<compile_context>
chip_gen: v5e
topology: v5e:2x2
jax: 0.10.0
libtpu: 0.0.40
codegen_flags: <defaults>
</compile_context>

<pallas_src>
import jax
import jax.numpy as jnp
from jax import lax
from jax.experimental import pallas as pl
from jax.experimental.pallas import tpu as pltpu


IMAGENET_MEAN = (0.485, 0.456, 0.406)
IMAGENET_STD = (0.229, 0.224, 0.225)

_VMEM = pl.BlockSpec(memory_space=pltpu.MemorySpace.VMEM)


# --------------------------------------------------------------------------
# Small in-kernel helpers
# --------------------------------------------------------------------------

def _elu(y):
    # torch.nn.ELU(alpha=1.0); exp goes to the EUP slot.
    return jnp.where(y > 0.0, y, jnp.exp(jnp.minimum(y, 0.0)) - 1.0)


def _sigmoid(y):
    # 1 / (1 + exp(-y)) with the divide on the EUP reciprocal path.
    return pl.reciprocal(1.0 + jnp.exp(-y), approx=True)


# --------------------------------------------------------------------------
# Auto-encoder kernels (single-shot matmul + fused epilogue)
# --------------------------------------------------------------------------

def _enc1_kernel(x_ref, w_ref, b_ref, o_ref):
    y = jnp.dot(x_ref[...], w_ref[...],
                preferred_element_type=jnp.float32) + b_ref[...]
    o_ref[...] = _elu(y).astype(o_ref.dtype)


def _enc23_kernel(x_ref, w2_ref, b2_ref, w3_ref, b3_ref, ps_ref, pb_ref,
                  sig_ref, norm_ref):
    # enc2 conv + ELU
    h = _elu(jnp.dot(x_ref[...], w2_ref[...],
                     preferred_element_type=jnp.float32) + b2_ref[...])
    # enc3 1x1 conv + sigmoid (its "im2col" is just enc2's output)
    z = jnp.dot(h.astype(jnp.bfloat16), w3_ref[...],
                preferred_element_type=jnp.float32) + b3_ref[...]
    s = _sigmoid(z)
    sig_ref[...] = s.astype(sig_ref.dtype)
    # ImageNet Normalize fused: sigmoid(z) * (1/std) + (-mean/std)
    norm_ref[...] = (s * ps_ref[...] + pb_ref[...]).astype(norm_ref.dtype)


def _dec1_kernel(x_ref, w_ref, b_ref, o_ref):
    y = jnp.dot(x_ref[...], w_ref[...],
                preferred_element_type=jnp.float32) + b_ref[...]
    # final sigmoid commutes with PixelShuffle (pure permutation) -> fused here.
    o_ref[...] = _sigmoid(y).astype(o_ref.dtype)


# --------------------------------------------------------------------------
# Fully fused ResNet-18 trunk kernel (stem + pool + 8 blocks + GAP + FC)
# --------------------------------------------------------------------------

def _make_trunk_kernel(B):
    """Trunk kernel specialised to: latent 8x8 -> stem 4x4 -> pool 2x2 ->
    layer1 2x2 -> layer2..4 1x1.  Only 2-D values (rows = (b, h, w),
    lanes = channels) are used in-kernel; no reshapes that split/merge the
    sublane dim are emitted (row slices + concatenates instead)."""
    f32 = jnp.float32
    bf16 = jnp.bfloat16

    def kernel(*refs):
        it = iter(refs[:-2])
        o_ref = refs[-2]
        pad2d = refs[-1]          # (B*4*4, 64) zero-padded 4x4 map, rows (b,ph,pw)
        nxt = lambda: next(it)

        def mm(x, w_ref, b_ref):
            return jnp.dot(x.astype(bf16), w_ref[...],
                           preferred_element_type=f32) + b_ref[...]

        # -------- stem: 7x7/s2/p3 conv (im2col done in XLA) + ReLU --------
        x_ref, w_ref, b_ref = nxt(), nxt(), nxt()
        y = jnp.maximum(
            jnp.dot(x_ref[...], w_ref[...], preferred_element_type=f32)
            + b_ref[...], 0.0)                      # (B*16, 64), rows (b, ih, iw)

        # -------- 3x3/s2/p1 max pool: 4x4 -> 2x2 (window clamping) --------
        pooled = []
        for b in range(B):
            for oh in range(2):
                hs, he = max(0, 2 * oh - 1), min(4, 2 * oh + 2)
                for ow in range(2):
                    ws, we = max(0, 2 * ow - 1), min(4, 2 * ow + 2)
                    win = None
                    for ih in range(hs, he):
                        r0 = b * 16 + ih * 4 + ws
                        seg = jnp.max(y[r0:r0 + (we - ws), :],
                                      axis=0, keepdims=True)
                        win = seg if win is None else jnp.maximum(win, seg)
                    pooled.append(win)
        x = jnp.concatenate(pooled, axis=0)          # (B*4, 64), rows (b, oh, ow)

        # -------- layer1: two basic blocks at 2x2 spatial (full 3x3/p1) -----
        def write_interior(v):                        # v: (B*4, C) rows (b,oh,ow)
            for b in range(B):
                for oh in range(2):
                    dst = b * 16 + (oh + 1) * 4 + 1
                    src = (b * 2 + oh) * 2
                    pad2d[dst:dst + 2, :] = v[src:src + 2, :]

        def conv3x3_2x2(w_ref, b_ref):
            rows = []
            for b in range(B):
                for oh in range(2):
                    pieces = [pad2d[b * 16 + (oh + i) * 4 + j:
                                    b * 16 + (oh + i) * 4 + j + 2, :]
                              for i in range(3) for j in range(3)]
                    rows.append(jnp.concatenate(pieces, axis=-1))   # (2, 9*64)
            xg = jnp.concatenate(rows, axis=0).astype(bf16)          # (B*4, 576)
            return jnp.dot(xg, w_ref[...],
                           preferred_element_type=f32) + b_ref[...]

        pad2d[...] = jnp.zeros_like(pad2d)           # zero border for conv pad
        for _ in range(2):
            w1, b1, w2, b2 = nxt(), nxt(), nxt(), nxt()
            write_interior(x)
            h = jnp.maximum(conv3x3_2x2(w1, b1), 0.0)
            write_interior(h)
            x = jnp.maximum(conv3x3_2x2(w2, b2) + x, 0.0)   # (B*4, 64)

        # -------- layer2 block0: 2x2 -> 1x1 (stride-2 conv1 + 1x1 downsample)
        w1, b1, wd, bd, w2, b2 = nxt(), nxt(), nxt(), nxt(), nxt(), nxt()
        xrows, drows = [], []
        for b in range(B):
            r = [x[b * 4 + k: b * 4 + k + 1, :] for k in range(4)]
            xrows.append(jnp.concatenate(r, axis=-1))    # (1, 4*64) all pixels
            drows.append(r[0])                           # top-left pixel
        xcat = jnp.concatenate(xrows, axis=0)            # (B, 256)
        xtl = jnp.concatenate(drows, axis=0)             # (B, 64)
        h = jnp.maximum(mm(xcat, w1, b1), 0.0)
        idn = mm(xtl, wd, bd)
        x = jnp.maximum(mm(h, w2, b2) + idn, 0.0)        # (B, 128)

        # -------- remaining blocks at 1x1 spatial (3x3 == centre tap) -------
        def block1x1(x, w1, b1, w2, b2, wd=None, bd=None):
            idn = x if wd is None else mm(x, wd, bd)
            h = jnp.maximum(mm(x, w1, b1), 0.0)
            return jnp.maximum(mm(h, w2, b2) + idn, 0.0)

        w1, b1, w2, b2 = nxt(), nxt(), nxt(), nxt()       # layer2 block1
        x = block1x1(x, w1, b1, w2, b2)
        for _ in range(2):                                # layer3, layer4
            w1, b1, wd, bd, w2, b2 = nxt(), nxt(), nxt(), nxt(), nxt(), nxt()
            x = block1x1(x, w1, b1, w2, b2, wd, bd)
            w1, b1, w2, b2 = nxt(), nxt(), nxt(), nxt()
            x = block1x1(x, w1, b1, w2, b2)

        # -------- GAP (1x1 spatial -> identity) + FC ------------------------
        fcw, fcb = nxt(), nxt()
        o_ref[...] = mm(x, fcw, fcb)                      # (B, num_classes) f32

    return kernel


# --------------------------------------------------------------------------
# XLA-side layout glue
# --------------------------------------------------------------------------

def _im2col(x, kh, kw, stride, pad):
    """NHWC -> (B*OH*OW, kh*kw*Cin) bf16, taps row-major, channels minor."""
    B, H, W, C = x.shape
    if pad > 0:
        x = jnp.pad(x, ((0, 0), (pad, pad), (pad, pad), (0, 0)))
    OH = (H + 2 * pad - kh) // stride + 1
    OW = (W + 2 * pad - kw) // stride + 1
    cols = []
    for i in range(kh):
        for j in range(kw):
            v = lax.slice(
                x, (0, i, j, 0),
                (B, i + stride * (OH - 1) + 1, j + stride * (OW - 1) + 1, C),
                (1, stride, stride, 1))
            cols.append(v.reshape(B * OH * OW, C))
    return jnp.concatenate(cols, axis=-1).astype(jnp.bfloat16), OH, OW


def pixel_shuffle_nhwc(x, r):
    """torch.nn.PixelShuffle(r) for NHWC (out channels = C // r^2)."""
    B, H, W, C = x.shape
    c = C // (r * r)
    x = x.reshape(B, H, W, c, r, r)
    x = jnp.transpose(x, (0, 1, 4, 2, 5, 3))
    return x.reshape(B, H * r, W * r, c)


# --------------------------------------------------------------------------
# Deterministic synthetic parameters (BN folded, matmul-ready bf16 weights)
# --------------------------------------------------------------------------

def _he_conv(key, kh, kw, cin, cout):
    return jax.random.normal(key, (kh, kw, cin, cout), jnp.float32) * jnp.sqrt(
        2.0 / (kh * kw * cin))


def _prep_conv(key, kh, kw, cin, cout, bn):
    if bn:
        kw_, k1, k2, k3, k4 = jax.random.split(key, 5)
        w = _he_conv(kw_, kh, kw, cin, cout)
        gamma = 1.0 + 0.1 * jax.random.normal(k1, (cout,), jnp.float32)
        beta = 0.1 * jax.random.normal(k2, (cout,), jnp.float32)
        mean = 0.1 * jax.random.normal(k3, (cout,), jnp.float32)
        var = 1.0 + 0.1 * jax.random.uniform(k4, (cout,), jnp.float32)
        scale = gamma / jnp.sqrt(var + 1e-5)               # eval-mode BN
        bias = beta - mean * scale
        w = w * scale                                      # fold BN scale into weights
    else:
        kw_, kb_ = jax.random.split(key)
        w = _he_conv(kw_, kh, kw, cin, cout)
        bias = 0.01 * jax.random.normal(kb_, (cout,), jnp.float32)
    return {"w": w.reshape(kh * kw * cin, cout).astype(jnp.bfloat16),
            "b": bias.reshape(1, cout).astype(jnp.float32)}


def init_autoencoder(key):
    k = jax.random.split(key, 4)
    return {"enc1": _prep_conv(k[0], 5, 5, 1, 32, bn=False),
            "enc2": _prep_conv(k[1], 5, 5, 32, 16, bn=False),
            "enc3": _prep_conv(k[2], 1, 1, 16, 3, bn=False),
            "dec1": _prep_conv(k[3], 3, 3, 3, 16, bn=False)}


def init_resnet18(key, num_classes):
    keys = iter(jax.random.split(key, 64))
    params = {"stem": _prep_conv(next(keys), 7, 7, 3, 64, bn=True)}
    cfg = [(64, 64, 1), (64, 128, 2), (128, 256, 2), (256, 512, 2)]
    layers = []
    for cin, cout, stride in cfg:
        blocks = []
        for bidx in range(2):
            s = stride if bidx == 0 else 1
            ci = cin if bidx == 0 else cout
            blk = {"conv1": _prep_conv(next(keys), 3, 3, ci, cout, bn=True),
                   "conv2": _prep_conv(next(keys), 3, 3, cout, cout, bn=True)}
            if s != 1 or ci != cout:
                blk["down"] = _prep_conv(next(keys), 1, 1, ci, cout, bn=True)
            blocks.append(blk)
        layers.append(blocks)
    params["layers"] = layers
    params["fc"] = {"w": (jax.random.normal(next(keys), (512, num_classes),
                                            jnp.float32)
                          / jnp.sqrt(512.0)).astype(jnp.bfloat16),
                    "b": jnp.zeros((1, num_classes), jnp.float32)}
    return params


def init_params(key, num_classes):
    kae, kcls = jax.random.split(key)
    return {"ae": init_autoencoder(kae),
            "resnet": init_resnet18(kcls, num_classes)}


# --------------------------------------------------------------------------
# Forward passes
# --------------------------------------------------------------------------

def autoencoder_forward(p, x, post_scale, post_bias):
    """x NHWC (B,H,W,1) f32 -> (normalized latent (B,H/4,W/4,3) bf16,
    decoder output (B,H,W,1) f32)."""
    B = x.shape[0]

    # enc1: 5x5/s2 + ELU
    x1, OH1, OW1 = _im2col(x, 5, 5, 2, 2)
    h1 = pl.pallas_call(
        _enc1_kernel,
        out_shape=jax.ShapeDtypeStruct((B * OH1 * OW1, 32), jnp.bfloat16),
        in_specs=[_VMEM] * 3, out_specs=_VMEM,
    )(x1, p["enc1"]["w"], p["enc1"]["b"])
    h1 = h1.reshape(B, OH1, OW1, 32)

    # enc2 (5x5/s2 + ELU) fused with enc3 (1x1 + sigmoid) and Normalize
    x2, OH2, OW2 = _im2col(h1, 5, 5, 2, 2)
    sig, norm = pl.pallas_call(
        _enc23_kernel,
        out_shape=(jax.ShapeDtypeStruct((B * OH2 * OW2, 3), jnp.bfloat16),
                   jax.ShapeDtypeStruct((B * OH2 * OW2, 3), jnp.bfloat16)),
        in_specs=[_VMEM] * 7, out_specs=(_VMEM, _VMEM),
    )(x2, p["enc2"]["w"], p["enc2"]["b"], p["enc3"]["w"], p["enc3"]["b"],
      post_scale, post_bias)
    sig = sig.reshape(B, OH2, OW2, 3)
    norm = norm.reshape(B, OH2, OW2, 3)

    # dec1: 3x3 conv + final sigmoid, then PixelShuffle(4) as a permutation
    x3, _, _ = _im2col(sig, 3, 3, 1, 1)
    d = pl.pallas_call(
        _dec1_kernel,
        out_shape=jax.ShapeDtypeStruct((B * OH2 * OW2, 16), jnp.float32),
        in_specs=[_VMEM] * 3, out_specs=_VMEM,
    )(x3, p["dec1"]["w"], p["dec1"]["b"])
    dec = pixel_shuffle_nhwc(d.reshape(B, OH2, OW2, 16), 4)
    return norm, dec


def resnet18_forward(p, latent):
    """latent: normalized NHWC (B, 8, 8, 3). Returns logits (B, num_classes)."""
    B, H, W, C = latent.shape
    # TODO(synk): the trunk kernel is specialised to the 8x8 latent (32x32 input)
    # spatial schedule (stem->4x4, pool->2x2, layer2+->1x1).
    assert (H, W, C) == (8, 8, 3), (H, W, C)
    num_classes = p["fc"]["w"].shape[1]

    stem_x, _, _ = _im2col(latent, 7, 7, 2, 3)            # (B*16, 147) bf16

    def tap_rows(w, cin, taps):
        # w: (9*cin, cout), rows tap-major / channel-minor.
        return jnp.concatenate([w[t * cin:(t + 1) * cin] for t in taps], axis=0)

    CENTER = (4,)            # centre tap of a 3x3 kernel (1x1 spatial input)
    BR2X2 = (4, 5, 7, 8)     # taps a stride-2 3x3/p1 conv touches on a 2x2 map

    args = [stem_x, p["stem"]["w"], p["stem"]["b"]]
    for blk in p["layers"][0]:                             # layer1: full 3x3
        args += [blk["conv1"]["w"], blk["conv1"]["b"],
                 blk["conv2"]["w"], blk["conv2"]["b"]]
    chans = [(64, 128), (128, 256), (256, 512)]
    for li, (ci, co) in enumerate(chans, start=1):
        b0, b1 = p["layers"][li]
        c1_taps = BR2X2 if li == 1 else CENTER
        args += [tap_rows(b0["conv1"]["w"], ci, c1_taps), b0["conv1"]["b"],
                 b0["down"]["w"], b0["down"]["b"],
                 tap_rows(b0["conv2"]["w"], co, CENTER), b0["conv2"]["b"],
                 tap_rows(b1["conv1"]["w"], co, CENTER), b1["conv1"]["b"],
                 tap_rows(b1["conv2"]["w"], co, CENTER), b1["conv2"]["b"]]
    args += [p["fc"]["w"], p["fc"]["b"]]

    return pl.pallas_call(
        _make_trunk_kernel(B),
        out_shape=jax.ShapeDtypeStruct((B, num_classes), jnp.float32),
        in_specs=[_VMEM] * len(args),
        out_specs=_VMEM,
        scratch_shapes=[pltpu.VMEM((B * 16, 64), jnp.float32)],
    )(*args)


def improved_ae_resnet18_forward(params, x_nchw):
    """x_nchw: (B, 1, H, W) float32. Returns (decoder_output NCHW, logits)."""
    x = jnp.transpose(x_nchw.astype(jnp.float32), (0, 2, 3, 1))    # NCHW -> NHWC
    mean = jnp.asarray(IMAGENET_MEAN, jnp.float32)
    std = jnp.asarray(IMAGENET_STD, jnp.float32)
    # torch's per-image .cuda() copy loop is semantically just Normalize():
    # Normalize(sigmoid(enc)) == sigmoid(enc) * (1/std) + (-mean/std)
    post_scale = (1.0 / std).reshape(1, 3)
    post_bias = (-mean / std).reshape(1, 3)
    latent, dec = autoencoder_forward(params["ae"], x, post_scale, post_bias)
    logits = resnet18_forward(params["resnet"], latent)
    dec_nchw = jnp.transpose(dec, (0, 3, 1, 2))                    # NHWC -> NCHW
    return dec_nchw, logits


# --------------------------------------------------------------------------
# Main
# --------------------------------------------------------------------------

if __name__ == "__main__":
    num_classes = 10
    key = jax.random.PRNGKey(0)
    kp, kx = jax.random.split(key)
    params = init_params(kp, num_classes)

    # batch=2, 1 channel, 32x32 image (consistent with the module)
    x = jax.random.uniform(kx, (2, 1, 32, 32), jnp.float32)

    fwd = jax.jit(improved_ae_resnet18_forward)
    decoder_output, logits = fwd(params, x)
    jax.block_until_ready((decoder_output, logits))

    assert decoder_output.shape == (2, 1, 32, 32), decoder_output.shape
    assert logits.shape == (2, num_classes), logits.shape
    assert bool(jnp.all(jnp.isfinite(decoder_output)))
    assert bool(jnp.all(jnp.isfinite(logits)))
    print("KERNEL_OK")
</pallas_src>

<mosaic_0001>
module attributes {stable_mosaic.version = 11 : i64} {
  func.func @_enc1_kernel(%arg0: memref<512x25xbf16, #tpu.memory_space<vmem>>, %arg1: memref<25x32xbf16, #tpu.memory_space<vmem>>, %arg2: memref<1x32xf32, #tpu.memory_space<vmem>>, %arg3: memref<512x32xbf16, #tpu.memory_space<vmem>>) attributes {dimension_semantics = [], scalar_prefetch = 0 : i64, scratch_operands = 0 : i64, tpu.core_type = #tpu.core_type<tc>} {
    %c0 = arith.constant 0 : index
    %c0_0 = arith.constant 0 : index
    %0 = vector.load %arg0[%c0, %c0_0] : memref<512x25xbf16, #tpu.memory_space<vmem>>, vector<512x25xbf16>
    %c0_1 = arith.constant 0 : index
    %c0_2 = arith.constant 0 : index
    %1 = vector.load %arg1[%c0_1, %c0_2] : memref<25x32xbf16, #tpu.memory_space<vmem>>, vector<25x32xbf16>
    %cst = arith.constant dense<0.000000e+00> : vector<512x32xf32>
    %2 = tpu.matmul %0, %1, %cst {dimension_numbers = #tpu.dot_dimension_numbers<[1], [0], [0], [1], [0, 0, 1, 1], [], []>} : vector<512x25xbf16>, vector<25x32xbf16>, vector<512x32xf32> -> vector<512x32xf32>
    %c0_3 = arith.constant 0 : index
    %c0_4 = arith.constant 0 : index
    %3 = vector.load %arg2[%c0_3, %c0_4] : memref<1x32xf32, #tpu.memory_space<vmem>>, vector<1x32xf32>
    %4 = vector.broadcast %3 : vector<1x32xf32> to vector<512x32xf32>
    %5 = arith.addf %2, %4 : vector<512x32xf32>
    %cst_5 = arith.constant 0.000000e+00 : f32
    %6 = vector.broadcast %cst_5 : f32 to vector<512x32xf32>
    %7 = arith.cmpf ogt, %5, %6 : vector<512x32xf32>
    %cst_6 = arith.constant 0.000000e+00 : f32
    %8 = vector.broadcast %cst_6 : f32 to vector<512x32xf32>
    %9 = arith.minimumf %5, %8 : vector<512x32xf32>
    %10 = math.exp %9 : vector<512x32xf32>
    %cst_7 = arith.constant 1.000000e+00 : f32
    %11 = vector.broadcast %cst_7 : f32 to vector<512x32xf32>
    %12 = arith.subf %10, %11 : vector<512x32xf32>
    %13 = arith.select %7, %5, %12 : vector<512x32xi1>, vector<512x32xf32>
    %14 = arith.truncf %13 : vector<512x32xf32> to vector<512x32xbf16>
    %c0_8 = arith.constant 0 : index
    %c0_9 = arith.constant 0 : index
    %15 = vector.load %arg3[%c0_8, %c0_9] : memref<512x32xbf16, #tpu.memory_space<vmem>>, vector<512x32xbf16>
    tpu.vector_store %arg3[%c0_8, %c0_9], %14 {strides = array<i32>} : memref<512x32xbf16, #tpu.memory_space<vmem>>, vector<512x32xbf16>,
    return
  }
}

module attributes {stable_mosaic.version = 11 : i64} {
  func.func @_enc23_kernel(%arg0: memref<128x800xbf16, #tpu.memory_space<vmem>>, %arg1: memref<800x16xbf16, #tpu.memory_space<vmem>>, %arg2: memref<1x16xf32, #tpu.memory_space<vmem>>, %arg3: memref<16x3xbf16, #tpu.memory_space<vmem>>, %arg4: memref<1x3xf32, #tpu.memory_space<vmem>>, %arg5: memref<1x3xf32, #tpu.memory_space<vmem>>, %arg6: memref<1x3xf32, #tpu.memory_space<vmem>>, %arg7: memref<128x3xbf16, #tpu.memory_space<vmem>>, %arg8: memref<128x3xbf16, #tpu.memory_space<vmem>>) attributes {dimension_semantics = [], scalar_prefetch = 0 : i64, scratch_operands = 0 : i64, tpu.core_type = #tpu.core_type<tc>} {
    %c0 = arith.constant 0 : index
    %c0_0 = arith.constant 0 : index
    %0 = vector.load %arg0[%c0, %c0_0] : memref<128x800xbf16, #tpu.memory_space<vmem>>, vector<128x800xbf16>
    %c0_1 = arith.constant 0 : index
    %c0_2 = arith.constant 0 : index
    %1 = vector.load %arg1[%c0_1, %c0_2] : memref<800x16xbf16, #tpu.memory_space<vmem>>, vector<800x16xbf16>
    %cst = arith.constant dense<0.000000e+00> : vector<128x16xf32>
    %2 = tpu.matmul %0, %1, %cst {dimension_numbers = #tpu.dot_dimension_numbers<[1], [0], [0], [1], [0, 0, 1, 1], [], []>} : vector<128x800xbf16>, vector<800x16xbf16>, vector<128x16xf32> -> vector<128x16xf32>
    %c0_3 = arith.constant 0 : index
    %c0_4 = arith.constant 0 : index
    %3 = vector.load %arg2[%c0_3, %c0_4] : memref<1x16xf32, #tpu.memory_space<vmem>>, vector<1x16xf32>
    %4 = vector.broadcast %3 : vector<1x16xf32> to vector<128x16xf32>
    %5 = arith.addf %2, %4 : vector<128x16xf32>
    %cst_5 = arith.constant 0.000000e+00 : f32
    %6 = vector.broadcast %cst_5 : f32 to vector<128x16xf32>
    %7 = arith.cmpf ogt, %5, %6 : vector<128x16xf32>
    %cst_6 = arith.constant 0.000000e+00 : f32
    %8 = vector.broadcast %cst_6 : f32 to vector<128x16xf32>
    %9 = arith.minimumf %5, %8 : vector<128x16xf32>
    %10 = math.exp %9 : vector<128x16xf32>
    %cst_7 = arith.constant 1.000000e+00 : f32
    %11 = vector.broadcast %cst_7 : f32 to vector<128x16xf32>
    %12 = arith.subf %10, %11 : vector<128x16xf32>
    %13 = arith.select %7, %5, %12 : vector<128x16xi1>, vector<128x16xf32>
    %14 = arith.truncf %13 : vector<128x16xf32> to vector<128x16xbf16>
    %c0_8 = arith.constant 0 : index
    %c0_9 = arith.constant 0 : index
    %15 = vector.load %arg3[%c0_8, %c0_9] : memref<16x3xbf16, #tpu.memory_space<vmem>>, vector<16x3xbf16>
    %cst_10 = arith.constant dense<0.000000e+00> : vector<128x3xf32>
    %16 = tpu.matmul %14, %15, %cst_10 {dimension_numbers = #tpu.dot_dimension_numbers<[1], [0], [0], [1], [0, 0, 1, 1], [], []>} : vector<128x16xbf16>, vector<16x3xbf16>, vector<128x3xf32> -> vector<128x3xf32>
    %c0_11 = arith.constant 0 : index
    %c0_12 = arith.constant 0 : index
    %17 = vector.load %arg4[%c0_11, %c0_12] : memref<1x3xf32, #tpu.memory_space<vmem>>, vector<1x3xf32>
    %18 = vector.broadcast %17 : vector<1x3xf32> to vector<128x3xf32>
    %19 = arith.addf %16, %18 : vector<128x3xf32>
    %cst_13 = arith.constant 0.000000e+00 : f32
    %20 = vector.broadcast %cst_13 : f32 to vector<128x3xf32>
    %21 = arith.subf %20, %19 : vector<128x3xf32>
    %22 = math.exp %21 : vector<128x3xf32>
    %cst_14 = arith.constant 1.000000e+00 : f32
    %23 = vector.broadcast %cst_14 : f32 to vector<128x3xf32>
    %24 = arith.addf %23, %22 : vector<128x3xf32>
    %25 = tpu.reciprocal %24 {approx = true} : vector<128x3xf32> -> vector<128x3xf32>
    %26 = arith.truncf %25 : vector<128x3xf32> to vector<128x3xbf16>
    %c0_15 = arith.constant 0 : index
    %c0_16 = arith.constant 0 : index
    %27 = vector.load %arg7[%c0_15, %c0_16] : memref<128x3xbf16, #tpu.memory_space<vmem>>, vector<128x3xbf16>
    tpu.vector_store %arg7[%c0_15, %c0_16], %26 {strides = array<i32>} : memref<128x3xbf16, #tpu.memory_space<vmem>>, vector<128x3xbf16>,
    %c0_17 = arith.constant 0 : index
    %c0_18 = arith.constant 0 : index
    %28 = vector.load %arg5[%c0_17, %c0_18] : memref<1x3xf32, #tpu.memory_space<vmem>>, vector<1x3xf32>
    %29 = vector.broadcast %28 : vector<1x3xf32> to vector<128x3xf32>
    %30 = arith.mulf %25, %29 : vector<128x3xf32>
    %c0_19 = arith.constant 0 : index
    %c0_20 = arith.constant 0 : index
    %31 = vector.load %arg6[%c0_19, %c0_20] : memref<1x3xf32, #tpu.memory_space<vmem>>, vector<1x3xf32>
    %32 = vector.broadcast %31 : vector<1x3xf32> to vector<128x3xf32>
    %33 = arith.addf %30, %32 : vector<128x3xf32>
    %34 = arith.truncf %33 : vector<128x3xf32> to vector<128x3xbf16>
    %c0_21 = arith.constant 0 : index
    %c0_22 = arith.constant 0 : index
    %35 = vector.load %arg8[%c0_21, %c0_22] : memref<128x3xbf16, #tpu.memory_space<vmem>>, vector<128x3xbf16>
    tpu.vector_store %arg8[%c0_21, %c0_22], %34 {strides = array<i32>} : memref<128x3xbf16, #tpu.memory_space<vmem>>, vector<128x3xbf16>,
    return
  }
}

module attributes {stable_mosaic.version = 11 : i64} {
  func.func @_dec1_kernel(%arg0: memref<128x27xbf16, #tpu.memory_space<vmem>>, %arg1: memref<27x16xbf16, #tpu.memory_space<vmem>>, %arg2: memref<1x16xf32, #tpu.memory_space<vmem>>, %arg3: memref<128x16xf32, #tpu.memory_space<vmem>>) attributes {dimension_semantics = [], scalar_prefetch = 0 : i64, scratch_operands = 0 : i64, tpu.core_type = #tpu.core_type<tc>} {
    %c0 = arith.constant 0 : index
    %c0_0 = arith.constant 0 : index
    %0 = vector.load %arg0[%c0, %c0_0] : memref<128x27xbf16, #tpu.memory_space<vmem>>, vector<128x27xbf16>
    %c0_1 = arith.constant 0 : index
    %c0_2 = arith.constant 0 : index
    %1 = vector.load %arg1[%c0_1, %c0_2] : memref<27x16xbf16, #tpu.memory_space<vmem>>, vector<27x16xbf16>
    %cst = arith.constant dense<0.000000e+00> : vector<128x16xf32>
    %2 = tpu.matmul %0, %1, %cst {dimension_numbers = #tpu.dot_dimension_numbers<[1], [0], [0], [1], [0, 0, 1, 1], [], []>} : vector<128x27xbf16>, vector<27x16xbf16>, vector<128x16xf32> -> vector<128x16xf32>
    %c0_3 = arith.constant 0 : index
    %c0_4 = arith.constant 0 : index
    %3 = vector.load %arg2[%c0_3, %c0_4] : memref<1x16xf32, #tpu.memory_space<vmem>>, vector<1x16xf32>
    %4 = vector.broadcast %3 : vector<1x16xf32> to vector<128x16xf32>
    %5 = arith.addf %2, %4 : vector<128x16xf32>
    %cst_5 = arith.constant 0.000000e+00 : f32
    %6 = vector.broadcast %cst_5 : f32 to vector<128x16xf32>
    %7 = arith.subf %6, %5 : vector<128x16xf32>
    %8 = math.exp %7 : vector<128x16xf32>
    %cst_6 = arith.constant 1.000000e+00 : f32
    %9 = vector.broadcast %cst_6 : f32 to vector<128x16xf32>
    %10 = arith.addf %9, %8 : vector<128x16xf32>
    %11 = tpu.reciprocal %10 {approx = true} : vector<128x16xf32> -> vector<128x16xf32>
    %c0_7 = arith.constant 0 : index
    %c0_8 = arith.constant 0 : index
    %12 = vector.load %arg3[%c0_7, %c0_8] : memref<128x16xf32, #tpu.memory_space<vmem>>, vector<128x16xf32>
    tpu.vector_store %arg3[%c0_7, %c0_8], %11 {strides = array<i32>} : memref<128x16xf32, #tpu.memory_space<vmem>>, vector<128x16xf32>,
    return
  }
}

module attributes {stable_mosaic.version = 11 : i64} {
  func.func @kernel(%arg0: memref<32x147xbf16, #tpu.memory_space<vmem>>, %arg1: memref<147x64xbf16, #tpu.memory_space<vmem>>, %arg2: memref<1x64xf32, #tpu.memory_space<vmem>>, %arg3: memref<576x64xbf16, #tpu.memory_space<vmem>>, %arg4: memref<1x64xf32, #tpu.memory_space<vmem>>, %arg5: memref<576x64xbf16, #tpu.memory_space<vmem>>, %arg6: memref<1x64xf32, #tpu.memory_space<vmem>>, %arg7: memref<576x64xbf16, #tpu.memory_space<vmem>>, %arg8: memref<1x64xf32, #tpu.memory_space<vmem>>, %arg9: memref<576x64xbf16, #tpu.memory_space<vmem>>, %arg10: memref<1x64xf32, #tpu.memory_space<vmem>>, %arg11: memref<256x128xbf16, #tpu.memory_space<vmem>>, %arg12: memref<1x128xf32, #tpu.memory_space<vmem>>, %arg13: memref<64x128xbf16, #tpu.memory_space<vmem>>, %arg14: memref<1x128xf32, #tpu.memory_space<vmem>>, %arg15: memref<128x128xbf16, #tpu.memory_space<vmem>>, %arg16: memref<1x128xf32, #tpu.memory_space<vmem>>, %arg17: memref<128x128xbf16, #tpu.memory_space<vmem>>, %arg18: memref<1x128xf32, #tpu.memory_space<vmem>>, %arg19: memref<128x128xbf16, #tpu.memory_space<vmem>>, %arg20: memref<1x128xf32, #tpu.memory_space<vmem>>, %arg21: memref<128x256xbf16, #tpu.memory_space<vmem>>, %arg22: memref<1x256xf32, #tpu.memory_space<vmem>>, %arg23: memref<128x256xbf16, #tpu.memory_space<vmem>>, %arg24: memref<1x256xf32, #tpu.memory_space<vmem>>, %arg25: memref<256x256xbf16, #tpu.memory_space<vmem>>, %arg26: memref<1x256xf32, #tpu.memory_space<vmem>>, %arg27: memref<256x256xbf16, #tpu.memory_space<vmem>>, %arg28: memref<1x256xf32, #tpu.memory_space<vmem>>, %arg29: memref<256x256xbf16, #tpu.memory_space<vmem>>, %arg30: memref<1x256xf32, #tpu.memory_space<vmem>>, %arg31: memref<256x512xbf16, #tpu.memory_space<vmem>>, %arg32: memref<1x512xf32, #tpu.memory_space<vmem>>, %arg33: memref<256x512xbf16, #tpu.memory_space<vmem>>, %arg34: memref<1x512xf32, #tpu.memory_space<vmem>>, %arg35: memref<512x512xbf16, #tpu.memory_space<vmem>>, %arg36: memref<1x512xf32, #tpu.memory_space<vmem>>, %arg37: memref<512x512xbf16, #tpu.memory_space<vmem>>, %arg38: memref<1x512xf32, #tpu.memory_space<vmem>>, %arg39: memref<512x512xbf16, #tpu.memory_space<vmem>>, %arg40: memref<1x512xf32, #tpu.memory_space<vmem>>, %arg41: memref<512x10xbf16, #tpu.memory_space<vmem>>, %arg42: memref<1x10xf32, #tpu.memory_space<vmem>>, %arg43: memref<2x10xf32, #tpu.memory_space<vmem>>, %arg44: memref<32x64xf32, #tpu.memory_space<vmem>>) attributes {dimension_semantics = [], scalar_prefetch = 0 : i64, scratch_operands = 1 : i64, tpu.core_type = #tpu.core_type<tc>} {
    %c0 = arith.constant 0 : index
    %c0_0 = arith.constant 0 : index
    %0 = vector.load %arg0[%c0, %c0_0] : memref<32x147xbf16, #tpu.memory_space<vmem>>, vector<32x147xbf16>
    %c0_1 = arith.constant 0 : index
    %c0_2 = arith.constant 0 : index
    %1 = vector.load %arg1[%c0_1, %c0_2] : memref<147x64xbf16, #tpu.memory_space<vmem>>, vector<147x64xbf16>
    %cst = arith.constant dense<0.000000e+00> : vector<32x64xf32>
    %2 = tpu.matmul %0, %1, %cst {dimension_numbers = #tpu.dot_dimension_numbers<[1], [0], [0], [1], [0, 0, 1, 1], [], []>} : vector<32x147xbf16>, vector<147x64xbf16>, vector<32x64xf32> -> vector<32x64xf32>
    %c0_3 = arith.constant 0 : index
    %c0_4 = arith.constant 0 : index
    %3 = vector.load %arg2[%c0_3, %c0_4] : memref<1x64xf32, #tpu.memory_space<vmem>>, vector<1x64xf32>
    %4 = vector.broadcast %3 : vector<1x64xf32> to vector<32x64xf32>
    %5 = arith.addf %2, %4 : vector<32x64xf32>
    %cst_5 = arith.constant 0.000000e+00 : f32
    %6 = vector.broadcast %cst_5 : f32 to vector<32x64xf32>
    %7 = arith.maximumf %5, %6 : vector<32x64xf32>
    %8 = vector.extract_strided_slice %7 {offsets = [0, 0], sizes = [2, 64], strides = [1, 1]} : vector<32x64xf32> to vector<2x64xf32>
    %cst_6 = arith.constant dense<0xFF800000> : vector<64xf32>
    %9 = vector.multi_reduction <maximumf>, %8, %cst_6 [0] : vector<2x64xf32> to vector<64xf32>
    %10 = vector.shape_cast %9 : vector<64xf32> to vector<1x64xf32>
    %11 = vector.extract_strided_slice %7 {offsets = [4, 0], sizes = [2, 64], strides = [1, 1]} : vector<32x64xf32> to vector<2x64xf32>
    %cst_7 = arith.constant dense<0xFF800000> : vector<64xf32>
    %12 = vector.multi_reduction <maximumf>, %11, %cst_7 [0] : vector<2x64xf32> to vector<64xf32>
    %13 = vector.shape_cast %12 : vector<64xf32> to vector<1x64xf32>
    %14 = arith.maximumf %10, %13 : vector<1x64xf32>
    %15 = vector.extract_strided_slice %7 {offsets = [1, 0], sizes = [3, 64], strides = [1, 1]} : vector<32x64xf32> to vector<3x64xf32>
    %cst_8 = arith.constant dense<0xFF800000> : vector<64xf32>
    %16 = vector.multi_reduction <maximumf>, %15, %cst_8 [0] : vector<3x64xf32> to vector<64xf32>
    %17 = vector.shape_cast %16 : vector<64xf32> to vector<1x64xf32>
    %18 = vector.extract_strided_slice %7 {offsets = [5, 0], sizes = [3, 64], strides = [1, 1]} : vector<32x64xf32> to vector<3x64xf32>
    %cst_9 = arith.constant dense<0xFF800000> : vector<64xf32>
    %19 = vector.multi_reduction <maximumf>, %18, %cst_9 [0] : vector<3x64xf32> to vector<64xf32>
    %20 = vector.shape_cast %19 : vector<64xf32> to vector<1x64xf32>
    %21 = arith.maximumf %17, %20 : vector<1x64xf32>
    %22 = vector.extract_strided_slice %7 {offsets = [4, 0], sizes = [2, 64], strides = [1, 1]} : vector<32x64xf32> to vector<2x64xf32>
    %cst_10 = arith.constant dense<0xFF800000> : vector<64xf32>
    %23 = vector.multi_reduction <maximumf>, %22, %cst_10 [0] : vector<2x64xf32> to vector<64xf32>
    %24 = vector.shape_cast %23 : vector<64xf32> to vector<1x64xf32>
    %25 = vector.extract_strided_slice %7 {offsets = [8, 0], sizes = [2, 64], strides = [1, 1]} : vector<32x64xf32> to vector<2x64xf32>
    %cst_11 = arith.constant dense<0xFF800000> : vector<64xf32>
    %26 = vector.multi_reduction <maximumf>, %25, %cst_11 [0] : vector<2x64xf32> to vector<64xf32>
    %27 = vector.shape_cast %26 : vector<64xf32> to vector<1x64xf32>
    %28 = arith.maximumf %24, %27 : vector<1x64xf32>
    %29 = vector.extract_strided_slice %7 {offsets = [12, 0], sizes = [2, 64], strides = [1, 1]} : vector<32x64xf32> to vector<2x64xf32>
    %cst_12 = arith.constant dense<0xFF800000> : vector<64xf32>
    %30 = vector.multi_reduction <maximumf>, %29, %cst_12 [0] : vector<2x64xf32> to vector<64xf32>
    %31 = vector.shape_cast %30 : vector<64xf32> to vector<1x64xf32>
    %32 = arith.maximumf %28, %31 : vector<1x64xf32>
    %33 = vector.extract_strided_slice %7 {offsets = [5, 0], sizes = [3, 64], strides = [1, 1]} : vector<32x64xf32> to vector<3x64xf32>
    %cst_13 = arith.constant dense<0xFF800000> : vector<64xf32>
    %34 = vector.multi_reduction <maximumf>, %33, %cst_13 [0] : vector<3x64xf32> to vector<64xf32>
    %35 = vector.shape_cast %34 : vector<64xf32> to vector<1x64xf32>
    %36 = vector.extract_strided_slice %7 {offsets = [9, 0], sizes = [3, 64], strides = [1, 1]} : vector<32x64xf32> to vector<3x64xf32>
    %cst_14 = arith.constant dense<0xFF800000> : vector<64xf32>
    %37 = vector.multi_reduction <maximumf>, %36, %cst_14 [0] : vector<3x64xf32> to vector<64xf32>
    %38 = vector.shape_cast %37 : vector<64xf32> to vector<1x64xf32>
    %39 = arith.maximumf %35, %38 : vector<1x64xf32>
    %40 = vector.extract_strided_slice %7 {offsets = [13, 0], sizes = [3, 64], strides = [1, 1]} : vector<32x64xf32> to vector<3x64xf32>
    %cst_15 = arith.constant dense<0xFF800000> : vector<64xf32>
    %41 = vector.multi_reduction <maximumf>, %40, %cst_15 [0] : vector<3x64xf32> to vector<64xf32>
    %42 = vector.shape_cast %41 : vector<64xf32> to vector<1x64xf32>
    %43 = arith.maximumf %39, %42 : vector<1x64xf32>
    %44 = vector.extract_strided_slice %7 {offsets = [16, 0], sizes = [2, 64], strides = [1, 1]} : vector<32x64xf32> to vector<2x64xf32>
    %cst_16 = arith.constant dense<0xFF800000> : vector<64xf32>
    %45 = vector.multi_reduction <maximumf>, %44, %cst_16 [0] : vector<2x64xf32> to vector<64xf32>
    %46 = vector.shape_cast %45 : vector<64xf32> to vector<1x64xf32>
    %47 = vector.extract_strided_slice %7 {offsets = [20, 0], sizes = [2, 64], strides = [1, 1]} : vector<32x64xf32> to vector<2x64xf32>
    %cst_17 = arith.constant dense<0xFF800000> : vector<64xf32>
    %48 = vector.multi_reduction <maximumf>, %47, %cst_17 [0] : vector<2x64xf32> to vector<64xf32>
    %49 = vector.shape_cast %48 : vector<64xf32> to vector<1x64xf32>
    %50 = arith.maximumf %46, %49 : vector<1x64xf32>
    %51 = vector.extract_strided_slice %7 {offsets = [17, 0], sizes = [3, 64], strides = [1, 1]} : vector<32x64xf32> to vector<3x64xf32>
    %cst_18 = arith.constant dense<0xFF800000> : vector<64xf32>
    %52 = vector.multi_reduction <maximumf>, %51, %cst_18 [0] : vector<3x64xf32> to vector<64xf32>
    %53 = vector.shape_cast %52 : vector<64xf32> to vector<1x64xf32>
    %54 = vector.extract_strided_slice %7 {offsets = [21, 0], sizes = [3, 64], strides = [1, 1]} : vector<32x64xf32> to vector<3x64xf32>
    %cst_19 = arith.constant dense<0xFF800000> : vector<64xf32>
    %55 = vector.multi_reduction <maximumf>, %54, %cst_19 [0] : vector<3x64xf32> to vector<64xf32>
    %56 = vector.shape_cast %55 : vector<64xf32> to vector<1x64xf32>
    %57 = arith.maximumf %53, %56 : vector<1x64xf32>
    %58 = vector.extract_strided_slice %7 {offsets = [20, 0], sizes = [2, 64], strides = [1, 1]} : vector<32x64xf32> to vector<2x64xf32>
    %cst_20 = arith.constant dense<0xFF800000> : vector<64xf32>
    %59 = vector.multi_reduction <maximumf>, %58, %cst_20 [0] : vector<2x64xf32> to vector<64xf32>
    %60 = vector.shape_cast %59 : vector<64xf32> to vector<1x64xf32>
    %61 = vector.extract_strided_slice %7 {offsets = [24, 0], sizes = [2, 64], strides = [1, 1]} : vector<32x64xf32> to vector<2x64xf32>
    %cst_21 = arith.constant dense<0xFF800000> : vector<64xf32>
    %62 = vector.multi_reduction <maximumf>, %61, %cst_21 [0] : vector<2x64xf32> to vector<64xf32>
    %63 = vector.shape_cast %62 : vector<64xf32> to vector<1x64xf32>
    %64 = arith.maximumf %60, %63 : vector<1x64xf32>
    %65 = vector.extract_strided_slice %7 {offsets = [28, 0], sizes = [2, 64], strides = [1, 1]} : vector<32x64xf32> to vector<2x64xf32>
    %cst_22 = arith.constant dense<0xFF800000> : vector<64xf32>
    %66 = vector.multi_reduction <maximumf>, %65, %cst_22 [0] : vector<2x64xf32> to vector<64xf32>
    %67 = vector.shape_cast %66 : vector<64xf32> to vector<1x64xf32>
    %68 = arith.maximumf %64, %67 : vector<1x64xf32>
    %69 = vector.extract_strided_slice %7 {offsets = [21, 0], sizes = [3, 64], strides = [1, 1]} : vector<32x64xf32> to vector<3x64xf32>
    %cst_23 = arith.constant dense<0xFF800000> : vector<64xf32>
    %70 = vector.multi_reduction <maximumf>, %69, %cst_23 [0] : vector<3x64xf32> to vector<64xf32>
    %71 = vector.shape_cast %70 : vector<64xf32> to vector<1x64xf32>
    %72 = vector.extract_strided_slice %7 {offsets = [25, 0], sizes = [3, 64], strides = [1, 1]} : vector<32x64xf32> to vector<3x64xf32>
    %cst_24 = arith.constant dense<0xFF800000> : vector<64xf32>
    %73 = vector.multi_reduction <maximumf>, %72, %cst_24 [0] : vector<3x64xf32> to vector<64xf32>
    %74 = vector.shape_cast %73 : vector<64xf32> to vector<1x64xf32>
    %75 = arith.maximumf %71, %74 : vector<1x64xf32>
    %76 = vector.extract_strided_slice %7 {offsets = [29, 0], sizes = [3, 64], strides = [1, 1]} : vector<32x64xf32> to vector<3x64xf32>
    %cst_25 = arith.constant dense<0xFF800000> : vector<64xf32>
    %77 = vector.multi_reduction <maximumf>, %76, %cst_25 [0] : vector<3x64xf32> to vector<64xf32>
    %78 = vector.shape_cast %77 : vector<64xf32> to vector<1x64xf32>
    %79 = arith.maximumf %75, %78 : vector<1x64xf32>
    %80 = tpu.concatenate %14, %21, %32, %43, %50, %57, %68, %79 in 0 : vector<1x64xf32>, vector<1x64xf32>, vector<1x64xf32>, vector<1x64xf32>, vector<1x64xf32>, vector<1x64xf32>, vector<1x64xf32>, vector<1x64xf32> -> vector<8x64xf32>
    %cst_26 = arith.constant 0.000000e+00 : f32
    %81 = vector.broadcast %cst_26 : f32 to vector<32x64xf32>
    %c0_27 = arith.constant 0 : index
    %c0_28 = arith.constant 0 : index
    %82 = vector.load %arg44[%c0_27, %c0_28] : memref<32x64xf32, #tpu.memory_space<vmem>>, vector<32x64xf32>
    tpu.vector_store %arg44[%c0_27, %c0_28], %81 {strides = array<i32>} : memref<32x64xf32, #tpu.memory_space<vmem>>, vector<32x64xf32>,
    %83 = vector.extract_strided_slice %80 {offsets = [0, 0], sizes = [2, 64], strides = [1, 1]} : vector<8x64xf32> to vector<2x64xf32>
    %c5 = arith.constant 5 : index
    %c0_29 = arith.constant 0 : index
    %84 = vector.load %arg44[%c5, %c0_29] : memref<32x64xf32, #tpu.memory_space<vmem>>, vector<2x64xf32>
    tpu.vector_store %arg44[%c5, %c0_29], %83 {strides = array<i32>} : memref<32x64xf32, #tpu.memory_space<vmem>>, vector<2x64xf32>,
    %85 = vector.extract_strided_slice %80 {offsets = [2, 0], sizes = [2, 64], strides = [1, 1]} : vector<8x64xf32> to vector<2x64xf32>
    %c9 = arith.constant 9 : index
    %c0_30 = arith.constant 0 : index
    %86 = vector.load %arg44[%c9, %c0_30] : memref<32x64xf32, #tpu.memory_space<vmem>>, vector<2x64xf32>
    tpu.vector_store %arg44[%c9, %c0_30], %85 {strides = array<i32>} : memref<32x64xf32, #tpu.memory_space<vmem>>, vector<2x64xf32>,
    %87 = vector.extract_strided_slice %80 {offsets = [4, 0], sizes = [2, 64], strides = [1, 1]} : vector<8x64xf32> to vector<2x64xf32>
    %c21 = arith.constant 21 : index
    %c0_31 = arith.constant 0 : index
    %88 = vector.load %arg44[%c21, %c0_31] : memref<32x64xf32, #tpu.memory_space<vmem>>, vector<2x64xf32>
    tpu.vector_store %arg44[%c21, %c0_31], %87 {strides = array<i32>} : memref<32x64xf32, #tpu.memory_space<vmem>>, vector<2x64xf32>,
    %89 = vector.extract_strided_slice %80 {offsets = [6, 0], sizes = [2, 64], strides = [1, 1]} : vector<8x64xf32> to vector<2x64xf32>
    %c25 = arith.constant 25 : index
    %c0_32 = arith.constant 0 : index
    %90 = vector.load %arg44[%c25, %c0_32] : memref<32x64xf32, #tpu.memory_space<vmem>>, vector<2x64xf32>
    tpu.vector_store %arg44[%c25, %c0_32], %89 {strides = array<i32>} : memref<32x64xf32, #tpu.memory_space<vmem>>, vector<2x64xf32>,
    %c0_33 = arith.constant 0 : index
    %c0_34 = arith.constant 0 : index
    %91 = vector.load %arg44[%c0_33, %c0_34] : memref<32x64xf32, #tpu.memory_space<vmem>>, vector<2x64xf32>
    %c1 = arith.constant 1 : index
    %c0_35 = arith.constant 0 : index
    %92 = vector.load %arg44[%c1, %c0_35] : memref<32x64xf32, #tpu.memory_space<vmem>>, vector<2x64xf32>
    %c2 = arith.constant 2 : index
    %c0_36 = arith.constant 0 : index
    %93 = vector.load %arg44[%c2, %c0_36] : memref<32x64xf32, #tpu.memory_space<vmem>>, vector<2x64xf32>
    %c4 = arith.constant 4 : index
    %c0_37 = arith.constant 0 : index
    %94 = vector.load %arg44[%c4, %c0_37] : memref<32x64xf32, #tpu.memory_space<vmem>>, vector<2x64xf32>
    %c5_38 = arith.constant 5 : index
    %c0_39 = arith.constant 0 : index
    %95 = vector.load %arg44[%c5_38, %c0_39] : memref<32x64xf32, #tpu.memory_space<vmem>>, vector<2x64xf32>
    %c6 = arith.constant 6 : index
    %c0_40 = arith.constant 0 : index
    %96 = vector.load %arg44[%c6, %c0_40] : memref<32x64xf32, #tpu.memory_space<vmem>>, vector<2x64xf32>
    %c8 = arith.constant 8 : index
    %c0_41 = arith.constant 0 : index
    %97 = vector.load %arg44[%c8, %c0_41] : memref<32x64xf32, #tpu.memory_space<vmem>>, vector<2x64xf32>
    %c9_42 = arith.constant 9 : index
    %c0_43 = arith.constant 0 : index
    %98 = vector.load %arg44[%c9_42, %c0_43] : memref<32x64xf32, #tpu.memory_space<vmem>>, vector<2x64xf32>
    %c10 = arith.constant 10 : index
    %c0_44 = arith.constant 0 : index
    %99 = vector.load %arg44[%c10, %c0_44] : memref<32x64xf32, #tpu.memory_space<vmem>>, vector<2x64xf32>
    %100 = tpu.concatenate %91, %92, %93, %94, %95, %96, %97, %98, %99 in 1 : vector<2x64xf32>, vector<2x64xf32>, vector<2x64xf32>, vector<2x64xf32>, vector<2x64xf32>, vector<2x64xf32>, vector<2x64xf32>, vector<2x64xf32>, vector<2x64xf32> -> vector<2x576xf32>
    %c4_45 = arith.constant 4 : index
    %c0_46 = arith.constant 0 : index
    %101 = vector.load %arg44[%c4_45, %c0_46] : memref<32x64xf32, #tpu.memory_space<vmem>>, vector<2x64xf32>
    %c5_47 = arith.constant 5 : index
    %c0_48 = arith.constant 0 : index
    %102 = vector.load %arg44[%c5_47, %c0_48] : memref<32x64xf32, #tpu.memory_space<vmem>>, vector<2x64xf32>
    %c6_49 = arith.constant 6 : index
    %c0_50 = arith.constant 0 : index
    %103 = vector.load %arg44[%c6_49, %c0_50] : memref<32x64xf32, #tpu.memory_space<vmem>>, vector<2x64xf32>
    %c8_51 = arith.constant 8 : index
    %c0_52 = arith.constant 0 : index
    %104 = vector.load %arg44[%c8_51, %c0_52] : memref<32x64xf32, #tpu.memory_space<vmem>>, vector<2x64xf32>
    %c9_53 = arith.constant 9 : index
    %c0_54 = arith.constant 0 : index
    %105 = vector.load %arg44[%c9_53, %c0_54] : memref<32x64xf32, #tpu.memory_space<vmem>>, vector<2x64xf32>
    %c10_55 = arith.constant 10 : index
    %c0_56 = arith.constant 0 : index
    %106 = vector.load %arg44[%c10_55, %c0_56] : memref<32x64xf32, #tpu.memory_space<vmem>>, vector<2x64xf32>
    %c12 = arith.constant 12 : index
    %c0_57 = arith.constant 0 : index
    %107 = vector.load %arg44[%c12, %c0_57] : memref<32x64xf32, #tpu.memory_space<vmem>>, vector<2x64xf32>
    %c13 = arith.constant 13 : index
    %c0_58 = arith.constant 0 : index
    %108 = vector.load %arg44[%c13, %c0_58] : memref<32x64xf32, #tpu.memory_space<vmem>>, vector<2x64xf32>
    %c14 = arith.constant 14 : index
    %c0_59 = arith.constant 0 : index
    %109 = vector.load %arg44[%c14, %c0_59] : memref<32x64xf32, #tpu.memory_space<vmem>>, vector<2x64xf32>
    %110 = tpu.concatenate %101, %102, %103, %104, %105, %106, %107, %108, %109 in 1 : vector<2x64xf32>, vector<2x64xf32>, vector<2x64xf32>, vector<2x64xf32>, vector<2x64xf32>, vector<2x64xf32>, vector<2x64xf32>, vector<2x64xf32>, vector<2x64xf32> -> vector<2x576xf32>
    %c16 = arith.constant 16 : index
    %c0_60 = arith.constant 0 : index
    %111 = vector.load %arg44[%c16, %c0_60] : memref<32x64xf32, #tpu.memory_space<vmem>>, vector<2x64xf32>
    %c17 = arith.constant 17 : index
    %c0_61 = arith.constant 0 : index
    %112 = vector.load %arg44[%c17, %c0_61] : memref<32x64xf32, #tpu.memory_space<vmem>>, vector<2x64xf32>
    %c18 = arith.constant 18 : index
    %c0_62 = arith.constant 0 : index
    %113 = vector.load %arg44[%c18, %c0_62] : memref<32x64xf32, #tpu.memory_space<vmem>>, vector<2x64xf32>
    %c20 = arith.constant 20 : index
    %c0_63 = arith.constant 0 : index
    %114 = vector.load %arg44[%c20, %c0_63] : memref<32x64xf32, #tpu.memory_space<vmem>>, vector<2x64xf32>
    %c21_64 = arith.constant 21 : index
    %c0_65 = arith.constant 0 : index
    %115 = vector.load %arg44[%c21_64, %c0_65] : memref<32x64xf32, #tpu.memory_space<vmem>>, vector<2x64xf32>
    %c22 = arith.constant 22 : index
    %c0_66 = arith.constant 0 : index
    %116 = vector.load %arg44[%c22, %c0_66] : memref<32x64xf32, #tpu.memory_space<vmem>>, vector<2x64xf32>
    %c24 = arith.constant 24 : index
    %c0_67 = arith.constant 0 : index
    %117 = vector.load %arg44[%c24, %c0_67] : memref<32x64xf32, #tpu.memory_space<vmem>>, vector<2x64xf32>
    %c25_68 = arith.constant 25 : index
    %c0_69 = arith.constant 0 : index
    %118 = vector.load %arg44[%c25_68, %c0_69] : memref<32x64xf32, #tpu.memory_space<vmem>>, vector<2x64xf32>
    %c26 = arith.constant 26 : index
    %c0_70 = arith.constant 0 : index
    %119 = vector.load %arg44[%c26, %c0_70] : memref<32x64xf32, #tpu.memory_space<vmem>>, vector<2x64xf32>
    %120 = tpu.concatenate %111, %112, %113, %114, %115, %116, %117, %118, %119 in 1 : vector<2x64xf32>, vector<2x64xf32>, vector<2x64xf32>, vector<2x64xf32>, vector<2x64xf32>, vector<2x64xf32>, vector<2x64xf32>, vector<2x64xf32>, vector<2x64xf32> -> vector<2x576xf32>
    %c20_71 = arith.constant 20 : index
    %c0_72 = arith.constant 0 : index
    %121 = vector.load %arg44[%c20_71, %c0_72] : memref<32x64xf32, #tpu.memory_space<vmem>>, vector<2x64xf32>
    %c21_73 = arith.constant 21 : index
    %c0_74 = arith.constant 0 : index
    %122 = vector.load %arg44[%c21_73, %c0_74] : memref<32x64xf32, #tpu.memory_space<vmem>>, vector<2x64xf32>
    %c22_75 = arith.constant 22 : index
    %c0_76 = arith.constant 0 : index
    %123 = vector.load %arg44[%c22_75, %c0_76] : memref<32x64xf32, #tpu.memory_space<vmem>>, vector<2x64xf32>
    %c24_77 = arith.constant 24 : index
    %c0_78 = arith.constant 0 : index
    %124 = vector.load %arg44[%c24_77, %c0_78] : memref<32x64xf32, #tpu.memory_space<vmem>>, vector<2x64xf32>
    %c25_79 = arith.constant 25 : index
    %c0_80 = arith.constant 0 : index
    %125 = vector.load %arg44[%c25_79, %c0_80] : memref<32x64xf32, #tpu.memory_space<vmem>>, vector<2x64xf32>
    %c26_81 = arith.constant 26 : index
    %c0_82 = arith.constant 0 : index
    %126 = vector.load %arg44[%c26_81, %c0_82] : memref<32x64xf32, #tpu.memory_space<vmem>>, vector<2x64xf32>
    %c28 = arith.constant 28 : index
    %c0_83 = arith.constant 0 : index
    %127 = vector.load %arg44[%c28, %c0_83] : memref<32x64xf32, #tpu.memory_space<vmem>>, vector<2x64xf32>
    %c29 = arith.constant 29 : index
    %c0_84 = arith.constant 0 : index
    %128 = vector.load %arg44[%c29, %c0_84] : memref<32x64xf32, #tpu.memory_space<vmem>>, vector<2x64xf32>
    %c30 = arith.constant 30 : index
    %c0_85 = arith.constant 0 : index
    %129 = vector.load %arg44[%c30, %c0_85] : memref<32x64xf32, #tpu.memory_space<vmem>>, vector<2x64xf32>
    %130 = tpu.concatenate %121, %122, %123, %124, %125, %126, %127, %128, %129 in 1 : vector<2x64xf32>, vector<2x64xf32>, vector<2x64xf32>, vector<2x64xf32>, vector<2x64xf32>, vector<2x64xf32>, vector<2x64xf32>, vector<2x64xf32>, vector<2x64xf32> -> vector<2x576xf32>
    %131 = tpu.concatenate %100, %110, %120, %130 in 0 : vector<2x576xf32>, vector<2x576xf32>, vector<2x576xf32>, vector<2x576xf32> -> vector<8x576xf32>
    %132 = arith.truncf %131 : vector<8x576xf32> to vector<8x576xbf16>
    %c0_86 = arith.constant 0 : index
    %c0_87 = arith.constant 0 : index
    %133 = vector.load %arg3[%c0_86, %c0_87] : memref<576x64xbf16, #tpu.memory_space<vmem>>, vector<576x64xbf16>
    %cst_88 = arith.constant dense<0.000000e+00> : vector<8x64xf32>
    %134 = tpu.matmul %132, %133, %cst_88 {dimension_numbers = #tpu.dot_dimension_numbers<[1], [0], [0], [1], [0, 0, 1, 1], [], []>} : vector<8x576xbf16>, vector<576x64xbf16>, vector<8x64xf32> -> vector<8x64xf32>
    %c0_89 = arith.constant 0 : index
    %c0_90 = arith.constant 0 : index
    %135 = vector.load %arg4[%c0_89, %c0_90] : memref<1x64xf32, #tpu.memory_space<vmem>>, vector<1x64xf32>
    %136 = vector.broadcast %135 : vector<1x64xf32> to vector<8x64xf32>
    %137 = arith.addf %134, %136 : vector<8x64xf32>
    %cst_91 = arith.constant 0.000000e+00 : f32
    %138 = vector.broadcast %cst_91 : f32 to vector<8x64xf32>
    %139 = arith.maximumf %137, %138 : vector<8x64xf32>
    %140 = vector.extract_strided_slice %139 {offsets = [0, 0], sizes = [2, 64], strides = [1, 1]} : vector<8x64xf32> to vector<2x64xf32>
    %c5_92 = arith.constant 5 : index
    %c0_93 = arith.constant 0 : index
    %141 = vector.load %arg44[%c5_92, %c0_93] : memref<32x64xf32, #tpu.memory_space<vmem>>, vector<2x64xf32>
    tpu.vector_store %arg44[%c5_92, %c0_93], %140 {strides = array<i32>} : memref<32x64xf32, #tpu.memory_space<vmem>>, vector<2x64xf32>,
    %142 = vector.extract_strided_slice %139 {offsets = [2, 0], sizes = [2, 64], strides = [1, 1]} : vector<8x64xf32> to vector<2x64xf32>
    %c9_94 = arith.constant 9 : index
    %c0_95 = arith.constant 0 : index
    %143 = vector.load %arg44[%c9_94, %c0_95] : memref<32x64xf32, #tpu.memory_space<vmem>>, vector<2x64xf32>
    tpu.vector_store %arg44[%c9_94, %c0_95], %142 {strides = array<i32>} : memref<32x64xf32, #tpu.memory_space<vmem>>, vector<2x64xf32>,
    %144 = vector.extract_strided_slice %139 {offsets = [4, 0], sizes = [2, 64], strides = [1, 1]} : vector<8x64xf32> to vector<2x64xf32>
    %c21_96 = arith.constant 21 : index
    %c0_97 = arith.constant 0 : index
    %145 = vector.load %arg44[%c21_96, %c0_97] : memref<32x64xf32, #tpu.memory_space<vmem>>, vector<2x64xf32>
    tpu.vector_store %arg44[%c21_96, %c0_97], %144 {strides = array<i32>} : memref<32x64xf32, #tpu.memory_space<vmem>>, vector<2x64xf32>,
    %146 = vector.extract_strided_slice %139 {offsets = [6, 0], sizes = [2, 64], strides = [1, 1]} : vector<8x64xf32> to vector<2x64xf32>
    %c25_98 = arith.constant 25 : index
    %c0_99 = arith.constant 0 : index
    %147 = vector.load %arg44[%c25_98, %c0_99] : memref<32x64xf32, #tpu.memory_space<vmem>>, vector<2x64xf32>
    tpu.vector_store %arg44[%c25_98, %c0_99], %146 {strides = array<i32>} : memref<32x64xf32, #tpu.memory_space<vmem>>, vector<2x64xf32>,
    %c0_100 = arith.constant 0 : index
    %c0_101 = arith.constant 0 : index
    %148 = vector.load %arg44[%c0_100, %c0_101] : memref<32x64xf32, #tpu.memory_space<vmem>>, vector<2x64xf32>
    %c1_102 = arith.constant 1 : index
    %c0_103 = arith.constant 0 : index
    %149 = vector.load %arg44[%c1_102, %c0_103] : memref<32x64xf32, #tpu.memory_space<vmem>>, vector<2x64xf32>
    %c2_104 = arith.constant 2 : index
    %c0_105 = arith.constant 0 : index
    %150 = vector.load %arg44[%c2_104, %c0_105] : memref<32x64xf32, #tpu.memory_space<vmem>>, vector<2x64xf32>
    %c4_106 = arith.constant 4 : index
    %c0_107 = arith.constant 0 : index
    %151 = vector.load %arg44[%c4_106, %c0_107] : memref<32x64xf32, #tpu.memory_space<vmem>>, vector<2x64xf32>
    %c5_108 = arith.constant 5 : index
    %c0_109 = arith.constant 0 : index
    %152 = vector.load %arg44[%c5_108, %c0_109] : memref<32x64xf32, #tpu.memory_space<vmem>>, vector<2x64xf32>
    %c6_110 = arith.constant 6 : index
    %c0_111 = arith.constant 0 : index
    %153 = vector.load %arg44[%c6_110, %c0_111] : memref<32x64xf32, #tpu.memory_space<vmem>>, vector<2x64xf32>
    %c8_112 = arith.constant 8 : index
    %c0_113 = arith.constant 0 : index
    %154 = vector.load %arg44[%c8_112, %c0_113] : memref<32x64xf32, #tpu.memory_space<vmem>>, vector<2x64xf32>
    %c9_114 = arith.constant 9 : index
    %c0_115 = arith.constant 0 : index
    %155 = vector.load %arg44[%c9_114, %c0_115] : memref<32x64xf32, #tpu.memory_space<vmem>>, vector<2x64xf32>
    %c10_116 = arith.constant 10 : index
    %c0_117 = arith.constant 0 : index
    %156 = vector.load %arg44[%c10_116, %c0_117] : memref<32x64xf32, #tpu.memory_space<vmem>>, vector<2x64xf32>
    %157 = tpu.concatenate %148, %149, %150, %151, %152, %153, %154, %155, %156 in 1 : vector<2x64xf32>, vector<2x64xf32>, vector<2x64xf32>, vector<2x64xf32>, vector<2x64xf32>, vector<2x64xf32>, vector<2x64xf32>, vector<2x64xf32>, vector<2x64xf32> -> vector<2x576xf32>
    %c4_118 = arith.constant 4 : index
    %c0_119 = arith.constant 0 : index
    %158 = vector.load %arg44[%c4_118, %c0_119] : memref<32x64xf32, #tpu.memory_space<vmem>>, vector<2x64xf32>
    %c5_120 = arith.constant 5 : index
    %c0_121 = arith.constant 0 : index
    %159 = vector.load %arg44[%c5_120, %c0_121] : memref<32x64xf32, #tpu.memory_space<vmem>>, vector<2x64xf32>
    %c6_122 = arith.constant 6 : index
    %c0_123 = arith.constant 0 : index
    %160 = vector.load %arg44[%c6_122, %c0_123] : memref<32x64xf32, #tpu.memory_space<vmem>>, vector<2x64xf32>
    %c8_124 = arith.constant 8 : index
    %c0_125 = arith.constant 0 : index
    %161 = vector.load %arg44[%c8_124, %c0_125] : memref<32x64xf32, #tpu.memory_space<vmem>>, vector<2x64xf32>
    %c9_126 = arith.constant 9 : index
    %c0_127 = arith.constant 0 : index
    %162 = vector.load %arg44[%c9_126, %c0_127] : memref<32x64xf32, #tpu.memory_space<vmem>>, vector<2x64xf32>
    %c10_128 = arith.constant 10 : index
    %c0_129 = arith.constant 0 : index
    %163 = vector.load %arg44[%c10_128, %c0_129] : memref<32x64xf32, #tpu.memory_space<vmem>>, vector<2x64xf32>
    %c12_130 = arith.constant 12 : index
    %c0_131 = arith.constant 0 : index
    %164 = vector.load %arg44[%c12_130, %c0_131] : memref<32x64xf32, #tpu.memory_space<vmem>>, vector<2x64xf32>
    %c13_132 = arith.constant 13 : index
    %c0_133 = arith.constant 0 : index
    %165 = vector.load %arg44[%c13_132, %c0_133] : memref<32x64xf32, #tpu.memory_space<vmem>>, vector<2x64xf32>
    %c14_134 = arith.constant 14 : index
    %c0_135 = arith.constant 0 : index
    %166 = vector.load %arg44[%c14_134, %c0_135] : memref<32x64xf32, #tpu.memory_space<vmem>>, vector<2x64xf32>
    %167 = tpu.concatenate %158, %159, %160, %161, %162, %163, %164, %165, %166 in 1 : vector<2x64xf32>, vector<2x64xf32>, vector<2x64xf32>, vector<2x64xf32>, vector<2x64xf32>, vector<2x64xf32>, vector<2x64xf32>, vector<2x64xf32>, vector<2x64xf32> -> vector<2x576xf32>
    %c16_136 = arith.constant 16 : index
    %c0_137 = arith.constant 0 : index
    %168 = vector.load %arg44[%c16_136, %c0_137] : memref<32x64xf32, #tpu.memory_space<vmem>>, vector<2x64xf32>
    %c17_138 = arith.constant 17 : index
    %c0_139 = arith.constant 0 : index
    %169 = vector.load %arg44[%c17_138, %c0_139] : memref<32x64xf32, #tpu.memory_space<vmem>>, vector<2x64xf32>
    %c18_140 = arith.constant 18 : index
    %c0_141 = arith.constant 0 : index
    %170 = vector.load %arg44[%c18_140, %c0_141] : memref<32x64xf32, #tpu.memory_space<vmem>>, vector<2x64xf32>
    %c20_142 = arith.constant 20 : index
    %c0_143 = arith.constant 0 : index
    %171 = vector.load %arg44[%c20_142, %c0_143] : memref<32x64xf32, #tpu.memory_space<vmem>>, vector<2x64xf32>
    %c21_144 = arith.constant 21 : index
    %c0_145 = arith.constant 0 : index
    %172 = vector.load %arg44[%c21_144, %c0_145] : memref<32x64xf32, #tpu.memory_space<vmem>>, vector<2x64xf32>
    %c22_146 = arith.constant 22 : index
    %c0_147 = arith.constant 0 : index
    %173 = vector.load %arg44[%c22_146, %c0_147] : memref<32x64xf32, #tpu.memory_space<vmem>>, vector<2x64xf32>
    %c24_148 = arith.constant 24 : index
    %c0_149 = arith.constant 0 : index
    %174 = vector.load %arg44[%c24_148, %c0_149] : memref<32x64xf32, #tpu.memory_space<vmem>>, vector<2x64xf32>
    %c25_150 = arith.constant 25 : index
    %c0_151 = arith.constant 0 : index
    %175 = vector.load %arg44[%c25_150, %c0_151] : memref<32x64xf32, #tpu.memory_space<vmem>>, vector<2x64xf32>
    %c26_152 = arith.constant 26 : index
    %c0_153 = arith.constant 0 : index
    %176 = vector.load %arg44[%c26_152, %c0_153] : memref<32x64xf32, #tpu.memory_space<vmem>>, vector<2x64xf32>
    %177 = tpu.concatenate %168, %169, %170, %171, %172, %173, %174, %175, %176 in 1 : vector<2x64xf32>, vector<2x64xf32>, vector<2x64xf32>, vector<2x64xf32>, vector<2x64xf32>, vector<2x64xf32>, vector<2x64xf32>, vector<2x64xf32>, vector<2x64xf32> -> vector<2x576xf32>
    %c20_154 = arith.constant 20 : index
    %c0_155 = arith.constant 0 : index
    %178 = vector.load %arg44[%c20_154, %c0_155] : memref<32x64xf32, #tpu.memory_space<vmem>>, vector<2x64xf32>
    %c21_156 = arith.constant 21 : index
    %c0_157 = arith.constant 0 : index
    %179 = vector.load %arg44[%c21_156, %c0_157] : memref<32x64xf32, #tpu.memory_space<vmem>>, vector<2x64xf32>
    %c22_158 = arith.constant 22 : index
    %c0_159 = arith.constant 0 : index
    %180 = vector.load %arg44[%c22_158, %c0_159] : memref<32x64xf32, #tpu.memory_space<vmem>>, vector<2x64xf32>
    %c24_160 = arith.constant 24 : index
    %c0_161 = arith.constant 0 : index
    %181 = vector.load %arg44[%c24_160, %c0_161] : memref<32x64xf32, #tpu.memory_space<vmem>>, vector<2x64xf32>
    %c25_162 = arith.constant 25 : index
    %c0_163 = arith.constant 0 : index
    %182 = vector.load %arg44[%c25_162, %c0_163] : memref<32x64xf32, #tpu.memory_space<vmem>>, vector<2x64xf32>
    %c26_164 = arith.constant 26 : index
    %c0_165 = arith.constant 0 : index
    %183 = vector.load %arg44[%c26_164, %c0_165] : memref<32x64xf32, #tpu.memory_space<vmem>>, vector<2x64xf32>
    %c28_166 = arith.constant 28 : index
    %c0_167 = arith.constant 0 : index
    %184 = vector.load %arg44[%c28_166, %c0_167] : memref<32x64xf32, #tpu.memory_space<vmem>>, vector<2x64xf32>
    %c29_168 = arith.constant 29 : index
    %c0_169 = arith.constant 0 : index
    %185 = vector.load %arg44[%c29_168, %c0_169] : memref<32x64xf32, #tpu.memory_space<vmem>>, vector<2x64xf32>
    %c30_170 = arith.constant 30 : index
    %c0_171 = arith.constant 0 : index
    %186 = vector.load %arg44[%c30_170, %c0_171] : memref<32x64xf32, #tpu.memory_space<vmem>>, vector<2x64xf32>
    %187 = tpu.concatenate %178, %179, %180, %181, %182, %183, %184, %185, %186 in 1 : vector<2x64xf32>, vector<2x64xf32>, vector<2x64xf32>, vector<2x64xf32>, vector<2x64xf32>, vector<2x64xf32>, vector<2x64xf32>, vector<2x64xf32>, vector<2x64xf32> -> vector<2x576xf32>
    %188 = tpu.concatenate %157, %167, %177, %187 in 0 : vector<2x576xf32>, vector<2x576xf32>, vector<2x576xf32>, vector<2x576xf32> -> vector<8x576xf32>
    %189 = arith.truncf %188 : vector<8x576xf32> to vector<8x576xbf16>
    %c0_172 = arith.constant 0 : index
    %c0_173 = arith.constant 0 : index
    %190 = vector.load %arg5[%c0_172, %c0_173] : memref<576x64xbf16, #tpu.memory_space<vmem>>, vector<576x64xbf16>
    %cst_174 = arith.constant dense<0.000000e+00> : vector<8x64xf32>
    %191 = tpu.matmul %189, %190, %cst_174 {dimension_numbers = #tpu.dot_dimension_numbers<[1], [0], [0], [1], [0, 0, 1, 1], [], []>} : vector<8x576xbf16>, vector<576x64xbf16>, vector<8x64xf32> -> vector<8x64xf32>
    %c0_175 = arith.constant 0 : index
    %c0_176 = arith.constant 0 : index
    %192 = vector.load %arg6[%c0_175, %c0_176] : memref<1x64xf32, #tpu.memory_space<vmem>>, vector<1x64xf32>
    %193 = vector.broadcast %192 : vector<1x64xf32> to vector<8x64xf32>
    %194 = arith.addf %191, %193 : vector<8x64xf32>
    %195 = arith.addf %194, %80 : vector<8x64xf32>
    %cst_177 = arith.constant 0.000000e+00 : f32
    %196 = vector.broadcast %cst_177 : f32 to vector<8x64xf32>
    %197 = arith.maximumf %195, %196 : vector<8x64xf32>
    %198 = vector.extract_strided_slice %197 {offsets = [0, 0], sizes = [2, 64], strides = [1, 1]} : vector<8x64xf32> to vector<2x64xf32>
    %c5_178 = arith.constant 5 : index
    %c0_179 = arith.constant 0 : index
    %199 = vector.load %arg44[%c5_178, %c0_179] : memref<32x64xf32, #tpu.memory_space<vmem>>, vector<2x64xf32>
    tpu.vector_store %arg44[%c5_178, %c0_179], %198 {strides = array<i32>} : memref<32x64xf32, #tpu.memory_space<vmem>>, vector<2x64xf32>,
    %200 = vector.extract_strided_slice %197 {offsets = [2, 0], sizes = [2, 64], strides = [1, 1]} : vector<8x64xf32> to vector<2x64xf32>
    %c9_180 = arith.constant 9 : index
    %c0_181 = arith.constant 0 : index
    %201 = vector.load %arg44[%c9_180, %c0_181] : memref<32x64xf32, #tpu.memory_space<vmem>>, vector<2x64xf32>
    tpu.vector_store %arg44[%c9_180, %c0_181], %200 {strides = array<i32>} : memref<32x64xf32, #tpu.memory_space<vmem>>, vector<2x64xf32>,
    %202 = vector.extract_strided_slice %197 {offsets = [4, 0], sizes = [2, 64], strides = [1, 1]} : vector<8x64xf32> to vector<2x64xf32>
    %c21_182 = arith.constant 21 : index
    %c0_183 = arith.constant 0 : index
    %203 = vector.load %arg44[%c21_182, %c0_183] : memref<32x64xf32, #tpu.memory_space<vmem>>, vector<2x64xf32>
    tpu.vector_store %arg44[%c21_182, %c0_183], %202 {strides = array<i32>} : memref<32x64xf32, #tpu.memory_space<vmem>>, vector<2x64xf32>,
    %204 = vector.extract_strided_slice %197 {offsets = [6, 0], sizes = [2, 64], strides = [1, 1]} : vector<8x64xf32> to vector<2x64xf32>
    %c25_184 = arith.constant 25 : index
    %c0_185 = arith.constant 0 : index
    %205 = vector.load %arg44[%c25_184, %c0_185] : memref<32x64xf32, #tpu.memory_space<vmem>>, vector<2x64xf32>
    tpu.vector_store %arg44[%c25_184, %c0_185], %204 {strides = array<i32>} : memref<32x64xf32, #tpu.memory_space<vmem>>, vector<2x64xf32>,
    %c0_186 = arith.constant 0 : index
    %c0_187 = arith.constant 0 : index
    %206 = vector.load %arg44[%c0_186, %c0_187] : memref<32x64xf32, #tpu.memory_space<vmem>>, vector<2x64xf32>
    %c1_188 = arith.constant 1 : index
    %c0_189 = arith.constant 0 : index
    %207 = vector.load %arg44[%c1_188, %c0_189] : memref<32x64xf32, #tpu.memory_space<vmem>>, vector<2x64xf32>
    %c2_190 = arith.constant 2 : index
    %c0_191 = arith.constant 0 : index
    %208 = vector.load %arg44[%c2_190, %c0_191] : memref<32x64xf32, #tpu.memory_space<vmem>>, vector<2x64xf32>
    %c4_192 = arith.constant 4 : index
    %c0_193 = arith.constant 0 : index
    %209 = vector.load %arg44[%c4_192, %c0_193] : memref<32x64xf32, #tpu.memory_space<vmem>>, vector<2x64xf32>
    %c5_194 = arith.constant 5 : index
    %c0_195 = arith.constant 0 : index
    %210 = vector.load %arg44[%c5_194, %c0_195] : memref<32x64xf32, #tpu.memory_space<vmem>>, vector<2x64xf32>
    %c6_196 = arith.constant 6 : index
    %c0_197 = arith.constant 0 : index
    %211 = vector.load %arg44[%c6_196, %c0_197] : memref<32x64xf32, #tpu.memory_space<vmem>>, vector<2x64xf32>
    %c8_198 = arith.constant 8 : index
    %c0_199 = arith.constant 0 : index
    %212 = vector.load %arg44[%c8_198, %c0_199] : memref<32x64xf32, #tpu.memory_space<vmem>>, vector<2x64xf32>
    %c9_200 = arith.constant 9 : index
    %c0_201 = arith.constant 0 : index
    %213 = vector.load %arg44[%c9_200, %c0_201] : memref<32x64xf32, #tpu.memory_space<vmem>>, vector<2x64xf32>
    %c10_202 = arith.constant 10 : index
    %c0_203 = arith.constant 0 : index
    %214 = vector.load %arg44[%c10_202, %c0_203] : memref<32x64xf32, #tpu.memory_space<vmem>>, vector<2x64xf32>
    %215 = tpu.concatenate %206, %207, %208, %209, %210, %211, %212, %213, %214 in 1 : vector<2x64xf32>, vector<2x64xf32>, vector<2x64xf32>, vector<2x64xf32>, vector<2x64xf32>, vector<2x64xf32>, vector<2x64xf32>, vector<2x64xf32>, vector<2x64xf32> -> vector<2x576xf32>
    %c4_204 = arith.constant 4 : index
    %c0_205 = arith.constant 0 : index
    %216 = vector.load %arg44[%c4_204, %c0_205] : memref<32x64xf32, #tpu.memory_space<vmem>>, vector<2x64xf32>
    %c5_206 = arith.constant 5 : index
    %c0_207 = arith.constant 0 : index
    %217 = vector.load %arg44[%c5_206, %c0_207] : memref<32x64xf32, #tpu.memory_space<vmem>>, vector<2x64xf32>
    %c6_208 = arith.constant 6 : index
    %c0_209 = arith.constant 0 : index
    %218 = vector.load %arg44[%c6_208, %c0_209] : memref<32x64xf32, #tpu.memory_space<vmem>>, vector<2x64xf32>
    %c8_210 = arith.constant 8 : index
    %c0_211 = arith.constant 0 : index
    %219 = vector.load %arg44[%c8_210, %c0_211] : memref<32x64xf32, #tpu.memory_space<vmem>>, vector<2x64xf32>
    %c9_212 = arith.constant 9 : index
    %c0_213 = arith.constant 0 : index
    %220 = vector.load %arg44[%c9_212, %c0_213] : memref<32x64xf32, #tpu.memory_space<vmem>>, vector<2x64xf32>
    %c10_214 = arith.constant 10 : index
    %c0_215 = arith.constant 0 : index
    %221 = vector.load %arg44[%c10_214, %c0_215] : memref<32x64xf32, #tpu.memory_space<vmem>>, vector<2x64xf32>
    %c12_216 = arith.constant 12 : index
    %c0_217 = arith.constant 0 : index
    %222 = vector.load %arg44[%c12_216, %c0_217] : memref<32x64xf32, #tpu.memory_space<vmem>>, vector<2x64xf32>
    %c13_218 = arith.constant 13 : index
    %c0_219 = arith.constant 0 : index
    %223 = vector.load %arg44[%c13_218, %c0_219] : memref<32x64xf32, #tpu.memory_space<vmem>>, vector<2x64xf32>
    %c14_220 = arith.constant 14 : index
    %c0_221 = arith.constant 0 : index
    %224 = vector.load %arg44[%c14_220, %c0_221] : memref<32x64xf32, #tpu.memory_space<vmem>>, vector<2x64xf32>
    %225 = tpu.concatenate %216, %217, %218, %219, %220, %221, %222, %223, %224 in 1 : vector<2x64xf32>, vector<2x64xf32>, vector<2x64xf32>, vector<2x64xf32>, vector<2x64xf32>, vector<2x64xf32>, vector<2x64xf32>, vector<2x64xf32>, vector<2x64xf32> -> vector<2x576xf32>
    %c16_222 = arith.constant 16 : index
    %c0_223 = arith.constant 0 : index
    %226 = vector.load %arg44[%c16_222, %c0_223] : memref<32x64xf32, #tpu.memory_space<vmem>>, vector<2x64xf32>
    %c17_224 = arith.constant 17 : index
    %c0_225 = arith.constant 0 : index
    %227 = vector.load %arg44[%c17_224, %c0_225] : memref<32x64xf32, #tpu.memory_space<vmem>>, vector<2x64xf32>
    %c18_226 = arith.constant 18 : index
    %c0_227 = arith.constant 0 : index
    %228 = vector.load %arg44[%c18_226, %c0_227] : memref<32x64xf32, #tpu.memory_space<vmem>>, vector<2x64xf32>
    %c20_228 = arith.constant 20 : index
    %c0_229 = arith.constant 0 : index
    %229 = vector.load %arg44[%c20_228, %c0_229] : memref<32x64xf32, #tpu.memory_space<vmem>>, vector<2x64xf32>
    %c21_230 = arith.constant 21 : index
    %c0_231 = arith.constant 0 : index
    %230 = vector.load %arg44[%c21_230, %c0_231] : memref<32x64xf32, #tpu.memory_space<vmem>>, vector<2x64xf32>
    %c22_232 = arith.constant 22 : index
    %c0_233 = arith.constant 0 : index
    %231 = vector.load %arg44[%c22_232, %c0_233] : memref<32x64xf32, #tpu.memory_space<vmem>>, vector<2x64xf32>
    %c24_234 = arith.constant 24 : index
    %c0_235 = arith.constant 0 : index
    %232 = vector.load %arg44[%c24_234, %c0_235] : memref<32x64xf32, #tpu.memory_space<vmem>>, vector<2x64xf32>
    %c25_236 = arith.constant 25 : index
    %c0_237 = arith.constant 0 : index
    %233 = vector.load %arg44[%c25_236, %c0_237] : memref<32x64xf32, #tpu.memory_space<vmem>>, vector<2x64xf32>
    %c26_238 = arith.constant 26 : index
    %c0_239 = arith.constant 0 : index
    %234 = vector.load %arg44[%c26_238, %c0_239] : memref<32x64xf32, #tpu.memory_space<vmem>>, vector<2x64xf32>
    %235 = tpu.concatenate %226, %227, %228, %229, %230, %231, %232, %233, %234 in 1 : vector<2x64xf32>, vector<2x64xf32>, vector<2x64xf32>, vector<2x64xf32>, vector<2x64xf32>, vector<2x64xf32>, vector<2x64xf32>, vector<2x64xf32>, vector<2x64xf32> -> vector<2x576xf32>
    %c20_240 = arith.constant 20 : index
    %c0_241 = arith.constant 0 : index
    %236 = vector.load %arg44[%c20_240, %c0_241] : memref<32x64xf32, #tpu.memory_space<vmem>>, vector<2x64xf32>
    %c21_242 = arith.constant 21 : index
    %c0_243 = arith.constant 0 : index
    %237 = vector.load %arg44[%c21_242, %c0_243] : memref<32x64xf32, #tpu.memory_space<vmem>>, vector<2x64xf32>
    %c22_244 = arith.constant 22 : index
    %c0_245 = arith.constant 0 : index
    %238 = vector.load %arg44[%c22_244, %c0_245] : memref<32x64xf32, #tpu.memory_space<vmem>>, vector<2x64xf32>
    %c24_246 = arith.constant 24 : index
    %c0_247 = arith.constant 0 : index
    %239 = vector.load %arg44[%c24_246, %c0_247] : memref<32x64xf32, #tpu.memory_space<vmem>>, vector<2x64xf32>
    %c25_248 = arith.constant 25 : index
    %c0_249 = arith.constant 0 : index
    %240 = vector.load %arg44[%c25_248, %c0_249] : memref<32x64xf32, #tpu.memory_space<vmem>>, vector<2x64xf32>
    %c26_250 = arith.constant 26 : index
    %c0_251 = arith.constant 0 : index
    %241 = vector.load %arg44[%c26_250, %c0_251] : memref<32x64xf32, #tpu.memory_space<vmem>>, vector<2x64xf32>
    %c28_252 = arith.constant 28 : index
    %c0_253 = arith.constant 0 : index
    %242 = vector.load %arg44[%c28_252, %c0_253] : memref<32x64xf32, #tpu.memory_space<vmem>>, vector<2x64xf32>
    %c29_254 = arith.constant 29 : index
    %c0_255 = arith.constant 0 : index
    %243 = vector.load %arg44[%c29_254, %c0_255] : memref<32x64xf32, #tpu.memory_space<vmem>>, vector<2x64xf32>
    %c30_256 = arith.constant 30 : index
    %c0_257 = arith.constant 0 : index
    %244 = vector.load %arg44[%c30_256, %c0_257] : memref<32x64xf32, #tpu.memory_space<vmem>>, vector<2x64xf32>
    %245 = tpu.concatenate %236, %237, %238, %239, %240, %241, %242, %243, %244 in 1 : vector<2x64xf32>, vector<2x64xf32>, vector<2x64xf32>, vector<2x64xf32>, vector<2x64xf32>, vector<2x64xf32>, vector<2x64xf32>, vector<2x64xf32>, vector<2x64xf32> -> vector<2x576xf32>
    %246 = tpu.concatenate %215, %225, %235, %245 in 0 : vector<2x576xf32>, vector<2x576xf32>, vector<2x576xf32>, vector<2x576xf32> -> vector<8x576xf32>
    %247 = arith.truncf %246 : vector<8x576xf32> to vector<8x576xbf16>
    %c0_258 = arith.constant 0 : index
    %c0_259 = arith.constant 0 : index
    %248 = vector.load %arg7[%c0_258, %c0_259] : memref<576x64xbf16, #tpu.memory_space<vmem>>, vector<576x64xbf16>
    %cst_260 = arith.constant dense<0.000000e+00> : vector<8x64xf32>
    %249 = tpu.matmul %247, %248, %cst_260 {dimension_numbers = #tpu.dot_dimension_numbers<[1], [0], [0], [1], [0, 0, 1, 1], [], []>} : vector<8x576xbf16>, vector<576x64xbf16>, vector<8x64xf32> -> vector<8x64xf32>
    %c0_261 = arith.constant 0 : index
    %c0_262 = arith.constant 0 : index
    %250 = vector.load %arg8[%c0_261, %c0_262] : memref<1x64xf32, #tpu.memory_space<vmem>>, vector<1x64xf32>
    %251 = vector.broadcast %250 : vector<1x64xf32> to vector<8x64xf32>
    %252 = arith.addf %249, %251 : vector<8x64xf32>
    %cst_263 = arith.constant 0.000000e+00 : f32
    %253 = vector.broadcast %cst_263 : f32 to vector<8x64xf32>
    %254 = arith.maximumf %252, %253 : vector<8x64xf32>
    %255 = vector.extract_strided_slice %254 {offsets = [0, 0], sizes = [2, 64], strides = [1, 1]} : vector<8x64xf32> to vector<2x64xf32>
    %c5_264 = arith.constant 5 : index
    %c0_265 = arith.constant 0 : index
    %256 = vector.load %arg44[%c5_264, %c0_265] : memref<32x64xf32, #tpu.memory_space<vmem>>, vector<2x64xf32>
    tpu.vector_store %arg44[%c5_264, %c0_265], %255 {strides = array<i32>} : memref<32x64xf32, #tpu.memory_space<vmem>>, vector<2x64xf32>,
    %257 = vector.extract_strided_slice %254 {offsets = [2, 0], sizes = [2, 64], strides = [1, 1]} : vector<8x64xf32> to vector<2x64xf32>
    %c9_266 = arith.constant 9 : index
    %c0_267 = arith.constant 0 : index
    %258 = vector.load %arg44[%c9_266, %c0_267] : memref<32x64xf32, #tpu.memory_space<vmem>>, vector<2x64xf32>
    tpu.vector_store %arg44[%c9_266, %c0_267], %257 {strides = array<i32>} : memref<32x64xf32, #tpu.memory_space<vmem>>, vector<2x64xf32>,
    %259 = vector.extract_strided_slice %254 {offsets = [4, 0], sizes = [2, 64], strides = [1, 1]} : vector<8x64xf32> to vector<2x64xf32>
    %c21_268 = arith.constant 21 : index
    %c0_269 = arith.constant 0 : index
    %260 = vector.load %arg44[%c21_268, %c0_269] : memref<32x64xf32, #tpu.memory_space<vmem>>, vector<2x64xf32>
    tpu.vector_store %arg44[%c21_268, %c0_269], %259 {strides = array<i32>} : memref<32x64xf32, #tpu.memory_space<vmem>>, vector<2x64xf32>,
    %261 = vector.extract_strided_slice %254 {offsets = [6, 0], sizes = [2, 64], strides = [1, 1]} : vector<8x64xf32> to vector<2x64xf32>
    %c25_270 = arith.constant 25 : index
    %c0_271 = arith.constant 0 : index
    %262 = vector.load %arg44[%c25_270, %c0_271] : memref<32x64xf32, #tpu.memory_space<vmem>>, vector<2x64xf32>
    tpu.vector_store %arg44[%c25_270, %c0_271], %261 {strides = array<i32>} : memref<32x64xf32, #tpu.memory_space<vmem>>, vector<2x64xf32>,
    %c0_272 = arith.constant 0 : index
    %c0_273 = arith.constant 0 : index
    %263 = vector.load %arg44[%c0_272, %c0_273] : memref<32x64xf32, #tpu.memory_space<vmem>>, vector<2x64xf32>
    %c1_274 = arith.constant 1 : index
    %c0_275 = arith.constant 0 : index
    %264 = vector.load %arg44[%c1_274, %c0_275] : memref<32x64xf32, #tpu.memory_space<vmem>>, vector<2x64xf32>
    %c2_276 = arith.constant 2 : index
    %c0_277 = arith.constant 0 : index
    %265 = vector.load %arg44[%c2_276, %c0_277] : memref<32x64xf32, #tpu.memory_space<vmem>>, vector<2x64xf32>
    %c4_278 = arith.constant 4 : index
    %c0_279 = arith.constant 0 : index
    %266 = vector.load %arg44[%c4_278, %c0_279] : memref<32x64xf32, #tpu.memory_space<vmem>>, vector<2x64xf32>
    %c5_280 = arith.constant 5 : index
    %c0_281 = arith.constant 0 : index
    %267 = vector.load %arg44[%c5_280, %c0_281] : memref<32x64xf32, #tpu.memory_space<vmem>>, vector<2x64xf32>
    %c6_282 = arith.constant 6 : index
    %c0_283 = arith.constant 0 : index
    %268 = vector.load %arg44[%c6_282, %c0_283] : memref<32x64xf32, #tpu.memory_space<vmem>>, vector<2x64xf32>
    %c8_284 = arith.constant 8 : index
    %c0_285 = arith.constant 0 : index
    %269 = vector.load %arg44[%c8_284, %c0_285] : memref<32x64xf32, #tpu.memory_space<vmem>>, vector<2x64xf32>
    %c9_286 = arith.constant 9 : index
    %c0_287 = arith.constant 0 : index
    %270 = vector.load %arg44[%c9_286, %c0_287] : memref<32x64xf32, #tpu.memory_space<vmem>>, vector<2x64xf32>
    %c10_288 = arith.constant 10 : index
    %c0_289 = arith.constant 0 : index
    %271 = vector.load %arg44[%c10_288, %c0_289] : memref<32x64xf32, #tpu.memory_space<vmem>>, vector<2x64xf32>
    %272 = tpu.concatenate %263, %264, %265, %266, %267, %268, %269, %270, %271 in 1 : vector<2x64xf32>, vector<2x64xf32>, vector<2x64xf32>, vector<2x64xf32>, vector<2x64xf32>, vector<2x64xf32>, vector<2x64xf32>, vector<2x64xf32>, vector<2x64xf32> -> vector<2x576xf32>
    %c4_290 = arith.constant 4 : index
    %c0_291 = arith.constant 0 : index
    %273 = vector.load %arg44[%c4_290, %c0_291] : memref<32x64xf32, #tpu.memory_space<vmem>>, vector<2x64xf32>
    %c5_292 = arith.constant 5 : index
    %c0_293 = arith.constant 0 : index
    %274 = vector.load %arg44[%c5_292, %c0_293] : memref<32x64xf32, #tpu.memory_space<vmem>>, vector<2x64xf32>
    %c6_294 = arith.constant 6 : index
    %c0_295 = arith.constant 0 : index
    %275 = vector.load %arg44[%c6_294, %c0_295] : memref<32x64xf32, #tpu.memory_space<vmem>>, vector<2x64xf32>
    %c8_296 = arith.constant 8 : index
    %c0_297 = arith.constant 0 : index
    %276 = vector.load %arg44[%c8_296, %c0_297] : memref<32x64xf32, #tpu.memory_space<vmem>>, vector<2x64xf32>
    %c9_298 = arith.constant 9 : index
    %c0_299 = arith.constant 0 : index
    %277 = vector.load %arg44[%c9_298, %c0_299] : memref<32x64xf32, #tpu.memory_space<vmem>>, vector<2x64xf32>
    %c10_300 = arith.constant 10 : index
    %c0_301 = arith.constant 0 : index
    %278 = vector.load %arg44[%c10_300, %c0_301] : memref<32x64xf32, #tpu.memory_space<vmem>>, vector<2x64xf32>
    %c12_302 = arith.constant 12 : index
    %c0_303 = arith.constant 0 : index
    %279 = vector.load %arg44[%c12_302, %c0_303] : memref<32x64xf32, #tpu.memory_space<vmem>>, vector<2x64xf32>
    %c13_304 = arith.constant 13 : index
    %c0_305 = arith.constant 0 : index
    %280 = vector.load %arg44[%c13_304, %c0_305] : memref<32x64xf32, #tpu.memory_space<vmem>>, vector<2x64xf32>
    %c14_306 = arith.constant 14 : index
    %c0_307 = arith.constant 0 : index
    %281 = vector.load %arg44[%c14_306, %c0_307] : memref<32x64xf32, #tpu.memory_space<vmem>>, vector<2x64xf32>
    %282 = tpu.concatenate %273, %274, %275, %276, %277, %278, %279, %280, %281 in 1 : vector<2x64xf32>, vector<2x64xf32>, vector<2x64xf32>, vector<2x64xf32>, vector<2x64xf32>, vector<2x64xf32>, vector<2x64xf32>, vector<2x64xf32>, vector<2x64xf32> -> vector<2x576xf32>
    %c16_308 = arith.constant 16 : index
    %c0_309 = arith.constant 0 : index
    %283 = vector.load %arg44[%c16_308, %c0_309] : memref<32x64xf32, #tpu.memory_space<vmem>>, vector<2x64xf32>
    %c17_310 = arith.constant 17 : index
    %c0_311 = arith.constant 0 : index
    %284 = vector.load %arg44[%c17_310, %c0_311] : memref<32x64xf32, #tpu.memory_space<vmem>>, vector<2x64xf32>
    %c18_312 = arith.constant 18 : index
    %c0_313 = arith.constant 0 : index
    %285 = vector.load %arg44[%c18_312, %c0_313] : memref<32x64xf32, #tpu.memory_space<vmem>>, vector<2x64xf32>
    %c20_314 = arith.constant 20 : index
    %c0_315 = arith.constant 0 : index
    %286 = vector.load %arg44[%c20_314, %c0_315] : memref<32x64xf32, #tpu.memory_space<vmem>>, vector<2x64xf32>
    %c21_316 = arith.constant 21 : index
    %c0_317 = arith.constant 0 : index
    %287 = vector.load %arg44[%c21_316, %c0_317] : memref<32x64xf32, #tpu.memory_space<vmem>>, vector<2x64xf32>
    %c22_318 = arith.constant 22 : index
    %c0_319 = arith.constant 0 : index
    %288 = vector.load %arg44[%c22_318, %c0_319] : memref<32x64xf32, #tpu.memory_space<vmem>>, vector<2x64xf32>
    %c24_320 = arith.constant 24 : index
    %c0_321 = arith.constant 0 : index
    %289 = vector.load %arg44[%c24_320, %c0_321] : memref<32x64xf32, #tpu.memory_space<vmem>>, vector<2x64xf32>
    %c25_322 = arith.constant 25 : index
    %c0_323 = arith.constant 0 : index
    %290 = vector.load %arg44[%c25_322, %c0_323] : memref<32x64xf32, #tpu.memory_space<vmem>>, vector<2x64xf32>
    %c26_324 = arith.constant 26 : index
    %c0_325 = arith.constant 0 : index
    %291 = vector.load %arg44[%c26_324, %c0_325] : memref<32x64xf32, #tpu.memory_space<vmem>>, vector<2x64xf32>
    %292 = tpu.concatenate %283, %284, %285, %286, %287, %288, %289, %290, %291 in 1 : vector<2x64xf32>, vector<2x64xf32>, vector<2x64xf32>, vector<2x64xf32>, vector<2x64xf32>, vector<2x64xf32>, vector<2x64xf32>, vector<2x64xf32>, vector<2x64xf32> -> vector<2x576xf32>
    %c20_326 = arith.constant 20 : index
    %c0_327 = arith.constant 0 : index
    %293 = vector.load %arg44[%c20_326, %c0_327] : memref<32x64xf32, #tpu.memory_space<vmem>>, vector<2x64xf32>
    %c21_328 = arith.constant 21 : index
    %c0_329 = arith.constant 0 : index
    %294 = vector.load %arg44[%c21_328, %c0_329] : memref<32x64xf32, #tpu.memory_space<vmem>>, vector<2x64xf32>
    %c22_330 = arith.constant 22 : index
    %c0_331 = arith.constant 0 : index
    %295 = vector.load %arg44[%c22_330, %c0_331] : memref<32x64xf32, #tpu.memory_space<vmem>>, vector<2x64xf32>
    %c24_332 = arith.constant 24 : index
    %c0_333 = arith.constant 0 : index
    %296 = vector.load %arg44[%c24_332, %c0_333] : memref<32x64xf32, #tpu.memory_space<vmem>>, vector<2x64xf32>
    %c25_334 = arith.constant 25 : index
    %c0_335 = arith.constant 0 : index
    %297 = vector.load %arg44[%c25_334, %c0_335] : memref<32x64xf32, #tpu.memory_space<vmem>>, vector<2x64xf32>
    %c26_336 = arith.constant 26 : index
    %c0_337 = arith.constant 0 : index
    %298 = vector.load %arg44[%c26_336, %c0_337] : memref<32x64xf32, #tpu.memory_space<vmem>>, vector<2x64xf32>
    %c28_338 = arith.constant 28 : index
    %c0_339 = arith.constant 0 : index
    %299 = vector.load %arg44[%c28_338, %c0_339] : memref<32x64xf32, #tpu.memory_space<vmem>>, vector<2x64xf32>
    %c29_340 = arith.constant 29 : index
    %c0_341 = arith.constant 0 : index
    %300 = vector.load %arg44[%c29_340, %c0_341] : memref<32x64xf32, #tpu.memory_space<vmem>>, vector<2x64xf32>
    %c30_342 = arith.constant 30 : index
    %c0_343 = arith.constant 0 : index
    %301 = vector.load %arg44[%c30_342, %c0_343] : memref<32x64xf32, #tpu.memory_space<vmem>>, vector<2x64xf32>
    %302 = tpu.concatenate %293, %294, %295, %296, %297, %298, %299, %300, %301 in 1 : vector<2x64xf32>, vector<2x64xf32>, vector<2x64xf32>, vector<2x64xf32>, vector<2x64xf32>, vector<2x64xf32>, vector<2x64xf32>, vector<2x64xf32>, vector<2x64xf32> -> vector<2x576xf32>
    %303 = tpu.concatenate %272, %282, %292, %302 in 0 : vector<2x576xf32>, vector<2x576xf32>, vector<2x576xf32>, vector<2x576xf32> -> vector<8x576xf32>
    %304 = arith.truncf %303 : vector<8x576xf32> to vector<8x576xbf16>
    %c0_344 = arith.constant 0 : index
    %c0_345 = arith.constant 0 : index
    %305 = vector.load %arg9[%c0_344, %c0_345] : memref<576x64xbf16, #tpu.memory_space<vmem>>, vector<576x64xbf16>
    %cst_346 = arith.constant dense<0.000000e+00> : vector<8x64xf32>
    %306 = tpu.matmul %304, %305, %cst_346 {dimension_numbers = #tpu.dot_dimension_numbers<[1], [0], [0], [1], [0, 0, 1, 1], [], []>} : vector<8x576xbf16>, vector<576x64xbf16>, vector<8x64xf32> -> vector<8x64xf32>
    %c0_347 = arith.constant 0 : index
    %c0_348 = arith.constant 0 : index
    %307 = vector.load %arg10[%c0_347, %c0_348] : memref<1x64xf32, #tpu.memory_space<vmem>>, vector<1x64xf32>
    %308 = vector.broadcast %307 : vector<1x64xf32> to vector<8x64xf32>
    %309 = arith.addf %306, %308 : vector<8x64xf32>
    %310 = arith.addf %309, %197 : vector<8x64xf32>
    %cst_349 = arith.constant 0.000000e+00 : f32
    %311 = vector.broadcast %cst_349 : f32 to vector<8x64xf32>
    %312 = arith.maximumf %310, %311 : vector<8x64xf32>
    %313 = vector.extract_strided_slice %312 {offsets = [0, 0], sizes = [1, 64], strides = [1, 1]} : vector<8x64xf32> to vector<1x64xf32>
    %314 = vector.extract_strided_slice %312 {offsets = [1, 0], sizes = [1, 64], strides = [1, 1]} : vector<8x64xf32> to vector<1x64xf32>
    %315 = vector.extract_strided_slice %312 {offsets = [2, 0], sizes = [1, 64], strides = [1, 1]} : vector<8x64xf32> to vector<1x64xf32>
    %316 = vector.extract_strided_slice %312 {offsets = [3, 0], sizes = [1, 64], strides = [1, 1]} : vector<8x64xf32> to vector<1x64xf32>
    %317 = tpu.concatenate %313, %314, %315, %316 in 1 : vector<1x64xf32>, vector<1x64xf32>, vector<1x64xf32>, vector<1x64xf32> -> vector<1x256xf32>
    %318 = vector.extract_strided_slice %312 {offsets = [4, 0], sizes = [1, 64], strides = [1, 1]} : vector<8x64xf32> to vector<1x64xf32>
    %319 = vector.extract_strided_slice %312 {offsets = [5, 0], sizes = [1, 64], strides = [1, 1]} : vector<8x64xf32> to vector<1x64xf32>
    %320 = vector.extract_strided_slice %312 {offsets = [6, 0], sizes = [1, 64], strides = [1, 1]} : vector<8x64xf32> to vector<1x64xf32>
    %321 = vector.extract_strided_slice %312 {offsets = [7, 0], sizes = [1, 64], strides = [1, 1]} : vector<8x64xf32> to vector<1x64xf32>
    %322 = tpu.concatenate %318, %319, %320, %321 in 1 : vector<1x64xf32>, vector<1x64xf32>, vector<1x64xf32>, vector<1x64xf32> -> vector<1x256xf32>
    %323 = tpu.concatenate %317, %322 in 0 : vector<1x256xf32>, vector<1x256xf32> -> vector<2x256xf32>
    %324 = tpu.concatenate %313, %318 in 0 : vector<1x64xf32>, vector<1x64xf32> -> vector<2x64xf32>
    %325 = arith.truncf %323 : vector<2x256xf32> to vector<2x256xbf16>
    %c0_350 = arith.constant 0 : index
    %c0_351 = arith.constant 0 : index
    %326 = vector.load %arg11[%c0_350, %c0_351] : memref<256x128xbf16, #tpu.memory_space<vmem>>, vector<256x128xbf16>
    %cst_352 = arith.constant dense<0.000000e+00> : vector<2x128xf32>
    %327 = tpu.matmul %325, %326, %cst_352 {dimension_numbers = #tpu.dot_dimension_numbers<[1], [0], [0], [1], [0, 0, 1, 1], [], []>} : vector<2x256xbf16>, vector<256x128xbf16>, vector<2x128xf32> -> vector<2x128xf32>
    %c0_353 = arith.constant 0 : index
    %c0_354 = arith.constant 0 : index
    %328 = vector.load %arg12[%c0_353, %c0_354] : memref<1x128xf32, #tpu.memory_space<vmem>>, vector<1x128xf32>
    %329 = vector.broadcast %328 : vector<1x128xf32> to vector<2x128xf32>
    %330 = arith.addf %327, %329 : vector<2x128xf32>
    %cst_355 = arith.constant 0.000000e+00 : f32
    %331 = vector.broadcast %cst_355 : f32 to vector<2x128xf32>
    %332 = arith.maximumf %330, %331 : vector<2x128xf32>
    %333 = arith.truncf %324 : vector<2x64xf32> to vector<2x64xbf16>
    %c0_356 = arith.constant 0 : index
    %c0_357 = arith.constant 0 : index
    %334 = vector.load %arg13[%c0_356, %c0_357] : memref<64x128xbf16, #tpu.memory_space<vmem>>, vector<64x128xbf16>
    %cst_358 = arith.constant dense<0.000000e+00> : vector<2x128xf32>
    %335 = tpu.matmul %333, %334, %cst_358 {dimension_numbers = #tpu.dot_dimension_numbers<[1], [0], [0], [1], [0, 0, 1, 1], [], []>} : vector<2x64xbf16>, vector<64x128xbf16>, vector<2x128xf32> -> vector<2x128xf32>
    %c0_359 = arith.constant 0 : index
    %c0_360 = arith.constant 0 : index
    %336 = vector.load %arg14[%c0_359, %c0_360] : memref<1x128xf32, #tpu.memory_space<vmem>>, vector<1x128xf32>
    %337 = vector.broadcast %336 : vector<1x128xf32> to vector<2x128xf32>
    %338 = arith.addf %335, %337 : vector<2x128xf32>
    %339 = arith.truncf %332 : vector<2x128xf32> to vector<2x128xbf16>
    %c0_361 = arith.constant 0 : index
    %c0_362 = arith.constant 0 : index
    %340 = vector.load %arg15[%c0_361, %c0_362] : memref<128x128xbf16, #tpu.memory_space<vmem>>, vector<128x128xbf16>
    %cst_363 = arith.constant dense<0.000000e+00> : vector<2x128xf32>
    %341 = tpu.matmul %339, %340, %cst_363 {dimension_numbers = #tpu.dot_dimension_numbers<[1], [0], [0], [1], [0, 0, 1, 1], [], []>} : vector<2x128xbf16>, vector<128x128xbf16>, vector<2x128xf32> -> vector<2x128xf32>
    %c0_364 = arith.constant 0 : index
    %c0_365 = arith.constant 0 : index
    %342 = vector.load %arg16[%c0_364, %c0_365] : memref<1x128xf32, #tpu.memory_space<vmem>>, vector<1x128xf32>
    %343 = vector.broadcast %342 : vector<1x128xf32> to vector<2x128xf32>
    %344 = arith.addf %341, %343 : vector<2x128xf32>
    %345 = arith.addf %344, %338 : vector<2x128xf32>
    %cst_366 = arith.constant 0.000000e+00 : f32
    %346 = vector.broadcast %cst_366 : f32 to vector<2x128xf32>
    %347 = arith.maximumf %345, %346 : vector<2x128xf32>
    %348 = arith.truncf %347 : vector<2x128xf32> to vector<2x128xbf16>
    %c0_367 = arith.constant 0 : index
    %c0_368 = arith.constant 0 : index
    %349 = vector.load %arg17[%c0_367, %c0_368] : memref<128x128xbf16, #tpu.memory_space<vmem>>, vector<128x128xbf16>
    %cst_369 = arith.constant dense<0.000000e+00> : vector<2x128xf32>
    %350 = tpu.matmul %348, %349, %cst_369 {dimension_numbers = #tpu.dot_dimension_numbers<[1], [0], [0], [1], [0, 0, 1, 1], [], []>} : vector<2x128xbf16>, vector<128x128xbf16>, vector<2x128xf32> -> vector<2x128xf32>
    %c0_370 = arith.constant 0 : index
    %c0_371 = arith.constant 0 : index
    %351 = vector.load %arg18[%c0_370, %c0_371] : memref<1x128xf32, #tpu.memory_space<vmem>>, vector<1x128xf32>
    %352 = vector.broadcast %351 : vector<1x128xf32> to vector<2x128xf32>
    %353 = arith.addf %350, %352 : vector<2x128xf32>
    %cst_372 = arith.constant 0.000000e+00 : f32
    %354 = vector.broadcast %cst_372 : f32 to vector<2x128xf32>
    %355 = arith.maximumf %353, %354 : vector<2x128xf32>
    %356 = arith.truncf %355 : vector<2x128xf32> to vector<2x128xbf16>
    %c0_373 = arith.constant 0 : index
    %c0_374 = arith.constant 0 : index
    %357 = vector.load %arg19[%c0_373, %c0_374] : memref<128x128xbf16, #tpu.memory_space<vmem>>, vector<128x128xbf16>
    %cst_375 = arith.constant dense<0.000000e+00> : vector<2x128xf32>
    %358 = tpu.matmul %356, %357, %cst_375 {dimension_numbers = #tpu.dot_dimension_numbers<[1], [0], [0], [1], [0, 0, 1, 1], [], []>} : vector<2x128xbf16>, vector<128x128xbf16>, vector<2x128xf32> -> vector<2x128xf32>
    %c0_376 = arith.constant 0 : index
    %c0_377 = arith.constant 0 : index
    %359 = vector.load %arg20[%c0_376, %c0_377] : memref<1x128xf32, #tpu.memory_space<vmem>>, vector<1x128xf32>
    %360 = vector.broadcast %359 : vector<1x128xf32> to vector<2x128xf32>
    %361 = arith.addf %358, %360 : vector<2x128xf32>
    %362 = arith.addf %361, %347 : vector<2x128xf32>
    %cst_378 = arith.constant 0.000000e+00 : f32
    %363 = vector.broadcast %cst_378 : f32 to vector<2x128xf32>
    %364 = arith.maximumf %362, %363 : vector<2x128xf32>
    %365 = arith.truncf %364 : vector<2x128xf32> to vector<2x128xbf16>
    %c0_379 = arith.constant 0 : index
    %c0_380 = arith.constant 0 : index
    %366 = vector.load %arg23[%c0_379, %c0_380] : memref<128x256xbf16, #tpu.memory_space<vmem>>, vector<128x256xbf16>
    %cst_381 = arith.constant dense<0.000000e+00> : vector<2x256xf32>
    %367 = tpu.matmul %365, %366, %cst_381 {dimension_numbers = #tpu.dot_dimension_numbers<[1], [0], [0], [1], [0, 0, 1, 1], [], []>} : vector<2x128xbf16>, vector<128x256xbf16>, vector<2x256xf32> -> vector<2x256xf32>
    %c0_382 = arith.constant 0 : index
    %c0_383 = arith.constant 0 : index
    %368 = vector.load %arg24[%c0_382, %c0_383] : memref<1x256xf32, #tpu.memory_space<vmem>>, vector<1x256xf32>
    %369 = vector.broadcast %368 : vector<1x256xf32> to vector<2x256xf32>
    %370 = arith.addf %367, %369 : vector<2x256xf32>
    %371 = arith.truncf %364 : vector<2x128xf32> to vector<2x128xbf16>
    %c0_384 = arith.constant 0 : index
    %c0_385 = arith.constant 0 : index
    %372 = vector.load %arg21[%c0_384, %c0_385] : memref<128x256xbf16, #tpu.memory_space<vmem>>, vector<128x256xbf16>
    %cst_386 = arith.constant dense<0.000000e+00> : vector<2x256xf32>
    %373 = tpu.matmul %371, %372, %cst_386 {dimension_numbers = #tpu.dot_dimension_numbers<[1], [0], [0], [1], [0, 0, 1, 1], [], []>} : vector<2x128xbf16>, vector<128x256xbf16>, vector<2x256xf32> -> vector<2x256xf32>
    %c0_387 = arith.constant 0 : index
    %c0_388 = arith.constant 0 : index
    %374 = vector.load %arg22[%c0_387, %c0_388] : memref<1x256xf32, #tpu.memory_space<vmem>>, vector<1x256xf32>
    %375 = vector.broadcast %374 : vector<1x256xf32> to vector<2x256xf32>
    %376 = arith.addf %373, %375 : vector<2x256xf32>
    %cst_389 = arith.constant 0.000000e+00 : f32
    %377 = vector.broadcast %cst_389 : f32 to vector<2x256xf32>
    %378 = arith.maximumf %376, %377 : vector<2x256xf32>
    %379 = arith.truncf %378 : vector<2x256xf32> to vector<2x256xbf16>
    %c0_390 = arith.constant 0 : index
    %c0_391 = arith.constant 0 : index
    %380 = vector.load %arg25[%c0_390, %c0_391] : memref<256x256xbf16, #tpu.memory_space<vmem>>, vector<256x256xbf16>
    %cst_392 = arith.constant dense<0.000000e+00> : vector<2x256xf32>
    %381 = tpu.matmul %379, %380, %cst_392 {dimension_numbers = #tpu.dot_dimension_numbers<[1], [0], [0], [1], [0, 0, 1, 1], [], []>} : vector<2x256xbf16>, vector<256x256xbf16>, vector<2x256xf32> -> vector<2x256xf32>
    %c0_393 = arith.constant 0 : index
    %c0_394 = arith.constant 0 : index
    %382 = vector.load %arg26[%c0_393, %c0_394] : memref<1x256xf32, #tpu.memory_space<vmem>>, vector<1x256xf32>
    %383 = vector.broadcast %382 : vector<1x256xf32> to vector<2x256xf32>
    %384 = arith.addf %381, %383 : vector<2x256xf32>
    %385 = arith.addf %384, %370 : vector<2x256xf32>
    %cst_395 = arith.constant 0.000000e+00 : f32
    %386 = vector.broadcast %cst_395 : f32 to vector<2x256xf32>
    %387 = arith.maximumf %385, %386 : vector<2x256xf32>
    %388 = arith.truncf %387 : vector<2x256xf32> to vector<2x256xbf16>
    %c0_396 = arith.constant 0 : index
    %c0_397 = arith.constant 0 : index
    %389 = vector.load %arg27[%c0_396, %c0_397] : memref<256x256xbf16, #tpu.memory_space<vmem>>, vector<256x256xbf16>
    %cst_398 = arith.constant dense<0.000000e+00> : vector<2x256xf32>
    %390 = tpu.matmul %388, %389, %cst_398 {dimension_numbers = #tpu.dot_dimension_numbers<[1], [0], [0], [1], [0, 0, 1, 1], [], []>} : vector<2x256xbf16>, vector<256x256xbf16>, vector<2x256xf32> -> vector<2x256xf32>
    %c0_399 = arith.constant 0 : index
    %c0_400 = arith.constant 0 : index
    %391 = vector.load %arg28[%c0_399, %c0_400] : memref<1x256xf32, #tpu.memory_space<vmem>>, vector<1x256xf32>
    %392 = vector.broadcast %391 : vector<1x256xf32> to vector<2x256xf32>
    %393 = arith.addf %390, %392 : vector<2x256xf32>
    %cst_401 = arith.constant 0.000000e+00 : f32
    %394 = vector.broadcast %cst_401 : f32 to vector<2x256xf32>
    %395 = arith.maximumf %393, %394 : vector<2x256xf32>
    %396 = arith.truncf %395 : vector<2x256xf32> to vector<2x256xbf16>
    %c0_402 = arith.constant 0 : index
    %c0_403 = arith.constant 0 : index
    %397 = vector.load %arg29[%c0_402, %c0_403] : memref<256x256xbf16, #tpu.memory_space<vmem>>, vector<256x256xbf16>
    %cst_404 = arith.constant dense<0.000000e+00> : vector<2x256xf32>
    %398 = tpu.matmul %396, %397, %cst_404 {dimension_numbers = #tpu.dot_dimension_numbers<[1], [0], [0], [1], [0, 0, 1, 1], [], []>} : vector<2x256xbf16>, vector<256x256xbf16>, vector<2x256xf32> -> vector<2x256xf32>
    %c0_405 = arith.constant 0 : index
    %c0_406 = arith.constant 0 : index
    %399 = vector.load %arg30[%c0_405, %c0_406] : memref<1x256xf32, #tpu.memory_space<vmem>>, vector<1x256xf32>
    %400 = vector.broadcast %399 : vector<1x256xf32> to vector<2x256xf32>
    %401 = arith.addf %398, %400 : vector<2x256xf32>
    %402 = arith.addf %401, %387 : vector<2x256xf32>
    %cst_407 = arith.constant 0.000000e+00 : f32
    %403 = vector.broadcast %cst_407 : f32 to vector<2x256xf32>
    %404 = arith.maximumf %402, %403 : vector<2x256xf32>
    %405 = arith.truncf %404 : vector<2x256xf32> to vector<2x256xbf16>
    %c0_408 = arith.constant 0 : index
    %c0_409 = arith.constant 0 : index
    %406 = vector.load %arg33[%c0_408, %c0_409] : memref<256x512xbf16, #tpu.memory_space<vmem>>, vector<256x512xbf16>
    %cst_410 = arith.constant dense<0.000000e+00> : vector<2x512xf32>
    %407 = tpu.matmul %405, %406, %cst_410 {dimension_numbers = #tpu.dot_dimension_numbers<[1], [0], [0], [1], [0, 0, 1, 1], [], []>} : vector<2x256xbf16>, vector<256x512xbf16>, vector<2x512xf32> -> vector<2x512xf32>
    %c0_411 = arith.constant 0 : index
    %c0_412 = arith.constant 0 : index
    %408 = vector.load %arg34[%c0_411, %c0_412] : memref<1x512xf32, #tpu.memory_space<vmem>>, vector<1x512xf32>
    %409 = vector.broadcast %408 : vector<1x512xf32> to vector<2x512xf32>
    %410 = arith.addf %407, %409 : vector<2x512xf32>
    %411 = arith.truncf %404 : vector<2x256xf32> to vector<2x256xbf16>
    %c0_413 = arith.constant 0 : index
    %c0_414 = arith.constant 0 : index
    %412 = vector.load %arg31[%c0_413, %c0_414] : memref<256x512xbf16, #tpu.memory_space<vmem>>, vector<256x512xbf16>
    %cst_415 = arith.constant dense<0.000000e+00> : vector<2x512xf32>
    %413 = tpu.matmul %411, %412, %cst_415 {dimension_numbers = #tpu.dot_dimension_numbers<[1], [0], [0], [1], [0, 0, 1, 1], [], []>} : vector<2x256xbf16>, vector<256x512xbf16>, vector<2x512xf32> -> vector<2x512xf32>
    %c0_416 = arith.constant 0 : index
    %c0_417 = arith.constant 0 : index
    %414 = vector.load %arg32[%c0_416, %c0_417] : memref<1x512xf32, #tpu.memory_space<vmem>>, vector<1x512xf32>
    %415 = vector.broadcast %414 : vector<1x512xf32> to vector<2x512xf32>
    %416 = arith.addf %413, %415 : vector<2x512xf32>
    %cst_418 = arith.constant 0.000000e+00 : f32
    %417 = vector.broadcast %cst_418 : f32 to vector<2x512xf32>
    %418 = arith.maximumf %416, %417 : vector<2x512xf32>
    %419 = arith.truncf %418 : vector<2x512xf32> to vector<2x512xbf16>
    %c0_419 = arith.constant 0 : index
    %c0_420 = arith.constant 0 : index
    %420 = vector.load %arg35[%c0_419, %c0_420] : memref<512x512xbf16, #tpu.memory_space<vmem>>, vector<512x512xbf16>
    %cst_421 = arith.constant dense<0.000000e+00> : vector<2x512xf32>
    %421 = tpu.matmul %419, %420, %cst_421 {dimension_numbers = #tpu.dot_dimension_numbers<[1], [0], [0], [1], [0, 0, 1, 1], [], []>} : vector<2x512xbf16>, vector<512x512xbf16>, vector<2x512xf32> -> vector<2x512xf32>
    %c0_422 = arith.constant 0 : index
    %c0_423 = arith.constant 0 : index
    %422 = vector.load %arg36[%c0_422, %c0_423] : memref<1x512xf32, #tpu.memory_space<vmem>>, vector<1x512xf32>
    %423 = vector.broadcast %422 : vector<1x512xf32> to vector<2x512xf32>
    %424 = arith.addf %421, %423 : vector<2x512xf32>
    %425 = arith.addf %424, %410 : vector<2x512xf32>
    %cst_424 = arith.constant 0.000000e+00 : f32
    %426 = vector.broadcast %cst_424 : f32 to vector<2x512xf32>
    %427 = arith.maximumf %425, %426 : vector<2x512xf32>
    %428 = arith.truncf %427 : vector<2x512xf32> to vector<2x512xbf16>
    %c0_425 = arith.constant 0 : index
    %c0_426 = arith.constant 0 : index
    %429 = vector.load %arg37[%c0_425, %c0_426] : memref<512x512xbf16, #tpu.memory_space<vmem>>, vector<512x512xbf16>
    %cst_427 = arith.constant dense<0.000000e+00> : vector<2x512xf32>
    %430 = tpu.matmul %428, %429, %cst_427 {dimension_numbers = #tpu.dot_dimension_numbers<[1], [0], [0], [1], [0, 0, 1, 1], [], []>} : vector<2x512xbf16>, vector<512x512xbf16>, vector<2x512xf32> -> vector<2x512xf32>
    %c0_428 = arith.constant 0 : index
    %c0_429 = arith.constant 0 : index
    %431 = vector.load %arg38[%c0_428, %c0_429] : memref<1x512xf32, #tpu.memory_space<vmem>>, vector<1x512xf32>
    %432 = vector.broadcast %431 : vector<1x512xf32> to vector<2x512xf32>
    %433 = arith.addf %430, %432 : vector<2x512xf32>
    %cst_430 = arith.constant 0.000000e+00 : f32
    %434 = vector.broadcast %cst_430 : f32 to vector<2x512xf32>
    %435 = arith.maximumf %433, %434 : vector<2x512xf32>
    %436 = arith.truncf %435 : vector<2x512xf32> to vector<2x512xbf16>
    %c0_431 = arith.constant 0 : index
    %c0_432 = arith.constant 0 : index
    %437 = vector.load %arg39[%c0_431, %c0_432] : memref<512x512xbf16, #tpu.memory_space<vmem>>, vector<512x512xbf16>
    %cst_433 = arith.constant dense<0.000000e+00> : vector<2x512xf32>
    %438 = tpu.matmul %436, %437, %cst_433 {dimension_numbers = #tpu.dot_dimension_numbers<[1], [0], [0], [1], [0, 0, 1, 1], [], []>} : vector<2x512xbf16>, vector<512x512xbf16>, vector<2x512xf32> -> vector<2x512xf32>
    %c0_434 = arith.constant 0 : index
    %c0_435 = arith.constant 0 : index
    %439 = vector.load %arg40[%c0_434, %c0_435] : memref<1x512xf32, #tpu.memory_space<vmem>>, vector<1x512xf32>
    %440 = vector.broadcast %439 : vector<1x512xf32> to vector<2x512xf32>
    %441 = arith.addf %438, %440 : vector<2x512xf32>
    %442 = arith.addf %441, %427 : vector<2x512xf32>
    %cst_436 = arith.constant 0.000000e+00 : f32
    %443 = vector.broadcast %cst_436 : f32 to vector<2x512xf32>
    %444 = arith.maximumf %442, %443 : vector<2x512xf32>
    %445 = arith.truncf %444 : vector<2x512xf32> to vector<2x512xbf16>
    %c0_437 = arith.constant 0 : index
    %c0_438 = arith.constant 0 : index
    %446 = vector.load %arg41[%c0_437, %c0_438] : memref<512x10xbf16, #tpu.memory_space<vmem>>, vector<512x10xbf16>
    %cst_439 = arith.constant dense<0.000000e+00> : vector<2x10xf32>
    %447 = tpu.matmul %445, %446, %cst_439 {dimension_numbers = #tpu.dot_dimension_numbers<[1], [0], [0], [1], [0, 0, 1, 1], [], []>} : vector<2x512xbf16>, vector<512x10xbf16>, vector<2x10xf32> -> vector<2x10xf32>
    %c0_440 = arith.constant 0 : index
    %c0_441 = arith.constant 0 : index
    %448 = vector.load %arg42[%c0_440, %c0_441] : memref<1x10xf32, #tpu.memory_space<vmem>>, vector<1x10xf32>
    %449 = vector.broadcast %448 : vector<1x10xf32> to vector<2x10xf32>
    %450 = arith.addf %447, %449 : vector<2x10xf32>
    %c0_442 = arith.constant 0 : index
    %c0_443 = arith.constant 0 : index
    %451 = vector.load %arg43[%c0_442, %c0_443] : memref<2x10xf32, #tpu.memory_space<vmem>>, vector<2x10xf32>
    tpu.vector_store %arg43[%c0_442, %c0_443], %450 {strides = array<i32>} : memref<2x10xf32, #tpu.memory_space<vmem>>, vector<2x10xf32>,
    return
  }
}

</mosaic_0001>

<bundles_post_ra>
// kernel: improved_ae_resnet18_forward.4
= control target key start
LH: loop header
LB: loop body
LE: loop exit
PB: predicated region body
PF: predicated region fallthrough
CT: control target
= control target key end

     0   :  { %8 = vsyncpa [#allocation3], 0  ;;  %s2391_s0 = inlined_call_operand.vmem [shape: bf16[512,25], index: 0, kind: input, shape index: {}]   ;;  %s2392_s1 = inlined_call_operand.hbm [shape: bf16[25,32], index: 1, kind: input, shape index: {}]   ;;  %s2393_s2 = inlined_call_operand.hbm [shape: f32[1,32], index: 2, kind: input, shape index: {}]   ;;  %s2394_s3 = inlined_call_operand.vmem [shape: bf16[512,32], index: 3, kind: output, shape index: {}]  }
   0x1   :  { %s16_s14 = sshll.u32 %s2392_s1, 4  ;;  %s17_s14 = int_to_ptr.hbm [resolvable:$true] %s16_s14 }
   0x2   :  { %9 = vsyncpa [#allocation5], 0  ;;  %s1539_s15 = smov [#allocation2]   ;;  %s30_s19 = sshll.u32 %s2393_s2, 4  ;;  %s31_s19 = int_to_ptr.hbm [resolvable:$true] %s30_s19 }
   0x3   :  { %s18_s16 = sshll.u32 %s1539_s15, 4  ;;  %s1540_s20 = smov 64   ;;  %s19_s16 = int_to_ptr.vmem [resolvable:$true] %s18_s16 }
   0x4   :  { %s1541_s21 = smov 4   ;;  %s1542_s22 = smov [#allocation4]  }
   0x5   :  { %24 = dma.hbm_to_vmem [thread:$0]  %s17_s14, 256, %s19_s16, [#allocation3], %s1540_s20, %s1540_s20, %s1541_s21  }
   0x6   :  { %s32_s23 = sshll.u32 %s1542_s22, 4  ;;  %s33_s23 = int_to_ptr.vmem [resolvable:$true] %s32_s23 }
   0x7   :  { %35 = dma.hbm_to_vmem [thread:$0]  %s31_s19, 16, %s33_s23, [#allocation5]  }
   0x8   :  { %1535 = dma.done.wait [#allocation3], 256  }
   0x9   :  { %1536 = vsyncadd [#allocation3], 4294967040 }
   0xa   :  { %1537 = dma.done.wait [#allocation5], 16  }
   0xb   :  { %1538 = vsyncadd [#allocation5], 4294967280  ;;  %vm385_vm0 = vcmask 1043456   ;;  %vm386_vm1 = vcmask 1044480   ;;  %v1543_v0 = vmov 65535   ;;  %v1344_v7 = vld [vmem:[#allocation2] sm:$0xff] }
   0xc   :  { %v387_v1 = vsel %vm385_vm0, 4294967295, %v1543_v0  ;;  %v1214_v2 = vld [vmem:[#allocation2 + $0x8] sm:$0xf]  ;;  %v1345_v3 = vld [vmem:[#allocation2 + $0x8] sm:$0x10]  ;;  %v1312_v8 = vld [vmem:[%s2391_s0] sm:$0xff] }
   0xd   :  { %v388_v4 = vsel %vm386_vm1, %v387_v1, 0  ;;  %v1215_v5 = vor.u32 %v1345_v3, %v1214_v2  ;;  %v1320_v9 = vld [vmem:[%s2391_s0 + $0x40] sm:$0xff]  ;;  %vm288_vm2 = vcmask 203776   ;;  %v1313_v12 = vld [vmem:[%s2391_s0 + $0x8] sm:$0xff]  ;;  %v1314_v16 = vld [vmem:[%s2391_s0 + $0x10] sm:$0xff]  ;;  %vm1009_vm3 = vcmask 257024  }
   0xe   :  { %v1328_v10 = vld [vmem:[%s2391_s0 + $0x80] sm:$0xff]  ;;  %v1321_v13 = vld [vmem:[%s2391_s0 + $0x48] sm:$0xff]  ;;  %v1322_v17 = vld [vmem:[%s2391_s0 + $0x50] sm:$0xff] }
   0xf   :  { %v390_v6 = vand.u32 %v1215_v5, %v388_v4  ;;  %v1336_v11 = vld [vmem:[%s2391_s0 + $0xc0] sm:$0xff]  ;;  %v1329_v14 = vld [vmem:[%s2391_s0 + $0x88] sm:$0xff]  ;;  %v1330_v18 = vld [vmem:[%s2391_s0 + $0x90] sm:$0xff] }
  0x10   :  { %v1337_v15 = vld [vmem:[%s2391_s0 + $0xc8] sm:$0xff]  ;;  %v1338_v19 = vld [vmem:[%s2391_s0 + $0xd0] sm:$0xff]  ;;  %v1315_v20 = vld [vmem:[%s2391_s0 + $0x18] sm:$0xff] }
  0x11   :  { %398 = vmatpush.bf16.msra.mxu0 %v390_v6  ;;  %1346 = vmatpush.bf16.msra.mxu1 %v390_v6  ;;  %v1323_v21 = vld [vmem:[%s2391_s0 + $0x58] sm:$0xff]  ;;  %v1316_v24 = vld [vmem:[%s2391_s0 + $0x20] sm:$0xff]  ;;  %v1317_v28 = vld [vmem:[%s2391_s0 + $0x28] sm:$0xff] }
  0x12   :  { %1347 = vmatpush.bf16.msra.mxu2 %v390_v6  ;;  %1348 = vmatpush.bf16.msra.mxu3 %v390_v6  ;;  %v1331_v22 = vld [vmem:[%s2391_s0 + $0x98] sm:$0xff]  ;;  %v1324_v25 = vld [vmem:[%s2391_s0 + $0x60] sm:$0xff]  ;;  %v1325_v29 = vld [vmem:[%s2391_s0 + $0x68] sm:$0xff] }
  0x13   :  { %v1339_v23 = vld [vmem:[%s2391_s0 + $0xd8] sm:$0xff]  ;;  %v1332_v26 = vld [vmem:[%s2391_s0 + $0xa0] sm:$0xff]  ;;  %v1333_v30 = vld [vmem:[%s2391_s0 + $0xa8] sm:$0xff] }
  0x14   :  { %v1340_v27 = vld [vmem:[%s2391_s0 + $0xe0] sm:$0xff]  ;;  %v1341_v31 = vld [vmem:[%s2391_s0 + $0xe8] sm:$0xff]  ;;  %v1318_v32 = vld [vmem:[%s2391_s0 + $0x30] sm:$0xff] }
  0x15   :  { %399 = vmatpush.bf16.msra.mxu0 %v1344_v7  ;;  %1349 = vmatpush.bf16.msra.mxu1 %v1344_v7  ;;  %v1326_v33 = vld [vmem:[%s2391_s0 + $0x70] sm:$0xff]  ;;  %v1319_v36 = vld [vmem:[%s2391_s0 + $0x38] sm:$0xff] }
  0x16   :  { %1350 = vmatpush.bf16.msra.mxu2 %v1344_v7  ;;  %1351 = vmatpush.bf16.msra.mxu3 %v1344_v7  ;;  %v1334_v34 = vld [vmem:[%s2391_s0 + $0xb0] sm:$0xff]  ;;  %v1327_v37 = vld [vmem:[%s2391_s0 + $0x78] sm:$0xff] }
  0x17   :  { %v1342_v35 = vld [vmem:[%s2391_s0 + $0xf0] sm:$0xff]  ;;  %v1335_v38 = vld [vmem:[%s2391_s0 + $0xb8] sm:$0xff] }
  0x18   :  { %1216 = vmatmul.msk.bf16.vlgmr.msra.gmra.mxu0 %vm288_vm2, %v1312_v8  ;;  %1224 = vmatmul.msk.bf16.vlgmr.msra.gmra.mxu1 %vm288_vm2, %v1320_v9  ;;  %v1343_v39 = vld [vmem:[%s2391_s0 + $0xf8] sm:$0xff]  ;;  %v1698_v40 = vld [vmem:[#allocation4] ss:$0 sm:$0xff] }
  0x19   :  { %1232 = vmatmul.msk.bf16.vlgmr.msra.gmra.mxu2 %vm288_vm2, %v1328_v10  ;;  %1240 = vmatmul.msk.bf16.vlgmr.msra.gmra.mxu3 %vm288_vm2, %v1336_v11 }
  0x28   :  { %1217 = vmatmul.msk.bf16.gmra.mxu0 %vm288_vm2, %v1313_v12  ;;  %1225 = vmatmul.msk.bf16.gmra.mxu1 %vm288_vm2, %v1321_v13 }
  0x29   :  { %1233 = vmatmul.msk.bf16.gmra.mxu2 %vm288_vm2, %v1329_v14  ;;  %1241 = vmatmul.msk.bf16.gmra.mxu3 %vm288_vm2, %v1337_v15 }
  0x38   :  { %1218 = vmatmul.msk.bf16.gmra.mxu0 %vm288_vm2, %v1314_v16  ;;  %1226 = vmatmul.msk.bf16.gmra.mxu1 %vm288_vm2, %v1322_v17 }
  0x39   :  { %1234 = vmatmul.msk.bf16.gmra.mxu2 %vm288_vm2, %v1330_v18  ;;  %1242 = vmatmul.msk.bf16.gmra.mxu3 %vm288_vm2, %v1338_v19 }
  0x48   :  { %1219 = vmatmul.msk.bf16.gmra.mxu0 %vm288_vm2, %v1315_v20  ;;  %1227 = vmatmul.msk.bf16.gmra.mxu1 %vm288_vm2, %v1323_v21 }
  0x49   :  { %1235 = vmatmul.msk.bf16.gmra.mxu2 %vm288_vm2, %v1331_v22  ;;  %1243 = vmatmul.msk.bf16.gmra.mxu3 %vm288_vm2, %v1339_v23 }
  0x58   :  { %1220 = vmatmul.msk.bf16.gmra.mxu0 %vm288_vm2, %v1316_v24  ;;  %1228 = vmatmul.msk.bf16.gmra.mxu1 %vm288_vm2, %v1324_v25 }
  0x59   :  { %1236 = vmatmul.msk.bf16.gmra.mxu2 %vm288_vm2, %v1332_v26  ;;  %1244 = vmatmul.msk.bf16.gmra.mxu3 %vm288_vm2, %v1340_v27 }
  0x68   :  { %1221 = vmatmul.msk.bf16.gmra.mxu0 %vm288_vm2, %v1317_v28  ;;  %1229 = vmatmul.msk.bf16.gmra.mxu1 %vm288_vm2, %v1325_v29 }
  0x69   :  { %1237 = vmatmul.msk.bf16.gmra.mxu2 %vm288_vm2, %v1333_v30  ;;  %1245 = vmatmul.msk.bf16.gmra.mxu3 %vm288_vm2, %v1341_v31 }
  0x78   :  { %1222 = vmatmul.msk.bf16.gmra.mxu0 %vm288_vm2, %v1318_v32  ;;  %1230 = vmatmul.msk.bf16.gmra.mxu1 %vm288_vm2, %v1326_v33 }
  0x79   :  { %1238 = vmatmul.msk.bf16.gmra.mxu2 %vm288_vm2, %v1334_v34  ;;  %1246 = vmatmul.msk.bf16.gmra.mxu3 %vm288_vm2, %v1342_v35 }
  0x88   :  { %1223 = vmatmul.msk.bf16.gmra.mxu0 %vm288_vm2, %v1319_v36  ;;  %1231 = vmatmul.msk.bf16.gmra.mxu1 %vm288_vm2, %v1327_v37 }
  0x89   :  { %1239 = vmatmul.msk.bf16.gmra.mxu2 %vm288_vm2, %v1335_v38  ;;  %1247 = vmatmul.msk.bf16.gmra.mxu3 %vm288_vm2, %v1343_v39 }
  0x95   :  { %v401_v41 = vpop.f32.mrf.mxu0  ;;  %v441_v42 = vpop.f32.mrf.mxu1 }
  0x96   :  { %v402_v43 = vadd.f32 %v1698_v40, %v401_v41  ;;  %v442_v44 = vadd.f32 %v1698_v40, %v441_v42 }
  0x98   :  { %v625_v45 = vmin.f32 %v402_v43, 0.0  ;;  %v641_v46 = vmin.f32 %v442_v44, 0.0  ;;  %vm561_vm4 = vcmp.gt.f32.partialorder %v402_v43, 0.0  ;;  %vm577_vm5 = vcmp.gt.f32.partialorder %v442_v44, 0.0 }
  0x9a   :  { %v689_v47 = vmul.f32 1.442695, %v625_v45  ;;  %v721_v48 = vmul.f32 1.442695, %v641_v46 }
  0x9c   :  { %1358 = vpow2.f32 %v689_v47  ;;  %v481_v49 = vpop.f32.mrf.mxu2  ;;  %v521_v50 = vpop.f32.mrf.mxu3 }
  0x9d   :  { %1360 = vpow2.f32 %v721_v48  ;;  %v482_v51 = vadd.f32 %v1698_v40, %v481_v49  ;;  %v1704_v52 = vadd.f32 %v1698_v40, %v521_v50  ;;  %v403_v53 = vpop.f32.mrf.mxu0  ;;  %v443_v54 = vpop.f32.mrf.mxu1 }
  0x9e   :  { %v1707_v55 = vadd.f32 %v1698_v40, %v403_v53  ;;  %v1710_v56 = vadd.f32 %v1698_v40, %v443_v54 }
  0x9f   :  { %v657_v57 = vmin.f32 %v482_v51, 0.0  ;;  %v673_v58 = vmin.f32 %v1704_v52, 0.0  ;;  %vm593_vm6 = vcmp.gt.f32.partialorder %v482_v51, 0.0  ;;  %vm609_vm7 = vcmp.gt.f32.partialorder %v1704_v52, 0.0 }
  0xa0   :  { %v626_v59 = vmin.f32 %v1707_v55, 0.0  ;;  %v642_v60 = vmin.f32 %v1710_v56, 0.0  ;;  %vm562_vm8 = vcmp.gt.f32.partialorder %v1707_v55, 0.0  ;;  %vm578_vm9 = vcmp.gt.f32.partialorder %v1710_v56, 0.0 }
  0xa1   :  { %v753_v61 = vmul.f32 1.442695, %v657_v57  ;;  %v785_v62 = vmul.f32 1.442695, %v673_v58 }
  0xa2   :  { %v1359_v63 = vpop.eup %1358  ;;  %v691_v0 = vmul.f32 1.442695, %v626_v59  ;;  %v723_v1 = vmul.f32 1.442695, %v642_v60 }
  0xa3   :  { %v1361_v2 = vpop.eup %1360  ;;  %v1248_v3 = vadd.f32 -1.0, %v1359_v63  ;;  %1362 = vpow2.f32 %v753_v61 }
  0xa4   :  { %v1264_v4 = vadd.f32 -1.0, %v1361_v2  ;;  %1364 = vpow2.f32 %v785_v62  ;;  %v483_v5 = vpop.f32.mrf.mxu2  ;;  %v523_v6 = vpop.f32.mrf.mxu3 }
  0xa5   :  { %v881_v7 = vsel %vm561_vm4, %v402_v43, %v1248_v3  ;;  %1366 = vpow2.f32 %v691_v0  ;;  %v1716_v8 = vadd.f32 %v1698_v40, %v483_v5  ;;  %v1719_v9 = vadd.f32 %v1698_v40, %v523_v6  ;;  %v406_v10 = vpop.f32.mrf.mxu0  ;;  %v446_v11 = vpop.f32.mrf.mxu1 }
  0xa6   :  { %v945_v12 = vpack.c.bf16 %v881_v7, %v881_v7  ;;  %v897_v13 = vsel %vm577_vm5, %v442_v44, %v1264_v4  ;;  %1368 = vpow2.f32 %v723_v1  ;;  %v1722_v14 = vadd.f32 %v1698_v40, %v406_v10 }
  0xa7   :  { %v961_v15 = vpack.c.bf16 %v897_v13, %v897_v13  ;;  %v658_v16 = vmin.f32 %v1716_v8, 0.0  ;;  %v674_v17 = vmin.f32 %v1719_v9, 0.0  ;;  %v1732_v19 = vadd.f32 %v1698_v40, %v446_v11 }
  0xa8   :  { %1010 = vst.msk [vmem:[%s2394_s3] sm:$0xf] %vm1009_vm3, %v945_v12  ;;  %v627_v18 = vmin.f32 %v1722_v14, 0.0  ;;  %vm594_vm10 = vcmp.gt.f32.partialorder %v1716_v8, 0.0  ;;  %vm610_vm11 = vcmp.gt.f32.partialorder %v1719_v9, 0.0  ;;  %vm563_vm12 = vcmp.gt.f32.partialorder %v1722_v14, 0.0 }
  0xa9   :  { %v1363_v20 = vpop.eup %1362  ;;  %1026 = vst.msk [vmem:[%s2394_s3 + $0x40] sm:$0xf] %vm1009_vm3, %v961_v15  ;;  %v755_v21 = vmul.f32 1.442695, %v658_v16  ;;  %v787_v24 = vmul.f32 1.442695, %v674_v17 }
  0xaa   :  { %v1365_v22 = vpop.eup %1364  ;;  %v1280_v23 = vadd.f32 -1.0, %v1363_v20  ;;  %v693_v25 = vmul.f32 1.442695, %v627_v18  ;;  %v643_v28 = vmin.f32 %v1732_v19, 0.0  ;;  %vm579_vm13 = vcmp.gt.f32.partialorder %v1732_v19, 0.0 }
  0xab   :  { %v1367_v26 = vpop.eup %1366  ;;  %v1296_v27 = vadd.f32 -1.0, %v1365_v22  ;;  %1370 = vpow2.f32 %v755_v21 }
  0xac   :  { %v1369_v29 = vpop.eup %1368  ;;  %v913_v30 = vsel %vm593_vm6, %v482_v51, %v1280_v23  ;;  %v1249_v31 = vadd.f32 -1.0, %v1367_v26  ;;  %1372 = vpow2.f32 %v787_v24  ;;  %v486_v32 = vpop.f32.mrf.mxu2  ;;  %v725_v42 = vmul.f32 1.442695, %v643_v28 }
  0xad   :  { %v526_v33 = vpop.f32.mrf.mxu3  ;;  %v977_v34 = vpack.c.bf16 %v913_v30, %v913_v30  ;;  %v929_v35 = vsel %vm609_vm7, %v1704_v52, %v1296_v27  ;;  %v1265_v36 = vadd.f32 -1.0, %v1369_v29  ;;  %1374 = vpow2.f32 %v693_v25  ;;  %v408_v37 = vpop.f32.mrf.mxu0 }
  0xae   :  { %v448_v38 = vpop.f32.mrf.mxu1  ;;  %v993_v39 = vpack.c.bf16 %v929_v35, %v929_v35  ;;  %v882_v41 = vsel %vm562_vm8, %v1707_v55, %v1249_v31  ;;  %v1749_v43 = vadd.f32 %v1698_v40, %v486_v32  ;;  %v1759_v46 = vadd.f32 %v1698_v40, %v526_v33 }
  0xaf   :  { %1042 = vst.msk [vmem:[%s2394_s3 + $0x80] sm:$0xf] %vm1009_vm3, %v977_v34  ;;  %v946_v44 = vpack.c.bf16 %v882_v41, %v882_v41  ;;  %v898_v45 = vsel %vm578_vm9, %v1710_v56, %v1265_v36  ;;  %v1762_v47 = vadd.f32 %v1698_v40, %v408_v37  ;;  %1376 = vpow2.f32 %v725_v42 }
  0xb0   :  { %1058 = vst.msk [vmem:[%s2394_s3 + $0xc0] sm:$0xf] %vm1009_vm3, %v993_v39  ;;  %v962_v48 = vpack.c.bf16 %v898_v45, %v898_v45  ;;  %v659_v49 = vmin.f32 %v1749_v43, 0.0  ;;  %v675_v51 = vmin.f32 %v1759_v46, 0.0  ;;  %v1781_v56 = vadd.f32 %v1698_v40, %v448_v38 }
  0xb1   :  { %v1371_v50 = vpop.eup %1370  ;;  %1011 = vst.msk [vmem:[%s2394_s3 + $0x4] sm:$0xf] %vm1009_vm3, %v946_v44  ;;  %v628_v52 = vmin.f32 %v1762_v47, 0.0  ;;  %vm595_vm14 = vcmp.gt.f32.partialorder %v1749_v43, 0.0  ;;  %vm611_vm15 = vcmp.gt.f32.partialorder %v1759_v46, 0.0  ;;  %vm564_vm0 = vcmp.gt.f32.partialorder %v1762_v47, 0.0 }
  0xb2   :  { %v1373_v53 = vpop.eup %1372  ;;  %1027 = vst.msk [vmem:[%s2394_s3 + $0x44] sm:$0xf] %vm1009_vm3, %v962_v48  ;;  %v1281_v54 = vadd.f32 -1.0, %v1371_v50  ;;  %v757_v55 = vmul.f32 1.442695, %v659_v49  ;;  %v644_v3 = vmin.f32 %v1781_v56, 0.0 }
  0xb3   :  { %v1375_v57 = vpop.eup %1374  ;;  %v1297_v58 = vadd.f32 -1.0, %v1373_v53  ;;  %v789_v59 = vmul.f32 1.442695, %v675_v51  ;;  %v695_v60 = vmul.f32 1.442695, %v628_v52  ;;  %vm580_vm1 = vcmp.gt.f32.partialorder %v1781_v56, 0.0 }
  0xb4   :  { %v914_v61 = vsel %vm594_vm10, %v1716_v8, %v1281_v54  ;;  %v1250_v62 = vadd.f32 -1.0, %v1375_v57  ;;  %1378 = vpow2.f32 %v757_v55  ;;  %v488_v63 = vpop.f32.mrf.mxu2  ;;  %v727_v12 = vmul.f32 1.442695, %v644_v3 }
  0xb5   :  { %v528_v0 = vpop.f32.mrf.mxu3  ;;  %v978_v1 = vpack.c.bf16 %v914_v61, %v914_v61  ;;  %v930_v2 = vsel %vm610_vm11, %v1719_v9, %v1297_v58  ;;  %1380 = vpow2.f32 %v789_v59  ;;  %v411_v4 = vpop.f32.mrf.mxu0  ;;  %v1790_v8 = vadd.f32 %v1698_v40, %v488_v63 }
  0xb6   :  { %v451_v5 = vpop.f32.mrf.mxu1  ;;  %v1377_v6 = vpop.eup %1376  ;;  %v994_v7 = vpack.c.bf16 %v930_v2, %v930_v2  ;;  %v883_v10 = vsel %vm563_vm12, %v1722_v14, %v1250_v62  ;;  %1382 = vpow2.f32 %v695_v60  ;;  %v1797_v13 = vadd.f32 %v1698_v40, %v528_v0 }
  0xb7   :  { %1043 = vst.msk [vmem:[%s2394_s3 + $0x84] sm:$0xf] %vm1009_vm3, %v978_v1  ;;  %v947_v11 = vpack.c.bf16 %v883_v10, %v883_v10  ;;  %v1266_v9 = vadd.f32 -1.0, %v1377_v6  ;;  %v660_v14 = vmin.f32 %v1790_v8, 0.0  ;;  %v1806_v15 = vadd.f32 %v1698_v40, %v411_v4 }
  0xb8   :  { %1059 = vst.msk [vmem:[%s2394_s3 + $0xc4] sm:$0xf] %vm1009_vm3, %v994_v7  ;;  %v1809_v16 = vadd.f32 %v1698_v40, %v451_v5  ;;  %1384 = vpow2.f32 %v727_v12  ;;  %v676_v18 = vmin.f32 %v1797_v13, 0.0  ;;  %vm596_vm2 = vcmp.gt.f32.partialorder %v1790_v8, 0.0 }
  0xb9   :  { %1012 = vst.msk [vmem:[%s2394_s3 + $0x8] sm:$0xf] %vm1009_vm3, %v947_v11  ;;  %v899_v17 = vsel %vm579_vm13, %v1732_v19, %v1266_v9  ;;  %v759_v22 = vmul.f32 1.442695, %v660_v14  ;;  %v629_v23 = vmin.f32 %v1806_v15, 0.0  ;;  %vm612_vm4 = vcmp.gt.f32.partialorder %v1797_v13, 0.0 }
  0xba   :  { %v1379_v20 = vpop.eup %1378  ;;  %v963_v21 = vpack.c.bf16 %v899_v17, %v899_v17  ;;  %v791_v26 = vmul.f32 1.442695, %v676_v18  ;;  %v645_v27 = vmin.f32 %v1809_v16, 0.0  ;;  %vm565_vm5 = vcmp.gt.f32.partialorder %v1806_v15, 0.0 }
  0xbb   :  { %v1381_v24 = vpop.eup %1380  ;;  %v1282_v25 = vadd.f32 -1.0, %v1379_v20  ;;  %1386 = vpow2.f32 %v759_v22  ;;  %v697_v29 = vmul.f32 1.442695, %v629_v23  ;;  %vm581_vm6 = vcmp.gt.f32.partialorder %v1809_v16, 0.0 }
  0xbc   :  { %v1383_v28 = vpop.eup %1382  ;;  %1028 = vst.msk [vmem:[%s2394_s3 + $0x48] sm:$0xf] %vm1009_vm3, %v963_v21  ;;  %v1298_v19 = vadd.f32 -1.0, %v1381_v24  ;;  %v491_v30 = vpop.f32.mrf.mxu2  ;;  %1388 = vpow2.f32 %v791_v26  ;;  %v729_v34 = vmul.f32 1.442695, %v645_v27 }
  0xbd   :  { %v531_v31 = vpop.f32.mrf.mxu3  ;;  %v915_v32 = vsel %vm595_vm14, %v1749_v43, %v1282_v25  ;;  %v1251_v33 = vadd.f32 -1.0, %v1383_v28  ;;  %v413_v35 = vpop.f32.mrf.mxu0  ;;  %1390 = vpow2.f32 %v697_v29  ;;  %v1833_v39 = vadd.f32 %v1698_v40, %v491_v30 }
  0xbe   :  { %v453_v36 = vpop.f32.mrf.mxu1  ;;  %v979_v37 = vpack.c.bf16 %v915_v32, %v915_v32  ;;  %v931_v38 = vsel %vm611_vm15, %v1759_v46, %v1298_v19  ;;  %v1385_v41 = vpop.eup %1384  ;;  %1392 = vpow2.f32 %v729_v34  ;;  %v1839_v44 = vadd.f32 %v1698_v40, %v531_v31 }
  0xbf   :  { %v995_v42 = vpack.c.bf16 %v931_v38, %v931_v38  ;;  %v884_v43 = vsel %vm564_vm0, %v1762_v47, %v1251_v33  ;;  %v1267_v46 = vadd.f32 -1.0, %v1385_v41  ;;  %v661_v48 = vmin.f32 %v1833_v39, 0.0 }
  0xc0   :  { %1044 = vst.msk [vmem:[%s2394_s3 + $0x88] sm:$0xf] %vm1009_vm3, %v979_v37  ;;  %v948_v45 = vpack.c.bf16 %v884_v43, %v884_v43  ;;  %v677_v47 = vmin.f32 %v1839_v44, 0.0  ;;  %v1853_v49 = vadd.f32 %v1698_v40, %v413_v35  ;;  %v1856_v50 = vadd.f32 %v1698_v40, %v453_v36 }
  0xc1   :  { %1060 = vst.msk [vmem:[%s2394_s3 + $0xc8] sm:$0xf] %vm1009_vm3, %v995_v42  ;;  %v1387_v51 = vpop.eup %1386  ;;  %v900_v52 = vsel %vm580_vm1, %v1781_v56, %v1267_v46  ;;  %v761_v53 = vmul.f32 1.442695, %v661_v48  ;;  %vm597_vm7 = vcmp.gt.f32.partialorder %v1833_v39, 0.0  ;;  %vm613_vm8 = vcmp.gt.f32.partialorder %v1839_v44, 0.0 }
  0xc2   :  { %1013 = vst.msk [vmem:[%s2394_s3 + $0xc] sm:$0xf] %vm1009_vm3, %v948_v45  ;;  %v1389_v54 = vpop.eup %1388  ;;  %v964_v55 = vpack.c.bf16 %v900_v52, %v900_v52  ;;  %v1283_v57 = vadd.f32 -1.0, %v1387_v51  ;;  %v793_v58 = vmul.f32 1.442695, %v677_v47  ;;  %v630_v61 = vmin.f32 %v1853_v49, 0.0 }
  0xc3   :  { %v1391_v59 = vpop.eup %1390  ;;  %v1299_v60 = vadd.f32 -1.0, %v1389_v54  ;;  %1394 = vpow2.f32 %v761_v53  ;;  %v646_v2 = vmin.f32 %v1856_v50, 0.0  ;;  %vm566_vm9 = vcmp.gt.f32.partialorder %v1853_v49, 0.0 }
  0xc4   :  { %v493_v62 = vpop.f32.mrf.mxu2  ;;  %v1393_v63 = vpop.eup %1392  ;;  %1029 = vst.msk [vmem:[%s2394_s3 + $0x4c] sm:$0xf] %vm1009_vm3, %v964_v55  ;;  %v916_v0 = vsel %vm596_vm2, %v1790_v8, %v1283_v57  ;;  %v1252_v1 = vadd.f32 -1.0, %v1391_v59  ;;  %1396 = vpow2.f32 %v793_v58  ;;  %v699_v10 = vmul.f32 1.442695, %v630_v61 }
  0xc5   :  { %v533_v56 = vpop.f32.mrf.mxu3  ;;  %v416_v3 = vpop.f32.mrf.mxu0  ;;  %v980_v5 = vpack.c.bf16 %v916_v0, %v916_v0  ;;  %v932_v6 = vsel %vm612_vm4, %v1797_v13, %v1299_v60  ;;  %v1268_v7 = vadd.f32 -1.0, %v1393_v63  ;;  %v731_v12 = vmul.f32 1.442695, %v646_v2 }
  0xc6   :  { %v456_v4 = vpop.f32.mrf.mxu1  ;;  %v996_v11 = vpack.c.bf16 %v932_v6, %v932_v6  ;;  %v885_v9 = vsel %vm565_vm5, %v1806_v15, %v1252_v1  ;;  %v1883_v8 = vadd.f32 %v1698_v40, %v493_v62  ;;  %1398 = vpow2.f32 %v699_v10 }
  0xc7   :  { %1045 = vst.msk [vmem:[%s2394_s3 + $0x8c] sm:$0xf] %vm1009_vm3, %v980_v5  ;;  %v949_v14 = vpack.c.bf16 %v885_v9, %v885_v9  ;;  %v901_v13 = vsel %vm581_vm6, %v1809_v16, %v1268_v7  ;;  %v1893_v17 = vadd.f32 %v1698_v40, %v533_v56  ;;  %1400 = vpow2.f32 %v731_v12 }
  0xc8   :  { %1061 = vst.msk [vmem:[%s2394_s3 + $0xcc] sm:$0xf] %vm1009_vm3, %v996_v11  ;;  %v965_v15 = vpack.c.bf16 %v901_v13, %v901_v13  ;;  %v662_v18 = vmin.f32 %v1883_v8, 0.0  ;;  %v1906_v21 = vadd.f32 %v1698_v40, %v416_v3  ;;  %v1909_v22 = vadd.f32 %v1698_v40, %v456_v4 }
  0xc9   :  { %v1395_v20 = vpop.eup %1394  ;;  %1014 = vst.msk [vmem:[%s2394_s3 + $0x10] sm:$0xf] %vm1009_vm3, %v949_v14  ;;  %v678_v16 = vmin.f32 %v1893_v17, 0.0  ;;  %vm582_vm10 = vcmp.gt.f32.partialorder %v1856_v50, 0.0  ;;  %vm598_vm11 = vcmp.gt.f32.partialorder %v1883_v8, 0.0  ;;  %vm614_vm12 = vcmp.gt.f32.partialorder %v1893_v17, 0.0 }
  0xca   :  { %v1397_v23 = vpop.eup %1396  ;;  %1030 = vst.msk [vmem:[%s2394_s3 + $0x50] sm:$0xf] %vm1009_vm3, %v965_v15  ;;  %v1284_v24 = vadd.f32 -1.0, %v1395_v20  ;;  %v763_v25 = vmul.f32 1.442695, %v662_v18  ;;  %v631_v28 = vmin.f32 %v1906_v21, 0.0 }
  0xcb   :  { %v1300_v26 = vadd.f32 -1.0, %v1397_v23  ;;  %v795_v27 = vmul.f32 1.442695, %v678_v16  ;;  %v647_v31 = vmin.f32 %v1909_v22, 0.0  ;;  %vm567_vm13 = vcmp.gt.f32.partialorder %v1906_v21, 0.0 }
  0xcc   :  { %v496_v19 = vpop.f32.mrf.mxu2  ;;  %v917_v30 = vsel %vm597_vm7, %v1833_v39, %v1284_v24  ;;  %1402 = vpow2.f32 %v763_v25  ;;  %v1399_v34 = vpop.eup %1398  ;;  %v701_v37 = vmul.f32 1.442695, %v631_v28  ;;  %vm583_vm14 = vcmp.gt.f32.partialorder %v1909_v22, 0.0 }
  0xcd   :  { %v536_v29 = vpop.f32.mrf.mxu3  ;;  %v418_v32 = vpop.f32.mrf.mxu0  ;;  %v981_v35 = vpack.c.bf16 %v917_v30, %v917_v30  ;;  %v933_v36 = vsel %vm613_vm8, %v1839_v44, %v1300_v26  ;;  %1404 = vpow2.f32 %v795_v27  ;;  %v1253_v42 = vadd.f32 -1.0, %v1399_v34 }
  0xce   :  { %v458_v33 = vpop.f32.mrf.mxu1  ;;  %v1401_v38 = vpop.eup %1400  ;;  %v997_v41 = vpack.c.bf16 %v933_v36, %v933_v36  ;;  %v733_v43 = vmul.f32 1.442695, %v647_v31  ;;  %v1923_v45 = vadd.f32 %v1698_v40, %v496_v19  ;;  %1406 = vpow2.f32 %v701_v37 }
  0xcf   :  { %1046 = vst.msk [vmem:[%s2394_s3 + $0x90] sm:$0xf] %vm1009_vm3, %v981_v35  ;;  %v1269_v39 = vadd.f32 -1.0, %v1401_v38  ;;  %v1930_v46 = vadd.f32 %v1698_v40, %v536_v29  ;;  %v1933_v44 = vadd.f32 %v1698_v40, %v418_v32  ;;  %v886_v48 = vsel %vm566_vm9, %v1853_v49, %v1253_v42 }
  0xd0   :  { %1062 = vst.msk [vmem:[%s2394_s3 + $0xd0] sm:$0xf] %vm1009_vm3, %v997_v41  ;;  %1408 = vpow2.f32 %v733_v43  ;;  %v663_v47 = vmin.f32 %v1923_v45, 0.0  ;;  %v950_v51 = vpack.c.bf16 %v886_v48, %v886_v48  ;;  %vm599_vm15 = vcmp.gt.f32.partialorder %v1923_v45, 0.0 }
  0xd1   :  { %v902_v52 = vsel %vm582_vm10, %v1856_v50, %v1269_v39  ;;  %v679_v53 = vmin.f32 %v1930_v46, 0.0  ;;  %v632_v58 = vmin.f32 %v1933_v44, 0.0  ;;  %v1954_v50 = vadd.f32 %v1698_v40, %v458_v33 }
  0xd2   :  { %v1403_v54 = vpop.eup %1402  ;;  %v966_v55 = vpack.c.bf16 %v902_v52, %v902_v52  ;;  %v765_v57 = vmul.f32 1.442695, %v663_v47  ;;  %1015 = vst.msk [vmem:[%s2394_s3 + $0x14] sm:$0xf] %vm1009_vm3, %v950_v51  ;;  %vm615_vm0 = vcmp.gt.f32.partialorder %v1930_v46, 0.0  ;;  %vm568_vm1 = vcmp.gt.f32.partialorder %v1933_v44, 0.0 }
  0xd3   :  { %v1405_v59 = vpop.eup %1404  ;;  %v1285_v49 = vadd.f32 -1.0, %v1403_v54  ;;  %v797_v60 = vmul.f32 1.442695, %v679_v53  ;;  %v703_v63 = vmul.f32 1.442695, %v632_v58  ;;  %v648_v5 = vmin.f32 %v1954_v50, 0.0 }
  0xd4   :  { %v498_v61 = vpop.f32.mrf.mxu2  ;;  %1031 = vst.msk [vmem:[%s2394_s3 + $0x54] sm:$0xf] %vm1009_vm3, %v966_v55  ;;  %v1301_v56 = vadd.f32 -1.0, %v1405_v59  ;;  %1410 = vpow2.f32 %v765_v57  ;;  %v1407_v3 = vpop.eup %1406  ;;  %vm584_vm2 = vcmp.gt.f32.partialorder %v1954_v50, 0.0 }
  0xd5   :  { %v538_v62 = vpop.f32.mrf.mxu3  ;;  %v1961_v0 = vadd.f32 %v1698_v40, %v498_v61  ;;  %v421_v1 = vpop.f32.mrf.mxu0  ;;  %v918_v4 = vsel %vm598_vm11, %v1883_v8, %v1285_v49  ;;  %1412 = vpow2.f32 %v797_v60  ;;  %v1254_v11 = vadd.f32 -1.0, %v1407_v3 }
  0xd6   :  { %v461_v2 = vpop.f32.mrf.mxu1  ;;  %v1409_v6 = vpop.eup %1408  ;;  %v982_v7 = vpack.c.bf16 %v918_v4, %v918_v4  ;;  %v934_v10 = vsel %vm614_vm12, %v1893_v17, %v1301_v56  ;;  %1414 = vpow2.f32 %v703_v63  ;;  %v735_v14 = vmul.f32 1.442695, %v648_v5 }
  0xd7   :  { %v998_v9 = vpack.c.bf16 %v934_v10, %v934_v10  ;;  %v1270_v12 = vadd.f32 -1.0, %v1409_v6  ;;  %v887_v8 = vsel %vm567_vm13, %v1906_v21, %v1254_v11  ;;  %v664_v13 = vmin.f32 %v1961_v0, 0.0 }
  0xd8   :  { %1047 = vst.msk [vmem:[%s2394_s3 + $0x94] sm:$0xf] %vm1009_vm3, %v982_v7  ;;  %v1979_v15 = vadd.f32 %v1698_v40, %v538_v62  ;;  %v1982_v17 = vadd.f32 %v1698_v40, %v421_v1  ;;  %v951_v18 = vpack.c.bf16 %v887_v8, %v887_v8  ;;  %1416 = vpow2.f32 %v735_v14 }
  0xd9   :  { %1063 = vst.msk [vmem:[%s2394_s3 + $0xd4] sm:$0xf] %vm1009_vm3, %v998_v9  ;;  %v903_v20 = vsel %vm583_vm14, %v1909_v22, %v1270_v12  ;;  %v1990_v16 = vadd.f32 %v1698_v40, %v461_v2  ;;  %v767_v24 = vmul.f32 1.442695, %v664_v13  ;;  %vm600_vm4 = vcmp.gt.f32.partialorder %v1961_v0, 0.0 }
  0xda   :  { %v1411_v21 = vpop.eup %1410  ;;  %v967_v23 = vpack.c.bf16 %v903_v20, %v903_v20  ;;  %v680_v25 = vmin.f32 %v1979_v15, 0.0  ;;  %1016 = vst.msk [vmem:[%s2394_s3 + $0x18] sm:$0xf] %vm1009_vm3, %v951_v18  ;;  %v633_v22 = vmin.f32 %v1982_v17, 0.0  ;;  %vm616_vm5 = vcmp.gt.f32.partialorder %v1979_v15, 0.0 }
  0xdb   :  { %v1413_v26 = vpop.eup %1412  ;;  %v1286_v27 = vadd.f32 -1.0, %v1411_v21  ;;  %1418 = vpow2.f32 %v767_v24  ;;  %v649_v32 = vmin.f32 %v1990_v16, 0.0  ;;  %vm569_vm6 = vcmp.gt.f32.partialorder %v1982_v17, 0.0 }
  0xdc   :  { %v501_v28 = vpop.f32.mrf.mxu2  ;;  %v1415_v29 = vpop.eup %1414  ;;  %1032 = vst.msk [vmem:[%s2394_s3 + $0x58] sm:$0xf] %vm1009_vm3, %v967_v23  ;;  %v1302_v30 = vadd.f32 -1.0, %v1413_v26  ;;  %v799_v31 = vmul.f32 1.442695, %v680_v25  ;;  %vm585_vm7 = vcmp.gt.f32.partialorder %v1990_v16, 0.0 }
  0xdd   :  { %v541_v19 = vpop.f32.mrf.mxu3  ;;  %v423_v33 = vpop.f32.mrf.mxu0  ;;  %v919_v35 = vsel %vm599_vm15, %v1923_v45, %v1286_v27  ;;  %v1255_v36 = vadd.f32 -1.0, %v1415_v29  ;;  %v705_v37 = vmul.f32 1.442695, %v633_v22  ;;  %v2010_v38 = vadd.f32 %v1698_v40, %v501_v28 }
  0xde   :  { %v463_v34 = vpop.f32.mrf.mxu1  ;;  %v983_v41 = vpack.c.bf16 %v919_v35, %v919_v35  ;;  %v935_v42 = vsel %vm615_vm0, %v1930_v46, %v1302_v30  ;;  %1420 = vpow2.f32 %v799_v31  ;;  %v737_v43 = vmul.f32 1.442695, %v649_v32  ;;  %v1417_v39 = vpop.eup %1416 }
  0xdf   :  { %v999_v48 = vpack.c.bf16 %v935_v42, %v935_v42  ;;  %v888_v47 = vsel %vm568_vm1, %v1933_v44, %v1255_v36  ;;  %1422 = vpow2.f32 %v705_v37  ;;  %v1271_v51 = vadd.f32 -1.0, %v1417_v39 }
  0xe0   :  { %1048 = vst.msk [vmem:[%s2394_s3 + $0x98] sm:$0xf] %vm1009_vm3, %v983_v41  ;;  %v952_v45 = vpack.c.bf16 %v888_v47, %v888_v47  ;;  %1424 = vpow2.f32 %v737_v43  ;;  %v665_v52 = vmin.f32 %v2010_v38, 0.0  ;;  %v2029_v46 = vadd.f32 %v1698_v40, %v541_v19 }
  0xe1   :  { %1064 = vst.msk [vmem:[%s2394_s3 + $0xd8] sm:$0xf] %vm1009_vm3, %v999_v48  ;;  %v2032_v44 = vadd.f32 %v1698_v40, %v423_v33  ;;  %v2035_v53 = vadd.f32 %v1698_v40, %v463_v34  ;;  %v1419_v54 = vpop.eup %1418  ;;  %v904_v55 = vsel %vm584_vm2, %v1954_v50, %v1271_v51  ;;  %vm601_vm8 = vcmp.gt.f32.partialorder %v2010_v38, 0.0 }
  0xe2   :  { %1017 = vst.msk [vmem:[%s2394_s3 + $0x1c] sm:$0xf] %vm1009_vm3, %v952_v45  ;;  %v769_v57 = vmul.f32 1.442695, %v665_v52  ;;  %v968_v58 = vpack.c.bf16 %v904_v55, %v904_v55  ;;  %v1287_v59 = vadd.f32 -1.0, %v1419_v54  ;;  %v681_v49 = vmin.f32 %v2029_v46, 0.0 }
  0xe3   :  { %v634_v56 = vmin.f32 %v2032_v44, 0.0  ;;  %v650_v5 = vmin.f32 %v2035_v53, 0.0  ;;  %vm617_vm9 = vcmp.gt.f32.partialorder %v2029_v46, 0.0  ;;  %vm570_vm10 = vcmp.gt.f32.partialorder %v2032_v44, 0.0 }
  0xe4   :  { %v503_v60 = vpop.f32.mrf.mxu2  ;;  %v1421_v62 = vpop.eup %1420  ;;  %1426 = vpow2.f32 %v769_v57  ;;  %1033 = vst.msk [vmem:[%s2394_s3 + $0x5c] sm:$0xf] %vm1009_vm3, %v968_v58  ;;  %v920_v2 = vsel %vm600_vm4, %v1961_v0, %v1287_v59  ;;  %v801_v4 = vmul.f32 1.442695, %v681_v49  ;;  %vm586_vm11 = vcmp.gt.f32.partialorder %v2035_v53, 0.0 }
  0xe5   :  { %v543_v61 = vpop.f32.mrf.mxu3  ;;  %v426_v63 = vpop.f32.mrf.mxu0  ;;  %v1303_v3 = vadd.f32 -1.0, %v1421_v62  ;;  %v984_v7 = vpack.c.bf16 %v920_v2, %v920_v2  ;;  %v707_v11 = vmul.f32 1.442695, %v634_v56  ;;  %v2054_v9 = vadd.f32 %v1698_v40, %v503_v60 }
  0xe6   :  { %v466_v1 = vpop.f32.mrf.mxu1  ;;  %v1423_v50 = vpop.eup %1422  ;;  %1428 = vpow2.f32 %v801_v4  ;;  %v739_v8 = vmul.f32 1.442695, %v650_v5  ;;  %v2074_v24 = vadd.f32 %v1698_v40, %v543_v61 }
  0xe7   :  { %v1425_v6 = vpop.eup %1424  ;;  %v1256_v10 = vadd.f32 -1.0, %v1423_v50  ;;  %v936_v12 = vsel %vm616_vm5, %v1979_v15, %v1303_v3  ;;  %1049 = vst.msk [vmem:[%s2394_s3 + $0x9c] sm:$0xf] %vm1009_vm3, %v984_v7  ;;  %1430 = vpow2.f32 %v707_v11  ;;  %v666_v15 = vmin.f32 %v2054_v9, 0.0 }
  0xe8   :  { %v1272_v14 = vadd.f32 -1.0, %v1425_v6  ;;  %v1000_v0 = vpack.c.bf16 %v936_v12, %v936_v12  ;;  %1432 = vpow2.f32 %v739_v8  ;;  %v2080_v25 = vadd.f32 %v1698_v40, %v466_v1 }
  0xe9   :  { %v889_v13 = vsel %vm569_vm6, %v1982_v17, %v1256_v10  ;;  %v2077_v17 = vadd.f32 %v1698_v40, %v426_v63  ;;  %v771_v26 = vmul.f32 1.442695, %v666_v15  ;;  %v682_v28 = vmin.f32 %v2074_v24, 0.0 }
  0xea   :  { %v953_v18 = vpack.c.bf16 %v889_v13, %v889_v13  ;;  %v905_v20 = vsel %vm585_vm7, %v1990_v16, %v1272_v14  ;;  %v1427_v21 = vpop.eup %1426  ;;  %1065 = vst.msk [vmem:[%s2394_s3 + $0xdc] sm:$0xf] %vm1009_vm3, %v1000_v0  ;;  %v651_v33 = vmin.f32 %v2080_v25, 0.0  ;;  %vm602_vm12 = vcmp.gt.f32.partialorder %v2054_v9, 0.0 }
  0xeb   :  { %v969_v23 = vpack.c.bf16 %v905_v20, %v905_v20  ;;  %v1288_v16 = vadd.f32 -1.0, %v1427_v21  ;;  %v635_v19 = vmin.f32 %v2077_v17, 0.0  ;;  %1434 = vpow2.f32 %v771_v26 }
  0xec   :  { %1018 = vst.msk [vmem:[%s2394_s3 + $0x20] sm:$0xf] %vm1009_vm3, %v953_v18  ;;  %v506_v27 = vpop.f32.mrf.mxu2  ;;  %v1429_v31 = vpop.eup %1428  ;;  %v803_v37 = vmul.f32 1.442695, %v682_v28  ;;  %v741_v39 = vmul.f32 1.442695, %v651_v33 }
  0xed   :  { %v546_v22 = vpop.f32.mrf.mxu3  ;;  %1034 = vst.msk [vmem:[%s2394_s3 + $0x60] sm:$0xf] %vm1009_vm3, %v969_v23  ;;  %v428_v29 = vpop.f32.mrf.mxu0  ;;  %v921_v32 = vsel %vm601_vm8, %v2010_v38, %v1288_v16  ;;  %v1304_v36 = vadd.f32 -1.0, %v1429_v31  ;;  %v709_v41 = vmul.f32 1.442695, %v635_v19  ;;  %v2098_v48 = vadd.f32 %v1698_v40, %v506_v27 }
  0xee   :  { %v468_v30 = vpop.f32.mrf.mxu1  ;;  %v1431_v34 = vpop.eup %1430  ;;  %v985_v35 = vpack.c.bf16 %v921_v32, %v921_v32  ;;  %v2101_v47 = vadd.f32 %v1698_v40, %v546_v22  ;;  %1436 = vpow2.f32 %v803_v37  ;;  %v2111_v51 = vadd.f32 %v1698_v40, %v428_v29 }
  0xef   :  { %v1433_v42 = vpop.eup %1432  ;;  %v1257_v43 = vadd.f32 -1.0, %v1431_v34  ;;  %v937_v38 = vsel %vm617_vm9, %v2029_v46, %v1304_v36  ;;  %1438 = vpow2.f32 %v709_v41  ;;  %v667_v58 = vmin.f32 %v2098_v48, 0.0  ;;  %v2190_v41 = vld [vmem:[#allocation4] ss:$0 sm:$0xff] }
  0xf0   :  { %1050 = vst.msk [vmem:[%s2394_s3 + $0xa0] sm:$0xf] %vm1009_vm3, %v985_v35  ;;  %v1273_v45 = vadd.f32 -1.0, %v1433_v42  ;;  %v1001_v52 = vpack.c.bf16 %v937_v38, %v937_v38  ;;  %1440 = vpow2.f32 %v741_v39  ;;  %vm618_vm13 = vcmp.gt.f32.partialorder %v2074_v24, 0.0 }
  0xf1   :  { %v890_v54 = vsel %vm570_vm10, %v2032_v44, %v1257_v43  ;;  %v1435_v46 = vpop.eup %1434  ;;  %v683_v44 = vmin.f32 %v2101_v47, 0.0  ;;  %v773_v61 = vmul.f32 1.442695, %v667_v58  ;;  %v636_v62 = vmin.f32 %v2111_v51, 0.0 }
  0xf2   :  { %v954_v55 = vpack.c.bf16 %v890_v54, %v890_v54  ;;  %v906_v57 = vsel %vm586_vm11, %v2035_v53, %v1273_v45  ;;  %1066 = vst.msk [vmem:[%s2394_s3 + $0xe0] sm:$0xf] %vm1009_vm3, %v1001_v52  ;;  %v1289_v53 = vadd.f32 -1.0, %v1435_v46  ;;  %v2132_v56 = vadd.f32 %v1698_v40, %v468_v30 }
  0xf3   :  { %v970_v59 = vpack.c.bf16 %v906_v57, %v906_v57  ;;  %vm571_vm14 = vcmp.gt.f32.partialorder %v2077_v17, 0.0  ;;  %vm587_vm15 = vcmp.gt.f32.partialorder %v2080_v25, 0.0  ;;  %v805_v50 = vmul.f32 1.442695, %v683_v44 }
  0xf4   :  { %v508_v49 = vpop.f32.mrf.mxu2  ;;  %1019 = vst.msk [vmem:[%s2394_s3 + $0x24] sm:$0xf] %vm1009_vm3, %v954_v55  ;;  %v1437_v3 = vpop.eup %1436  ;;  %v922_v4 = vsel %vm602_vm12, %v2054_v9, %v1289_v53  ;;  %1442 = vpow2.f32 %v773_v61  ;;  %v711_v5 = vmul.f32 1.442695, %v636_v62  ;;  %v652_v12 = vmin.f32 %v2132_v56, 0.0 }
  0xf5   :  { %v548_v60 = vpop.f32.mrf.mxu3  ;;  %v431_v63 = vpop.f32.mrf.mxu0  ;;  %1035 = vst.msk [vmem:[%s2394_s3 + $0x64] sm:$0xf] %vm1009_vm3, %v970_v59  ;;  %v2141_v2 = vadd.f32 %v1698_v40, %v508_v49  ;;  %v986_v10 = vpack.c.bf16 %v922_v4, %v922_v4  ;;  %v1305_v11 = vadd.f32 -1.0, %v1437_v3  ;;  %1444 = vpow2.f32 %v805_v50 }
  0xf6   :  { %v471_v1 = vpop.f32.mrf.mxu1  ;;  %v2147_v6 = vadd.f32 %v1698_v40, %v548_v60  ;;  %v1439_v7 = vpop.eup %1438  ;;  %1446 = vpow2.f32 %v711_v5  ;;  %v2152_v13 = vadd.f32 %v1698_v40, %v431_v63  ;;  %vm603_vm0 = vcmp.gt.f32.partialorder %v2098_v48, 0.0 }
  0xf7   :  { %v1441_v14 = vpop.eup %1440  ;;  %v1258_v8 = vadd.f32 -1.0, %v1439_v7  ;;  %v668_v0 = vmin.f32 %v2141_v2, 0.0  ;;  %1051 = vst.msk [vmem:[%s2394_s3 + $0xa4] sm:$0xf] %vm1009_vm3, %v986_v10  ;;  %v938_v9 = vsel %vm618_vm13, %v2074_v24, %v1305_v11  ;;  %v743_v20 = vmul.f32 1.442695, %v652_v12 }
  0xf8   :  { %v1274_v18 = vadd.f32 -1.0, %v1441_v14  ;;  %v1002_v15 = vpack.c.bf16 %v938_v9, %v938_v9  ;;  %v684_v16 = vmin.f32 %v2147_v6, 0.0  ;;  %vm619_vm1 = vcmp.gt.f32.partialorder %v2101_v47, 0.0 }
  0xf9   :  { %v891_v21 = vsel %vm571_vm14, %v2077_v17, %v1258_v8  ;;  %v775_v23 = vmul.f32 1.442695, %v668_v0  ;;  %1448 = vpow2.f32 %v743_v20  ;;  %v637_v29 = vmin.f32 %v2152_v13, 0.0 }
  0xfa   :  { %v955_v26 = vpack.c.bf16 %v891_v21, %v891_v21  ;;  %v907_v27 = vsel %vm587_vm15, %v2080_v25, %v1274_v18  ;;  %v1443_v28 = vpop.eup %1442  ;;  %1067 = vst.msk [vmem:[%s2394_s3 + $0xe4] sm:$0xf] %vm1009_vm3, %v1002_v15  ;;  %v807_v19 = vmul.f32 1.442695, %v684_v16  ;;  %vm572_vm2 = vcmp.gt.f32.partialorder %v2111_v51, 0.0 }
  0xfb   :  { %v971_v17 = vpack.c.bf16 %v907_v27, %v907_v27  ;;  %1450 = vpow2.f32 %v775_v23  ;;  %v1445_v32 = vpop.eup %1444  ;;  %v1290_v25 = vadd.f32 -1.0, %v1443_v28  ;;  %v2181_v33 = vadd.f32 %v1698_v40, %v471_v1 }
  0xfc   :  { %v511_v24 = vpop.f32.mrf.mxu2  ;;  %1020 = vst.msk [vmem:[%s2394_s3 + $0x28] sm:$0xf] %vm1009_vm3, %v955_v26  ;;  %v1447_v35 = vpop.eup %1446  ;;  %v1306_v36 = vadd.f32 -1.0, %v1445_v32  ;;  %1452 = vpow2.f32 %v807_v19  ;;  %v713_v37 = vmul.f32 1.442695, %v637_v29  ;;  %vm588_vm4 = vcmp.gt.f32.partialorder %v2132_v56, 0.0 }
  0xfd   :  { %v551_v22 = vpop.f32.mrf.mxu3  ;;  %v433_v30 = vpop.f32.mrf.mxu0  ;;  %v2184_v34 = vadd.f32 %v1698_v40, %v511_v24  ;;  %1036 = vst.msk [vmem:[%s2394_s3 + $0x68] sm:$0xf] %vm1009_vm3, %v971_v17  ;;  %v923_v43 = vsel %vm603_vm0, %v2098_v48, %v1290_v25  ;;  %v1259_v40 = vadd.f32 -1.0, %v1447_v35  ;;  %v653_v39 = vmin.f32 %v2181_v33, 0.0 }
  0xfe   :  { %v473_v31 = vpop.f32.mrf.mxu1  ;;  %v2193_v42 = vadd.f32 %v2190_v41, %v551_v22  ;;  %v987_v38 = vpack.c.bf16 %v923_v43, %v923_v43  ;;  %v939_v45 = vsel %vm619_vm1, %v2101_v47, %v1306_v36  ;;  %1454 = vpow2.f32 %v713_v37 }
  0xff   :  { %v2204_v52 = vadd.f32 %v2190_v41, %v433_v30  ;;  %v1449_v54 = vpop.eup %1448  ;;  %v1003_v55 = vpack.c.bf16 %v939_v45, %v939_v45  ;;  %v892_v48 = vsel %vm572_vm2, %v2111_v51, %v1259_v40  ;;  %v745_v57 = vmul.f32 1.442695, %v653_v39 }
 0x100   :  { %v669_v58 = vmin.f32 %v2184_v34, 0.0  ;;  %1052 = vst.msk [vmem:[%s2394_s3 + $0xa8] sm:$0xf] %vm1009_vm3, %v987_v38  ;;  %v956_v47 = vpack.c.bf16 %v892_v48, %v892_v48  ;;  %v1275_v59 = vadd.f32 -1.0, %v1449_v54  ;;  %vm604_vm5 = vcmp.gt.f32.partialorder %v2141_v2, 0.0 }
 0x101   :  { %v1451_v46 = vpop.eup %1450  ;;  %v685_v44 = vmin.f32 %v2193_v42, 0.0  ;;  %1068 = vst.msk [vmem:[%s2394_s3 + $0xe8] sm:$0xf] %vm1009_vm3, %v1003_v55  ;;  %vm620_vm6 = vcmp.gt.f32.partialorder %v2147_v6, 0.0  ;;  %1456 = vpow2.f32 %v745_v57  ;;  %v638_v1 = vmin.f32 %v2204_v52, 0.0 }
 0x102   :  { %v1291_v51 = vadd.f32 -1.0, %v1451_v46  ;;  %v777_v49 = vmul.f32 1.442695, %v669_v58  ;;  %v1453_v61 = vpop.eup %1452  ;;  %1021 = vst.msk [vmem:[%s2394_s3 + $0x2c] sm:$0xf] %vm1009_vm3, %v956_v47  ;;  %v908_v62 = vsel %vm588_vm4, %v2132_v56, %v1275_v59  ;;  %v2230_v50 = vadd.f32 %v2190_v41, %v473_v31 }
 0x103   :  { %v809_v63 = vmul.f32 1.442695, %v685_v44  ;;  %v972_v4 = vpack.c.bf16 %v908_v62, %v908_v62  ;;  %v1307_v7 = vadd.f32 -1.0, %v1453_v61  ;;  %vm573_vm7 = vcmp.gt.f32.partialorder %v2152_v13, 0.0 }
 0x104   :  { %v513_v60 = vpop.f32.mrf.mxu2  ;;  %v924_v5 = vsel %vm604_vm5, %v2141_v2, %v1291_v51  ;;  %1458 = vpow2.f32 %v777_v49  ;;  %v1455_v11 = vpop.eup %1454  ;;  %v715_v56 = vmul.f32 1.442695, %v638_v1  ;;  %v654_v2 = vmin.f32 %v2230_v50, 0.0 }
 0x105   :  { %v553_v53 = vpop.f32.mrf.mxu3  ;;  %v436_v3 = vpop.f32.mrf.mxu0  ;;  %v988_v12 = vpack.c.bf16 %v924_v5, %v924_v5  ;;  %1460 = vpow2.f32 %v809_v63  ;;  %1037 = vst.msk [vmem:[%s2394_s3 + $0x6c] sm:$0xf] %vm1009_vm3, %v972_v4  ;;  %v940_v14 = vsel %vm620_vm6, %v2147_v6, %v1307_v7  ;;  %v1260_v8 = vadd.f32 -1.0, %v1455_v11 }
 0x106   :  { %v476_v10 = vpop.f32.mrf.mxu1  ;;  %v2245_v0 = vadd.f32 %v2190_v41, %v513_v60  ;;  %v1004_v9 = vpack.c.bf16 %v940_v14, %v940_v14  ;;  %1462 = vpow2.f32 %v715_v56  ;;  %v2252_v18 = vadd.f32 %v2190_v41, %v553_v53 }
 0x107   :  { %1053 = vst.msk [vmem:[%s2394_s3 + $0xac] sm:$0xf] %vm1009_vm3, %v988_v12  ;;  %v2255_v20 = vadd.f32 %v2190_v41, %v436_v3  ;;  %v1457_v6 = vpop.eup %1456  ;;  %v893_v15 = vsel %vm573_vm7, %v2152_v13, %v1260_v8  ;;  %vm589_vm8 = vcmp.gt.f32.partialorder %v2181_v33, 0.0  ;;  %v747_v21 = vmul.f32 1.442695, %v654_v2 }
 0x108   :  { %v670_v23 = vmin.f32 %v2245_v0, 0.0  ;;  %1069 = vst.msk [vmem:[%s2394_s3 + $0xec] sm:$0xf] %vm1009_vm3, %v1004_v9  ;;  %v957_v16 = vpack.c.bf16 %v893_v15, %v893_v15  ;;  %v1276_v26 = vadd.f32 -1.0, %v1457_v6  ;;  %vm605_vm9 = vcmp.gt.f32.partialorder %v2184_v34, 0.0 }
 0x109   :  { %v686_v27 = vmin.f32 %v2252_v18, 0.0  ;;  %vm621_vm10 = vcmp.gt.f32.partialorder %v2193_v42, 0.0  ;;  %1464 = vpow2.f32 %v747_v21  ;;  %v639_v22 = vmin.f32 %v2255_v20, 0.0 }
 0x10a   :  { %v1459_v24 = vpop.eup %1458  ;;  %v779_v13 = vmul.f32 1.442695, %v670_v23  ;;  %1022 = vst.msk [vmem:[%s2394_s3 + $0x30] sm:$0xf] %vm1009_vm3, %v957_v16  ;;  %v909_v19 = vsel %vm589_vm8, %v2181_v33, %v1276_v26  ;;  %v2276_v31 = vadd.f32 %v2190_v41, %v476_v10  ;;  %vm574_vm11 = vcmp.gt.f32.partialorder %v2204_v52, 0.0 }
 0x10b   :  { %v1461_v17 = vpop.eup %1460  ;;  %v1292_v29 = vadd.f32 -1.0, %v1459_v24  ;;  %v811_v30 = vmul.f32 1.442695, %v686_v27  ;;  %v973_v32 = vpack.c.bf16 %v909_v19, %v909_v19  ;;  %v717_v35 = vmul.f32 1.442695, %v639_v22 }
 0x10c   :  { %v516_v28 = vpop.f32.mrf.mxu2  ;;  %v1308_v25 = vadd.f32 -1.0, %v1461_v17  ;;  %1466 = vpow2.f32 %v779_v13  ;;  %v1463_v37 = vpop.eup %1462  ;;  %v655_v33 = vmin.f32 %v2276_v31, 0.0  ;;  %vm590_vm12 = vcmp.gt.f32.partialorder %v2230_v50, 0.0 }
 0x10d   :  { %v556_v36 = vpop.f32.mrf.mxu3  ;;  %v925_v43 = vsel %vm605_vm9, %v2184_v34, %v1292_v29  ;;  %1468 = vpow2.f32 %v811_v30  ;;  %v438_v40 = vpop.f32.mrf.mxu0  ;;  %1038 = vst.msk [vmem:[%s2394_s3 + $0x70] sm:$0xf] %vm1009_vm3, %v973_v32  ;;  %v1261_v45 = vadd.f32 -1.0, %v1463_v37  ;;  %v2291_v48 = vadd.f32 %v2190_v41, %v516_v28 }
 0x10e   :  { %v989_v39 = vpack.c.bf16 %v925_v43, %v925_v43  ;;  %v941_v38 = vsel %vm621_vm10, %v2193_v42, %v1308_v25  ;;  %1470 = vpow2.f32 %v717_v35  ;;  %v478_v54 = vpop.f32.mrf.mxu1  ;;  %v749_v55 = vmul.f32 1.442695, %v655_v33 }
 0x10f   :  { %v1005_v34 = vpack.c.bf16 %v941_v38, %v941_v38  ;;  %v2294_v57 = vadd.f32 %v2190_v41, %v556_v36  ;;  %v1465_v58 = vpop.eup %1464  ;;  %v894_v42 = vsel %vm574_vm11, %v2204_v52, %v1261_v45  ;;  %v2305_v46 = vadd.f32 %v2190_v41, %v438_v40 }
 0x110   :  { %1054 = vst.msk [vmem:[%s2394_s3 + $0xb0] sm:$0xf] %vm1009_vm3, %v989_v39  ;;  %v958_v47 = vpack.c.bf16 %v894_v42, %v894_v42  ;;  %v1277_v59 = vadd.f32 -1.0, %v1465_v58  ;;  %1472 = vpow2.f32 %v749_v55  ;;  %v2312_v44 = vadd.f32 %v2190_v41, %v478_v54 }
 0x111   :  { %1070 = vst.msk [vmem:[%s2394_s3 + $0xf0] sm:$0xf] %vm1009_vm3, %v1005_v34  ;;  %vm606_vm13 = vcmp.gt.f32.partialorder %v2245_v0, 0.0  ;;  %vm622_vm14 = vcmp.gt.f32.partialorder %v2252_v18, 0.0  ;;  %v671_v52 = vmin.f32 %v2291_v48, 0.0  ;;  %v687_v49 = vmin.f32 %v2294_v57, 0.0 }
 0x112   :  { %v1467_v51 = vpop.eup %1466  ;;  %1023 = vst.msk [vmem:[%s2394_s3 + $0x34] sm:$0xf] %vm1009_vm3, %v958_v47  ;;  %v910_v53 = vsel %vm590_vm12, %v2230_v50, %v1277_v59  ;;  %vm575_vm15 = vcmp.gt.f32.partialorder %v2255_v20, 0.0  ;;  %v640_v62 = vmin.f32 %v2305_v46, 0.0  ;;  %v656_v56 = vmin.f32 %v2312_v44, 0.0 }
 0x113   :  { %v1469_v60 = vpop.eup %1468  ;;  %v1293_v61 = vadd.f32 -1.0, %v1467_v51  ;;  %v974_v3 = vpack.c.bf16 %v910_v53, %v910_v53  ;;  %v781_v5 = vmul.f32 1.442695, %v671_v52  ;;  %v813_v7 = vmul.f32 1.442695, %v687_v49 }
 0x114   :  { %v518_v63 = vpop.f32.mrf.mxu2  ;;  %v1471_v1 = vpop.eup %1470  ;;  %v1309_v4 = vadd.f32 -1.0, %v1469_v60  ;;  %v719_v12 = vmul.f32 1.442695, %v640_v62  ;;  %v751_v15 = vmul.f32 1.442695, %v656_v56  ;;  %vm591_vm0 = vcmp.gt.f32.partialorder %v2276_v31, 0.0 }
 0x115   :  { %v926_v10 = vsel %vm606_vm13, %v2245_v0, %v1293_v61  ;;  %v1262_v11 = vadd.f32 -1.0, %v1471_v1  ;;  %1039 = vst.msk [vmem:[%s2394_s3 + $0x74] sm:$0xf] %vm1009_vm3, %v974_v3  ;;  %1474 = vpow2.f32 %v781_v5  ;;  %v519_v8 = vadd.f32 %v2190_v41, %v518_v63  ;;  %v558_v2 = vpop.f32.mrf.mxu3 }
 0x116   :  { %v990_v50 = vpack.c.bf16 %v926_v10, %v926_v10  ;;  %v942_v14 = vsel %vm622_vm14, %v2252_v18, %v1309_v4  ;;  %v1473_v9 = vpop.eup %1472  ;;  %1476 = vpow2.f32 %v813_v7  ;;  %vm607_vm1 = vcmp.gt.f32.partialorder %v2291_v48, 0.0 }
 0x117   :  { %v1006_v0 = vpack.c.bf16 %v942_v14, %v942_v14  ;;  %v895_v6 = vsel %vm575_vm15, %v2255_v20, %v1262_v11  ;;  %v1278_v23 = vadd.f32 -1.0, %v1473_v9  ;;  %1478 = vpow2.f32 %v719_v12 }
 0x118   :  { %1055 = vst.msk [vmem:[%s2394_s3 + $0xb4] sm:$0xf] %vm1009_vm3, %v990_v50  ;;  %v959_v21 = vpack.c.bf16 %v895_v6, %v895_v6  ;;  %1480 = vpow2.f32 %v751_v15  ;;  %v672_v18 = vmin.f32 %v519_v8, 0.0  ;;  %v559_v20 = vadd.f32 %v2190_v41, %v558_v2 }
 0x119   :  { %1071 = vst.msk [vmem:[%s2394_s3 + $0xf4] sm:$0xf] %vm1009_vm3, %v1006_v0  ;;  %v911_v16 = vsel %vm591_vm0, %v2276_v31, %v1278_v23  ;;  %vm623_vm2 = vcmp.gt.f32.partialorder %v2294_v57, 0.0  ;;  %vm576_vm4 = vcmp.gt.f32.partialorder %v2305_v46, 0.0  ;;  %vm592_vm5 = vcmp.gt.f32.partialorder %v2312_v44, 0.0 }
 0x11a   :  { %1024 = vst.msk [vmem:[%s2394_s3 + $0x38] sm:$0xf] %vm1009_vm3, %v959_v21  ;;  %v975_v26 = vpack.c.bf16 %v911_v16, %v911_v16  ;;  %v783_v27 = vmul.f32 1.442695, %v672_v18  ;;  %v688_v24 = vmin.f32 %v559_v20, 0.0  ;;  %vm608_vm6 = vcmp.gt.f32.partialorder %v519_v8, 0.0 }
 0x11b   :  { %v1475_v13 = vpop.eup %1474  ;;  %vm624_vm7 = vcmp.gt.f32.partialorder %v559_v20, 0.0 }
 0x11c   :  { %v1477_v22 = vpop.eup %1476  ;;  %1040 = vst.msk [vmem:[%s2394_s3 + $0x78] sm:$0xf] %vm1009_vm3, %v975_v26  ;;  %v1294_v28 = vadd.f32 -1.0, %v1475_v13  ;;  %1482 = vpow2.f32 %v783_v27  ;;  %v815_v41 = vmul.f32 1.442695, %v688_v24 }
 0x11d   :  { %v1479_v17 = vpop.eup %1478  ;;  %v1310_v19 = vadd.f32 -1.0, %v1477_v22 }
 0x11e   :  { %v1481_v29 = vpop.eup %1480  ;;  %v927_v30 = vsel %vm607_vm1, %v2291_v48, %v1294_v28  ;;  %v1263_v31 = vadd.f32 -1.0, %v1479_v17  ;;  %1484 = vpow2.f32 %v815_v41 }
 0x11f   :  { %v991_v32 = vpack.c.bf16 %v927_v30, %v927_v30  ;;  %v943_v25 = vsel %vm623_vm2, %v2294_v57, %v1310_v19  ;;  %v1279_v35 = vadd.f32 -1.0, %v1481_v29 }
 0x120   :  { %v1007_v36 = vpack.c.bf16 %v943_v25, %v943_v25  ;;  %v896_v37 = vsel %vm576_vm4, %v2305_v46, %v1263_v31 }
 0x121   :  { %1056 = vst.msk [vmem:[%s2394_s3 + $0xb8] sm:$0xf] %vm1009_vm3, %v991_v32  ;;  %v960_v43 = vpack.c.bf16 %v896_v37, %v896_v37  ;;  %v912_v33 = vsel %vm592_vm5, %v2312_v44, %v1279_v35 }
 0x122   :  { %v1483_v40 = vpop.eup %1482  ;;  %1072 = vst.msk [vmem:[%s2394_s3 + $0xf8] sm:$0xf] %vm1009_vm3, %v1007_v36  ;;  %v976_v39 = vpack.c.bf16 %v912_v33, %v912_v33 }
 0x123   :  { %1025 = vst.msk [vmem:[%s2394_s3 + $0x3c] sm:$0xf] %vm1009_vm3, %v960_v43  ;;  %v1295_v38 = vadd.f32 -1.0, %v1483_v40 }
 0x124   :  { %v1485_v45 = vpop.eup %1484  ;;  %1041 = vst.msk [vmem:[%s2394_s3 + $0x7c] sm:$0xf] %vm1009_vm3, %v976_v39 }
 0x125   :  { %v928_v54 = vsel %vm608_vm6, %v519_v8, %v1295_v38  ;;  %v1311_v34 = vadd.f32 -1.0, %v1485_v45 }
 0x126   :  { %v992_v55 = vpack.c.bf16 %v928_v54, %v928_v54 }
 0x127   :  { %v944_v48 = vsel %vm624_vm7, %v559_v20, %v1311_v34 }
 0x128   :  { %1057 = vst.msk [vmem:[%s2394_s3 + $0xbc] sm:$0xf] %vm1009_vm3, %v992_v55  ;;  %v1008_v57 = vpack.c.bf16 %v944_v48, %v944_v48 }
 0x12a   :  { %1073 = vst.msk [vmem:[%s2394_s3 + $0xfc] sm:$0xf] %vm1009_vm3, %v1008_v57 }
 0x12b   :  { %1078 = vsyncpa [#allocation3], 1 }
 0x12c   :  { %1079 = vsyncpa [#allocation5], 1 }

// kernel: improved_ae_resnet18_forward.5
= control target key start
LH: loop header
LB: loop body
LE: loop exit
PB: predicated region body
PF: predicated region fallthrough
CT: control target
= control target key end

     0   :  { %vm777_vm0 = vcmask 261120   ;;  %vm1261_vm3 = vcmask 130048   ;;  %s3005_s1 = inlined_call_operand.vmem [shape: bf16[800,16], index: 1, kind: input, shape index: {}]   ;;  %s3006_s2 = inlined_call_operand.vmem [shape: f32[1,16], index: 2, kind: input, shape index: {}]   ;;  %s3007_s0 = inlined_call_operand.vmem [shape: bf16[128,800], index: 0, kind: input, shape index: {}]   ;;  %s3008_s3 = inlined_call_operand.vmem [shape: bf16[16,3], index: 3, kind: input, shape index: {}]   ;;  %s3009_s4 = inlined_call_operand.vmem [shape: f32[1,3], index: 4, kind: input, shape index: {}]   ;;  %s3010_s5 = inlined_call_operand.vmem [shape: f32[1,3], index: 5, kind: input, shape index: {}]   ;;  %s3011_s6 = inlined_call_operand.vmem [shape: f32[1,3], index: 6, kind: input, shape index: {}]   ;;  %s3012_s7 = inlined_call_operand.vmem [shape: bf16[128,3], index: 7, kind: output, shape index: {0}]   ;;  %s3013_s8 = inlined_call_operand.vmem [shape: bf16[128,3], index: 8, kind: output, shape index: {1}]  }
   0x1   :  { %v2051_v0 = vld [vmem:[%s3005_s1 + $0x38] sm:$0xff]  ;;  %v2050_v4 = vld [vmem:[%s3005_s1 + $0x30] sm:$0xff]  ;;  %v2049_v8 = vld [vmem:[%s3005_s1 + $0x28] sm:$0xff] }
   0x2   :  { %v2059_v1 = vld [vmem:[%s3005_s1 + $0x78] sm:$0xff]  ;;  %802 = vmatpush.bf16.msra.mxu0 %v2051_v0  ;;  %v2058_v5 = vld [vmem:[%s3005_s1 + $0x70] sm:$0xff]  ;;  %v2057_v9 = vld [vmem:[%s3005_s1 + $0x68] sm:$0xff] }
   0x3   :  { %v2067_v2 = vld [vmem:[%s3005_s1 + $0xb8] sm:$0xff]  ;;  %851 = vmatpush.bf16.msra.mxu1 %v2059_v1  ;;  %v2066_v6 = vld [vmem:[%s3005_s1 + $0xb0] sm:$0xff]  ;;  %v2065_v10 = vld [vmem:[%s3005_s1 + $0xa8] sm:$0xff] }
   0x4   :  { %v2075_v3 = vld [vmem:[%s3005_s1 + $0xf8] sm:$0xff]  ;;  %900 = vmatpush.bf16.msra.mxu2 %v2067_v2  ;;  %v2074_v7 = vld [vmem:[%s3005_s1 + $0xf0] sm:$0xff]  ;;  %v2073_v11 = vld [vmem:[%s3005_s1 + $0xe8] sm:$0xff] }
   0x5   :  { %949 = vmatpush.bf16.msra.mxu3 %v2075_v3  ;;  %v2048_v12 = vld [vmem:[%s3005_s1 + $0x20] sm:$0xff]  ;;  %v2047_v16 = vld [vmem:[%s3005_s1 + $0x18] sm:$0xff]  ;;  %v2046_v20 = vld [vmem:[%s3005_s1 + $0x10] sm:$0xff] }
   0x6   :  { %803 = vmatpush.bf16.msra.mxu0 %v2050_v4  ;;  %v2056_v13 = vld [vmem:[%s3005_s1 + $0x60] sm:$0xff]  ;;  %v2055_v17 = vld [vmem:[%s3005_s1 + $0x58] sm:$0xff]  ;;  %v2054_v21 = vld [vmem:[%s3005_s1 + $0x50] sm:$0xff] }
   0x7   :  { %852 = vmatpush.bf16.msra.mxu1 %v2058_v5  ;;  %v2064_v14 = vld [vmem:[%s3005_s1 + $0xa0] sm:$0xff]  ;;  %v2063_v18 = vld [vmem:[%s3005_s1 + $0x98] sm:$0xff]  ;;  %v2062_v22 = vld [vmem:[%s3005_s1 + $0x90] sm:$0xff] }
   0x8   :  { %901 = vmatpush.bf16.msra.mxu2 %v2066_v6  ;;  %v2072_v15 = vld [vmem:[%s3005_s1 + $0xe0] sm:$0xff]  ;;  %v2071_v19 = vld [vmem:[%s3005_s1 + $0xd8] sm:$0xff]  ;;  %v2070_v23 = vld [vmem:[%s3005_s1 + $0xd0] sm:$0xff] }
   0x9   :  { %950 = vmatpush.bf16.msra.mxu3 %v2074_v7  ;;  %v2045_v24 = vld [vmem:[%s3005_s1 + $0x8] sm:$0xff]  ;;  %v2044_v28 = vld [vmem:[%s3005_s1] sm:$0xff]  ;;  %v1991_v33 = vld [vmem:[%s3007_s0 + $0x18] sm:$0xf0] }
   0xa   :  { %804 = vmatpush.bf16.msra.mxu0 %v2049_v8  ;;  %v2053_v25 = vld [vmem:[%s3005_s1 + $0x48] sm:$0xff]  ;;  %v2052_v29 = vld [vmem:[%s3005_s1 + $0x40] sm:$0xff]  ;;  %v2083_v41 = vld [vmem:[%s3005_s1 + $0x138] sm:$0xff] }
   0xb   :  { %853 = vmatpush.bf16.msra.mxu1 %v2057_v9  ;;  %v2061_v26 = vld [vmem:[%s3005_s1 + $0x88] sm:$0xff]  ;;  %v2060_v30 = vld [vmem:[%s3005_s1 + $0x80] sm:$0xff]  ;;  %v2091_v46 = vld [vmem:[%s3005_s1 + $0x178] sm:$0xff] }
   0xc   :  { %902 = vmatpush.bf16.msra.mxu2 %v2065_v10  ;;  %v2069_v27 = vld [vmem:[%s3005_s1 + $0xc8] sm:$0xff]  ;;  %v2068_v31 = vld [vmem:[%s3005_s1 + $0xc0] sm:$0xff]  ;;  %v2082_v47 = vld [vmem:[%s3005_s1 + $0x130] sm:$0xff] }
   0xd   :  { %951 = vmatpush.bf16.msra.mxu3 %v2073_v11  ;;  %v1530_v32 = vld [vmem:[%s3007_s0] sm:$0xf]  ;;  %v1988_v34 = vld [vmem:[%s3007_s0 + $0x4] sm:$0xf]  ;;  %v1538_v36 = vld [vmem:[%s3007_s0 + $0x8] sm:$0xf] }
   0xe   :  { %805 = vmatpush.bf16.msra.mxu0 %v2048_v12  ;;  %v1532_v35 = vld [vmem:[%s3007_s0 + $0x1c] sm:$0xf0]  ;;  %v1992_v37 = vld [vmem:[%s3007_s0 + $0x20] sm:$0xf0]  ;;  %v1989_v38 = vld [vmem:[%s3007_s0 + $0xc] sm:$0xf]  ;;  %v1531_v42 = vor.u32 %v1991_v33, %v1530_v32 }
   0xf   :  { %854 = vmatpush.bf16.msra.mxu1 %v2056_v13  ;;  %v1540_v39 = vld [vmem:[%s3007_s0 + $0x24] sm:$0xf0]  ;;  %v1535_v43 = vor.u32 %v1988_v34, %v1532_v35  ;;  %v1539_v44 = vor.u32 %v1992_v37, %v1538_v36  ;;  %v2090_v48 = vld [vmem:[%s3005_s1 + $0x170] sm:$0xff]  ;;  %v1558_v51 = vld [vmem:[%s3007_s0 + $0x38] sm:$0xf] }
  0x10   :  { %903 = vmatpush.bf16.msra.mxu2 %v2064_v14  ;;  %v2093_v40 = vld [vmem:[%s3005_s1 + $0x188] sm:$0xff]  ;;  %v1543_v45 = vor.u32 %v1989_v38, %v1540_v39  ;;  %v1998_v52 = vld [vmem:[%s3007_s0 + $0x50] sm:$0xf0]  ;;  %v1995_v53 = vld [vmem:[%s3007_s0 + $0x3c] sm:$0xf] }
  0x11   :  { %952 = vmatpush.bf16.msra.mxu3 %v2072_v15  ;;  %v2081_v49 = vld [vmem:[%s3005_s1 + $0x128] sm:$0xff]  ;;  %v1560_v54 = vld [vmem:[%s3007_s0 + $0x54] sm:$0xf0]  ;;  %v1566_v55 = vld [vmem:[%s3007_s0 + $0x40] sm:$0xf]  ;;  %v1559_v59 = vor.u32 %v1998_v52, %v1558_v51 }
  0x12   :  { %806 = vmatpush.bf16.msra.mxu0 %v2047_v16  ;;  %v2089_v50 = vld [vmem:[%s3005_s1 + $0x168] sm:$0xff]  ;;  %v1999_v56 = vld [vmem:[%s3007_s0 + $0x58] sm:$0xf0]  ;;  %v1996_v57 = vld [vmem:[%s3007_s0 + $0x44] sm:$0xf]  ;;  %v1563_v60 = vor.u32 %v1995_v53, %v1560_v54 }
  0x13   :  { %855 = vmatpush.bf16.msra.mxu1 %v2055_v17  ;;  %v1568_v58 = vld [vmem:[%s3007_s0 + $0x5c] sm:$0xf0]  ;;  %v1567_v61 = vor.u32 %v1999_v56, %v1566_v55  ;;  %v1586_v1 = vld [vmem:[%s3007_s0 + $0x70] sm:$0xf]  ;;  %v2005_v2 = vld [vmem:[%s3007_s0 + $0x88] sm:$0xf0] }
  0x14   :  { %904 = vmatpush.bf16.msra.mxu2 %v2063_v18  ;;  %v1571_v62 = vor.u32 %v1996_v57, %v1568_v58  ;;  %v2080_v63 = vld [vmem:[%s3005_s1 + $0x120] sm:$0xff]  ;;  %v2002_v3 = vld [vmem:[%s3007_s0 + $0x74] sm:$0xf]  ;;  %v1588_v4 = vld [vmem:[%s3007_s0 + $0x8c] sm:$0xf0]  ;;  %v1587_v9 = vor.u32 %v2005_v2, %v1586_v1 }
  0x15   :  { %953 = vmatpush.bf16.msra.mxu3 %v2071_v19  ;;  %v2088_v0 = vld [vmem:[%s3005_s1 + $0x160] sm:$0xff]  ;;  %v1594_v5 = vld [vmem:[%s3007_s0 + $0x78] sm:$0xf]  ;;  %v2006_v6 = vld [vmem:[%s3007_s0 + $0x90] sm:$0xf0]  ;;  %v1591_v10 = vor.u32 %v2002_v3, %v1588_v4 }
  0x16   :  { %807 = vmatpush.bf16.msra.mxu0 %v2046_v20  ;;  %v2003_v7 = vld [vmem:[%s3007_s0 + $0x7c] sm:$0xf]  ;;  %v1596_v8 = vld [vmem:[%s3007_s0 + $0x94] sm:$0xf0]  ;;  %v1595_v11 = vor.u32 %v2006_v6, %v1594_v5  ;;  %v2092_v13 = vld [vmem:[%s3005_s1 + $0x180] sm:$0xff] }
  0x17   :  { %856 = vmatpush.bf16.msra.mxu1 %v2054_v21  ;;  %v1599_v12 = vor.u32 %v2003_v7, %v1596_v8  ;;  %v2079_v14 = vld [vmem:[%s3005_s1 + $0x118] sm:$0xff]  ;;  %v1614_v16 = vld [vmem:[%s3007_s0 + $0xa8] sm:$0xf]  ;;  %v2012_v17 = vld [vmem:[%s3007_s0 + $0xc0] sm:$0xf0] }
  0x18   :  { %905 = vmatpush.bf16.msra.mxu2 %v2062_v22  ;;  %v2087_v15 = vld [vmem:[%s3005_s1 + $0x158] sm:$0xff]  ;;  %v2009_v18 = vld [vmem:[%s3007_s0 + $0xac] sm:$0xf]  ;;  %v1616_v19 = vld [vmem:[%s3007_s0 + $0xc4] sm:$0xf0] }
  0x19   :  { %954 = vmatpush.bf16.msra.mxu3 %v2070_v23  ;;  %v1622_v20 = vld [vmem:[%s3007_s0 + $0xb0] sm:$0xf]  ;;  %v2013_v21 = vld [vmem:[%s3007_s0 + $0xc8] sm:$0xf0]  ;;  %v2010_v22 = vld [vmem:[%s3007_s0 + $0xb4] sm:$0xf] }
  0x1a   :  { %808 = vmatpush.bf16.msra.mxu0 %v2045_v24  ;;  %v1624_v23 = vld [vmem:[%s3007_s0 + $0xcc] sm:$0xf0]  ;;  %v1615_v24 = vor.u32 %v2012_v17, %v1614_v16  ;;  %v2016_v32 = vld [vmem:[%s3007_s0 + $0xe4] sm:$0xf]  ;;  %v1644_v33 = vld [vmem:[%s3007_s0 + $0xfc] sm:$0xf0] }
  0x1b   :  { %857 = vmatpush.bf16.msra.mxu1 %v2053_v25  ;;  %v1619_v25 = vor.u32 %v2009_v18, %v1616_v19  ;;  %v1650_v34 = vld [vmem:[%s3007_s0 + $0xe8] sm:$0xf]  ;;  %v2020_v35 = vld [vmem:[%s3007_s0 + $0x100] sm:$0xf0]  ;;  %v2017_v36 = vld [vmem:[%s3007_s0 + $0xec] sm:$0xf]  ;;  %v1647_v39 = vor.u32 %v2016_v32, %v1644_v33 }
  0x1c   :  { %906 = vmatpush.bf16.msra.mxu2 %v2061_v26  ;;  %v1623_v26 = vor.u32 %v2013_v21, %v1622_v20  ;;  %v1652_v37 = vld [vmem:[%s3007_s0 + $0x104] sm:$0xf0]  ;;  %v1680_v51 = vld [vmem:[%s3007_s0 + $0x13c] sm:$0xf0]  ;;  %v1698_v58 = vld [vmem:[%s3007_s0 + $0x150] sm:$0xf] }
  0x1d   :  { %955 = vmatpush.bf16.msra.mxu3 %v2069_v27  ;;  %v1627_v27 = vor.u32 %v2010_v22, %v1624_v23  ;;  %v2076_v56 = vld [vmem:[%s3005_s1 + $0x100] sm:$0xff]  ;;  %v1708_v1 = vld [vmem:[%s3007_s0 + $0x174] sm:$0xf0]  ;;  %v1726_v6 = vld [vmem:[%s3007_s0 + $0x188] sm:$0xf] }
  0x1e   :  { %809 = vmatpush.bf16.msra.mxu0 %v2044_v28  ;;  %v2078_v28 = vld [vmem:[%s3005_s1 + $0x110] sm:$0xff]  ;;  %v2084_v57 = vld [vmem:[%s3005_s1 + $0x140] sm:$0xff]  ;;  %v2037_v8 = vld [vmem:[%s3007_s0 + $0x18c] sm:$0xf] }
  0x1f   :  { %858 = vmatpush.bf16.msra.mxu1 %v2052_v29  ;;  %v2086_v29 = vld [vmem:[%s3005_s1 + $0x150] sm:$0xff]  ;;  %v2040_v7 = vld [vmem:[%s3007_s0 + $0x1a0] sm:$0xf0]  ;;  %v1993_v19 = vld [vmem:[%s3007_s0 + $0x28] sm:$0xf0] }
  0x20   :  { %907 = vmatpush.bf16.msra.mxu2 %v2060_v30  ;;  %v1642_v30 = vld [vmem:[%s3007_s0 + $0xe0] sm:$0xf]  ;;  %v1546_v18 = vld [vmem:[%s3007_s0 + $0x10] sm:$0xf]  ;;  %v1990_v20 = vld [vmem:[%s3007_s0 + $0x14] sm:$0xf] }
  0x21   :  { %956 = vmatpush.bf16.msra.mxu3 %v2068_v31  ;;  %810 = vmatmul.bf16.vlgmr.msra.gmra.mxu0 %v1531_v42  ;;  %v2019_v31 = vld [vmem:[%s3007_s0 + $0xf8] sm:$0xf0]  ;;  %v2077_v42 = vld [vmem:[%s3005_s1 + $0x108] sm:$0xff]  ;;  %v1548_v21 = vld [vmem:[%s3007_s0 + $0x2c] sm:$0xf0] }
  0x22   :  { %998 = vmatpush.bf16.msrb.mxu0 %v2083_v41  ;;  %859 = vmatmul.bf16.vlgmr.msra.gmra.mxu1 %v1535_v43  ;;  %v1643_v38 = vor.u32 %v2019_v31, %v1642_v30  ;;  %v1655_v41 = vor.u32 %v2017_v36, %v1652_v37  ;;  %v2085_v43 = vld [vmem:[%s3005_s1 + $0x148] sm:$0xff]  ;;  %v2597_v22 = vld [vmem:[%s3006_s2] ss:$0 sm:$0xff]  ;;  %v1554_v23 = vld [vmem:[%s3007_s0 + $0x18] sm:$0xf] }
  0x23   :  { %908 = vmatmul.bf16.vlgmr.msra.gmra.mxu2 %v1539_v44  ;;  %1047 = vmatpush.bf16.msrb.mxu1 %v2091_v46  ;;  %v1670_v44 = vld [vmem:[%s3007_s0 + $0x118] sm:$0xf]  ;;  %v2023_v46 = vld [vmem:[%s3007_s0 + $0x11c] sm:$0xf]  ;;  %v2094_v32 = vld [vmem:[%s3008_s3] sm:$0xff] }
  0x24   :  { %1102 = vmatpush.bf16.msrb.mxu2 %v2093_v40  ;;  %957 = vmatmul.bf16.vlgmr.msra.gmra.mxu3 %v1543_v45  ;;  %v1651_v40 = vor.u32 %v2020_v35, %v1650_v34  ;;  %v2026_v45 = vld [vmem:[%s3007_s0 + $0x130] sm:$0xf0] }
  0x25   :  { %v1671_v52 = vor.u32 %v2026_v45, %v1670_v44  ;;  %1293 = vmatpush.bf16.msrb.mxu3 %v2094_v32  ;;  %v2001_v44 = vld [vmem:[%s3007_s0 + $0x68] sm:$0xf0] }
  0x26   :  { %999 = vmatpush.bf16.msrb.mxu0 %v2082_v47  ;;  %v1672_v47 = vld [vmem:[%s3007_s0 + $0x134] sm:$0xf0] }
  0x27   :  { %1048 = vmatpush.bf16.msrb.mxu1 %v2090_v48  ;;  %v1678_v48 = vld [vmem:[%s3007_s0 + $0x120] sm:$0xf]  ;;  %v1675_v53 = vor.u32 %v2023_v46, %v1672_v47 }
  0x28   :  { %1103 = vmatpush.bf16.msrb.mxu2 %v2092_v13  ;;  %v1736_v13 = vld [vmem:[%s3007_s0 + $0x1ac] sm:$0xf0] }
  0x2a   :  { %1000 = vmatpush.bf16.msrb.mxu0 %v2081_v49  ;;  %v2027_v49 = vld [vmem:[%s3007_s0 + $0x138] sm:$0xf0] }
  0x2b   :  { %1049 = vmatpush.bf16.msrb.mxu1 %v2089_v50  ;;  %v2024_v50 = vld [vmem:[%s3007_s0 + $0x124] sm:$0xf]  ;;  %v1679_v54 = vor.u32 %v2027_v49, %v1678_v48 }
  0x2c   :  { %v1683_v55 = vor.u32 %v2024_v50, %v1680_v51 }
  0x2e   :  { %1001 = vmatpush.bf16.msrb.mxu0 %v2080_v63  ;;  %v2034_v63 = vld [vmem:[%s3007_s0 + $0x170] sm:$0xf0] }
  0x2f   :  { %1050 = vmatpush.bf16.msrb.mxu1 %v2088_v0  ;;  %v2031_v0 = vld [vmem:[%s3007_s0 + $0x15c] sm:$0xf] }
  0x30   :  { %v1711_v5 = vor.u32 %v2031_v0, %v1708_v1  ;;  %v1610_v0 = vld [vmem:[%s3007_s0 + $0x88] sm:$0xf]  ;;  %v2008_v1 = vld [vmem:[%s3007_s0 + $0xa0] sm:$0xf0] }
  0x31   :  { %815 = vmatmul.bf16.gmra.mxu0 %v1559_v59  ;;  %v2033_v59 = vld [vmem:[%s3007_s0 + $0x168] sm:$0xf0] }
  0x32   :  { %864 = vmatmul.bf16.gmra.mxu1 %v1563_v60  ;;  %1002 = vmatpush.bf16.msrb.mxu0 %v2079_v14  ;;  %v2030_v60 = vld [vmem:[%s3007_s0 + $0x154] sm:$0xf]  ;;  %v1699_v2 = vor.u32 %v2033_v59, %v1698_v58  ;;  %v1727_v14 = vor.u32 %v2040_v7, %v1726_v6 }
  0x33   :  { %913 = vmatmul.bf16.gmra.mxu2 %v1567_v61  ;;  %1051 = vmatpush.bf16.msrb.mxu1 %v2087_v15  ;;  %v1700_v61 = vld [vmem:[%s3007_s0 + $0x16c] sm:$0xf0] }
  0x34   :  { %962 = vmatmul.bf16.gmra.mxu3 %v1571_v62  ;;  %v1706_v62 = vld [vmem:[%s3007_s0 + $0x158] sm:$0xf]  ;;  %v1703_v3 = vor.u32 %v2030_v60, %v1700_v61  ;;  %v1602_v60 = vld [vmem:[%s3007_s0 + $0x80] sm:$0xf]  ;;  %v2007_v61 = vld [vmem:[%s3007_s0 + $0x98] sm:$0xf0] }
  0x35   :  { %v1707_v4 = vor.u32 %v2034_v63, %v1706_v62  ;;  %v2004_v62 = vld [vmem:[%s3007_s0 + $0x84] sm:$0xf]  ;;  %v1604_v63 = vld [vmem:[%s3007_s0 + $0x9c] sm:$0xf0] }
  0x36   :  { %1003 = vmatpush.bf16.msrb.mxu0 %v2078_v28 }
  0x37   :  { %1052 = vmatpush.bf16.msrb.mxu1 %v2086_v29 }
  0x3a   :  { %1004 = vmatpush.bf16.msrb.mxu0 %v2077_v42  ;;  %v1576_v42 = vld [vmem:[%s3007_s0 + $0x64] sm:$0xf0] }
  0x3b   :  { %1053 = vmatpush.bf16.msrb.mxu1 %v2085_v43  ;;  %v1582_v43 = vld [vmem:[%s3007_s0 + $0x50] sm:$0xf] }
  0x3c   :  { %v1583_v51 = vor.u32 %v2001_v44, %v1582_v43  ;;  %v1660_v43 = vld [vmem:[%s3007_s0 + $0x10c] sm:$0xf0]  ;;  %v1666_v44 = vld [vmem:[%s3007_s0 + $0xf8] sm:$0xf] }
  0x3e   :  { %1005 = vmatpush.bf16.msrb.mxu0 %v2076_v56 }
  0x3f   :  { %1054 = vmatpush.bf16.msrb.mxu1 %v2084_v57 }
  0x41   :  { %820 = vmatmul.bf16.gmra.mxu0 %v1587_v9  ;;  %v1728_v9 = vld [vmem:[%s3007_s0 + $0x1a4] sm:$0xf0] }
  0x42   :  { %869 = vmatmul.bf16.gmra.mxu1 %v1591_v10  ;;  %v1734_v10 = vld [vmem:[%s3007_s0 + $0x190] sm:$0xf]  ;;  %v1731_v15 = vor.u32 %v2037_v8, %v1728_v9  ;;  %v1611_v8 = vor.u32 %v2008_v1, %v1610_v0  ;;  %v2028_v0 = vld [vmem:[%s3007_s0 + $0x140] sm:$0xf0]  ;;  %v2025_v1 = vld [vmem:[%s3007_s0 + $0x12c] sm:$0xf] }
  0x43   :  { %918 = vmatmul.bf16.gmra.mxu2 %v1595_v11  ;;  %v2041_v11 = vld [vmem:[%s3007_s0 + $0x1a8] sm:$0xf0] }
  0x44   :  { %967 = vmatmul.bf16.gmra.mxu3 %v1599_v12  ;;  %v2038_v12 = vld [vmem:[%s3007_s0 + $0x194] sm:$0xf]  ;;  %v1735_v16 = vor.u32 %v2041_v11, %v1734_v10 }
  0x45   :  { %v1739_v17 = vor.u32 %v2038_v12, %v1736_v13 }
  0x51   :  { %825 = vmatmul.bf16.gmra.mxu0 %v1615_v24  ;;  %v1994_v24 = vld [vmem:[%s3007_s0 + $0x30] sm:$0xf0] }
  0x52   :  { %874 = vmatmul.bf16.gmra.mxu1 %v1619_v25  ;;  %v1547_v25 = vor.u32 %v1993_v19, %v1546_v18  ;;  %v1555_v29 = vor.u32 %v1994_v24, %v1554_v23  ;;  %v2014_v18 = vld [vmem:[%s3007_s0 + $0xd0] sm:$0xf0]  ;;  %v2011_v19 = vld [vmem:[%s3007_s0 + $0xbc] sm:$0xf] }
  0x53   :  { %923 = vmatmul.bf16.gmra.mxu2 %v1623_v26  ;;  %v1551_v26 = vor.u32 %v1990_v20, %v1548_v21  ;;  %v1632_v20 = vld [vmem:[%s3007_s0 + $0xd4] sm:$0xf0]  ;;  %v1638_v21 = vld [vmem:[%s3007_s0 + $0xc0] sm:$0xf]  ;;  %v2015_v23 = vld [vmem:[%s3007_s0 + $0xd8] sm:$0xf0] }
  0x54   :  { %972 = vmatmul.bf16.gmra.mxu3 %v1627_v27 }
  0x61   :  { %830 = vmatmul.bf16.gmra.mxu0 %v1643_v38 }
  0x62   :  { %879 = vmatmul.bf16.gmra.mxu1 %v1647_v39  ;;  %v1574_v39 = vld [vmem:[%s3007_s0 + $0x48] sm:$0xf] }
  0x63   :  { %928 = vmatmul.bf16.gmra.mxu2 %v1651_v40  ;;  %v2000_v40 = vld [vmem:[%s3007_s0 + $0x60] sm:$0xf0] }
  0x64   :  { %977 = vmatmul.bf16.gmra.mxu3 %v1655_v41  ;;  %v1997_v41 = vld [vmem:[%s3007_s0 + $0x4c] sm:$0xf]  ;;  %v1575_v46 = vor.u32 %v2000_v40, %v1574_v39  ;;  %v1658_v40 = vld [vmem:[%s3007_s0 + $0xf0] sm:$0xf] }
  0x65   :  { %v1579_v47 = vor.u32 %v1997_v41, %v1576_v42  ;;  %v2021_v41 = vld [vmem:[%s3007_s0 + $0x108] sm:$0xf0]  ;;  %v2018_v42 = vld [vmem:[%s3007_s0 + $0xf4] sm:$0xf] }
  0x71   :  { %835 = vmatmul.bf16.gmra.mxu0 %v1671_v52 }
  0x72   :  { %884 = vmatmul.bf16.gmra.mxu1 %v1675_v53 }
  0x73   :  { %933 = vmatmul.bf16.gmra.mxu2 %v1679_v54 }
  0x74   :  { %982 = vmatmul.bf16.gmra.mxu3 %v1683_v55 }
  0x81   :  { %840 = vmatmul.bf16.gmra.mxu0 %v1699_v2 }
  0x82   :  { %889 = vmatmul.bf16.gmra.mxu1 %v1703_v3  ;;  %v1603_v3 = vor.u32 %v2007_v61, %v1602_v60 }
  0x83   :  { %938 = vmatmul.bf16.gmra.mxu2 %v1707_v4  ;;  %v1607_v4 = vor.u32 %v2004_v62, %v1604_v63  ;;  %v1686_v63 = vld [vmem:[%s3007_s0 + $0x128] sm:$0xf] }
  0x84   :  { %987 = vmatmul.bf16.gmra.mxu3 %v1711_v5 }
  0x91   :  { %845 = vmatmul.bf16.gmra.mxu0 %v1727_v14 }
  0x92   :  { %894 = vmatmul.bf16.gmra.mxu1 %v1731_v15 }
  0x93   :  { %943 = vmatmul.bf16.gmra.mxu2 %v1735_v16 }
  0x94   :  { %992 = vmatmul.bf16.gmra.mxu3 %v1739_v17  ;;  %v1630_v17 = vld [vmem:[%s3007_s0 + $0xb8] sm:$0xf] }
  0x9e   :  { %v811_v27 = vpop.f32.mrf.mxu0 }
  0x9f   :  { %v860_v28 = vpop.f32.mrf.mxu1  ;;  %v812_v30 = vadd.f32 %v2597_v22, %v811_v27 }
  0xa1   :  { %v861_v31 = vadd.f32 %v860_v28, %v812_v30  ;;  %1006 = vmatmul.bf16.vlgmr.msrb.gmra.mxu0 %v1547_v25  ;;  %v1631_v25 = vor.u32 %v2014_v18, %v1630_v17  ;;  %v1639_v30 = vor.u32 %v2015_v23, %v1638_v21  ;;  %v1714_v23 = vld [vmem:[%s3007_s0 + $0x160] sm:$0xf] }
  0xa2   :  { %1055 = vmatmul.bf16.vlgmr.msrb.gmra.mxu1 %v1551_v26  ;;  %v1635_v26 = vor.u32 %v2011_v19, %v1632_v20 }
  0xa3   :  { %1952 = vmatmul.msk.bf16.vlgmr.msrb.gmra.mxu2 %vm777_vm0, %v1555_v29 }
  0xa6   :  { %v909_v33 = vpop.f32.mrf.mxu2  ;;  %v813_v35 = vpop.f32.mrf.mxu0 }
  0xa7   :  { %v2610_v34 = vadd.f32 %v909_v33, %v861_v31  ;;  %v862_v36 = vpop.f32.mrf.mxu1  ;;  %v814_v37 = vadd.f32 %v2597_v22, %v813_v35 }
  0xa9   :  { %v863_v38 = vadd.f32 %v862_v36, %v814_v37 }
  0xae   :  { %v911_v45 = vpop.f32.mrf.mxu2  ;;  %v816_v49 = vpop.f32.mrf.mxu0 }
  0xaf   :  { %v2631_v48 = vadd.f32 %v911_v45, %v863_v38  ;;  %v865_v50 = vpop.f32.mrf.mxu1  ;;  %v817_v52 = vadd.f32 %v2597_v22, %v816_v49  ;;  %v2022_v45 = vld [vmem:[%s3007_s0 + $0x110] sm:$0xf0]  ;;  %v1663_v49 = vor.u32 %v2018_v42, %v1660_v43 }
  0xb1   :  { %v866_v53 = vadd.f32 %v865_v50, %v817_v52  ;;  %1011 = vmatmul.bf16.gmra.mxu0 %v1575_v46 }
  0xb2   :  { %1060 = vmatmul.bf16.gmra.mxu1 %v1579_v47  ;;  %v1659_v47 = vor.u32 %v2021_v41, %v1658_v40 }
  0xb3   :  { %1953 = vmatmul.msk.bf16.gmra.mxu2 %vm777_vm0, %v1583_v51 }
  0xb6   :  { %v914_v54 = vpop.f32.mrf.mxu2  ;;  %v818_v56 = vpop.f32.mrf.mxu0 }
  0xb7   :  { %v2635_v55 = vadd.f32 %v914_v54, %v866_v53  ;;  %v867_v57 = vpop.f32.mrf.mxu1  ;;  %v819_v58 = vadd.f32 %v2597_v22, %v818_v56  ;;  %v1667_v53 = vor.u32 %v2022_v45, %v1666_v44 }
  0xb9   :  { %v868_v59 = vadd.f32 %v867_v57, %v819_v58 }
  0xbe   :  { %v916_v2 = vpop.f32.mrf.mxu2  ;;  %v821_v6 = vpop.f32.mrf.mxu0 }
  0xbf   :  { %v2656_v5 = vadd.f32 %v916_v2, %v868_v59  ;;  %v870_v7 = vpop.f32.mrf.mxu1  ;;  %v822_v9 = vadd.f32 %v2597_v22, %v821_v6  ;;  %v1688_v2 = vld [vmem:[%s3007_s0 + $0x144] sm:$0xf0] }
  0xc1   :  { %v871_v10 = vadd.f32 %v870_v7, %v822_v9  ;;  %1016 = vmatmul.bf16.gmra.mxu0 %v1603_v3  ;;  %v1694_v3 = vld [vmem:[%s3007_s0 + $0x130] sm:$0xf]  ;;  %v1687_v7 = vor.u32 %v2028_v0, %v1686_v63 }
  0xc2   :  { %1065 = vmatmul.bf16.gmra.mxu1 %v1607_v4  ;;  %v2029_v4 = vld [vmem:[%s3007_s0 + $0x148] sm:$0xf0] }
  0xc3   :  { %1954 = vmatmul.msk.bf16.gmra.mxu2 %vm777_vm0, %v1611_v8  ;;  %v1691_v8 = vor.u32 %v2025_v1, %v1688_v2 }
  0xc6   :  { %v919_v11 = vpop.f32.mrf.mxu2  ;;  %v823_v13 = vpop.f32.mrf.mxu0 }
  0xc7   :  { %v2660_v12 = vadd.f32 %v919_v11, %v871_v10  ;;  %v872_v14 = vpop.f32.mrf.mxu1  ;;  %v824_v15 = vadd.f32 %v2597_v22, %v823_v13  ;;  %v1695_v13 = vor.u32 %v2029_v4, %v1694_v3 }
  0xc9   :  { %v873_v16 = vadd.f32 %v872_v14, %v824_v15 }
  0xce   :  { %v921_v24 = vpop.f32.mrf.mxu2  ;;  %v826_v28 = vpop.f32.mrf.mxu0 }
  0xcf   :  { %v2681_v27 = vadd.f32 %v921_v24, %v873_v16  ;;  %v875_v29 = vpop.f32.mrf.mxu1  ;;  %v827_v31 = vadd.f32 %v2597_v22, %v826_v28  ;;  %v2035_v24 = vld [vmem:[%s3007_s0 + $0x178] sm:$0xf0]  ;;  %v1722_v28 = vld [vmem:[%s3007_s0 + $0x168] sm:$0xf] }
  0xd1   :  { %v876_v32 = vadd.f32 %v875_v29, %v827_v31  ;;  %1021 = vmatmul.bf16.gmra.mxu0 %v1631_v25  ;;  %v2032_v25 = vld [vmem:[%s3007_s0 + $0x164] sm:$0xf] }
  0xd2   :  { %1070 = vmatmul.bf16.gmra.mxu1 %v1635_v26  ;;  %v1716_v26 = vld [vmem:[%s3007_s0 + $0x17c] sm:$0xf0]  ;;  %v2036_v29 = vld [vmem:[%s3007_s0 + $0x180] sm:$0xf0] }
  0xd3   :  { %1955 = vmatmul.msk.bf16.gmra.mxu2 %vm777_vm0, %v1639_v30  ;;  %v958_v30 = vpop.f32.mrf.mxu3 }
  0xd6   :  { %v924_v33 = vpop.f32.mrf.mxu2  ;;  %v828_v36 = vpop.f32.mrf.mxu0 }
  0xd7   :  { %v2685_v35 = vadd.f32 %v924_v33, %v876_v32  ;;  %v877_v37 = vpop.f32.mrf.mxu1  ;;  %v829_v38 = vadd.f32 %v2597_v22, %v828_v36  ;;  %v1715_v32 = vor.u32 %v2035_v24, %v1714_v23  ;;  %v1719_v33 = vor.u32 %v2032_v25, %v1716_v26 }
  0xd9   :  { %v878_v39 = vadd.f32 %v877_v37, %v829_v38 }
  0xde   :  { %v926_v46 = vpop.f32.mrf.mxu2  ;;  %v831_v51 = vpop.f32.mrf.mxu0 }
  0xdf   :  { %v2706_v50 = vadd.f32 %v926_v46, %v878_v39  ;;  %v880_v52 = vpop.f32.mrf.mxu1  ;;  %v832_v54 = vadd.f32 %v2597_v22, %v831_v51  ;;  %v1723_v39 = vor.u32 %v2036_v29, %v1722_v28  ;;  %v960_v46 = vpop.f32.mrf.mxu3  ;;  %v1742_v51 = vld [vmem:[%s3007_s0 + $0x198] sm:$0xf] }
  0xe0   :  { %v961_v26 = vadd.f32 %v960_v46, %v2631_v48 }
  0xe1   :  { %v881_v56 = vadd.f32 %v880_v52, %v832_v54  ;;  %1026 = vmatmul.bf16.gmra.mxu0 %v1659_v47  ;;  %v2042_v52 = vld [vmem:[%s3007_s0 + $0x1b0] sm:$0xf0]  ;;  %v1744_v54 = vld [vmem:[%s3007_s0 + $0x1b4] sm:$0xf0] }
  0xe2   :  { %1075 = vmatmul.bf16.gmra.mxu1 %v1663_v49 }
  0xe3   :  { %1956 = vmatmul.msk.bf16.gmra.mxu2 %vm777_vm0, %v1667_v53  ;;  %v2039_v53 = vld [vmem:[%s3007_s0 + $0x19c] sm:$0xf] }
  0xe6   :  { %v929_v57 = vpop.f32.mrf.mxu2  ;;  %v833_v59 = vpop.f32.mrf.mxu0 }
  0xe7   :  { %v2710_v58 = vadd.f32 %v929_v57, %v881_v56  ;;  %v882_v60 = vpop.f32.mrf.mxu1  ;;  %v834_v61 = vadd.f32 %v2597_v22, %v833_v59  ;;  %v1750_v56 = vld [vmem:[%s3007_s0 + $0x1a0] sm:$0xf]  ;;  %v2043_v57 = vld [vmem:[%s3007_s0 + $0x1b8] sm:$0xf0]  ;;  %v963_v3 = vpop.f32.mrf.mxu3 }
  0xe8   :  { %v1751_v1 = vor.u32 %v2043_v57, %v1750_v56 }
  0xe9   :  { %v883_v62 = vadd.f32 %v882_v60, %v834_v61  ;;  %v1743_v60 = vor.u32 %v2042_v52, %v1742_v51  ;;  %v1747_v61 = vor.u32 %v2039_v53, %v1744_v54 }
  0xee   :  { %v931_v6 = vpop.f32.mrf.mxu2  ;;  %v836_v10 = vpop.f32.mrf.mxu0 }
  0xef   :  { %v2731_v9 = vadd.f32 %v931_v6, %v883_v62  ;;  %v885_v11 = vpop.f32.mrf.mxu1  ;;  %v837_v14 = vadd.f32 %v2597_v22, %v836_v10 }
  0xf1   :  { %v886_v15 = vadd.f32 %v885_v11, %v837_v14  ;;  %1031 = vmatmul.bf16.gmra.mxu0 %v1687_v7  ;;  %v965_v14 = vpop.f32.mrf.mxu3 }
  0xf2   :  { %1080 = vmatmul.bf16.gmra.mxu1 %v1691_v8 }
  0xf3   :  { %1957 = vmatmul.msk.bf16.gmra.mxu2 %vm777_vm0, %v1695_v13 }
  0xf6   :  { %v934_v16 = vpop.f32.mrf.mxu2  ;;  %v838_v18 = vpop.f32.mrf.mxu0 }
  0xf7   :  { %v2735_v17 = vadd.f32 %v934_v16, %v886_v15  ;;  %v887_v19 = vpop.f32.mrf.mxu1  ;;  %v839_v20 = vadd.f32 %v2597_v22, %v838_v18  ;;  %v959_v16 = vadd.f32 %v958_v30, %v2610_v34  ;;  %v964_v34 = vadd.f32 %v963_v3, %v2635_v55 }
  0xf9   :  { %v888_v21 = vadd.f32 %v887_v19, %v839_v20  ;;  %v968_v24 = vpop.f32.mrf.mxu3 }
  0xfa   :  { %v969_v3 = vadd.f32 %v968_v24, %v2660_v12 }
  0xfe   :  { %v936_v31 = vpop.f32.mrf.mxu2  ;;  %v841_v37 = vpop.f32.mrf.mxu0 }
  0xff   :  { %v2756_v36 = vadd.f32 %v936_v31, %v888_v21  ;;  %v890_v38 = vpop.f32.mrf.mxu1  ;;  %v842_v40 = vadd.f32 %v2597_v22, %v841_v37 }
 0x101   :  { %v891_v41 = vadd.f32 %v890_v38, %v842_v40  ;;  %1036 = vmatmul.bf16.gmra.mxu0 %v1715_v32 }
 0x102   :  { %1085 = vmatmul.bf16.gmra.mxu1 %v1719_v33 }
 0x103   :  { %1958 = vmatmul.msk.bf16.gmra.mxu2 %vm777_vm0, %v1723_v39 }
 0x106   :  { %v939_v42 = vpop.f32.mrf.mxu2  ;;  %v843_v44 = vpop.f32.mrf.mxu0 }
 0x107   :  { %v2760_v43 = vadd.f32 %v939_v42, %v891_v41  ;;  %v892_v45 = vpop.f32.mrf.mxu1  ;;  %v844_v47 = vadd.f32 %v2597_v22, %v843_v44  ;;  %v970_v41 = vpop.f32.mrf.mxu3 }
 0x109   :  { %v893_v49 = vadd.f32 %v892_v45, %v844_v47 }
 0x10e   :  { %v941_v59 = vpop.f32.mrf.mxu2  ;;  %v846_v63 = vpop.f32.mrf.mxu0 }
 0x10f   :  { %v2781_v62 = vadd.f32 %v941_v59, %v893_v49  ;;  %v895_v0 = vpop.f32.mrf.mxu1  ;;  %v847_v2 = vadd.f32 %v2597_v22, %v846_v63  ;;  %v966_v49 = vadd.f32 %v965_v14, %v2656_v5  ;;  %v973_v55 = vpop.f32.mrf.mxu3 }
 0x111   :  { %v896_v4 = vadd.f32 %v895_v0, %v847_v2  ;;  %1041 = vmatmul.bf16.gmra.mxu0 %v1743_v60 }
 0x112   :  { %1090 = vmatmul.bf16.gmra.mxu1 %v1747_v61 }
 0x113   :  { %1959 = vmatmul.msk.bf16.gmra.mxu2 %vm777_vm0, %v1751_v1 }
 0x116   :  { %v944_v6 = vpop.f32.mrf.mxu2  ;;  %v848_v8 = vpop.f32.mrf.mxu0 }
 0x117   :  { %v2785_v7 = vadd.f32 %v944_v6, %v896_v4  ;;  %v897_v10 = vpop.f32.mrf.mxu1  ;;  %v849_v11 = vadd.f32 %v2597_v22, %v848_v8  ;;  %v975_v14 = vpop.f32.mrf.mxu3 }
 0x119   :  { %v898_v13 = vadd.f32 %v897_v10, %v849_v11 }
 0x11e   :  { %v946_v15 = vpop.f32.mrf.mxu2  ;;  %v1007_v19 = vpop.f32.mrf.mxu0 }
 0x11f   :  { %v2789_v18 = vadd.f32 %v946_v15, %v898_v13  ;;  %v1056_v20 = vpop.f32.mrf.mxu1  ;;  %v1008_v21 = vadd.f32 %v1007_v19, %v959_v16 }
 0x121   :  { %v1057_v23 = vadd.f32 %v1056_v20, %v1008_v21  ;;  %v971_v20 = vadd.f32 %v970_v41, %v2681_v27 }
 0x126   :  { %v1105_v25 = vpop.f32.mrf.mxu2  ;;  %v1009_v29 = vpop.f32.mrf.mxu0 }
 0x127   :  { %v1106_v28 = vadd.f32 %v1105_v25, %v1057_v23  ;;  %v1058_v31 = vpop.f32.mrf.mxu1  ;;  %v1010_v22 = vadd.f32 %v1009_v29, %v961_v26 }
 0x129   :  { %v1161_v32 = vmin.f32 %v1106_v28, 0.0  ;;  %v1059_v37 = vadd.f32 %v1058_v31, %v1010_v22  ;;  %vm1145_vm1 = vcmp.gt.f32.partialorder %v1106_v28, 0.0  ;;  %v978_v22 = vpop.f32.mrf.mxu3 }
 0x12b   :  { %v1177_v33 = vmul.f32 1.442695, %v1161_v32 }
 0x12d   :  { %2099 = vpow2.f32 %v1177_v33 }
 0x12e   :  { %v1107_v38 = vpop.f32.mrf.mxu2  ;;  %v1012_v39 = vpop.f32.mrf.mxu0 }
 0x12f   :  { %v1108_v30 = vadd.f32 %v1107_v38, %v1059_v37  ;;  %v1061_v40 = vpop.f32.mrf.mxu1  ;;  %v1013_v44 = vadd.f32 %v1012_v39, %v964_v34  ;;  %v974_v34 = vadd.f32 %v973_v55, %v2685_v35 }
 0x131   :  { %v1162_v42 = vmin.f32 %v1108_v30, 0.0  ;;  %v1062_v48 = vadd.f32 %v1061_v40, %v1013_v44  ;;  %vm1146_vm2 = vcmp.gt.f32.partialorder %v1108_v30, 0.0  ;;  %v980_v35 = vpop.f32.mrf.mxu3 }
 0x133   :  { %v1179_v45 = vmul.f32 1.442695, %v1162_v42  ;;  %v2100_v47 = vpop.eup %2099 }
 0x134   :  { %v1960_v57 = vadd.f32 -1.0, %v2100_v47  ;;  %v976_v47 = vadd.f32 %v975_v14, %v2706_v50 }
 0x135   :  { %2101 = vpow2.f32 %v1179_v45 }
 0x136   :  { %v1110_v46 = vpop.f32.mrf.mxu2  ;;  %v1014_v52 = vpop.f32.mrf.mxu0  ;;  %v1225_v0 = vsel %vm1145_vm1, %v1106_v28, %v1960_v57 }
 0x137   :  { %v1111_v51 = vadd.f32 %v1110_v46, %v1062_v48  ;;  %v1063_v53 = vpop.f32.mrf.mxu1  ;;  %v1015_v56 = vadd.f32 %v1014_v52, %v966_v49 }
 0x139   :  { %v1163_v54 = vmin.f32 %v1111_v51, 0.0  ;;  %v1064_v63 = vadd.f32 %v1063_v53, %v1015_v56  ;;  %vm1147_vm4 = vcmp.gt.f32.partialorder %v1111_v51, 0.0 }
 0x13b   :  { %v2102_v59 = vpop.eup %2101  ;;  %v1181_v61 = vmul.f32 1.442695, %v1163_v54 }
 0x13c   :  { %v1961_v60 = vadd.f32 -1.0, %v2102_v59 }
 0x13d   :  { %2103 = vpow2.f32 %v1181_v61 }
 0x13e   :  { %v1226_v1 = vsel %vm1146_vm2, %v1108_v30, %v1961_v60  ;;  %v1112_v2 = vpop.f32.mrf.mxu2  ;;  %v1017_v6 = vpop.f32.mrf.mxu0  ;;  %vm1431_vm2 = vcmask 19456  }
 0x13f   :  { %v1241_v5 = vpack.c.bf16 %v1226_v1, %v1225_v0  ;;  %v1113_v4 = vadd.f32 %v1112_v2, %v1064_v63  ;;  %v1066_v8 = vpop.f32.mrf.mxu1  ;;  %v1018_v11 = vadd.f32 %v1017_v6, %v969_v3  ;;  %v979_v1 = vadd.f32 %v978_v22, %v2710_v58 }
 0x141   :  { %v1164_v10 = vmin.f32 %v1113_v4, 0.0  ;;  %1980 = vmatmul.msk.bf16.vlgmr.msrb.gmra.mxu3 %vm1261_vm3, %v1241_v5  ;;  %v1067_v15 = vadd.f32 %v1066_v8, %v1018_v11  ;;  %vm1148_vm5 = vcmp.gt.f32.partialorder %v1113_v4, 0.0  ;;  %v983_v8 = vpop.f32.mrf.mxu3 }
 0x142   :  { %v984_v22 = vadd.f32 %v983_v8, %v2735_v17 }
 0x143   :  { %v1183_v13 = vmul.f32 1.442695, %v1164_v10  ;;  %v2104_v19 = vpop.eup %2103 }
 0x144   :  { %v1962_v26 = vadd.f32 -1.0, %v2104_v19 }
 0x145   :  { %2105 = vpow2.f32 %v1183_v13 }
 0x146   :  { %v1115_v16 = vpop.f32.mrf.mxu2  ;;  %v1019_v23 = vpop.f32.mrf.mxu0  ;;  %v1227_v37 = vsel %vm1147_vm4, %v1111_v51, %v1962_v26 }
 0x147   :  { %v1116_v21 = vadd.f32 %v1115_v16, %v1067_v15  ;;  %v1068_v12 = vpop.f32.mrf.mxu1  ;;  %v1020_v25 = vadd.f32 %v1019_v23, %v971_v20  ;;  %v981_v15 = vadd.f32 %v980_v35, %v2731_v9 }
 0x149   :  { %v1165_v24 = vmin.f32 %v1116_v21, 0.0  ;;  %v1069_v32 = vadd.f32 %v1068_v12, %v1020_v25  ;;  %vm1149_vm6 = vcmp.gt.f32.partialorder %v1116_v21, 0.0 }
 0x14b   :  { %v2106_v28 = vpop.eup %2105  ;;  %v1185_v31 = vmul.f32 1.442695, %v1165_v24  ;;  %v985_v24 = vpop.f32.mrf.mxu3 }
 0x14c   :  { %v1963_v29 = vadd.f32 -1.0, %v2106_v28 }
 0x14d   :  { %2107 = vpow2.f32 %v1185_v31 }
 0x14e   :  { %v1117_v33 = vpop.f32.mrf.mxu2  ;;  %v1228_v38 = vsel %vm1148_vm5, %v1113_v4, %v1963_v29  ;;  %v1022_v27 = vpop.f32.mrf.mxu0 }
 0x14f   :  { %v1118_v30 = vadd.f32 %v1117_v33, %v1069_v32  ;;  %v1071_v39 = vpop.f32.mrf.mxu1  ;;  %v1242_v40 = vpack.c.bf16 %v1228_v38, %v1227_v37  ;;  %v1023_v42 = vadd.f32 %v1022_v27, %v974_v34 }
 0x151   :  { %v1166_v41 = vmin.f32 %v1118_v30, 0.0  ;;  %1981 = vmatmul.msk.bf16.gmra.mxu3 %vm1261_vm3, %v1242_v40  ;;  %v1072_v45 = vadd.f32 %v1071_v39, %v1023_v42  ;;  %vm1150_vm7 = vcmp.gt.f32.partialorder %v1118_v30, 0.0 }
 0x153   :  { %v1187_v44 = vmul.f32 1.442695, %v1166_v41  ;;  %v2108_v46 = vpop.eup %2107  ;;  %v988_v40 = vpop.f32.mrf.mxu3 }
 0x154   :  { %v1964_v56 = vadd.f32 -1.0, %v2108_v46 }
 0x155   :  { %2109 = vpow2.f32 %v1187_v44  ;;  %v986_v44 = vadd.f32 %v985_v24, %v2756_v36 }
 0x156   :  { %v1120_v48 = vpop.f32.mrf.mxu2  ;;  %v1024_v51 = vpop.f32.mrf.mxu0  ;;  %v1229_v63 = vsel %vm1149_vm6, %v1116_v21, %v1964_v56 }
 0x157   :  { %v1121_v49 = vadd.f32 %v1120_v48, %v1072_v45  ;;  %v1073_v52 = vpop.f32.mrf.mxu1  ;;  %v1025_v54 = vadd.f32 %v1024_v51, %v976_v47 }
 0x159   :  { %v1167_v53 = vmin.f32 %v1121_v49, 0.0  ;;  %v1074_v60 = vadd.f32 %v1073_v52, %v1025_v54  ;;  %vm1151_vm8 = vcmp.gt.f32.partialorder %v1121_v49, 0.0 }
 0x15b   :  { %v2110_v55 = vpop.eup %2109  ;;  %v1189_v59 = vmul.f32 1.442695, %v1167_v53 }
 0x15c   :  { %v1965_v57 = vadd.f32 -1.0, %v2110_v55 }
 0x15d   :  { %2111 = vpow2.f32 %v1189_v59 }
 0x15e   :  { %v1122_v61 = vpop.f32.mrf.mxu2  ;;  %v1230_v0 = vsel %vm1150_vm7, %v1118_v30, %v1965_v57  ;;  %v1027_v50 = vpop.f32.mrf.mxu0  ;;  %v989_v57 = vadd.f32 %v988_v40, %v2760_v43 }
 0x15f   :  { %v1123_v2 = vadd.f32 %v1122_v61, %v1074_v60  ;;  %v1076_v3 = vpop.f32.mrf.mxu1  ;;  %v1243_v5 = vpack.c.bf16 %v1230_v0, %v1229_v63  ;;  %v1028_v6 = vadd.f32 %v1027_v50, %v979_v1  ;;  %v990_v63 = vpop.f32.mrf.mxu3 }
 0x161   :  { %v1168_v4 = vmin.f32 %v1123_v2, 0.0  ;;  %1982 = vmatmul.msk.bf16.gmra.mxu3 %vm1261_vm3, %v1243_v5  ;;  %v1077_v11 = vadd.f32 %v1076_v3, %v1028_v6  ;;  %vm1152_vm9 = vcmp.gt.f32.partialorder %v1123_v2, 0.0 }
 0x163   :  { %v1191_v10 = vmul.f32 1.442695, %v1168_v4  ;;  %v2112_v14 = vpop.eup %2111  ;;  %v991_v4 = vadd.f32 %v990_v63, %v2781_v62 }
 0x164   :  { %v1966_v23 = vadd.f32 -1.0, %v2112_v14 }
 0x165   :  { %2113 = vpow2.f32 %v1191_v10 }
 0x166   :  { %v1125_v13 = vpop.f32.mrf.mxu2  ;;  %v1029_v19 = vpop.f32.mrf.mxu0  ;;  %v1231_v31 = vsel %vm1151_vm8, %v1121_v49, %v1966_v23 }
 0x167   :  { %v1126_v16 = vadd.f32 %v1125_v13, %v1077_v11  ;;  %v1078_v58 = vpop.f32.mrf.mxu1  ;;  %v1030_v21 = vadd.f32 %v1029_v19, %v981_v15  ;;  %v993_v13 = vpop.f32.mrf.mxu3 }
 0x169   :  { %v1169_v20 = vmin.f32 %v1126_v16, 0.0  ;;  %v1079_v28 = vadd.f32 %v1078_v58, %v1030_v21  ;;  %vm1153_vm10 = vcmp.gt.f32.partialorder %v1126_v16, 0.0 }
 0x16b   :  { %v2114_v12 = vpop.eup %2113  ;;  %v1193_v26 = vmul.f32 1.442695, %v1169_v20 }
 0x16c   :  { %v1967_v25 = vadd.f32 -1.0, %v2114_v12  ;;  %v994_v12 = vadd.f32 %v993_v13, %v2785_v7 }
 0x16d   :  { %2115 = vpow2.f32 %v1193_v26 }
 0x16e   :  { %v1127_v29 = vpop.f32.mrf.mxu2  ;;  %v1232_v32 = vsel %vm1152_vm9, %v1123_v2, %v1967_v25  ;;  %v1032_v9 = vpop.f32.mrf.mxu0 }
 0x16f   :  { %v1128_v33 = vadd.f32 %v1127_v29, %v1079_v28  ;;  %v1081_v37 = vpop.f32.mrf.mxu1  ;;  %v1244_v38 = vpack.c.bf16 %v1232_v32, %v1231_v31  ;;  %v1033_v30 = vadd.f32 %v1032_v9, %v984_v22  ;;  %v995_v32 = vpop.f32.mrf.mxu3 }
 0x171   :  { %v1170_v34 = vmin.f32 %v1128_v33, 0.0  ;;  %1983 = vmatmul.msk.bf16.gmra.mxu3 %vm1261_vm3, %v1244_v38  ;;  %v1082_v39 = vadd.f32 %v1081_v37, %v1033_v30  ;;  %vm1154_vm11 = vcmp.gt.f32.partialorder %v1128_v33, 0.0  ;;  %v996_v37 = vadd.f32 %v995_v32, %v2789_v18 }
 0x173   :  { %v1195_v27 = vmul.f32 1.442695, %v1170_v34  ;;  %v2116_v42 = vpop.eup %2115 }
 0x174   :  { %v1968_v49 = vadd.f32 -1.0, %v2116_v42 }
 0x175   :  { %2117 = vpow2.f32 %v1195_v27 }
 0x176   :  { %v1130_v41 = vpop.f32.mrf.mxu2  ;;  %v1034_v48 = vpop.f32.mrf.mxu0  ;;  %v1233_v54 = vsel %vm1153_vm10, %v1126_v16, %v1968_v49 }
 0x177   :  { %v1131_v45 = vadd.f32 %v1130_v41, %v1082_v39  ;;  %v1083_v17 = vpop.f32.mrf.mxu1  ;;  %v1035_v47 = vadd.f32 %v1034_v48, %v986_v44 }
 0x179   :  { %v1171_v46 = vmin.f32 %v1131_v45, 0.0  ;;  %v1084_v53 = vadd.f32 %v1083_v17, %v1035_v47  ;;  %vm1155_vm12 = vcmp.gt.f32.partialorder %v1131_v45, 0.0 }
 0x17b   :  { %v2118_v51 = vpop.eup %2117  ;;  %v1197_v35 = vmul.f32 1.442695, %v1171_v46 }
 0x17c   :  { %v1969_v52 = vadd.f32 -1.0, %v2118_v51 }
 0x17d   :  { %2119 = vpow2.f32 %v1197_v35 }
 0x17e   :  { %v1234_v56 = vsel %vm1154_vm11, %v1128_v33, %v1969_v52  ;;  %v1132_v55 = vpop.f32.mrf.mxu2  ;;  %v1037_v36 = vpop.f32.mrf.mxu0 }
 0x17f   :  { %v1245_v59 = vpack.c.bf16 %v1234_v56, %v1233_v54  ;;  %v1133_v60 = vadd.f32 %v1132_v55, %v1084_v53  ;;  %v1086_v61 = vpop.f32.mrf.mxu1  ;;  %v1038_v1 = vadd.f32 %v1037_v36, %v989_v57  ;;  %v2817_v57 = vld [vmem:[%s3009_s4] ss:$0 sm:$0xff] }
 0x181   :  { %v1172_v0 = vmin.f32 %v1133_v60, 0.0  ;;  %1984 = vmatmul.msk.bf16.gmra.mxu3 %vm1261_vm3, %v1245_v59  ;;  %v1087_v50 = vadd.f32 %v1086_v61, %v1038_v1  ;;  %vm1156_vm13 = vcmp.gt.f32.partialorder %v1133_v60, 0.0 }
 0x183   :  { %v1199_v2 = vmul.f32 1.442695, %v1172_v0  ;;  %v2120_v5 = vpop.eup %2119 }
 0x184   :  { %v1970_v14 = vadd.f32 -1.0, %v2120_v5 }
 0x185   :  { %2121 = vpow2.f32 %v1199_v2 }
 0x186   :  { %v1135_v3 = vpop.f32.mrf.mxu2  ;;  %v1039_v8 = vpop.f32.mrf.mxu0  ;;  %v1235_v20 = vsel %vm1155_vm12, %v1131_v45, %v1970_v14 }
 0x187   :  { %v1136_v6 = vadd.f32 %v1135_v3, %v1087_v50  ;;  %v1088_v43 = vpop.f32.mrf.mxu1  ;;  %v1040_v11 = vadd.f32 %v1039_v8, %v991_v4 }
 0x189   :  { %v1173_v10 = vmin.f32 %v1136_v6, 0.0  ;;  %v1089_v58 = vadd.f32 %v1088_v43, %v1040_v11  ;;  %vm1157_vm14 = vcmp.gt.f32.partialorder %v1136_v6, 0.0 }
 0x18b   :  { %v2122_v15 = vpop.eup %2121  ;;  %v1201_v19 = vmul.f32 1.442695, %v1173_v10  ;;  %v2830_v10 = vld [vmem:[%s3011_s6] ss:$0 sm:$0xff] }
 0x18c   :  { %v1971_v16 = vadd.f32 -1.0, %v2122_v15 }
 0x18d   :  { %2123 = vpow2.f32 %v1201_v19 }
 0x18e   :  { %v1236_v21 = vsel %vm1156_vm13, %v1133_v60, %v1971_v16  ;;  %v1137_v23 = vpop.f32.mrf.mxu2  ;;  %v1042_v25 = vpop.f32.mrf.mxu0 }
 0x18f   :  { %v1246_v24 = vpack.c.bf16 %v1236_v21, %v1235_v20  ;;  %v1138_v62 = vadd.f32 %v1137_v23, %v1089_v58  ;;  %v1043_v28 = vadd.f32 %v1042_v25, %v994_v12  ;;  %v1091_v29 = vpop.f32.mrf.mxu1 }
 0x191   :  { %v1174_v26 = vmin.f32 %v1138_v62, 0.0  ;;  %1985 = vmatmul.msk.bf16.gmra.mxu3 %vm1261_vm3, %v1246_v24  ;;  %v1092_v22 = vadd.f32 %v1091_v29, %v1043_v28  ;;  %vm1158_vm15 = vcmp.gt.f32.partialorder %v1138_v62, 0.0 }
 0x193   :  { %v1203_v31 = vmul.f32 1.442695, %v1174_v26  ;;  %v2124_v9 = vpop.eup %2123 }
 0x194   :  { %v1972_v27 = vadd.f32 -1.0, %v2124_v9 }
 0x195   :  { %2125 = vpow2.f32 %v1203_v31 }
 0x196   :  { %v1140_v33 = vpop.f32.mrf.mxu2  ;;  %v1044_v34 = vpop.f32.mrf.mxu0  ;;  %v1237_v45 = vsel %vm1157_vm14, %v1136_v6, %v1972_v27  ;;  %v2825_v6 = vld [vmem:[%s3010_s5] ss:$0 sm:$0xff] }
 0x197   :  { %v1141_v38 = vadd.f32 %v1140_v33, %v1092_v22  ;;  %v1045_v30 = vadd.f32 %v1044_v34, %v996_v37  ;;  %v1093_v41 = vpop.f32.mrf.mxu1 }
 0x199   :  { %v1175_v7 = vmin.f32 %v1141_v38, 0.0  ;;  %v1094_v44 = vadd.f32 %v1093_v41, %v1045_v30  ;;  %vm1159_vm0 = vcmp.gt.f32.partialorder %v1141_v38, 0.0 }
 0x19b   :  { %v2126_v39 = vpop.eup %2125  ;;  %v1205_v42 = vmul.f32 1.442695, %v1175_v7 }
 0x19c   :  { %v1973_v40 = vadd.f32 -1.0, %v2126_v39 }
 0x19d   :  { %2127 = vpow2.f32 %v1205_v42 }
 0x19e   :  { %v1238_v48 = vsel %vm1158_vm15, %v1138_v62, %v1973_v40  ;;  %v1142_v17 = vpop.f32.mrf.mxu2 }
 0x19f   :  { %v1247_v46 = vpack.c.bf16 %v1238_v48, %v1237_v45  ;;  %v1143_v47 = vadd.f32 %v1142_v17, %v1094_v44 }
 0x1a1   :  { %v1176_v49 = vmin.f32 %v1143_v47, 0.0  ;;  %1986 = vmatmul.msk.bf16.gmra.mxu3 %vm1261_vm3, %v1247_v46  ;;  %vm1160_vm1 = vcmp.gt.f32.partialorder %v1143_v47, 0.0 }
 0x1a3   :  { %v1207_v18 = vmul.f32 1.442695, %v1176_v49  ;;  %v2128_v51 = vpop.eup %2127 }
 0x1a4   :  { %v1974_v52 = vadd.f32 -1.0, %v2128_v51 }
 0x1a5   :  { %2129 = vpow2.f32 %v1207_v18 }
 0x1a6   :  { %v1239_v54 = vsel %vm1159_vm0, %v1141_v38, %v1974_v52 }
 0x1ab   :  { %v2130_v35 = vpop.eup %2129 }
 0x1ac   :  { %v1975_v53 = vadd.f32 -1.0, %v2130_v35 }
 0x1ae   :  { %v1240_v56 = vsel %vm1160_vm1, %v1143_v47, %v1975_v53 }
 0x1af   :  { %v1248_v55 = vpack.c.bf16 %v1240_v56, %v1239_v54 }
 0x1b1   :  { %1987 = vmatmul.msk.bf16.gmra.mxu3 %vm1261_vm3, %v1248_v55 }
 0x1c4   :  { %v1295_v59 = vpop.f32.mrf.mxu3 }
 0x1c5   :  { %v1296_v60 = vadd.f32 %v2817_v57, %v1295_v59 }
 0x1c7   :  { %v1335_v36 = vsub.f32 0.0, %v1296_v60 }
 0x1c9   :  { %v1351_v61 = vmul.f32 1.442695, %v1335_v36 }
 0x1cb   :  { %2131 = vpow2.f32 %v1351_v61 }
 0x1cc   :  { %v1297_v63 = vpop.f32.mrf.mxu3 }
 0x1cd   :  { %v1298_v0 = vadd.f32 %v2817_v57, %v1297_v63 }
 0x1cf   :  { %v1336_v1 = vsub.f32 0.0, %v1298_v0 }
 0x1d1   :  { %v2132_v2 = vpop.eup %2131  ;;  %v1353_v50 = vmul.f32 1.442695, %v1336_v1 }
 0x1d2   :  { %v1383_v3 = vadd.f32 1.0, %v2132_v2 }
 0x1d3   :  { %2133 = vpow2.f32 %v1353_v50 }
 0x1d4   :  { %2135 = vrcp.f32 %v1383_v3  ;;  %v1300_v5 = vpop.f32.mrf.mxu3 }
 0x1d5   :  { %v1301_v4 = vadd.f32 %v2817_v57, %v1300_v5 }
 0x1d7   :  { %v1337_v8 = vsub.f32 0.0, %v1301_v4 }
 0x1d9   :  { %v2134_v43 = vpop.eup %2133  ;;  %v1355_v11 = vmul.f32 1.442695, %v1337_v8 }
 0x1da   :  { %v2136_v13 = vpop.eup %2135  ;;  %v1384_v14 = vadd.f32 1.0, %v2134_v43 }
 0x1db   :  { %v1415_v15 = vpack.c.bf16 %v2136_v13, %v2136_v13  ;;  %v1452_v16 = vmul.f32 %v2136_v13, %v2825_v6  ;;  %2137 = vpow2.f32 %v1355_v11 }
 0x1dc   :  { %2139 = vrcp.f32 %v1384_v14  ;;  %v1302_v19 = vpop.f32.mrf.mxu3 }
 0x1dd   :  { %1432 = vst.msk [vmem:[%s3012_s7] sm:$0xf] %vm1431_vm2, %v1415_v15  ;;  %v1472_v58 = vadd.f32 %v2830_v10, %v1452_v16  ;;  %v1303_v20 = vadd.f32 %v2817_v57, %v1302_v19 }
 0x1df   :  { %v1488_v21 = vpack.c.bf16 %v1472_v58, %v1472_v58  ;;  %v1338_v23 = vsub.f32 0.0, %v1303_v20 }
 0x1e1   :  { %v2138_v12 = vpop.eup %2137  ;;  %1504 = vst.msk [vmem:[%s3013_s8] sm:$0xf] %vm1431_vm2, %v1488_v21  ;;  %v1357_v24 = vmul.f32 1.442695, %v1338_v23 }
 0x1e2   :  { %v2140_v62 = vpop.eup %2139  ;;  %v1385_v25 = vadd.f32 1.0, %v2138_v12 }
 0x1e3   :  { %v1416_v26 = vpack.c.bf16 %v2140_v62, %v2140_v62  ;;  %v1453_v28 = vmul.f32 %v2140_v62, %v2825_v6  ;;  %2141 = vpow2.f32 %v1357_v24 }
 0x1e4   :  { %2143 = vrcp.f32 %v1385_v25  ;;  %v1305_v29 = vpop.f32.mrf.mxu3 }
 0x1e5   :  { %1433 = vst.msk [vmem:[%s3012_s7 + $0x4] sm:$0xf] %vm1431_vm2, %v1416_v26  ;;  %v1473_v31 = vadd.f32 %v2830_v10, %v1453_v28  ;;  %v1306_v32 = vadd.f32 %v2817_v57, %v1305_v29 }
 0x1e7   :  { %v1489_v22 = vpack.c.bf16 %v1473_v31, %v1473_v31  ;;  %v1339_v33 = vsub.f32 0.0, %v1306_v32 }
 0x1e9   :  { %v2142_v9 = vpop.eup %2141  ;;  %1505 = vst.msk [vmem:[%s3013_s8 + $0x4] sm:$0xf] %vm1431_vm2, %v1489_v22  ;;  %v1359_v37 = vmul.f32 1.442695, %v1339_v33 }
 0x1ea   :  { %v2144_v38 = vpop.eup %2143  ;;  %v1386_v34 = vadd.f32 1.0, %v2142_v9 }
 0x1eb   :  { %v1417_v7 = vpack.c.bf16 %v2144_v38, %v2144_v38  ;;  %v1454_v30 = vmul.f32 %v2144_v38, %v2825_v6  ;;  %2145 = vpow2.f32 %v1359_v37 }
 0x1ec   :  { %2147 = vrcp.f32 %v1386_v34  ;;  %v1307_v27 = vpop.f32.mrf.mxu3 }
 0x1ed   :  { %1434 = vst.msk [vmem:[%s3012_s7 + $0x8] sm:$0xf] %vm1431_vm2, %v1417_v7  ;;  %v1474_v39 = vadd.f32 %v2830_v10, %v1454_v30  ;;  %v1308_v40 = vadd.f32 %v2817_v57, %v1307_v27 }
 0x1ef   :  { %v1490_v41 = vpack.c.bf16 %v1474_v39, %v1474_v39  ;;  %v1340_v42 = vsub.f32 0.0, %v1308_v40 }
 0x1f1   :  { %v2146_v44 = vpop.eup %2145  ;;  %1506 = vst.msk [vmem:[%s3013_s8 + $0x8] sm:$0xf] %vm1431_vm2, %v1490_v41  ;;  %v1361_v45 = vmul.f32 1.442695, %v1340_v42 }
 0x1f2   :  { %v2148_v48 = vpop.eup %2147  ;;  %v1387_v17 = vadd.f32 1.0, %v2146_v44 }
 0x1f3   :  { %v1418_v46 = vpack.c.bf16 %v2148_v48, %v2148_v48  ;;  %v1455_v47 = vmul.f32 %v2148_v48, %v2825_v6  ;;  %2149 = vpow2.f32 %v1361_v45 }
 0x1f4   :  { %2151 = vrcp.f32 %v1387_v17  ;;  %v1310_v49 = vpop.f32.mrf.mxu3 }
 0x1f5   :  { %1435 = vst.msk [vmem:[%s3012_s7 + $0xc] sm:$0xf] %vm1431_vm2, %v1418_v46  ;;  %v1475_v18 = vadd.f32 %v2830_v10, %v1455_v47  ;;  %v1311_v51 = vadd.f32 %v2817_v57, %v1310_v49 }
 0x1f7   :  { %v1491_v52 = vpack.c.bf16 %v1475_v18, %v1475_v18  ;;  %v1341_v35 = vsub.f32 0.0, %v1311_v51 }
 0x1f9   :  { %v2150_v53 = vpop.eup %2149  ;;  %1507 = vst.msk [vmem:[%s3013_s8 + $0xc] sm:$0xf] %vm1431_vm2, %v1491_v52  ;;  %v1363_v54 = vmul.f32 1.442695, %v1341_v35 }
 0x1fa   :  { %v2152_v56 = vpop.eup %2151  ;;  %v1388_v55 = vadd.f32 1.0, %v2150_v53 }
 0x1fb   :  { %v1419_v59 = vpack.c.bf16 %v2152_v56, %v2152_v56  ;;  %v1456_v60 = vmul.f32 %v2152_v56, %v2825_v6  ;;  %2153 = vpow2.f32 %v1363_v54 }
 0x1fc   :  { %2155 = vrcp.f32 %v1388_v55  ;;  %v1312_v36 = vpop.f32.mrf.mxu3 }
 0x1fd   :  { %1436 = vst.msk [vmem:[%s3012_s7 + $0x10] sm:$0xf] %vm1431_vm2, %v1419_v59  ;;  %v1476_v61 = vadd.f32 %v2830_v10, %v1456_v60  ;;  %v1313_v63 = vadd.f32 %v2817_v57, %v1312_v36 }
 0x1ff   :  { %v1492_v0 = vpack.c.bf16 %v1476_v61, %v1476_v61  ;;  %v1342_v1 = vsub.f32 0.0, %v1313_v63 }
 0x201   :  { %v2154_v2 = vpop.eup %2153  ;;  %1508 = vst.msk [vmem:[%s3013_s8 + $0x10] sm:$0xf] %vm1431_vm2, %v1492_v0  ;;  %v1365_v50 = vmul.f32 1.442695, %v1342_v1 }
 0x202   :  { %v2156_v3 = vpop.eup %2155  ;;  %v1389_v5 = vadd.f32 1.0, %v2154_v2 }
 0x203   :  { %v1420_v4 = vpack.c.bf16 %v2156_v3, %v2156_v3  ;;  %v1457_v8 = vmul.f32 %v2156_v3, %v2825_v6  ;;  %2157 = vpow2.f32 %v1365_v50 }
 0x204   :  { %2159 = vrcp.f32 %v1389_v5  ;;  %v1315_v43 = vpop.f32.mrf.mxu3 }
 0x205   :  { %1437 = vst.msk [vmem:[%s3012_s7 + $0x14] sm:$0xf] %vm1431_vm2, %v1420_v4  ;;  %v1477_v11 = vadd.f32 %v2830_v10, %v1457_v8  ;;  %v1316_v13 = vadd.f32 %v2817_v57, %v1315_v43 }
 0x207   :  { %v1493_v14 = vpack.c.bf16 %v1477_v11, %v1477_v11  ;;  %v1343_v15 = vsub.f32 0.0, %v1316_v13 }
 0x209   :  { %v2158_v16 = vpop.eup %2157  ;;  %1509 = vst.msk [vmem:[%s3013_s8 + $0x14] sm:$0xf] %vm1431_vm2, %v1493_v14  ;;  %v1367_v19 = vmul.f32 1.442695, %v1343_v15 }
 0x20a   :  { %v2160_v58 = vpop.eup %2159  ;;  %v1390_v20 = vadd.f32 1.0, %v2158_v16 }
 0x20b   :  { %v1421_v21 = vpack.c.bf16 %v2160_v58, %v2160_v58  ;;  %v1458_v23 = vmul.f32 %v2160_v58, %v2825_v6  ;;  %2161 = vpow2.f32 %v1367_v19 }
 0x20c   :  { %2163 = vrcp.f32 %v1390_v20  ;;  %v1317_v12 = vpop.f32.mrf.mxu3 }
 0x20d   :  { %1438 = vst.msk [vmem:[%s3012_s7 + $0x18] sm:$0xf] %vm1431_vm2, %v1421_v21  ;;  %v1478_v24 = vadd.f32 %v2830_v10, %v1458_v23  ;;  %v1318_v62 = vadd.f32 %v2817_v57, %v1317_v12 }
 0x20f   :  { %v1494_v25 = vpack.c.bf16 %v1478_v24, %v1478_v24  ;;  %v1344_v26 = vsub.f32 0.0, %v1318_v62 }
 0x211   :  { %v2162_v28 = vpop.eup %2161  ;;  %1510 = vst.msk [vmem:[%s3013_s8 + $0x18] sm:$0xf] %vm1431_vm2, %v1494_v25  ;;  %v1369_v29 = vmul.f32 1.442695, %v1344_v26 }
 0x212   :  { %v2164_v31 = vpop.eup %2163  ;;  %v1391_v32 = vadd.f32 1.0, %v2162_v28 }
 0x213   :  { %v1422_v22 = vpack.c.bf16 %v2164_v31, %v2164_v31  ;;  %v1459_v33 = vmul.f32 %v2164_v31, %v2825_v6  ;;  %2165 = vpow2.f32 %v1369_v29 }
 0x214   :  { %2167 = vrcp.f32 %v1391_v32  ;;  %v1320_v9 = vpop.f32.mrf.mxu3 }
 0x215   :  { %1439 = vst.msk [vmem:[%s3012_s7 + $0x1c] sm:$0xf] %vm1431_vm2, %v1422_v22  ;;  %v1479_v37 = vadd.f32 %v2830_v10, %v1459_v33  ;;  %v1321_v38 = vadd.f32 %v2817_v57, %v1320_v9 }
 0x217   :  { %v1495_v34 = vpack.c.bf16 %v1479_v37, %v1479_v37  ;;  %v1345_v7 = vsub.f32 0.0, %v1321_v38 }
 0x219   :  { %v2166_v30 = vpop.eup %2165  ;;  %1511 = vst.msk [vmem:[%s3013_s8 + $0x1c] sm:$0xf] %vm1431_vm2, %v1495_v34  ;;  %v1371_v27 = vmul.f32 1.442695, %v1345_v7 }
 0x21a   :  { %v2168_v39 = vpop.eup %2167  ;;  %v1392_v40 = vadd.f32 1.0, %v2166_v30 }
 0x21b   :  { %v1423_v41 = vpack.c.bf16 %v2168_v39, %v2168_v39  ;;  %v1460_v42 = vmul.f32 %v2168_v39, %v2825_v6  ;;  %2169 = vpow2.f32 %v1371_v27 }
 0x21c   :  { %2171 = vrcp.f32 %v1392_v40  ;;  %v1322_v44 = vpop.f32.mrf.mxu3 }
 0x21d   :  { %1440 = vst.msk [vmem:[%s3012_s7 + $0x20] sm:$0xf] %vm1431_vm2, %v1423_v41  ;;  %v1480_v45 = vadd.f32 %v2830_v10, %v1460_v42  ;;  %v1323_v48 = vadd.f32 %v2817_v57, %v1322_v44 }
 0x21f   :  { %v1496_v17 = vpack.c.bf16 %v1480_v45, %v1480_v45  ;;  %v1346_v46 = vsub.f32 0.0, %v1323_v48 }
 0x221   :  { %v2170_v47 = vpop.eup %2169  ;;  %1512 = vst.msk [vmem:[%s3013_s8 + $0x20] sm:$0xf] %vm1431_vm2, %v1496_v17  ;;  %v1373_v49 = vmul.f32 1.442695, %v1346_v46 }
 0x222   :  { %v2172_v18 = vpop.eup %2171  ;;  %v1393_v51 = vadd.f32 1.0, %v2170_v47 }
 0x223   :  { %v1424_v52 = vpack.c.bf16 %v2172_v18, %v2172_v18  ;;  %v1461_v35 = vmul.f32 %v2172_v18, %v2825_v6  ;;  %2173 = vpow2.f32 %v1373_v49 }
 0x224   :  { %2175 = vrcp.f32 %v1393_v51  ;;  %v1325_v53 = vpop.f32.mrf.mxu3 }
 0x225   :  { %1441 = vst.msk [vmem:[%s3012_s7 + $0x24] sm:$0xf] %vm1431_vm2, %v1424_v52  ;;  %v1481_v54 = vadd.f32 %v2830_v10, %v1461_v35  ;;  %v1326_v56 = vadd.f32 %v2817_v57, %v1325_v53 }
 0x227   :  { %v1497_v55 = vpack.c.bf16 %v1481_v54, %v1481_v54  ;;  %v1347_v59 = vsub.f32 0.0, %v1326_v56 }
 0x229   :  { %v2174_v60 = vpop.eup %2173  ;;  %1513 = vst.msk [vmem:[%s3013_s8 + $0x24] sm:$0xf] %vm1431_vm2, %v1497_v55  ;;  %v1375_v36 = vmul.f32 1.442695, %v1347_v59 }
 0x22a   :  { %v2176_v61 = vpop.eup %2175  ;;  %v1394_v63 = vadd.f32 1.0, %v2174_v60 }
 0x22b   :  { %v1425_v0 = vpack.c.bf16 %v2176_v61, %v2176_v61  ;;  %v1462_v1 = vmul.f32 %v2176_v61, %v2825_v6  ;;  %2177 = vpow2.f32 %v1375_v36 }
 0x22c   :  { %2179 = vrcp.f32 %v1394_v63  ;;  %v1327_v2 = vpop.f32.mrf.mxu3 }
 0x22d   :  { %1442 = vst.msk [vmem:[%s3012_s7 + $0x28] sm:$0xf] %vm1431_vm2, %v1425_v0  ;;  %v1482_v50 = vadd.f32 %v2830_v10, %v1462_v1  ;;  %v1328_v3 = vadd.f32 %v2817_v57, %v1327_v2 }
 0x22f   :  { %v1498_v5 = vpack.c.bf16 %v1482_v50, %v1482_v50  ;;  %v1348_v4 = vsub.f32 0.0, %v1328_v3 }
 0x231   :  { %v2178_v8 = vpop.eup %2177  ;;  %1514 = vst.msk [vmem:[%s3013_s8 + $0x28] sm:$0xf] %vm1431_vm2, %v1498_v5  ;;  %v1377_v43 = vmul.f32 1.442695, %v1348_v4 }
 0x232   :  { %v2180_v11 = vpop.eup %2179  ;;  %v1395_v13 = vadd.f32 1.0, %v2178_v8 }
 0x233   :  { %v1426_v14 = vpack.c.bf16 %v2180_v11, %v2180_v11  ;;  %v1463_v15 = vmul.f32 %v2180_v11, %v2825_v6  ;;  %2181 = vpow2.f32 %v1377_v43 }
 0x234   :  { %2183 = vrcp.f32 %v1395_v13  ;;  %v1330_v16 = vpop.f32.mrf.mxu3 }
 0x235   :  { %1443 = vst.msk [vmem:[%s3012_s7 + $0x2c] sm:$0xf] %vm1431_vm2, %v1426_v14  ;;  %v1483_v19 = vadd.f32 %v2830_v10, %v1463_v15  ;;  %v1331_v58 = vadd.f32 %v2817_v57, %v1330_v16 }
 0x237   :  { %v1499_v20 = vpack.c.bf16 %v1483_v19, %v1483_v19  ;;  %v1349_v21 = vsub.f32 0.0, %v1331_v58 }
 0x239   :  { %v2182_v23 = vpop.eup %2181  ;;  %1515 = vst.msk [vmem:[%s3013_s8 + $0x2c] sm:$0xf] %vm1431_vm2, %v1499_v20  ;;  %v1379_v12 = vmul.f32 1.442695, %v1349_v21 }
 0x23a   :  { %v2184_v24 = vpop.eup %2183  ;;  %v1396_v62 = vadd.f32 1.0, %v2182_v23 }
 0x23b   :  { %v1427_v25 = vpack.c.bf16 %v2184_v24, %v2184_v24  ;;  %v1464_v26 = vmul.f32 %v2184_v24, %v2825_v6  ;;  %2185 = vpow2.f32 %v1379_v12 }
 0x23c   :  { %2187 = vrcp.f32 %v1396_v62  ;;  %v1332_v28 = vpop.f32.mrf.mxu3 }
 0x23d   :  { %1444 = vst.msk [vmem:[%s3012_s7 + $0x30] sm:$0xf] %vm1431_vm2, %v1427_v25  ;;  %v1484_v29 = vadd.f32 %v2830_v10, %v1464_v26  ;;  %v1333_v31 = vadd.f32 %v2817_v57, %v1332_v28 }
 0x23f   :  { %v1500_v32 = vpack.c.bf16 %v1484_v29, %v1484_v29  ;;  %v1350_v22 = vsub.f32 0.0, %v1333_v31 }
 0x241   :  { %v2186_v33 = vpop.eup %2185  ;;  %1516 = vst.msk [vmem:[%s3013_s8 + $0x30] sm:$0xf] %vm1431_vm2, %v1500_v32  ;;  %v1381_v9 = vmul.f32 1.442695, %v1350_v22 }
 0x242   :  { %v2188_v37 = vpop.eup %2187  ;;  %v1397_v38 = vadd.f32 1.0, %v2186_v33 }
 0x243   :  { %v1428_v34 = vpack.c.bf16 %v2188_v37, %v2188_v37  ;;  %v1465_v7 = vmul.f32 %v2188_v37, %v2825_v6  ;;  %2189 = vpow2.f32 %v1381_v9 }
 0x244   :  { %2191 = vrcp.f32 %v1397_v38 }
 0x245   :  { %1445 = vst.msk [vmem:[%s3012_s7 + $0x34] sm:$0xf] %vm1431_vm2, %v1428_v34  ;;  %v1485_v57 = vadd.f32 %v2830_v10, %v1465_v7 }
 0x247   :  { %v1501_v30 = vpack.c.bf16 %v1485_v57, %v1485_v57 }
 0x249   :  { %v2190_v27 = vpop.eup %2189  ;;  %1517 = vst.msk [vmem:[%s3013_s8 + $0x34] sm:$0xf] %vm1431_vm2, %v1501_v30 }
 0x24a   :  { %v2192_v39 = vpop.eup %2191  ;;  %v1398_v40 = vadd.f32 1.0, %v2190_v27 }
 0x24b   :  { %v1429_v41 = vpack.c.bf16 %v2192_v39, %v2192_v39  ;;  %v1466_v42 = vmul.f32 %v2192_v39, %v2825_v6 }
 0x24c   :  { %2193 = vrcp.f32 %v1398_v40 }
 0x24d   :  { %1446 = vst.msk [vmem:[%s3012_s7 + $0x38] sm:$0xf] %vm1431_vm2, %v1429_v41  ;;  %v1486_v44 = vadd.f32 %v2830_v10, %v1466_v42 }
 0x24f   :  { %v1502_v45 = vpack.c.bf16 %v1486_v44, %v1486_v44 }
 0x251   :  { %1518 = vst.msk [vmem:[%s3013_s8 + $0x38] sm:$0xf] %vm1431_vm2, %v1502_v45 }
 0x252   :  { %v2194_v48 = vpop.eup %2193 }
 0x253   :  { %v1430_v17 = vpack.c.bf16 %v2194_v48, %v2194_v48  ;;  %v1467_v46 = vmul.f32 %v2194_v48, %v2825_v6 }
 0x255   :  { %1447 = vst.msk [vmem:[%s3012_s7 + $0x3c] sm:$0xf] %vm1431_vm2, %v1430_v17  ;;  %v1487_v47 = vadd.f32 %v2830_v10, %v1467_v46 }
 0x257   :  { %v1503_v49 = vpack.c.bf16 %v1487_v47, %v1487_v47 }
 0x259   :  { %1519 = vst.msk [vmem:[%s3013_s8 + $0x3c] sm:$0xf] %vm1431_vm2, %v1503_v49 }

// kernel: improved_ae_resnet18_forward.6
= control target key start
LH: loop header
LB: loop body
LE: loop exit
PB: predicated region body
PF: predicated region fallthrough
CT: control target
= control target key end

     0   :  { %vm115_vm0 = vcmask 1044480   ;;  %vm116_vm1 = vcmask 1045504   ;;  %v402_v2 = vmov 65535   ;;  %vm90_vm2 = vcmask 220160   ;;  %s549_s1 = inlined_call_operand.vmem [shape: bf16[27,16], index: 1, kind: input, shape index: {}]   ;;  %s550_s2 = inlined_call_operand.vmem [shape: f32[1,16], index: 2, kind: input, shape index: {}]   ;;  %s551_s0 = inlined_call_operand.vmem [shape: bf16[128,27], index: 0, kind: input, shape index: {}]   ;;  %s552_s3 = inlined_call_operand.vmem [shape: f32[128,16], index: 3, kind: output, shape index: {}]  }
   0x1   :  { %v310_v0 = vld [vmem:[%s549_s1 + $0x8] sm:$0xf]  ;;  %v329_v1 = vld [vmem:[%s549_s1 + $0x8] sm:$0x30]  ;;  %v117_v3 = vsel %vm115_vm0, 4294967295, %v402_v2  ;;  %v328_v7 = vld [vmem:[%s549_s1] sm:$0xff] }
   0x2   :  { %v311_v4 = vor.u32 %v329_v1, %v310_v0  ;;  %v118_v5 = vsel %vm116_vm1, %v117_v3, 0  ;;  %v320_v8 = vld [vmem:[%s551_s0] sm:$0xff]  ;;  %v322_v9 = vld [vmem:[%s551_s0 + $0x10] sm:$0xff]  ;;  %v321_v12 = vld [vmem:[%s551_s0 + $0x8] sm:$0xff]  ;;  %vm251_vm3 = vcmask 130048  }
   0x3   :  { %v324_v10 = vld [vmem:[%s551_s0 + $0x20] sm:$0xff]  ;;  %v326_v11 = vld [vmem:[%s551_s0 + $0x30] sm:$0xff]  ;;  %v323_v13 = vld [vmem:[%s551_s0 + $0x18] sm:$0xff] }
   0x4   :  { %v120_v6 = vand.u32 %v311_v4, %v118_v5  ;;  %v325_v14 = vld [vmem:[%s551_s0 + $0x28] sm:$0xff]  ;;  %v327_v15 = vld [vmem:[%s551_s0 + $0x38] sm:$0xff]  ;;  %v467_v16 = vld [vmem:[%s550_s2] ss:$0 sm:$0xff] }
   0x6   :  { %128 = vmatpush.bf16.msra.mxu0 %v120_v6  ;;  %330 = vmatpush.bf16.msra.mxu1 %v120_v6 }
   0x7   :  { %331 = vmatpush.bf16.msra.mxu2 %v120_v6  ;;  %332 = vmatpush.bf16.msra.mxu3 %v120_v6 }
   0xa   :  { %129 = vmatpush.bf16.msra.mxu0 %v328_v7  ;;  %333 = vmatpush.bf16.msra.mxu1 %v328_v7 }
   0xb   :  { %334 = vmatpush.bf16.msra.mxu2 %v328_v7  ;;  %335 = vmatpush.bf16.msra.mxu3 %v328_v7 }
   0xd   :  { %312 = vmatmul.msk.bf16.vlgmr.msra.gmra.mxu0 %vm90_vm2, %v320_v8  ;;  %314 = vmatmul.msk.bf16.vlgmr.msra.gmra.mxu1 %vm90_vm2, %v322_v9 }
   0xe   :  { %316 = vmatmul.msk.bf16.vlgmr.msra.gmra.mxu2 %vm90_vm2, %v324_v10  ;;  %318 = vmatmul.msk.bf16.vlgmr.msra.gmra.mxu3 %vm90_vm2, %v326_v11 }
  0x1d   :  { %313 = vmatmul.msk.bf16.gmra.mxu0 %vm90_vm2, %v321_v12  ;;  %315 = vmatmul.msk.bf16.gmra.mxu1 %vm90_vm2, %v323_v13 }
  0x1e   :  { %317 = vmatmul.msk.bf16.gmra.mxu2 %vm90_vm2, %v325_v14  ;;  %319 = vmatmul.msk.bf16.gmra.mxu3 %vm90_vm2, %v327_v15 }
  0x8a   :  { %v131_v17 = vpop.f32.mrf.mxu0  ;;  %v141_v18 = vpop.f32.mrf.mxu1 }
  0x8b   :  { %v132_v19 = vadd.f32 %v467_v16, %v131_v17  ;;  %v142_v20 = vadd.f32 %v467_v16, %v141_v18 }
  0x8d   :  { %v171_v21 = vsub.f32 0.0, %v132_v19  ;;  %v175_v22 = vsub.f32 0.0, %v142_v20 }
  0x8f   :  { %v187_v23 = vmul.f32 1.442695, %v171_v21  ;;  %v195_v24 = vmul.f32 1.442695, %v175_v22 }
  0x91   :  { %338 = vpow2.f32 %v187_v23  ;;  %v151_v25 = vpop.f32.mrf.mxu2  ;;  %v161_v26 = vpop.f32.mrf.mxu3 }
  0x92   :  { %340 = vpow2.f32 %v195_v24  ;;  %v152_v27 = vadd.f32 %v467_v16, %v151_v25  ;;  %v162_v28 = vadd.f32 %v467_v16, %v161_v26  ;;  %v133_v29 = vpop.f32.mrf.mxu0  ;;  %v143_v30 = vpop.f32.mrf.mxu1 }
  0x93   :  { %v134_v31 = vadd.f32 %v467_v16, %v133_v29  ;;  %v144_v32 = vadd.f32 %v467_v16, %v143_v30 }
  0x94   :  { %v179_v33 = vsub.f32 0.0, %v152_v27  ;;  %v183_v34 = vsub.f32 0.0, %v162_v28 }
  0x95   :  { %v172_v35 = vsub.f32 0.0, %v134_v31  ;;  %v176_v36 = vsub.f32 0.0, %v144_v32 }
  0x96   :  { %v203_v37 = vmul.f32 1.442695, %v179_v33  ;;  %v211_v38 = vmul.f32 1.442695, %v183_v34 }
  0x97   :  { %v339_v39 = vpop.eup %338  ;;  %v189_v42 = vmul.f32 1.442695, %v172_v35  ;;  %v197_v44 = vmul.f32 1.442695, %v176_v36 }
  0x98   :  { %v341_v40 = vpop.eup %340  ;;  %v219_v41 = vadd.f32 1.0, %v339_v39  ;;  %342 = vpow2.f32 %v203_v37 }
  0x99   :  { %v223_v43 = vadd.f32 1.0, %v341_v40  ;;  %344 = vpow2.f32 %v211_v38  ;;  %v153_v45 = vpop.f32.mrf.mxu2  ;;  %v163_v46 = vpop.f32.mrf.mxu3 }
  0x9a   :  { %346 = vrcp.f32 %v219_v41  ;;  %v154_v47 = vadd.f32 %v467_v16, %v153_v45  ;;  %v164_v48 = vadd.f32 %v467_v16, %v163_v46  ;;  %v136_v49 = vpop.f32.mrf.mxu0  ;;  %v146_v50 = vpop.f32.mrf.mxu1 }
  0x9b   :  { %348 = vrcp.f32 %v223_v43  ;;  %v137_v51 = vadd.f32 %v467_v16, %v136_v49  ;;  %v147_v52 = vadd.f32 %v467_v16, %v146_v50 }
  0x9c   :  { %350 = vpow2.f32 %v189_v42  ;;  %v180_v53 = vsub.f32 0.0, %v154_v47  ;;  %v184_v54 = vsub.f32 0.0, %v164_v48 }
  0x9d   :  { %352 = vpow2.f32 %v197_v44  ;;  %v173_v55 = vsub.f32 0.0, %v137_v51  ;;  %v177_v58 = vsub.f32 0.0, %v147_v52 }
  0x9e   :  { %v343_v56 = vpop.eup %342  ;;  %v205_v57 = vmul.f32 1.442695, %v180_v53  ;;  %v213_v61 = vmul.f32 1.442695, %v184_v54 }
  0x9f   :  { %v345_v59 = vpop.eup %344  ;;  %v227_v60 = vadd.f32 1.0, %v343_v56  ;;  %v191_v0 = vmul.f32 1.442695, %v173_v55  ;;  %v199_v5 = vmul.f32 1.442695, %v177_v58 }
  0xa0   :  { %v347_v62 = vpop.eup %346  ;;  %v231_v63 = vadd.f32 1.0, %v345_v59  ;;  %354 = vpow2.f32 %v205_v57 }
  0xa1   :  { %v349_v1 = vpop.eup %348  ;;  %252 = vst.msk [vmem:[%s552_s3] sm:$0xff] %vm251_vm3, %v347_v62  ;;  %356 = vrcp.f32 %v227_v60  ;;  %v156_v2 = vpop.f32.mrf.mxu2 }
  0xa2   :  { %v166_v3 = vpop.f32.mrf.mxu3  ;;  %v351_v4 = vpop.eup %350  ;;  %256 = vst.msk [vmem:[%s552_s3 + $0x20] sm:$0xff] %vm251_vm3, %v349_v1  ;;  %358 = vrcp.f32 %v231_v63  ;;  %v157_v6 = vadd.f32 %v467_v16, %v156_v2 }
  0xa3   :  { %v167_v7 = vadd.f32 %v467_v16, %v166_v3  ;;  %v138_v8 = vpop.f32.mrf.mxu0  ;;  %v148_v9 = vpop.f32.mrf.mxu1  ;;  %v220_v11 = vadd.f32 1.0, %v351_v4  ;;  %360 = vpow2.f32 %v213_v61 }
  0xa4   :  { %v353_v10 = vpop.eup %352  ;;  %v139_v12 = vadd.f32 %v467_v16, %v138_v8  ;;  %v149_v13 = vadd.f32 %v467_v16, %v148_v9  ;;  %362 = vpow2.f32 %v191_v0  ;;  %v181_v15 = vsub.f32 0.0, %v157_v6 }
  0xa5   :  { %v224_v14 = vadd.f32 1.0, %v353_v10  ;;  %v185_v17 = vsub.f32 0.0, %v167_v7  ;;  %364 = vrcp.f32 %v220_v11 }
  0xa6   :  { %v174_v18 = vsub.f32 0.0, %v139_v12  ;;  %v178_v19 = vsub.f32 0.0, %v149_v13  ;;  %v355_v20 = vpop.eup %354  ;;  %v207_v21 = vmul.f32 1.442695, %v181_v15 }
  0xa7   :  { %366 = vrcp.f32 %v224_v14  ;;  %v215_v22 = vmul.f32 1.442695, %v185_v17  ;;  %v357_v23 = vpop.eup %356  ;;  %v228_v24 = vadd.f32 1.0, %v355_v20 }
  0xa8   :  { %368 = vpow2.f32 %v199_v5  ;;  %v193_v25 = vmul.f32 1.442695, %v174_v18  ;;  %v359_v26 = vpop.eup %358  ;;  %260 = vst.msk [vmem:[%s552_s3 + $0x40] sm:$0xff] %vm251_vm3, %v357_v23  ;;  %v201_v28 = vmul.f32 1.442695, %v178_v19 }
  0xa9   :  { %370 = vpow2.f32 %v207_v21  ;;  %v361_v27 = vpop.eup %360  ;;  %264 = vst.msk [vmem:[%s552_s3 + $0x60] sm:$0xff] %vm251_vm3, %v359_v26  ;;  %v158_v29 = vpop.f32.mrf.mxu2 }
  0xaa   :  { %372 = vrcp.f32 %v228_v24  ;;  %v168_v30 = vpop.f32.mrf.mxu3  ;;  %v363_v31 = vpop.eup %362  ;;  %v232_v32 = vadd.f32 1.0, %v361_v27  ;;  %v159_v33 = vadd.f32 %v467_v16, %v158_v29 }
  0xab   :  { %374 = vpow2.f32 %v215_v22  ;;  %v169_v34 = vadd.f32 %v467_v16, %v168_v30  ;;  %v365_v35 = vpop.eup %364  ;;  %v221_v36 = vadd.f32 1.0, %v363_v31 }
  0xac   :  { %376 = vpow2.f32 %v193_v25  ;;  %253 = vst.msk [vmem:[%s552_s3 + $0x8] sm:$0xff] %vm251_vm3, %v365_v35  ;;  %v182_v38 = vsub.f32 0.0, %v159_v33 }
  0xad   :  { %v367_v37 = vpop.eup %366  ;;  %378 = vrcp.f32 %v232_v32  ;;  %v186_v40 = vsub.f32 0.0, %v169_v34 }
  0xae   :  { %v369_v39 = vpop.eup %368  ;;  %257 = vst.msk [vmem:[%s552_s3 + $0x28] sm:$0xff] %vm251_vm3, %v367_v37  ;;  %380 = vrcp.f32 %v221_v36  ;;  %v209_v42 = vmul.f32 1.442695, %v182_v38 }
  0xaf   :  { %v371_v16 = vpop.eup %370  ;;  %v225_v41 = vadd.f32 1.0, %v369_v39  ;;  %382 = vpow2.f32 %v201_v28  ;;  %v217_v48 = vmul.f32 1.442695, %v186_v40 }
  0xb0   :  { %v373_v43 = vpop.eup %372  ;;  %v229_v44 = vadd.f32 1.0, %v371_v16 }
  0xb1   :  { %v375_v45 = vpop.eup %374  ;;  %261 = vst.msk [vmem:[%s552_s3 + $0x48] sm:$0xff] %vm251_vm3, %v373_v43  ;;  %384 = vrcp.f32 %v225_v41 }
  0xb2   :  { %v377_v46 = vpop.eup %376  ;;  %386 = vrcp.f32 %v229_v44  ;;  %v233_v47 = vadd.f32 1.0, %v375_v45 }
  0xb3   :  { %v379_v49 = vpop.eup %378  ;;  %v222_v50 = vadd.f32 1.0, %v377_v46  ;;  %388 = vpow2.f32 %v209_v42 }
  0xb4   :  { %v381_v51 = vpop.eup %380  ;;  %265 = vst.msk [vmem:[%s552_s3 + $0x68] sm:$0xff] %vm251_vm3, %v379_v49  ;;  %390 = vrcp.f32 %v233_v47 }
  0xb5   :  { %v383_v52 = vpop.eup %382  ;;  %254 = vst.msk [vmem:[%s552_s3 + $0x10] sm:$0xff] %vm251_vm3, %v381_v51  ;;  %392 = vrcp.f32 %v222_v50 }
  0xb6   :  { %v226_v53 = vadd.f32 1.0, %v383_v52  ;;  %394 = vpow2.f32 %v217_v48 }
  0xb7   :  { %v385_v54 = vpop.eup %384 }
  0xb8   :  { %v387_v55 = vpop.eup %386  ;;  %258 = vst.msk [vmem:[%s552_s3 + $0x30] sm:$0xff] %vm251_vm3, %v385_v54  ;;  %396 = vrcp.f32 %v226_v53 }
  0xb9   :  { %v389_v56 = vpop.eup %388  ;;  %262 = vst.msk [vmem:[%s552_s3 + $0x50] sm:$0xff] %vm251_vm3, %v387_v55 }
  0xba   :  { %v391_v57 = vpop.eup %390  ;;  %v230_v58 = vadd.f32 1.0, %v389_v56 }
  0xbb   :  { %v393_v59 = vpop.eup %392  ;;  %266 = vst.msk [vmem:[%s552_s3 + $0x70] sm:$0xff] %vm251_vm3, %v391_v57 }
  0xbc   :  { %v395_v60 = vpop.eup %394  ;;  %255 = vst.msk [vmem:[%s552_s3 + $0x18] sm:$0xff] %vm251_vm3, %v393_v59  ;;  %398 = vrcp.f32 %v230_v58 }
  0xbd   :  { %v234_v61 = vadd.f32 1.0, %v395_v60 }
  0xbe   :  { %v397_v62 = vpop.eup %396 }
  0xbf   :  { %259 = vst.msk [vmem:[%s552_s3 + $0x38] sm:$0xff] %vm251_vm3, %v397_v62  ;;  %400 = vrcp.f32 %v234_v61 }
  0xc2   :  { %v399_v63 = vpop.eup %398 }
  0xc3   :  { %263 = vst.msk [vmem:[%s552_s3 + $0x58] sm:$0xff] %vm251_vm3, %v399_v63 }
  0xc5   :  { %v401_v0 = vpop.eup %400 }
  0xc6   :  { %267 = vst.msk [vmem:[%s552_s3 + $0x78] sm:$0xff] %vm251_vm3, %v401_v0 }

// kernel: improved_ae_resnet18_forward.7
= control target key start
LH: loop header
LB: loop body
LE: loop exit
PB: predicated region body
PF: predicated region fallthrough
CT: control target
= control target key end

     0   :  { %s13117_s6 = smov 1   ;;  %s13118_s10 = smov 2   ;;  %s15601_s0 = inlined_call_operand.smem [shape: u32[44], index: -1, kind: input, shape index: {}] }
   0x1   :  { %s13172_s5 = sld [smem:[%s15601_s0]]   ;;  %s13119_s14 = smov 3  }
   0x2   :  { %s13177_s9 = sld [smem:[%s15601_s0 + %s13117_s6]]   ;;  %s13120_s18 = smov 4  }
   0x3   :  { %s13182_s13 = sld [smem:[%s15601_s0 + %s13118_s10]]   ;;  %s13121_s22 = smov 5  }
   0x4   :  { %s13187_s17 = sld [smem:[%s15601_s0 + %s13119_s14]]   ;;  %s13122_s26 = smov 6  }
   0x5   :  { %s13192_s21 = sld [smem:[%s15601_s0 + %s13120_s18]]   ;;  %s13123_s30 = smov 7  }
   0x6   :  { %s13197_s25 = sld [smem:[%s15601_s0 + %s13121_s22]]   ;;  %s13124_s4 = smov 8  }
   0x7   :  { %s13202_s29 = sld [smem:[%s15601_s0 + %s13122_s26]]   ;;  %s13125_s10 = smov 9  }
   0x8   :  { %s13207_s3 = sld [smem:[%s15601_s0 + %s13123_s30]]   ;;  %s13126_s15 = smov 10  }
   0x9   :  { %s13212_s8 = sld [smem:[%s15601_s0 + %s13124_s4]]   ;;  %s13127_s20 = smov 11  }
   0xa   :  { %s13217_s14 = sld [smem:[%s15601_s0 + %s13125_s10]]   ;;  %s13128_s26 = smov 12  }
   0xb   :  { %s13222_s19 = sld [smem:[%s15601_s0 + %s13126_s15]]   ;;  %s13129_s1 = smov 13  }
   0xc   :  { %s13227_s24 = sld [smem:[%s15601_s0 + %s13127_s20]]   ;;  %s13130_s7 = smov 14  }
   0xd   :  { %s13232_s30 = sld [smem:[%s15601_s0 + %s13128_s26]]   ;;  %s13131_s15 = smov 15  }
   0xe   :  { %s13237_s6 = sld [smem:[%s15601_s0 + %s13129_s1]]   ;;  %s13132_s22 = smov 16  }
   0xf   :  { %s13242_s12 = sld [smem:[%s15601_s0 + %s13130_s7]]   ;;  %s13133_s28 = smov 17  }
  0x10   :  { %s13247_s20 = sld [smem:[%s15601_s0 + %s13131_s15]]   ;;  %s13134_s7 = smov 18  }
  0x11   :  { %s13252_s27 = sld [smem:[%s15601_s0 + %s13132_s22]]   ;;  %s13135_s15 = smov 19  }
  0x12   :  { %s13257_s4 = sld [smem:[%s15601_s0 + %s13133_s28]]   ;;  %s13136_s22 = smov 20  }
  0x13   :  { %15614 = sst [smem:[#allocation6_spill]] %s13232_s30  ;;  %s13137_s28 = smov 21  }
  0x14   :  { %s13267_s30 = sld [smem:[%s15601_s0 + %s13135_s15]]   ;;  %s13139_s15 = smov 23  }
  0x15   :  { %15615 = sst [smem:[#allocation7_spill]] %s13242_s12 }
  0x16   :  { %s13262_s12 = sld [smem:[%s15601_s0 + %s13134_s7]]   ;;  %s13138_s7 = smov 22  }
  0x17   :  { %15616 = sst [smem:[#allocation8_spill]] %s13252_s27 }
  0x18   :  { %15617 = sst [smem:[#allocation9_spill]] %s13257_s4 }
  0x19   :  { %s13272_s27 = sld [smem:[%s15601_s0 + %s13136_s22]]   ;;  %s13140_s22 = smov 24  }
  0x1a   :  { %15619 = sst [smem:[#allocation11_spill]] %s13267_s30 }
  0x1b   :  { %s13277_s4 = sld [smem:[%s15601_s0 + %s13137_s28]]   ;;  %s13141_s28 = smov 25  }
  0x1c   :  { %15618 = sst [smem:[#allocation10_spill]] %s13262_s12 }
  0x1d   :  { %s13282_s12 = sld [smem:[%s15601_s0 + %s13138_s7]]   ;;  %s13142_s7 = smov 26  }
  0x1e   :  { %s13287_s30 = sld [smem:[%s15601_s0 + %s13139_s15]]   ;;  %s13143_s15 = smov 27  }
  0x1f   :  { %15620 = sst [smem:[#allocation12_spill]] %s13272_s27 }
  0x20   :  { %s13292_s27 = sld [smem:[%s15601_s0 + %s13140_s22]]   ;;  %s13144_s22 = smov 28  }
  0x21   :  { %15621 = sst [smem:[#allocation13_spill]] %s13277_s4 }
  0x22   :  { %s13297_s4 = sld [smem:[%s15601_s0 + %s13141_s28]]   ;;  %s13145_s28 = smov 29  }
  0x23   :  { %15622 = sst [smem:[#allocation14_spill]] %s13282_s12 }
  0x24   :  { %15623 = sst [smem:[#allocation15_spill]] %s13287_s30 }
  0x25   :  { %s13302_s12 = sld [smem:[%s15601_s0 + %s13142_s7]]   ;;  %s13146_s7 = smov 30  }
  0x26   :  { %15624 = sst [smem:[#allocation16_spill]] %s13292_s27 }
  0x27   :  { %s13307_s30 = sld [smem:[%s15601_s0 + %s13143_s15]]   ;;  %s13147_s15 = smov 31  }
  0x28   :  { %15625 = sst [smem:[#allocation17_spill]] %s13297_s4 }
  0x29   :  { %s13312_s27 = sld [smem:[%s15601_s0 + %s13144_s22]]   ;;  %s13148_s22 = smov 32  }
  0x2a   :  { %s13317_s4 = sld [smem:[%s15601_s0 + %s13145_s28]]   ;;  %s13149_s28 = smov 33  }
  0x2b   :  { %15626 = sst [smem:[#allocation18_spill]] %s13302_s12 }
  0x2c   :  { %s13322_s12 = sld [smem:[%s15601_s0 + %s13146_s7]]   ;;  %s13150_s7 = smov 34  }
  0x2d   :  { %15627 = sst [smem:[#allocation19_spill]] %s13307_s30 }
  0x2e   :  { %s13327_s30 = sld [smem:[%s15601_s0 + %s13147_s15]]   ;;  %s13151_s15 = smov 35  }
  0x2f   :  { %15628 = sst [smem:[#allocation20_spill]] %s13312_s27 }
  0x30   :  { %15629 = sst [smem:[#allocation21_spill]] %s13317_s4 }
  0x31   :  { %s13332_s27 = sld [smem:[%s15601_s0 + %s13148_s22]]   ;;  %s13152_s22 = smov 36  }
  0x32   :  { %15630 = sst [smem:[#allocation22_spill]] %s13322_s12 }
  0x33   :  { %s13337_s4 = sld [smem:[%s15601_s0 + %s13149_s28]]   ;;  %s13153_s28 = smov 37  }
  0x34   :  { %15631 = sst [smem:[#allocation23_spill]] %s13327_s30 }
  0x35   :  { %s13342_s12 = sld [smem:[%s15601_s0 + %s13150_s7]]   ;;  %s13154_s7 = smov 38  }
  0x36   :  { %s13347_s30 = sld [smem:[%s15601_s0 + %s13151_s15]]   ;;  %s13155_s15 = smov 39  }
  0x37   :  { %15632 = sst [smem:[#allocation24_spill]] %s13332_s27 }
  0x38   :  { %s13352_s27 = sld [smem:[%s15601_s0 + %s13152_s22]]   ;;  %s13156_s22 = smov 40  }
  0x39   :  { %15633 = sst [smem:[#allocation25_spill]] %s13337_s4 }
  0x3a   :  { %s13357_s4 = sld [smem:[%s15601_s0 + %s13153_s28]]   ;;  %s13157_s28 = smov 41  }
  0x3b   :  { %15634 = sst [smem:[#allocation26_spill]] %s13342_s12 }
  0x3c   :  { %15635 = sst [smem:[#allocation27_spill]] %s13347_s30 }
  0x3d   :  { %s13362_s12 = sld [smem:[%s15601_s0 + %s13154_s7]]   ;;  %s13158_s7 = smov 42  }
  0x3e   :  { %15636 = sst [smem:[#allocation28_spill]] %s13352_s27 }
  0x3f   :  { %s13367_s30 = sld [smem:[%s15601_s0 + %s13155_s15]]   ;;  %s13159_s15 = smov 43  }
  0x40   :  { %15637 = sst [smem:[#allocation29_spill]] %s13357_s4 }
  0x41   :  { %s13372_s27 = sld [smem:[%s15601_s0 + %s13156_s22]]  }
  0x42   :  { %s13377_s4 = sld [smem:[%s15601_s0 + %s13157_s28]]  }
  0x43   :  { %15638 = sst [smem:[#allocation30_spill]] %s13362_s12 }
  0x44   :  { %s13382_s12 = sld [smem:[%s15601_s0 + %s13158_s7]]  }
  0x45   :  { %15639 = sst [smem:[#allocation31_spill]] %s13367_s30 }
  0x46   :  { %s13387_s30 = sld [smem:[%s15601_s0 + %s13159_s15]]  }
  0x47   :  { %v12011_v0 = vld [vmem:[%s13177_s9 + $0x38] sm:$0xff]  ;;  %vm289_vm0 = vcmask 1040384   ;;  %vm290_vm1 = vcmask 1041408   ;;  %v202_v1 = vld [vmem:[%s13177_s9 + $0x48] sm:$0x3]  ;;  %v13160_v2 = vmov 65535  }
  0x48   :  { %v291_v3 = vsel %vm289_vm0, 4294967295, %v13160_v2  ;;  %296 = vmatpush.bf16.msra.mxu0 %v12011_v0  ;;  %v12010_v4 = vld [vmem:[%s13177_s9 + $0x30] sm:$0xff]  ;;  %v262_v5 = vunpack.c.l.b16 %v202_v1  ;;  %v12009_v8 = vld [vmem:[%s13177_s9 + $0x28] sm:$0xff]  ;;  %v12012_v10 = vld [vmem:[%s13177_s9 + $0x40] sm:$0xff] }
  0x49   :  { %v292_v6 = vsel %vm290_vm1, %v291_v3, 0  ;;  %v12000_v11 = vld [vmem:[%s13172_s5 + $0x4] sm:$0xf]  ;;  %v8505_v12 = vld [vmem:[%s13172_s5 + $0x8] sm:$0xf0] }
  0x4a   :  { %v272_v7 = vpack.c.b16 %v262_v5, %v262_v5 }
  0x4c   :  { %297 = vmatpush.bf16.msra.mxu0 %v12010_v4  ;;  %v294_v9 = vand.u32 %v292_v6, %v272_v7 }
  0x4e   :  { %321 = vmatpush.bf16.msra.mxu1 %v294_v9 }
  0x4f   :  { %92 = vsyncpa [#allocation4], 0  ;;  %v12008_v13 = vld [vmem:[%s13177_s9 + $0x20] sm:$0xff]  ;;  %v8508_v14 = vor.u32 %v12000_v11, %v8505_v12  ;;  %vm282_vm2 = vcmask 154624   ;;  %v12007_v15 = vld [vmem:[%s13177_s9 + $0x18] sm:$0xff]  ;;  %vm338_vm3 = vcmask 517120  }
  0x50   :  { %298 = vmatpush.bf16.msra.mxu0 %v12009_v8  ;;  %v12006_v16 = vld [vmem:[%s13177_s9 + $0x10] sm:$0xff]  ;;  %v12005_v17 = vld [vmem:[%s13177_s9 + $0x8] sm:$0xff]  ;;  %v8513_v19 = vld [vmem:[%s13172_s5 + $0x18] sm:$0xf0]  ;;  %vm346_vm4 = vcmask 521220   ;;  %vm355_vm5 = vcmask 519169  }
  0x51   :  { %v12002_v18 = vld [vmem:[%s13172_s5 + $0x14] sm:$0xf]  ;;  %v12004_v20 = vld [vmem:[%s13177_s9] sm:$0xff]  ;;  %v12001_v22 = vld [vmem:[%s13172_s5 + $0x4] sm:$0xf0]  ;;  %vm363_vm6 = vcmask 523269  }
  0x52   :  { %322 = vmatpush.bf16.msra.mxu1 %v12012_v10  ;;  %v8503_v21 = vld [vmem:[%s13172_s5] sm:$0xf]  ;;  %v8516_v23 = vor.u32 %v12002_v18, %v8513_v19  ;;  %v8511_v25 = vld [vmem:[%s13172_s5 + $0x10] sm:$0xf]  ;;  %v12003_v26 = vld [vmem:[%s13172_s5 + $0x14] sm:$0xf0] }
  0x53   :  { %v8504_v24 = vor.u32 %v12001_v22, %v8503_v21  ;;  %v8512_v27 = vor.u32 %v12003_v26, %v8511_v25  ;;  %v13412_v28 = vld [vmem:[%s13182_s13] ss:$0 sm:$0xff]  ;;  %vm478_vm7 = vcmask 523264   ;;  %vm468_vm8 = vcmask 1042432   ;;  %s13162_s0 = smov 64   ;;  %s15640_s5 = sld [smem:[#allocation9_spill]] }
  0x54   :  { %299 = vmatpush.bf16.msra.mxu0 %v12008_v13  ;;  %vm470_vm9 = vcmask 1043456   ;;  %vm472_vm10 = vcmask 1044480   ;;  %vm474_vm11 = vcmask 1045504   ;;  %vm476_vm12 = vcmask 1046528   ;;  %s15641_s9 = sld [smem:[#allocation6_spill]] }
  0x55   :  { %8553 = vmatmul.msk.bf16.vlgmr.msra.gmra.mxu1 %vm282_vm2, %v8508_v14  ;;  %vm484_vm13 = vcmask 519170   ;;  %vm487_vm14 = vcmask 523270   ;;  %s15642_s13 = sld [smem:[#allocation11_spill]]  ;;  %vm8440_vm15 = vcmask 74752  }
  0x56   :  { %s15654_s22 = sld [smem:[#allocation16_spill]] }
  0x57   :  { %s15655_s23 = sld [smem:[#allocation25_spill]] }
  0x58   :  { %300 = vmatpush.bf16.msra.mxu0 %v12007_v15  ;;  %s15656_s26 = sld [smem:[#allocation20_spill]] }
  0x59   :  { %s15657_s28 = sld [smem:[#allocation22_spill]] }
  0x5a   :  { %s15658_s1 = sld [smem:[#allocation23_spill]] }
  0x5b   :  { %s15659_s2 = sld [smem:[#allocation27_spill]] }
  0x5c   :  { %301 = vmatpush.bf16.msra.mxu0 %v12006_v16  ;;  %s15660_s7 = sld [smem:[#allocation26_spill]] }
  0x5d   :  { %s15661_s10 = sld [smem:[#allocation24_spill]] }
  0x5e   :  { %s15662_s11 = sld [smem:[#allocation29_spill]] }
  0x5f   :  { %s15663_s15 = sld [smem:[#allocation28_spill]] }
  0x60   :  { %302 = vmatpush.bf16.msra.mxu0 %v12005_v17  ;;  %s15664_s16 = sld [smem:[#allocation31_spill]] }
  0x61   :  { %s15665_s18 = sld [smem:[#allocation30_spill]] }
  0x64   :  { %303 = vmatpush.bf16.msra.mxu0 %v12004_v20 }
  0x65   :  { %8554 = vmatmul.msk.bf16.gmra.mxu1 %vm282_vm2, %v8516_v23  ;;  %v13161_v23 = vmov 0.0  }
  0x66   :  { %479 = vst.msk [vmem:[#allocation2] sm:$0xff] %vm478_vm7, %v13161_v23 }
  0x67   :  { %304 = vmatmul.bf16.vlgmr.msra.gmra.mxu0 %v8504_v24  ;;  %480 = vst.msk [vmem:[#allocation2 + $0x8] sm:$0xff] %vm478_vm7, %v13161_v23 }
  0x68   :  { %481 = vst.msk [vmem:[#allocation2 + $0x10] sm:$0xff] %vm478_vm7, %v13161_v23 }
  0x69   :  { %482 = vst.msk [vmem:[#allocation2 + $0x18] sm:$0xff] %vm478_vm7, %v13161_v23 }
  0x77   :  { %309 = vmatmul.bf16.gmra.mxu0 %v8512_v27 }
  0xd2   :  { %v324_v29 = vpop.f32.mrf.mxu1 }
  0xda   :  { %v326_v48 = vpop.f32.mrf.mxu1 }
  0xe2   :  { %v329_v7 = vpop.f32.mrf.mxu1 }
  0xe4   :  { %v305_v30 = vpop.f32.mrf.mxu0 }
  0xe5   :  { %v306_v31 = vadd.f32 %v13412_v28, %v305_v30 }
  0xe7   :  { %v325_v32 = vadd.f32 %v324_v29, %v306_v31 }
  0xe9   :  { %v334_v33 = vmax.f32 %v325_v32, 0.0 }
  0xeb   :  { %v339_v34 = vsel %vm338_vm3, %v334_v33, -inf  ;;  %v347_v35 = vsel %vm346_vm4, %v334_v33, -inf  ;;  %v356_v36 = vsel %vm355_vm5, %v334_v33, -inf  ;;  %v364_v37 = vsel %vm363_vm6, %v334_v33, -inf }
  0xec   :  { %v340_v38 = vrot.slane %v339_v34, 4  ;;  %v348_v39 = vrot.slane %v347_v35, 4  ;;  %v357_v40 = vrot.slane %v356_v36, 4  ;;  %v365_v41 = vrot.slane %v364_v37, 4  ;;  %v307_v42 = vpop.f32.mrf.mxu0 }
  0xed   :  { %v308_v43 = vadd.f32 %v13412_v28, %v307_v42 }
  0xee   :  { %v341_v44 = vmax.f32 %v339_v34, %v340_v38  ;;  %v349_v45 = vmax.f32 %v347_v35, %v348_v39  ;;  %v358_v46 = vmax.f32 %v356_v36, %v357_v40  ;;  %v366_v47 = vmax.f32 %v364_v37, %v365_v41 }
  0xef   :  { %v327_v49 = vadd.f32 %v326_v48, %v308_v43 }
  0xf0   :  { %v342_v50 = vrot.slane %v341_v44, 2  ;;  %v350_v52 = vrot.slane %v349_v45, 2  ;;  %v359_v53 = vrot.slane %v358_v46, 2  ;;  %v367_v54 = vrot.slane %v366_v47, 2 }
  0xf1   :  { %v335_v51 = vmax.f32 %v327_v49, 0.0 }
  0xf2   :  { %v343_v59 = vmax.f32 %v341_v44, %v342_v50  ;;  %v351_v1 = vmax.f32 %v349_v45, %v350_v52  ;;  %v360_v2 = vmax.f32 %v358_v46, %v359_v53  ;;  %v368_v3 = vmax.f32 %v366_v47, %v367_v54  ;;  %v331_v46 = vpop.f32.mrf.mxu1 }
  0xf3   :  { %v372_v55 = vsel %vm338_vm3, %v335_v51, -inf  ;;  %v380_v56 = vsel %vm346_vm4, %v335_v51, -inf  ;;  %v388_v57 = vsel %vm355_vm5, %v335_v51, -inf  ;;  %v396_v58 = vsel %vm363_vm6, %v335_v51, -inf }
  0xf4   :  { %v310_v60 = vpop.f32.mrf.mxu0  ;;  %v373_v61 = vrot.slane %v372_v55, 4  ;;  %v381_v62 = vrot.slane %v380_v56, 4  ;;  %v389_v63 = vrot.slane %v388_v57, 4  ;;  %v397_v0 = vrot.slane %v396_v58, 4 }
  0xf5   :  { %v344_v6 = vrot.slane %v343_v59, 1  ;;  %v311_v8 = vadd.f32 %v13412_v28, %v310_v60  ;;  %v352_v14 = vrot.slane %v351_v1, 1  ;;  %v361_v15 = vrot.slane %v360_v2, 1 }
  0xf6   :  { %v374_v4 = vmax.f32 %v372_v55, %v373_v61  ;;  %v390_v5 = vmax.f32 %v388_v57, %v389_v63  ;;  %v382_v10 = vmax.f32 %v380_v56, %v381_v62  ;;  %v398_v12 = vmax.f32 %v396_v58, %v397_v0 }
  0xf7   :  { %v330_v13 = vadd.f32 %v329_v7, %v311_v8  ;;  %v369_v16 = vrot.slane %v368_v3, 1  ;;  %v13425_v19 = vmax.f32 %v343_v59, %v344_v6  ;;  %v13433_v30 = vmax.f32 %v351_v1, %v352_v14 }
  0xf8   :  { %v375_v9 = vrot.slane %v374_v4, 2  ;;  %v391_v11 = vrot.slane %v390_v5, 2  ;;  %v383_v20 = vrot.slane %v382_v10, 2  ;;  %v399_v22 = vrot.slane %v398_v12, 2 }
  0xf9   :  { %v336_v18 = vmax.f32 %v330_v13, 0.0  ;;  %v362_v31 = vmax.f32 %v360_v2, %v361_v15  ;;  %v370_v32 = vmax.f32 %v368_v3, %v369_v16  ;;  %v354_v47 = vmax.f32 %v13425_v19, %v13433_v30 }
  0xfa   :  { %v376_v17 = vmax.f32 %v374_v4, %v375_v9  ;;  %v392_v21 = vmax.f32 %v390_v5, %v391_v11  ;;  %v384_v38 = vmax.f32 %v382_v10, %v383_v20  ;;  %v400_v40 = vmax.f32 %v398_v12, %v399_v22 }
  0xfb   :  { %v404_v24 = vsel %vm338_vm3, %v336_v18, -inf  ;;  %v411_v25 = vsel %vm346_vm4, %v336_v18, -inf  ;;  %v419_v26 = vsel %vm355_vm5, %v336_v18, -inf  ;;  %v426_v27 = vsel %vm363_vm6, %v336_v18, -inf }
  0xfc   :  { %v312_v29 = vpop.f32.mrf.mxu0  ;;  %v377_v33 = vrot.slane %v376_v17, 1  ;;  %v405_v34 = vrot.slane %v404_v24, 4  ;;  %v412_v35 = vrot.slane %v411_v25, 4  ;;  %v420_v36 = vrot.slane %v419_v26, 4 }
  0xfd   :  { %v427_v37 = vrot.slane %v426_v27, 4  ;;  %v393_v39 = vrot.slane %v392_v21, 1  ;;  %v313_v41 = vadd.f32 %v13412_v28, %v312_v29  ;;  %v371_v54 = vmax.f32 %v362_v31, %v370_v32 }
  0xfe   :  { %v406_v42 = vmax.f32 %v404_v24, %v405_v34  ;;  %v413_v43 = vmax.f32 %v411_v25, %v412_v35  ;;  %v421_v44 = vmax.f32 %v419_v26, %v420_v36  ;;  %v378_v48 = vmax.f32 %v376_v17, %v377_v33 }
  0xff   :  { %v428_v45 = vmax.f32 %v426_v27, %v427_v37  ;;  %v332_v49 = vadd.f32 %v331_v46, %v313_v41  ;;  %v385_v55 = vrot.slane %v384_v38, 1  ;;  %v401_v56 = vrot.slane %v400_v40, 1 }
 0x100   :  { %v407_v50 = vrot.slane %v406_v42, 2  ;;  %v414_v51 = vrot.slane %v413_v43, 2  ;;  %v422_v52 = vrot.slane %v421_v44, 2  ;;  %v394_v58 = vmax.f32 %v392_v21, %v393_v39 }
 0x101   :  { %v429_v53 = vrot.slane %v428_v45, 2  ;;  %v337_v57 = vmax.f32 %v332_v49, 0.0  ;;  %v379_v1 = vmax.f32 %v13433_v30, %v378_v48  ;;  %v386_v5 = vmax.f32 %v384_v38, %v385_v55 }
 0x102   :  { %v408_v28 = vmax.f32 %v406_v42, %v407_v50  ;;  %v415_v59 = vmax.f32 %v413_v43, %v414_v51  ;;  %v423_v60 = vmax.f32 %v421_v44, %v422_v52  ;;  %v395_v9 = vmax.f32 %v370_v32, %v394_v58 }
 0x103   :  { %v430_v61 = vmax.f32 %v428_v45, %v429_v53  ;;  %v434_v62 = vsel %vm338_vm3, %v337_v57, -inf  ;;  %v442_v63 = vsel %vm346_vm4, %v337_v57, -inf  ;;  %v450_v0 = vsel %vm355_vm5, %v337_v57, -inf }
 0x104   :  { %v409_v2 = vrot.slane %v408_v28, 1  ;;  %v416_v3 = vrot.slane %v415_v59, 1  ;;  %v435_v4 = vrot.slane %v434_v62, 4  ;;  %v443_v6 = vrot.slane %v442_v63, 4 }
 0x105   :  { %v451_v7 = vrot.slane %v450_v0, 4  ;;  %v458_v8 = vsel %vm363_vm6, %v337_v57, -inf  ;;  %v402_v10 = vmax.f32 %v400_v40, %v401_v56  ;;  %v424_v11 = vrot.slane %v423_v60, 1 }
 0x106   :  { %v436_v12 = vmax.f32 %v434_v62, %v435_v4  ;;  %v431_v13 = vrot.slane %v430_v61, 1  ;;  %v444_v14 = vmax.f32 %v442_v63, %v443_v6  ;;  %v459_v16 = vrot.slane %v458_v8, 4  ;;  %v490_v62 = vld [vmem:[#allocation2 + $0x1] sm:$0x3] }
 0x107   :  { %v452_v15 = vmax.f32 %v450_v0, %v451_v7  ;;  %v387_v17 = vmax.f32 %v379_v1, %v386_v5  ;;  %v410_v18 = vmax.f32 %v408_v28, %v409_v2  ;;  %v417_v19 = vmax.f32 %v415_v59, %v416_v3  ;;  %v519_v0 = vld [vmem:[#allocation2 + $0xd] sm:$0x3] }
 0x108   :  { %v437_v20 = vrot.slane %v436_v12, 2  ;;  %v445_v21 = vrot.slane %v444_v14, 2  ;;  %v460_v23 = vmax.f32 %v458_v8, %v459_v16  ;;  %v466_v24 = vsel %vm289_vm0, %v354_v47, %v371_v54  ;;  %v542_v54 = vld [vmem:[#allocation2 + $0x11] sm:$0x3] }
 0x109   :  { %v453_v22 = vrot.slane %v452_v15, 2  ;;  %v403_v25 = vmax.f32 %v395_v9, %v402_v10  ;;  %v425_v26 = vmax.f32 %v423_v60, %v424_v11  ;;  %v432_v29 = vmax.f32 %v430_v61, %v431_v13  ;;  %v571_v10 = vld [vmem:[#allocation2 + $0x1d] sm:$0x3]  ;;  %v12027_v16 = vld [vmem:[%s13187_s17 + $0x70] sm:$0xff] }
 0x10a   :  { %v438_v27 = vmax.f32 %v436_v12, %v437_v20  ;;  %v446_v30 = vmax.f32 %v444_v14, %v445_v21  ;;  %v461_v32 = vrot.slane %v460_v23, 2  ;;  %v467_v33 = vsel %vm290_vm1, %v466_v24, %v387_v17  ;;  %v12020_v13 = vld [vmem:[%s13187_s17 + $0x38] sm:$0xff]  ;;  %v12026_v20 = vld [vmem:[%s13187_s17 + $0x68] sm:$0xff]  ;;  %v12035_v21 = vld [vmem:[%s13187_s17 + $0xb0] sm:$0xff] }
 0x10b   :  { %v454_v31 = vmax.f32 %v452_v15, %v453_v22  ;;  %v418_v34 = vmax.f32 %v410_v18, %v417_v19  ;;  %v469_v40 = vsel %vm468_vm8, %v467_v33, %v403_v25  ;;  %v433_v41 = vmax.f32 %v425_v26, %v432_v29  ;;  %v12028_v14 = vld [vmem:[%s13187_s17 + $0x78] sm:$0xff]  ;;  %952 = vmatpush.bf16.msra.mxu2 %v12020_v13  ;;  %v12019_v15 = vld [vmem:[%s13187_s17 + $0x30] sm:$0xff]  ;;  %v12025_v24 = vld [vmem:[%s13187_s17 + $0x60] sm:$0xff] }
 0x10c   :  { %v439_v35 = vrot.slane %v438_v27, 1  ;;  %v447_v36 = vrot.slane %v446_v30, 1  ;;  %v462_v38 = vmax.f32 %v460_v23, %v461_v32  ;;  %965 = vmatpush.bf16.msra.mxu3 %v12028_v14  ;;  %v12036_v17 = vld [vmem:[%s13187_s17 + $0xb8] sm:$0xff]  ;;  %v12043_v22 = vld [vmem:[%s13187_s17 + $0xf0] sm:$0xff]  ;;  %v12017_v23 = vld [vmem:[%s13187_s17 + $0x20] sm:$0xff] }
 0x10d   :  { %v455_v37 = vrot.slane %v454_v31, 1  ;;  %v471_v44 = vsel %vm470_vm9, %v469_v40, %v418_v34  ;;  %v12044_v18 = vld [vmem:[%s13187_s17 + $0xf8] sm:$0xff]  ;;  %978 = vmatpush.bf16.msrb.mxu1 %v12036_v17  ;;  %v12033_v32 = vld [vmem:[%s13187_s17 + $0xa0] sm:$0xff]  ;;  %v12014_v34 = vld [vmem:[%s13187_s17 + $0x8] sm:$0xff] }
 0x10e   :  { %v440_v39 = vmax.f32 %v438_v27, %v439_v35  ;;  %v463_v43 = vrot.slane %v462_v38, 1  ;;  %v448_v46 = vmax.f32 %v446_v30, %v447_v36  ;;  %v473_v50 = vsel %vm472_vm10, %v471_v44, %v433_v41  ;;  %991 = vmatpush.bf16.msrb.mxu0 %v12044_v18  ;;  %v12016_v25 = vld [vmem:[%s13187_s17 + $0x18] sm:$0xff]  ;;  %v12034_v27 = vld [vmem:[%s13187_s17 + $0xa8] sm:$0xff]  ;;  %v12015_v30 = vld [vmem:[%s13187_s17 + $0x10] sm:$0xff] }
 0x10f   :  { %v456_v42 = vmax.f32 %v454_v31, %v455_v37  ;;  %953 = vmatpush.bf16.msra.mxu2 %v12019_v15  ;;  %v12024_v26 = vld [vmem:[%s13187_s17 + $0x58] sm:$0xff]  ;;  %v12023_v31 = vld [vmem:[%s13187_s17 + $0x50] sm:$0xff]  ;;  %v12041_v33 = vld [vmem:[%s13187_s17 + $0xe0] sm:$0xff] }
 0x110   :  { %v441_v45 = vmax.f32 %v417_v19, %v440_v39  ;;  %v464_v48 = vmax.f32 %v462_v38, %v463_v43  ;;  %966 = vmatpush.bf16.msra.mxu3 %v12027_v16  ;;  %v12018_v19 = vld [vmem:[%s13187_s17 + $0x28] sm:$0xff]  ;;  %v12032_v36 = vld [vmem:[%s13187_s17 + $0x98] sm:$0xff]  ;;  %v12013_v38 = vld [vmem:[%s13187_s17] sm:$0xff] }
 0x111   :  { %v457_v47 = vmax.f32 %v432_v29, %v456_v42  ;;  %979 = vmatpush.bf16.msrb.mxu1 %v12035_v21  ;;  %v12042_v29 = vld [vmem:[%s13187_s17 + $0xe8] sm:$0xff]  ;;  %v12040_v37 = vld [vmem:[%s13187_s17 + $0xd8] sm:$0xff]  ;;  %v12021_v39 = vld [vmem:[%s13187_s17 + $0x40] sm:$0xff] }
 0x112   :  { %v449_v49 = vmax.f32 %v441_v45, %v448_v46  ;;  %992 = vmatpush.bf16.msrb.mxu0 %v12043_v22  ;;  %v12022_v35 = vld [vmem:[%s13187_s17 + $0x48] sm:$0xff]  ;;  %v12031_v40 = vld [vmem:[%s13187_s17 + $0x90] sm:$0xff]  ;;  %v12048_v43 = vld [vmem:[%s13187_s17 + $0x118] sm:$0xff] }
 0x113   :  { %v465_v51 = vmax.f32 %v457_v47, %v464_v48  ;;  %954 = vmatpush.bf16.msra.mxu2 %v12018_v19  ;;  %v12039_v41 = vld [vmem:[%s13187_s17 + $0xd0] sm:$0xff]  ;;  %v12030_v42 = vld [vmem:[%s13187_s17 + $0x88] sm:$0xff]  ;;  %v12029_v45 = vld [vmem:[%s13187_s17 + $0x80] sm:$0xff] }
 0x114   :  { %v475_v52 = vsel %vm474_vm11, %v473_v50, %v449_v49  ;;  %967 = vmatpush.bf16.msra.mxu3 %v12026_v20  ;;  %v12038_v44 = vld [vmem:[%s13187_s17 + $0xc8] sm:$0xff]  ;;  %v12047_v46 = vld [vmem:[%s13187_s17 + $0x110] sm:$0xff]  ;;  %v12037_v47 = vld [vmem:[%s13187_s17 + $0xc0] sm:$0xff] }
 0x115   :  { %v13449_v53 = vsel %vm476_vm12, %v475_v52, %v465_v51  ;;  %980 = vmatpush.bf16.msrb.mxu1 %v12034_v27  ;;  %v12046_v48 = vld [vmem:[%s13187_s17 + $0x108] sm:$0xff]  ;;  %v12045_v50 = vld [vmem:[%s13187_s17 + $0x100] sm:$0xff]  ;;  %s15643_s17 = sld [smem:[#allocation7_spill]] }
 0x116   :  { %483 = vst.msk [vmem:[#allocation2 + $0x5] sm:$0x3] %vm338_vm3, %v13449_v53  ;;  %993 = vmatpush.bf16.msrb.mxu0 %v12042_v29  ;;  %v491_v22 = vld [vmem:[#allocation2 + $0x2] sm:$0x3] }
 0x117   :  { %485 = vst.msk [vmem:[#allocation2 + $0x7] sm:$0xc] %vm484_vm13, %v13449_v53  ;;  %955 = vmatpush.bf16.msra.mxu2 %v12017_v23 }
 0x118   :  { %486 = vst.msk [vmem:[#allocation2 + $0x11] sm:$0x30] %vm346_vm4, %v13449_v53  ;;  %968 = vmatpush.bf16.msra.mxu3 %v12025_v24 }
 0x119   :  { %488 = vst.msk [vmem:[#allocation2 + $0x13] sm:$0xc0] %vm487_vm14, %v13449_v53  ;;  %981 = vmatpush.bf16.msrb.mxu1 %v12033_v32 }
 0x11a   :  { %994 = vmatpush.bf16.msrb.mxu0 %v12041_v33 }
 0x11b   :  { %956 = vmatpush.bf16.msra.mxu2 %v12016_v25 }
 0x11c   :  { %969 = vmatpush.bf16.msra.mxu3 %v12024_v26 }
 0x11d   :  { %v13459_v55 = vld [vmem:[#allocation2 + $0x5] sm:$0x3]  ;;  %982 = vmatpush.bf16.msrb.mxu1 %v12032_v36 }
 0x11e   :  { %v13461_v56 = vld [vmem:[#allocation2 + $0xa] sm:$0x3]  ;;  %v13463_v57 = vld [vmem:[#allocation2 + $0x8] sm:$0x3]  ;;  %v12920_v58 = vpack.i.bf16 %v542_v54, %v13459_v55  ;;  %v13479_v1 = vld [vmem:[#allocation2 + $0x6] sm:$0x3]  ;;  %995 = vmatpush.bf16.msrb.mxu0 %v12040_v37 }
 0x11f   :  { %v13466_v28 = vld [vmem:[#allocation2 + $0x16] sm:$0x3]  ;;  %v13468_v59 = vld [vmem:[#allocation2 + $0x14] sm:$0x3]  ;;  %v13481_v2 = vld [vmem:[#allocation2 + $0x4] sm:$0x3]  ;;  %v12945_v5 = vpack.i.bf16 %v519_v0, %v13479_v1  ;;  %957 = vmatpush.bf16.msra.mxu2 %v12015_v30 }
 0x120   :  { %v12940_v60 = vpack.i.bf16 %v13466_v28, %v13461_v56  ;;  %v12930_v61 = vpack.i.bf16 %v13468_v59, %v13463_v57  ;;  %12921 = vrot.lane.b32.xlu0 %v12920_v58, %s13162_s0  ;;  %v13477_v63 = vld [vmem:[#allocation2 + $0x15] sm:$0x3]  ;;  %v13483_v3 = vld [vmem:[#allocation2 + $0x18] sm:$0x3]  ;;  %v13494_v8 = vld [vmem:[#allocation2 + $0x1a] sm:$0x3]  ;;  %970 = vmatpush.bf16.msra.mxu3 %v12023_v31 }
 0x121   :  { %v12925_v4 = vpack.i.bf16 %v13477_v63, %v490_v62  ;;  %v12935_v6 = vpack.i.bf16 %v13483_v3, %v13481_v2  ;;  %v13492_v7 = vld [vmem:[#allocation2 + $0x19] sm:$0x3]  ;;  %v13496_v9 = vld [vmem:[#allocation2 + $0x9] sm:$0x3]  ;;  %983 = vmatpush.bf16.msrb.mxu1 %v12031_v40 }
 0x122   :  { %12941 = vrot.lane.b32.xlu2 %v12940_v60, %s13162_s0  ;;  %12931 = vrot.lane.b32.xlu1 %v12930_v61, %s13162_s0  ;;  %v12950_v11 = vpack.i.bf16 %v13492_v7, %v13494_v8  ;;  %v12955_v12 = vpack.i.bf16 %v571_v10, %v13496_v9  ;;  %v541_v60 = vld [vmem:[#allocation2 + $0x10] sm:$0x3] }
 0x123   :  { %958 = vmatpush.bf16.msra.mxu2 %v12014_v34  ;;  %996 = vmatpush.bf16.msrb.mxu0 %v12039_v41  ;;  %v518_v34 = vld [vmem:[#allocation2 + $0xc] sm:$0x3] }
 0x124   :  { %971 = vmatpush.bf16.msra.mxu3 %v12022_v35 }
 0x125   :  { %984 = vmatpush.bf16.msrb.mxu1 %v12030_v42 }
 0x127   :  { %959 = vmatpush.bf16.msra.mxu2 %v12013_v38  ;;  %997 = vmatpush.bf16.msrb.mxu0 %v12038_v44 }
 0x128   :  { %12926 = vrot.lane.b32.xlu0 %v12925_v4, %s13162_s0  ;;  %972 = vmatpush.bf16.msra.mxu3 %v12021_v39 }
 0x129   :  { %985 = vmatpush.bf16.msrb.mxu1 %v12029_v45 }
 0x12a   :  { %12946 = vrot.lane.b32.xlu2 %v12945_v5, %s13162_s0  ;;  %12936 = vrot.lane.b32.xlu1 %v12935_v6, %s13162_s0  ;;  %v543_v5 = vld [vmem:[#allocation2 + $0x12] sm:$0x3] }
 0x12b   :  { %1008 = vmatpush.bf16.msrb.mxu2 %v12048_v43  ;;  %998 = vmatpush.bf16.msrb.mxu0 %v12037_v47 }
 0x12f   :  { %1009 = vmatpush.bf16.msrb.mxu2 %v12047_v46 }
 0x130   :  { %12951 = vrot.lane.b32.xlu0 %v12950_v11, %s13162_s0 }
 0x132   :  { %12956 = vrot.lane.b32.xlu1 %v12955_v12, %s13162_s0  ;;  %v489_v12 = vld [vmem:[#allocation2] sm:$0x3] }
 0x133   :  { %1010 = vmatpush.bf16.msrb.mxu2 %v12046_v48 }
 0x137   :  { %1011 = vmatpush.bf16.msrb.mxu2 %v12045_v50 }
 0x17c   :  { %v12942_v49 = vpop.permute.xlu2 %12941 }
 0x17d   :  { %v12943_v61 = vunpack.i.l.bf16 %v12942_v49  ;;  %v12944_v11 = vunpack.i.h.bf16 %v12942_v49  ;;  %v570_v49 = vld [vmem:[#allocation2 + $0x1c] sm:$0x3] }
 0x17f   :  { %v539_v14 = vsel %vm478_vm7, %v13496_v9, %v12943_v61  ;;  %v568_v37 = vsel %vm478_vm7, %v13477_v63, %v12944_v11 }
 0x180   :  { %v600_v41 = vrot.slane %v539_v14, 6  ;;  %v614_v48 = vrot.slane %v568_v37, 4 }
 0x184   :  { %v12947_v4 = vpop.permute.xlu2 %12946 }
 0x185   :  { %v12948_v18 = vunpack.i.l.bf16 %v12947_v4  ;;  %v12949_v9 = vunpack.i.h.bf16 %v12947_v4 }
 0x187   :  { %v516_v38 = vsel %vm478_vm7, %v13459_v55, %v12948_v18  ;;  %v540_v44 = vsel %vm478_vm7, %v518_v34, %v12949_v9  ;;  %v1023_v34 = vld [vmem:[#allocation2 + $0x1] sm:$0x3] }
 0x188   :  { %v639_v63 = vsel %vm290_vm1, %v516_v38, %v600_v41 }
 0x192   :  { %v12922_v51 = vpop.permute.xlu0 %12921 }
 0x193   :  { %v12924_v54 = vunpack.i.h.bf16 %v12922_v51  ;;  %v12923_v58 = vunpack.i.l.bf16 %v12922_v51 }
 0x194   :  { %v12932_v52 = vpop.permute.xlu1 %12931 }
 0x195   :  { %v12933_v62 = vunpack.i.l.bf16 %v12932_v52  ;;  %v12934_v0 = vunpack.i.h.bf16 %v12932_v52  ;;  %v566_v6 = vsel %vm478_vm7, %v541_v60, %v12924_v54  ;;  %v537_v10 = vsel %vm478_vm7, %v13481_v2, %v12923_v58 }
 0x196   :  { %v612_v20 = vrot.slane %v566_v6, 4  ;;  %v598_v21 = vrot.slane %v537_v10, 6  ;;  %v601_v60 = vrot.slane %v540_v44, 6  ;;  %v572_v6 = vld [vmem:[#allocation2 + $0x1e] sm:$0x3]  ;;  %v616_v10 = vrot.slane %v13494_v8, 4 }
 0x197   :  { %v538_v15 = vsel %vm478_vm7, %v13479_v1, %v12933_v62  ;;  %v567_v19 = vsel %vm478_vm7, %v543_v5, %v12934_v0  ;;  %v644_v5 = vsel %vm470_vm9, %v639_v63, %v614_v48  ;;  %v1052_v63 = vld [vmem:[#allocation2 + $0xd] sm:$0x3] }
 0x198   :  { %v599_v27 = vrot.slane %v538_v15, 6  ;;  %v613_v30 = vrot.slane %v567_v19, 4  ;;  %v13081_v19 = vld [vmem:[%s13192_s21] ss:$0 sm:$0xff]  ;;  %s15644_s21 = sld [smem:[#allocation8_spill]] }
 0x19a   :  { %v12927_v13 = vpop.permute.xlu0 %12926 }
 0x19b   :  { %v12929_v16 = vunpack.i.h.bf16 %v12927_v13  ;;  %v12928_v17 = vunpack.i.l.bf16 %v12927_v13 }
 0x19c   :  { %v12937_v23 = vpop.permute.xlu1 %12936 }
 0x19d   :  { %v589_v2 = vsel %vm478_vm7, %v13468_v59, %v12929_v16  ;;  %v514_v24 = vsel %vm478_vm7, %v489_v12, %v12928_v17  ;;  %v12939_v25 = vunpack.i.h.bf16 %v12937_v23  ;;  %v12938_v26 = vunpack.i.l.bf16 %v12937_v23 }
 0x19e   :  { %v627_v29 = vrot.slane %v589_v2, 2  ;;  %v637_v1 = vsel %vm290_vm1, %v514_v24, %v598_v21 }
 0x19f   :  { %v590_v31 = vsel %vm478_vm7, %v13466_v28, %v12939_v25  ;;  %v515_v32 = vsel %vm478_vm7, %v491_v22, %v12938_v26  ;;  %v642_v33 = vsel %vm470_vm9, %v637_v1, %v612_v20  ;;  %v520_v28 = vld [vmem:[#allocation2 + $0xe] sm:$0x3] }
 0x1a0   :  { %v647_v59 = vsel %vm474_vm11, %v642_v33, %v627_v29  ;;  %v628_v35 = vrot.slane %v590_v31, 2  ;;  %v638_v36 = vsel %vm290_vm1, %v515_v32, %v599_v27  ;;  %v602_v55 = vrot.slane %v520_v28, 6  ;;  %v1075_v33 = vld [vmem:[#allocation2 + $0x11] sm:$0x3] }
 0x1a1   :  { %v652_v39 = vpack.c.bf16 %v647_v59, %v647_v59  ;;  %v643_v40 = vsel %vm470_vm9, %v638_v36, %v613_v30 }
 0x1a2   :  { %v12952_v42 = vpop.permute.xlu0 %12951  ;;  %v648_v43 = vsel %vm474_vm11, %v643_v40, %v628_v35  ;;  %v641_v12 = vsel %vm290_vm1, %v13461_v56, %v602_v55  ;;  %v1104_v55 = vld [vmem:[#allocation2 + $0x1d] sm:$0x3] }
 0x1a3   :  { %v12954_v45 = vunpack.i.h.bf16 %v12952_v42  ;;  %v12953_v46 = vunpack.i.l.bf16 %v12952_v42  ;;  %960 = vmatmul.bf16.vlgmr.msra.gmra.mxu2 %v652_v39  ;;  %v653_v47 = vpack.c.bf16 %v648_v43, %v648_v43  ;;  %v646_v17 = vsel %vm470_vm9, %v641_v12, %v616_v10  ;;  %v12069_v10 = vld [vmem:[%s13197_s25 + $0xa0] sm:$0xff]  ;;  %v12068_v12 = vld [vmem:[%s13197_s25 + $0x98] sm:$0xff] }
 0x1a4   :  { %v12957_v50 = vpop.permute.xlu1 %12956 }
 0x1a5   :  { %v569_v51 = vsel %vm478_vm7, %v13483_v3, %v12954_v45  ;;  %v591_v52 = vsel %vm478_vm7, %v13492_v7, %v12953_v46  ;;  %v12959_v54 = vunpack.i.h.bf16 %v12957_v50  ;;  %v12958_v58 = vunpack.i.l.bf16 %v12957_v50  ;;  %973 = vmatmul.bf16.vlgmr.msra.gmra.mxu3 %v653_v47 }
 0x1a6   :  { %v615_v61 = vrot.slane %v569_v51, 4  ;;  %v629_v62 = vrot.slane %v591_v52, 2 }
 0x1a7   :  { %v592_v0 = vsel %vm478_vm7, %v570_v49, %v12959_v54  ;;  %v517_v4 = vsel %vm478_vm7, %v13463_v57, %v12958_v58  ;;  %v631_v57 = vrot.slane %v572_v6, 2  ;;  %v12056_v54 = vld [vmem:[%s13197_s25 + $0x38] sm:$0xff]  ;;  %v12063_v6 = vld [vmem:[%s13197_s25 + $0x70] sm:$0xff] }
 0x1a8   :  { %v630_v3 = vrot.slane %v592_v0, 2  ;;  %v640_v7 = vsel %vm290_vm1, %v517_v4, %v601_v60  ;;  %v649_v11 = vsel %vm474_vm11, %v644_v5, %v629_v62  ;;  %v12072_v58 = vld [vmem:[%s13197_s25 + $0xb8] sm:$0xff]  ;;  %1485 = vmatpush.bf16.msrb.mxu3 %v12056_v54  ;;  %v12055_v60 = vld [vmem:[%s13197_s25 + $0x30] sm:$0xff]  ;;  %v12054_v62 = vld [vmem:[%s13197_s25 + $0x28] sm:$0xff] }
 0x1a9   :  { %v654_v13 = vpack.c.bf16 %v649_v11, %v649_v11  ;;  %v645_v14 = vsel %vm470_vm9, %v640_v7, %v615_v61  ;;  %v651_v8 = vsel %vm474_vm11, %v646_v17, %v631_v57  ;;  %1511 = vmatpush.bf16.msra.mxu2 %v12072_v58  ;;  %v12071_v61 = vld [vmem:[%s13197_s25 + $0xb0] sm:$0xff]  ;;  %v12064_v0 = vld [vmem:[%s13197_s25 + $0x78] sm:$0xff]  ;;  %v12070_v4 = vld [vmem:[%s13197_s25 + $0xa8] sm:$0xff] }
 0x1aa   :  { %v650_v15 = vsel %vm474_vm11, %v645_v14, %v630_v3  ;;  %v656_v18 = vpack.c.bf16 %v651_v8, %v651_v8  ;;  %v12053_v5 = vld [vmem:[%s13197_s25 + $0x20] sm:$0xff]  ;;  %1498 = vmatpush.bf16.msra.mxu1 %v12064_v0  ;;  %v12052_v3 = vld [vmem:[%s13197_s25 + $0x18] sm:$0xff]  ;;  %v12062_v11 = vld [vmem:[%s13197_s25 + $0x68] sm:$0xff] }
 0x1ab   :  { %986 = vmatmul.bf16.vlgmr.msrb.gmra.mxu1 %v654_v13  ;;  %v655_v16 = vpack.c.bf16 %v650_v15, %v650_v15  ;;  %v12080_v7 = vld [vmem:[%s13197_s25 + $0xf8] sm:$0xff]  ;;  %v12051_v13 = vld [vmem:[%s13197_s25 + $0x10] sm:$0xff]  ;;  %v12061_v15 = vld [vmem:[%s13197_s25 + $0x60] sm:$0xff] }
 0x1ac   :  { %1486 = vmatpush.bf16.msrb.mxu3 %v12055_v60  ;;  %1524 = vmatpush.bf16.msra.mxu0 %v12080_v7  ;;  %v12079_v14 = vld [vmem:[%s13197_s25 + $0xf0] sm:$0xff]  ;;  %v12078_v17 = vld [vmem:[%s13197_s25 + $0xe8] sm:$0xff]  ;;  %v12060_v8 = vld [vmem:[%s13197_s25 + $0x58] sm:$0xff] }
 0x1ad   :  { %999 = vmatmul.bf16.vlgmr.msrb.gmra.mxu0 %v655_v16  ;;  %1512 = vmatpush.bf16.msra.mxu2 %v12071_v61  ;;  %v12067_v57 = vld [vmem:[%s13197_s25 + $0x90] sm:$0xff]  ;;  %v12050_v16 = vld [vmem:[%s13197_s25 + $0x8] sm:$0xff] }
 0x1ae   :  { %1499 = vmatpush.bf16.msra.mxu1 %v12063_v6 }
 0x1b0   :  { %1487 = vmatpush.bf16.msrb.mxu3 %v12054_v62  ;;  %1525 = vmatpush.bf16.msra.mxu0 %v12079_v14 }
 0x1b1   :  { %1513 = vmatpush.bf16.msra.mxu2 %v12070_v4 }
 0x1b2   :  { %1500 = vmatpush.bf16.msra.mxu1 %v12062_v11 }
 0x1b3   :  { %8699 = vmatmul.msk.bf16.vlgmr.msrb.gmra.mxu2 %vm478_vm7, %v656_v18  ;;  %v12066_v18 = vld [vmem:[%s13197_s25 + $0x88] sm:$0xff] }
 0x1b4   :  { %1488 = vmatpush.bf16.msrb.mxu3 %v12053_v5  ;;  %1526 = vmatpush.bf16.msra.mxu0 %v12078_v17 }
 0x1b5   :  { %1514 = vmatpush.bf16.msra.mxu2 %v12069_v10 }
 0x1b6   :  { %1501 = vmatpush.bf16.msra.mxu1 %v12061_v15  ;;  %v1076_v15 = vld [vmem:[#allocation2 + $0x12] sm:$0x3] }
 0x1b8   :  { %1489 = vmatpush.bf16.msrb.mxu3 %v12052_v3 }
 0x1b9   :  { %1515 = vmatpush.bf16.msra.mxu2 %v12068_v12 }
 0x1ba   :  { %1502 = vmatpush.bf16.msra.mxu1 %v12060_v8 }
 0x1bc   :  { %1490 = vmatpush.bf16.msrb.mxu3 %v12051_v13  ;;  %v1053_v13 = vld [vmem:[#allocation2 + $0xe] sm:$0x3] }
 0x1bd   :  { %1516 = vmatpush.bf16.msra.mxu2 %v12067_v57 }
 0x1c0   :  { %1491 = vmatpush.bf16.msrb.mxu3 %v12050_v16 }
 0x1c1   :  { %1517 = vmatpush.bf16.msra.mxu2 %v12066_v18 }
 0x226   :  { %v961_v20 = vpop.f32.mrf.mxu2 }
 0x227   :  { %v962_v22 = vadd.f32 %v13081_v19, %v961_v20  ;;  %v12049_v19 = vld [vmem:[%s13197_s25] sm:$0xff] }
 0x228   :  { %v974_v21 = vpop.f32.mrf.mxu3  ;;  %v987_v56 = vpop.f32.mrf.mxu1  ;;  %v12077_v20 = vld [vmem:[%s13197_s25 + $0xe0] sm:$0xff]  ;;  %1492 = vmatpush.bf16.msrb.mxu3 %v12049_v19 }
 0x229   :  { %v975_v2 = vadd.f32 %v974_v21, %v962_v22  ;;  %v12059_v21 = vld [vmem:[%s13197_s25 + $0x50] sm:$0xff]  ;;  %1527 = vmatpush.bf16.msra.mxu0 %v12077_v20  ;;  %v12076_v22 = vld [vmem:[%s13197_s25 + $0xd8] sm:$0xff]  ;;  %v1135_v20 = vrot.slane %v1053_v13, 6 }
 0x22a   :  { %v1000_v23 = vpop.f32.mrf.mxu0  ;;  %1503 = vmatpush.bf16.msra.mxu1 %v12059_v21  ;;  %v1024_v21 = vld [vmem:[#allocation2 + $0x2] sm:$0x3] }
 0x22b   :  { %v988_v9 = vadd.f32 %v987_v56, %v975_v2  ;;  %v12065_v56 = vld [vmem:[%s13197_s25 + $0x80] sm:$0xff]  ;;  %v12058_v2 = vld [vmem:[%s13197_s25 + $0x48] sm:$0xff] }
 0x22c   :  { %1518 = vmatpush.bf16.msra.mxu2 %v12065_v56 }
 0x22d   :  { %v1001_v29 = vadd.f32 %v1000_v23, %v988_v9  ;;  %v12084_v23 = vld [vmem:[%s13197_s25 + $0x118] sm:$0xff]  ;;  %1528 = vmatpush.bf16.msra.mxu0 %v12076_v22 }
 0x22e   :  { %v963_v24 = vpop.f32.mrf.mxu2  ;;  %1541 = vmatpush.bf16.msra.mxu3 %v12084_v23  ;;  %1504 = vmatpush.bf16.msra.mxu1 %v12058_v2 }
 0x22f   :  { %v12075_v24 = vld [vmem:[%s13197_s25 + $0xd0] sm:$0xff] }
 0x230   :  { %v976_v25 = vpop.f32.mrf.mxu3  ;;  %v989_v26 = vpop.f32.mrf.mxu1 }
 0x231   :  { %v12083_v25 = vld [vmem:[%s13197_s25 + $0x110] sm:$0xff]  ;;  %v12057_v26 = vld [vmem:[%s13197_s25 + $0x40] sm:$0xff]  ;;  %1529 = vmatpush.bf16.msra.mxu0 %v12075_v24 }
 0x232   :  { %v1002_v27 = vpop.f32.mrf.mxu0  ;;  %1542 = vmatpush.bf16.msra.mxu3 %v12083_v25  ;;  %1505 = vmatpush.bf16.msra.mxu1 %v12057_v26  ;;  %v1051_v25 = vld [vmem:[#allocation2 + $0xc] sm:$0x3] }
 0x233   :  { %v12074_v27 = vld [vmem:[%s13197_s25 + $0xc8] sm:$0xff] }
 0x235   :  { %1530 = vmatpush.bf16.msra.mxu0 %v12074_v27 }
 0x236   :  { %v1013_v1 = vpop.f32.mrf.mxu2 }
 0x237   :  { %v1014_v30 = vadd.f32 %v1013_v1, %v1001_v29  ;;  %v12082_v29 = vld [vmem:[%s13197_s25 + $0x108] sm:$0xff]  ;;  %v12073_v1 = vld [vmem:[%s13197_s25 + $0xc0] sm:$0xff] }
 0x238   :  { %1543 = vmatpush.bf16.msra.mxu3 %v12082_v29 }
 0x239   :  { %v1017_v31 = vmax.f32 %v1014_v30, 0.0  ;;  %v12081_v30 = vld [vmem:[%s13197_s25 + $0x100] sm:$0xff]  ;;  %1531 = vmatpush.bf16.msra.mxu0 %v12073_v1  ;;  %s15645_s25 = sld [smem:[#allocation15_spill]] }
 0x23b   :  { %1018 = vst.msk [vmem:[#allocation2 + $0x5] sm:$0x3] %vm338_vm3, %v1017_v31 }
 0x23c   :  { %1019 = vst.msk [vmem:[#allocation2 + $0x7] sm:$0xc] %vm484_vm13, %v1017_v31  ;;  %1544 = vmatpush.bf16.msra.mxu3 %v12081_v30  ;;  %v1105_v30 = vld [vmem:[#allocation2 + $0x1e] sm:$0x3] }
 0x23d   :  { %1020 = vst.msk [vmem:[#allocation2 + $0x11] sm:$0x30] %vm346_vm4, %v1017_v31 }
 0x23e   :  { %1021 = vst.msk [vmem:[#allocation2 + $0x13] sm:$0xc0] %vm487_vm14, %v1017_v31  ;;  %v1015_v32 = vpop.f32.mrf.mxu2 }
 0x242   :  { %v13588_v59 = vld [vmem:[#allocation2 + $0x5] sm:$0x3] }
 0x243   :  { %v13590_v35 = vld [vmem:[#allocation2 + $0xa] sm:$0x3]  ;;  %v12960_v36 = vpack.i.bf16 %v1075_v33, %v13588_v59  ;;  %v13603_v28 = vld [vmem:[#allocation2 + $0x6] sm:$0x3]  ;;  %v13607_v42 = vld [vmem:[#allocation2 + $0x4] sm:$0x3] }
 0x244   :  { %v13593_v37 = vld [vmem:[#allocation2 + $0x15] sm:$0x3]  ;;  %v13609_v43 = vld [vmem:[#allocation2 + $0x8] sm:$0x3] }
 0x245   :  { %v13595_v38 = vld [vmem:[#allocation2 + $0x16] sm:$0x3]  ;;  %v12965_v39 = vpack.i.bf16 %v13593_v37, %v1023_v34  ;;  %12961 = vrot.lane.b32.xlu2 %v12960_v36, %s13162_s0  ;;  %v13605_v41 = vld [vmem:[#allocation2 + $0x1a] sm:$0x3]  ;;  %v13611_v44 = vld [vmem:[#allocation2 + $0x14] sm:$0x3] }
 0x246   :  { %v12970_v40 = vpack.i.bf16 %v13595_v38, %v13590_v35  ;;  %v13613_v45 = vld [vmem:[#allocation2 + $0x18] sm:$0x3]  ;;  %v12975_v46 = vpack.i.bf16 %v13605_v41, %v13603_v28  ;;  %v12980_v47 = vpack.i.bf16 %v13611_v44, %v13609_v43  ;;  %v13626_v50 = vld [vmem:[#allocation2 + $0x9] sm:$0x3]  ;;  %v1074_v34 = vld [vmem:[#allocation2 + $0x10] sm:$0x3] }
 0x247   :  { %12966 = vrot.lane.b32.xlu0 %v12965_v39, %s13162_s0  ;;  %v12985_v48 = vpack.i.bf16 %v13613_v45, %v13607_v42  ;;  %v13624_v49 = vld [vmem:[#allocation2 + $0x19] sm:$0x3]  ;;  %v12995_v52 = vpack.i.bf16 %v1104_v55, %v13626_v50  ;;  %v1149_v29 = vrot.slane %v13605_v41, 4 }
 0x248   :  { %12971 = vrot.lane.b32.xlu1 %v12970_v40, %s13162_s0  ;;  %v12990_v51 = vpack.i.bf16 %v13624_v49, %v1052_v63 }
 0x24d   :  { %12976 = vrot.lane.b32.xlu2 %v12975_v46, %s13162_s0 }
 0x24f   :  { %12981 = vrot.lane.b32.xlu0 %v12980_v47, %s13162_s0  ;;  %v1022_v47 = vld [vmem:[#allocation2] sm:$0x3] }
 0x250   :  { %12986 = vrot.lane.b32.xlu1 %v12985_v48, %s13162_s0 }
 0x255   :  { %12991 = vrot.lane.b32.xlu2 %v12990_v51, %s13162_s0 }
 0x257   :  { %12996 = vrot.lane.b32.xlu0 %v12995_v52, %s13162_s0 }
 0x29f   :  { %v12962_v9 = vpop.permute.xlu2 %12961 }
 0x2a0   :  { %v12964_v31 = vunpack.i.h.bf16 %v12962_v9  ;;  %v12963_v32 = vunpack.i.l.bf16 %v12962_v9 }
 0x2a2   :  { %v1099_v39 = vsel %vm478_vm7, %v1074_v34, %v12964_v31  ;;  %v1070_v40 = vsel %vm478_vm7, %v13607_v42, %v12963_v32  ;;  %v1174_v31 = vsel %vm290_vm1, %v13590_v35, %v1135_v20 }
 0x2a3   :  { %v1145_v58 = vrot.slane %v1099_v39, 4  ;;  %v1131_v60 = vrot.slane %v1070_v40, 6  ;;  %v1164_v40 = vrot.slane %v1105_v30, 2  ;;  %v1179_v35 = vsel %vm470_vm9, %v1174_v31, %v1149_v29  ;;  %v1586_v29 = vld [vmem:[#allocation2 + $0xd] sm:$0x3] }
 0x2a4   :  { %v1638_v31 = vld [vmem:[#allocation2 + $0x1d] sm:$0x3] }
 0x2a7   :  { %v12977_v33 = vpop.permute.xlu2 %12976 }
 0x2a8   :  { %v12979_v36 = vunpack.i.h.bf16 %v12977_v33  ;;  %v12978_v46 = vunpack.i.l.bf16 %v12977_v33 }
 0x2aa   :  { %v1124_v61 = vsel %vm478_vm7, %v13624_v49, %v12979_v36  ;;  %v1049_v7 = vsel %vm478_vm7, %v13588_v59, %v12978_v46  ;;  %v1103_v36 = vld [vmem:[#allocation2 + $0x1c] sm:$0x3] }
 0x2ab   :  { %v1162_v11 = vrot.slane %v1124_v61, 2 }
 0x2b9   :  { %v12967_v48 = vpop.permute.xlu0 %12966 }
 0x2ba   :  { %v12972_v63 = vpop.permute.xlu1 %12971  ;;  %v12969_v55 = vunpack.i.h.bf16 %v12967_v48  ;;  %v12968_v51 = vunpack.i.l.bf16 %v12967_v48 }
 0x2bb   :  { %v12974_v52 = vunpack.i.h.bf16 %v12972_v63  ;;  %v12973_v54 = vunpack.i.l.bf16 %v12972_v63 }
 0x2bc   :  { %v1047_v62 = vsel %vm478_vm7, %v1022_v47, %v12968_v51  ;;  %v1122_v0 = vsel %vm478_vm7, %v13611_v44, %v12969_v55 }
 0x2bd   :  { %v1101_v42 = vsel %vm478_vm7, %v13593_v37, %v12974_v52  ;;  %v1072_v4 = vsel %vm478_vm7, %v13626_v50, %v12973_v54  ;;  %v1160_v5 = vrot.slane %v1122_v0, 2  ;;  %v1170_v6 = vsel %vm290_vm1, %v1047_v62, %v1131_v60  ;;  %v12992_v37 = vpop.permute.xlu2 %12991 }
 0x2be   :  { %v1147_v10 = vrot.slane %v1101_v42, 4  ;;  %v1133_v3 = vrot.slane %v1072_v4, 6  ;;  %v1175_v49 = vsel %vm470_vm9, %v1170_v6, %v1145_v58  ;;  %v12993_v22 = vunpack.i.l.bf16 %v12992_v37  ;;  %v13082_v4 = vld [vmem:[%s13202_s29] ss:$0 sm:$0xff]  ;;  %s15646_s29 = sld [smem:[#allocation13_spill]] }
 0x2bf   :  { %v1180_v44 = vsel %vm474_vm11, %v1175_v49, %v1160_v5  ;;  %v12994_v26 = vunpack.i.h.bf16 %v12992_v37  ;;  %v1184_v58 = vsel %vm474_vm11, %v1179_v35, %v1164_v40  ;;  %v12089_v40 = vld [vmem:[%s13207_s3 + $0x20] sm:$0xff]  ;;  %v12106_v35 = vld [vmem:[%s13207_s3 + $0xa8] sm:$0xff] }
 0x2c0   :  { %v1172_v12 = vsel %vm290_vm1, %v1049_v7, %v1133_v3  ;;  %v1185_v14 = vpack.c.bf16 %v1180_v44, %v1180_v44  ;;  %v1189_v0 = vpack.c.bf16 %v1184_v58, %v1184_v58  ;;  %v12086_v58 = vld [vmem:[%s13207_s3 + $0x8] sm:$0xff] }
 0x2c1   :  { %v1177_v50 = vsel %vm470_vm9, %v1172_v12, %v1147_v10  ;;  %v12982_v57 = vpop.permute.xlu0 %12981  ;;  %v1102_v34 = vsel %vm478_vm7, %v13613_v45, %v12994_v26 }
 0x2c2   :  { %v12987_v16 = vpop.permute.xlu1 %12986  ;;  %v1182_v17 = vsel %vm474_vm11, %v1177_v50, %v1162_v11  ;;  %v12984_v8 = vunpack.i.h.bf16 %v12982_v57  ;;  %v12983_v18 = vunpack.i.l.bf16 %v12982_v57  ;;  %1493 = vmatmul.bf16.vlgmr.msrb.gmra.mxu3 %v1185_v14  ;;  %v1148_v55 = vrot.slane %v1102_v34, 4  ;;  %v12100_v34 = vld [vmem:[%s13207_s3 + $0x78] sm:$0xff] }
 0x2c3   :  { %v12989_v59 = vunpack.i.h.bf16 %v12987_v16  ;;  %v12988_v19 = vunpack.i.l.bf16 %v12987_v16  ;;  %v1187_v56 = vpack.c.bf16 %v1182_v17, %v1182_v17  ;;  %v1609_v16 = vld [vmem:[#allocation2 + $0x11] sm:$0x3]  ;;  %v1557_v17 = vld [vmem:[#allocation2 + $0x1] sm:$0x3]  ;;  %2032 = vmatpush.bf16.msrb.mxu2 %v12100_v34 }
 0x2c4   :  { %v1100_v23 = vsel %vm478_vm7, %v1076_v15, %v12984_v8  ;;  %v1071_v2 = vsel %vm478_vm7, %v13603_v28, %v12983_v18  ;;  %v1073_v28 = vsel %vm478_vm7, %v1051_v25, %v12993_v22 }
 0x2c5   :  { %v1123_v24 = vsel %vm478_vm7, %v13595_v38, %v12989_v59  ;;  %v1146_v9 = vrot.slane %v1100_v23, 4  ;;  %v1132_v27 = vrot.slane %v1071_v2, 6  ;;  %1519 = vmatmul.bf16.vlgmr.msra.gmra.mxu2 %v1187_v56  ;;  %v1048_v1 = vsel %vm478_vm7, %v1024_v21, %v12988_v19 }
 0x2c6   :  { %v1161_v32 = vrot.slane %v1123_v24, 2  ;;  %v1134_v63 = vrot.slane %v1073_v28, 6  ;;  %v12092_v28 = vld [vmem:[%s13207_s3 + $0x38] sm:$0xff] }
 0x2c7   :  { %v1171_v33 = vsel %vm290_vm1, %v1048_v1, %v1132_v27  ;;  %2019 = vmatpush.bf16.msrb.mxu1 %v12092_v28  ;;  %v1610_v28 = vld [vmem:[#allocation2 + $0x12] sm:$0x3] }
 0x2c8   :  { %v1176_v38 = vsel %vm470_vm9, %v1171_v33, %v1146_v9 }
 0x2c9   :  { %v12997_v39 = vpop.permute.xlu0 %12996  ;;  %v1181_v41 = vsel %vm474_vm11, %v1176_v38, %v1161_v32  ;;  %v12091_v38 = vld [vmem:[%s13207_s3 + $0x30] sm:$0xff] }
 0x2ca   :  { %v12999_v46 = vunpack.i.h.bf16 %v12997_v39  ;;  %v12998_v47 = vunpack.i.l.bf16 %v12997_v39  ;;  %v1186_v48 = vpack.c.bf16 %v1181_v41, %v1181_v41  ;;  %v12108_v39 = vld [vmem:[%s13207_s3 + $0xb8] sm:$0xff]  ;;  %v12099_v41 = vld [vmem:[%s13207_s3 + $0x70] sm:$0xff] }
 0x2cb   :  { %2020 = vmatpush.bf16.msrb.mxu1 %v12091_v38  ;;  %2045 = vmatpush.bf16.msrb.mxu3 %v12108_v39 }
 0x2cc   :  { %v1125_v51 = vsel %vm478_vm7, %v1103_v36, %v12999_v46  ;;  %v1050_v52 = vsel %vm478_vm7, %v13609_v43, %v12998_v47  ;;  %1506 = vmatmul.bf16.vlgmr.msra.gmra.mxu1 %v1186_v48  ;;  %v12090_v36 = vld [vmem:[%s13207_s3 + $0x28] sm:$0xff]  ;;  %v12107_v46 = vld [vmem:[%s13207_s3 + $0xb0] sm:$0xff]  ;;  %2033 = vmatpush.bf16.msrb.mxu2 %v12099_v41  ;;  %v12088_v48 = vld [vmem:[%s13207_s3 + $0x18] sm:$0xff] }
 0x2cd   :  { %v1163_v45 = vrot.slane %v1125_v51, 2  ;;  %v1173_v54 = vsel %vm290_vm1, %v1050_v52, %v1134_v63  ;;  %v12098_v47 = vld [vmem:[%s13207_s3 + $0x68] sm:$0xff]  ;;  %v12116_v63 = vld [vmem:[%s13207_s3 + $0xf8] sm:$0xff]  ;;  %v12087_v51 = vld [vmem:[%s13207_s3 + $0x10] sm:$0xff] }
 0x2ce   :  { %v1178_v60 = vsel %vm470_vm9, %v1173_v54, %v1148_v55  ;;  %v12097_v55 = vld [vmem:[%s13207_s3 + $0x60] sm:$0xff]  ;;  %2058 = vmatpush.bf16.msrb.mxu0 %v12116_v63  ;;  %v12096_v54 = vld [vmem:[%s13207_s3 + $0x58] sm:$0xff] }
 0x2cf   :  { %v1183_v61 = vsel %vm474_vm11, %v1178_v60, %v1163_v45  ;;  %2021 = vmatpush.bf16.msrb.mxu1 %v12090_v36  ;;  %2046 = vmatpush.bf16.msrb.mxu3 %v12107_v46  ;;  %v12105_v52 = vld [vmem:[%s13207_s3 + $0xa0] sm:$0xff]  ;;  %v12115_v45 = vld [vmem:[%s13207_s3 + $0xf0] sm:$0xff]  ;;  %v12104_v60 = vld [vmem:[%s13207_s3 + $0x98] sm:$0xff] }
 0x2d0   :  { %v1188_v62 = vpack.c.bf16 %v1183_v61, %v1183_v61  ;;  %2034 = vmatpush.bf16.msrb.mxu2 %v12098_v47  ;;  %v12114_v61 = vld [vmem:[%s13207_s3 + $0xe8] sm:$0xff] }
 0x2d2   :  { %1532 = vmatmul.bf16.vlgmr.msra.gmra.mxu0 %v1188_v62  ;;  %8844 = vmatmul.msk.bf16.vlgmr.msra.gmra.mxu3 %vm478_vm7, %v1189_v0  ;;  %v12095_v62 = vld [vmem:[%s13207_s3 + $0x50] sm:$0xff]  ;;  %v12085_v0 = vld [vmem:[%s13207_s3] sm:$0xff] }
 0x2d3   :  { %2022 = vmatpush.bf16.msrb.mxu1 %v12089_v40  ;;  %2047 = vmatpush.bf16.msrb.mxu3 %v12106_v35  ;;  %v1558_v35 = vld [vmem:[#allocation2 + $0x2] sm:$0x3] }
 0x2d4   :  { %2035 = vmatpush.bf16.msrb.mxu2 %v12097_v55  ;;  %2059 = vmatpush.bf16.msrb.mxu0 %v12115_v45  ;;  %v1587_v55 = vld [vmem:[#allocation2 + $0xe] sm:$0x3] }
 0x2d7   :  { %2023 = vmatpush.bf16.msrb.mxu1 %v12088_v48  ;;  %2048 = vmatpush.bf16.msrb.mxu3 %v12105_v52 }
 0x2d8   :  { %2036 = vmatpush.bf16.msrb.mxu2 %v12096_v54  ;;  %2060 = vmatpush.bf16.msrb.mxu0 %v12114_v61 }
 0x2db   :  { %2024 = vmatpush.bf16.msrb.mxu1 %v12087_v51  ;;  %2049 = vmatpush.bf16.msrb.mxu3 %v12104_v60 }
 0x2dc   :  { %2037 = vmatpush.bf16.msrb.mxu2 %v12095_v62 }
 0x2df   :  { %2025 = vmatpush.bf16.msrb.mxu1 %v12086_v58 }
 0x2e3   :  { %2026 = vmatpush.bf16.msrb.mxu1 %v12085_v0 }
 0x345   :  { %v1494_v42 = vpop.f32.mrf.mxu3 }
 0x346   :  { %v1495_v43 = vadd.f32 %v13082_v4, %v1494_v42  ;;  %v12103_v42 = vld [vmem:[%s13207_s3 + $0x90] sm:$0xff]  ;;  %v12113_v4 = vld [vmem:[%s13207_s3 + $0xe0] sm:$0xff] }
 0x347   :  { %2050 = vmatpush.bf16.msrb.mxu3 %v12103_v42  ;;  %2061 = vmatpush.bf16.msrb.mxu0 %v12113_v4 }
 0x348   :  { %v1520_v5 = vpop.f32.mrf.mxu2 }
 0x349   :  { %v1507_v6 = vpop.f32.mrf.mxu1 }
 0x34a   :  { %v1508_v3 = vadd.f32 %v1507_v6, %v1495_v43  ;;  %v12102_v6 = vld [vmem:[%s13207_s3 + $0x88] sm:$0xff]  ;;  %v12112_v43 = vld [vmem:[%s13207_s3 + $0xd8] sm:$0xff] }
 0x34b   :  { %2051 = vmatpush.bf16.msrb.mxu3 %v12102_v6  ;;  %2062 = vmatpush.bf16.msrb.mxu0 %v12112_v43 }
 0x34c   :  { %v1521_v12 = vadd.f32 %v1520_v5, %v1508_v3  ;;  %v12094_v5 = vld [vmem:[%s13207_s3 + $0x48] sm:$0xff]  ;;  %v12093_v3 = vld [vmem:[%s13207_s3 + $0x40] sm:$0xff] }
 0x34d   :  { %v1496_v10 = vpop.f32.mrf.mxu3  ;;  %2038 = vmatpush.bf16.msrb.mxu2 %v12094_v5  ;;  %v1669_v5 = vrot.slane %v1587_v55, 6 }
 0x34e   :  { %v12120_v10 = vld [vmem:[%s13207_s3 + $0x118] sm:$0xff] }
 0x34f   :  { %v1533_v7 = vpop.f32.mrf.mxu0  ;;  %2075 = vmatpush.bf16.msra.mxu1 %v12120_v10 }
 0x350   :  { %v1522_v49 = vpop.f32.mrf.mxu2  ;;  %v1534_v44 = vadd.f32 %v1533_v7, %v1521_v12  ;;  %v12101_v7 = vld [vmem:[%s13207_s3 + $0x80] sm:$0xff]  ;;  %v12110_v12 = vld [vmem:[%s13207_s3 + $0xc8] sm:$0xff] }
 0x351   :  { %v1509_v11 = vpop.f32.mrf.mxu1  ;;  %v12111_v49 = vld [vmem:[%s13207_s3 + $0xd0] sm:$0xff]  ;;  %2039 = vmatpush.bf16.msrb.mxu2 %v12093_v3  ;;  %2052 = vmatpush.bf16.msrb.mxu3 %v12101_v7 }
 0x352   :  { %v12119_v11 = vld [vmem:[%s13207_s3 + $0x110] sm:$0xff]  ;;  %2063 = vmatpush.bf16.msrb.mxu0 %v12111_v49 }
 0x353   :  { %2076 = vmatpush.bf16.msra.mxu1 %v12119_v11 }
 0x355   :  { %v1546_v13 = vpop.f32.mrf.mxu3 }
 0x356   :  { %v1547_v37 = vadd.f32 %v1546_v13, %v1534_v44  ;;  %v12118_v44 = vld [vmem:[%s13207_s3 + $0x108] sm:$0xff]  ;;  %2064 = vmatpush.bf16.msrb.mxu0 %v12110_v12 }
 0x357   :  { %v1535_v14 = vpop.f32.mrf.mxu0  ;;  %2077 = vmatpush.bf16.msra.mxu1 %v12118_v44 }
 0x358   :  { %v1550_v50 = vadd.f32 %v1547_v37, %v13449_v53  ;;  %v12109_v37 = vld [vmem:[%s13207_s3 + $0xc0] sm:$0xff] }
 0x359   :  { %v12117_v14 = vld [vmem:[%s13207_s3 + $0x100] sm:$0xff]  ;;  %s15647_s3 = sld [smem:[#allocation10_spill]] }
 0x35a   :  { %v13714_v15 = vmax.f32 %v1550_v50, 0.0  ;;  %2065 = vmatpush.bf16.msrb.mxu0 %v12109_v37 }
 0x35b   :  { %2078 = vmatpush.bf16.msra.mxu1 %v12117_v14 }
 0x35c   :  { %1552 = vst.msk [vmem:[#allocation2 + $0x5] sm:$0x3] %vm338_vm3, %v13714_v15 }
 0x35d   :  { %1553 = vst.msk [vmem:[#allocation2 + $0x7] sm:$0xc] %vm484_vm13, %v13714_v15  ;;  %v1548_v57 = vpop.f32.mrf.mxu3 }
 0x35e   :  { %1554 = vst.msk [vmem:[#allocation2 + $0x11] sm:$0x30] %vm346_vm4, %v13714_v15  ;;  %v1608_v57 = vld [vmem:[#allocation2 + $0x10] sm:$0x3] }
 0x35f   :  { %1555 = vst.msk [vmem:[#allocation2 + $0x13] sm:$0xc0] %vm487_vm14, %v13714_v15 }
 0x363   :  { %v13724_v8 = vld [vmem:[#allocation2 + $0x5] sm:$0x3] }
 0x364   :  { %v13726_v53 = vld [vmem:[#allocation2 + $0x8] sm:$0x3]  ;;  %v13000_v18 = vpack.i.bf16 %v1609_v16, %v13724_v8  ;;  %v13739_v56 = vld [vmem:[#allocation2 + $0x4] sm:$0x3]  ;;  %v13741_v22 = vld [vmem:[#allocation2 + $0xa] sm:$0x3] }
 0x365   :  { %v13729_v59 = vld [vmem:[#allocation2 + $0x15] sm:$0x3]  ;;  %v13743_v23 = vld [vmem:[#allocation2 + $0x6] sm:$0x3]  ;;  %v13015_v26 = vpack.i.bf16 %v13741_v22, %v13739_v56  ;;  %v13762_v30 = vld [vmem:[#allocation2 + $0x9] sm:$0x3] }
 0x366   :  { %v13731_v19 = vld [vmem:[#allocation2 + $0x14] sm:$0x3]  ;;  %v13005_v20 = vpack.i.bf16 %v13729_v59, %v1557_v17  ;;  %13001 = vrot.lane.b32.xlu1 %v13000_v18, %s13162_s0  ;;  %v13745_v2 = vld [vmem:[#allocation2 + $0x16] sm:$0x3]  ;;  %v13747_v24 = vld [vmem:[#allocation2 + $0x18] sm:$0x3]  ;;  %v13035_v33 = vpack.i.bf16 %v1638_v31, %v13762_v30 }
 0x367   :  { %v13010_v21 = vpack.i.bf16 %v13731_v19, %v13726_v53  ;;  %v13749_v25 = vld [vmem:[#allocation2 + $0x1a] sm:$0x3]  ;;  %v13020_v9 = vpack.i.bf16 %v13745_v2, %v13747_v24 }
 0x368   :  { %13006 = vrot.lane.b32.xlu2 %v13005_v20, %s13162_s0  ;;  %v13025_v27 = vpack.i.bf16 %v13749_v25, %v13743_v23  ;;  %v13760_v1 = vld [vmem:[#allocation2 + $0x19] sm:$0x3]  ;;  %v1683_v44 = vrot.slane %v13749_v25, 4 }
 0x369   :  { %13011 = vrot.lane.b32.xlu0 %v13010_v21, %s13162_s0  ;;  %v13030_v32 = vpack.i.bf16 %v13760_v1, %v1586_v29  ;;  %v1556_v21 = vld [vmem:[#allocation2] sm:$0x3] }
 0x36e   :  { %13016 = vrot.lane.b32.xlu1 %v13015_v26, %s13162_s0 }
 0x370   :  { %13021 = vrot.lane.b32.xlu2 %v13020_v9, %s13162_s0 }
 0x371   :  { %13026 = vrot.lane.b32.xlu0 %v13025_v27, %s13162_s0 }
 0x376   :  { %13031 = vrot.lane.b32.xlu1 %v13030_v32, %s13162_s0 }
 0x378   :  { %13036 = vrot.lane.b32.xlu2 %v13035_v33, %s13162_s0 }
 0x3c2   :  { %v13007_v13 = vpop.permute.xlu2 %13006 }
 0x3c3   :  { %v13009_v50 = vunpack.i.h.bf16 %v13007_v13  ;;  %v13008_v17 = vunpack.i.l.bf16 %v13007_v13 }
 0x3c5   :  { %v1656_v26 = vsel %vm478_vm7, %v13731_v19, %v13009_v50  ;;  %v1581_v36 = vsel %vm478_vm7, %v1556_v21, %v13008_v17  ;;  %v1639_v50 = vld [vmem:[#allocation2 + $0x1e] sm:$0x3] }
 0x3c6   :  { %v1694_v41 = vrot.slane %v1656_v26, 2 }
 0x3ca   :  { %v13022_v9 = vpop.permute.xlu2 %13021 }
 0x3cb   :  { %v13023_v39 = vunpack.i.l.bf16 %v13022_v9  ;;  %v13024_v40 = vunpack.i.h.bf16 %v13022_v9  ;;  %v1698_v9 = vrot.slane %v1639_v50, 2 }
 0x3cd   :  { %v1657_v51 = vsel %vm478_vm7, %v13745_v2, %v13023_v39  ;;  %v1635_v58 = vsel %vm478_vm7, %v13729_v59, %v13024_v40 }
 0x3ce   :  { %v1695_v6 = vrot.slane %v1657_v51, 2  ;;  %v1681_v3 = vrot.slane %v1635_v58, 4 }
 0x3d2   :  { %v13037_v2 = vpop.permute.xlu2 %13036 }
 0x3d3   :  { %v13039_v13 = vunpack.i.h.bf16 %v13037_v2 }
 0x3d8   :  { %v13002_v16 = vpop.permute.xlu1 %13001 }
 0x3d9   :  { %v13004_v18 = vunpack.i.h.bf16 %v13002_v16  ;;  %v13003_v20 = vunpack.i.l.bf16 %v13002_v16  ;;  %v1585_v16 = vld [vmem:[#allocation2 + $0xc] sm:$0x3] }
 0x3db   :  { %v13012_v27 = vpop.permute.xlu0 %13011  ;;  %v1633_v32 = vsel %vm478_vm7, %v1608_v57, %v13004_v18  ;;  %v1604_v33 = vsel %vm478_vm7, %v13739_v56, %v13003_v20  ;;  %v1637_v57 = vld [vmem:[#allocation2 + $0x1c] sm:$0x3]  ;;  %v13038_v18 = vunpack.i.l.bf16 %v13037_v2 }
 0x3dc   :  { %v13014_v29 = vunpack.i.h.bf16 %v13012_v27  ;;  %v13013_v31 = vunpack.i.l.bf16 %v13012_v27  ;;  %v1679_v38 = vrot.slane %v1633_v32, 4  ;;  %v1665_v34 = vrot.slane %v1604_v33, 6 }
 0x3dd   :  { %v1659_v27 = vsel %vm478_vm7, %v1637_v57, %v13039_v13  ;;  %v1584_v33 = vsel %vm478_vm7, %v13726_v53, %v13038_v18 }
 0x3de   :  { %v1704_v46 = vsel %vm290_vm1, %v1581_v36, %v1665_v34  ;;  %v1634_v19 = vsel %vm478_vm7, %v1610_v28, %v13014_v29  ;;  %v1605_v47 = vsel %vm478_vm7, %v13743_v23, %v13013_v31  ;;  %v1697_v28 = vrot.slane %v1659_v27, 2  ;;  %v12135_v27 = vld [vmem:[%s13217_s14 + $0x70] sm:$0xff] }
 0x3df   :  { %v1709_v48 = vsel %vm470_vm9, %v1704_v46, %v1679_v38  ;;  %v1680_v60 = vrot.slane %v1634_v19, 4  ;;  %v1666_v61 = vrot.slane %v1605_v47, 6  ;;  %v13083_v46 = vld [vmem:[%s13212_s8] ss:$0 sm:$0xff]  ;;  %s15648_s8 = sld [smem:[#allocation17_spill]] }
 0x3e0   :  { %v13017_v63 = vpop.permute.xlu1 %13016  ;;  %v1714_v56 = vsel %vm474_vm11, %v1709_v48, %v1694_v41 }
 0x3e1   :  { %v13019_v52 = vunpack.i.h.bf16 %v13017_v63  ;;  %v13018_v45 = vunpack.i.l.bf16 %v13017_v63  ;;  %v1719_v54 = vpack.c.bf16 %v1714_v56, %v1714_v56 }
 0x3e3   :  { %v13027_v62 = vpop.permute.xlu0 %13026  ;;  %v1606_v42 = vsel %vm478_vm7, %v13762_v30, %v13019_v52  ;;  %v1582_v4 = vsel %vm478_vm7, %v1558_v35, %v13018_v45  ;;  %2027 = vmatmul.bf16.vlgmr.msrb.gmra.mxu1 %v1719_v54 }
 0x3e4   :  { %v13029_v23 = vunpack.i.h.bf16 %v13027_v62  ;;  %v13028_v0 = vunpack.i.l.bf16 %v13027_v62  ;;  %v1667_v43 = vrot.slane %v1606_v42, 6  ;;  %v1705_v10 = vsel %vm290_vm1, %v1582_v4, %v1666_v61  ;;  %v2120_v62 = vld [vmem:[#allocation2 + $0xe] sm:$0x3]  ;;  %v2090_v42 = vld [vmem:[#allocation2 + $0x1] sm:$0x3] }
 0x3e5   :  { %v1710_v49 = vsel %vm470_vm9, %v1705_v10, %v1680_v60 }
 0x3e6   :  { %v1658_v59 = vsel %vm478_vm7, %v13760_v1, %v13029_v23  ;;  %v1583_v7 = vsel %vm478_vm7, %v13724_v8, %v13028_v0  ;;  %v1715_v12 = vsel %vm474_vm11, %v1710_v49, %v1695_v6  ;;  %v1708_v1 = vsel %vm290_vm1, %v13741_v22, %v1669_v5  ;;  %v2142_v23 = vld [vmem:[#allocation2 + $0x11] sm:$0x3] }
 0x3e7   :  { %v1696_v11 = vrot.slane %v1658_v59, 2  ;;  %v1706_v30 = vsel %vm290_vm1, %v1583_v7, %v1667_v43  ;;  %v1720_v37 = vpack.c.bf16 %v1715_v12, %v1715_v12  ;;  %v1713_v25 = vsel %vm470_vm9, %v1708_v1, %v1683_v44 }
 0x3e8   :  { %v1711_v14 = vsel %vm470_vm9, %v1706_v30, %v1681_v3  ;;  %v13032_v8 = vpop.permute.xlu1 %13031  ;;  %v1718_v34 = vsel %vm474_vm11, %v1713_v25, %v1698_v9  ;;  %v2202_v0 = vrot.slane %v2120_v62, 6  ;;  %v12136_v9 = vld [vmem:[%s13217_s14 + $0x78] sm:$0xff]  ;;  %v12126_v25 = vld [vmem:[%s13217_s14 + $0x28] sm:$0xff]  ;;  %v12145_v62 = vld [vmem:[%s13217_s14 + $0xc0] sm:$0xff] }
 0x3e9   :  { %v1716_v17 = vsel %vm474_vm11, %v1711_v14, %v1696_v11  ;;  %v13034_v20 = vunpack.i.h.bf16 %v13032_v8  ;;  %v13033_v21 = vunpack.i.l.bf16 %v13032_v8  ;;  %2040 = vmatmul.bf16.vlgmr.msrb.gmra.mxu2 %v1720_v37  ;;  %v2119_v14 = vld [vmem:[#allocation2 + $0xd] sm:$0x3]  ;;  %2565 = vmatpush.bf16.msra.mxu3 %v12136_v9 }
 0x3ea   :  { %v1721_v26 = vpack.c.bf16 %v1716_v17, %v1716_v17  ;;  %v2171_v17 = vld [vmem:[#allocation2 + $0x1d] sm:$0x3] }
 0x3eb   :  { %v1636_v29 = vsel %vm478_vm7, %v13747_v24, %v13034_v20  ;;  %v1607_v22 = vsel %vm478_vm7, %v1585_v16, %v13033_v21  ;;  %v1723_v24 = vpack.c.bf16 %v1718_v34, %v1718_v34  ;;  %v12128_v21 = vld [vmem:[%s13217_s14 + $0x38] sm:$0xff]  ;;  %v12133_v34 = vld [vmem:[%s13217_s14 + $0x60] sm:$0xff] }
 0x3ec   :  { %2053 = vmatmul.bf16.vlgmr.msrb.gmra.mxu3 %v1721_v26  ;;  %v1682_v31 = vrot.slane %v1636_v29, 4  ;;  %v1668_v32 = vrot.slane %v1607_v22, 6  ;;  %2552 = vmatpush.bf16.msra.mxu2 %v12128_v21  ;;  %v12127_v26 = vld [vmem:[%s13217_s14 + $0x30] sm:$0xff]  ;;  %v12125_v29 = vld [vmem:[%s13217_s14 + $0x20] sm:$0xff]  ;;  %v12144_v22 = vld [vmem:[%s13217_s14 + $0xb8] sm:$0xff] }
 0x3ed   :  { %2566 = vmatpush.bf16.msra.mxu3 %v12135_v27  ;;  %2578 = vmatpush.bf16.msrb.mxu1 %v12144_v22 }
 0x3ee   :  { %v1707_v38 = vsel %vm290_vm1, %v1584_v33, %v1668_v32  ;;  %v12134_v32 = vld [vmem:[%s13217_s14 + $0x68] sm:$0xff]  ;;  %v12143_v33 = vld [vmem:[%s13217_s14 + $0xb0] sm:$0xff] }
 0x3ef   :  { %v1712_v36 = vsel %vm470_vm9, %v1707_v38, %v1682_v31  ;;  %v12152_v31 = vld [vmem:[%s13217_s14 + $0xf8] sm:$0xff] }
 0x3f0   :  { %v1717_v39 = vsel %vm474_vm11, %v1712_v36, %v1697_v28  ;;  %2553 = vmatpush.bf16.msra.mxu2 %v12127_v26  ;;  %2591 = vmatpush.bf16.msra.mxu0 %v12152_v31  ;;  %v12151_v28 = vld [vmem:[%s13217_s14 + $0xf0] sm:$0xff]  ;;  %v12124_v38 = vld [vmem:[%s13217_s14 + $0x18] sm:$0xff]  ;;  %v2091_v31 = vld [vmem:[#allocation2 + $0x2] sm:$0x3] }
 0x3f1   :  { %v1722_v41 = vpack.c.bf16 %v1717_v39, %v1717_v39  ;;  %2567 = vmatpush.bf16.msra.mxu3 %v12134_v32  ;;  %2579 = vmatpush.bf16.msrb.mxu1 %v12143_v33  ;;  %v12123_v36 = vld [vmem:[%s13217_s14 + $0x10] sm:$0xff]  ;;  %v12132_v39 = vld [vmem:[%s13217_s14 + $0x58] sm:$0xff] }
 0x3f3   :  { %2066 = vmatmul.bf16.vlgmr.msrb.gmra.mxu0 %v1722_v41  ;;  %8989 = vmatmul.msk.bf16.vlgmr.msra.gmra.mxu1 %vm478_vm7, %v1723_v24  ;;  %v12142_v41 = vld [vmem:[%s13217_s14 + $0xa8] sm:$0xff] }
 0x3f4   :  { %2554 = vmatpush.bf16.msra.mxu2 %v12126_v25  ;;  %2592 = vmatpush.bf16.msra.mxu0 %v12151_v28  ;;  %v12150_v24 = vld [vmem:[%s13217_s14 + $0xe8] sm:$0xff] }
 0x3f5   :  { %2568 = vmatpush.bf16.msra.mxu3 %v12133_v34  ;;  %2580 = vmatpush.bf16.msrb.mxu1 %v12142_v41 }
 0x3f8   :  { %2555 = vmatpush.bf16.msra.mxu2 %v12125_v29  ;;  %2593 = vmatpush.bf16.msra.mxu0 %v12150_v24 }
 0x3f9   :  { %2569 = vmatpush.bf16.msra.mxu3 %v12132_v39 }
 0x3fc   :  { %2556 = vmatpush.bf16.msra.mxu2 %v12124_v38 }
 0x400   :  { %2557 = vmatpush.bf16.msra.mxu2 %v12123_v36 }
 0x460   :  { %v2028_v40 = vpop.f32.mrf.mxu1 }
 0x461   :  { %v2029_v47 = vadd.f32 %v13083_v46, %v2028_v40  ;;  %v12122_v40 = vld [vmem:[%s13217_s14 + $0x8] sm:$0xff]  ;;  %v12131_v46 = vld [vmem:[%s13217_s14 + $0x50] sm:$0xff] }
 0x462   :  { %2558 = vmatpush.bf16.msra.mxu2 %v12122_v40  ;;  %2570 = vmatpush.bf16.msra.mxu3 %v12131_v46 }
 0x468   :  { %v2030_v19 = vpop.f32.mrf.mxu1 }
 0x469   :  { %v12141_v19 = vld [vmem:[%s13217_s14 + $0xa0] sm:$0xff] }
 0x46a   :  { %2581 = vmatpush.bf16.msrb.mxu1 %v12141_v19 }
 0x46c   :  { %v2041_v48 = vpop.f32.mrf.mxu2 }
 0x46d   :  { %v2042_v53 = vadd.f32 %v2041_v48, %v2029_v47  ;;  %v12149_v47 = vld [vmem:[%s13217_s14 + $0xe0] sm:$0xff] }
 0x46e   :  { %v12121_v48 = vld [vmem:[%s13217_s14] sm:$0xff]  ;;  %2594 = vmatpush.bf16.msra.mxu0 %v12149_v47 }
 0x46f   :  { %v2054_v35 = vpop.f32.mrf.mxu3  ;;  %2559 = vmatpush.bf16.msra.mxu2 %v12121_v48  ;;  %v2118_v48 = vld [vmem:[#allocation2 + $0xc] sm:$0x3] }
 0x470   :  { %v2055_v63 = vadd.f32 %v2054_v35, %v2042_v53  ;;  %v2067_v56 = vpop.f32.mrf.mxu0  ;;  %v2080_v55 = vpop.f32.mrf.mxu1  ;;  %v12130_v53 = vld [vmem:[%s13217_s14 + $0x48] sm:$0xff]  ;;  %v12140_v35 = vld [vmem:[%s13217_s14 + $0x98] sm:$0xff] }
 0x471   :  { %2571 = vmatpush.bf16.msra.mxu3 %v12130_v53  ;;  %2582 = vmatpush.bf16.msrb.mxu1 %v12140_v35 }
 0x472   :  { %v2068_v51 = vadd.f32 %v2067_v56, %v2055_v63  ;;  %v12148_v63 = vld [vmem:[%s13217_s14 + $0xd8] sm:$0xff] }
 0x473   :  { %v12156_v56 = vld [vmem:[%s13217_s14 + $0x118] sm:$0xff]  ;;  %2595 = vmatpush.bf16.msra.mxu0 %v12148_v63 }
 0x474   :  { %v2081_v52 = vadd.f32 %v2080_v55, %v2068_v51  ;;  %v2043_v45 = vpop.f32.mrf.mxu2  ;;  %2608 = vmatpush.bf16.msrb.mxu2 %v12156_v56  ;;  %v12129_v55 = vld [vmem:[%s13217_s14 + $0x40] sm:$0xff]  ;;  %v12139_v51 = vld [vmem:[%s13217_s14 + $0x90] sm:$0xff] }
 0x475   :  { %v12155_v45 = vld [vmem:[%s13217_s14 + $0x110] sm:$0xff]  ;;  %2572 = vmatpush.bf16.msra.mxu3 %v12129_v55  ;;  %2583 = vmatpush.bf16.msrb.mxu1 %v12139_v51 }
 0x476   :  { %v2084_v54 = vmax.f32 %v2081_v52, 0.0  ;;  %v12147_v52 = vld [vmem:[%s13217_s14 + $0xd0] sm:$0xff] }
 0x477   :  { %v2056_v58 = vpop.f32.mrf.mxu3  ;;  %2596 = vmatpush.bf16.msra.mxu0 %v12147_v52  ;;  %v2172_v52 = vld [vmem:[#allocation2 + $0x1e] sm:$0x3] }
 0x478   :  { %2085 = vst.msk [vmem:[#allocation2 + $0x5] sm:$0x3] %vm338_vm3, %v2084_v54  ;;  %v2069_v60 = vpop.f32.mrf.mxu0  ;;  %v2082_v61 = vpop.f32.mrf.mxu1  ;;  %2609 = vmatpush.bf16.msrb.mxu2 %v12155_v45  ;;  %v12146_v58 = vld [vmem:[%s13217_s14 + $0xc8] sm:$0xff] }
 0x479   :  { %2086 = vst.msk [vmem:[#allocation2 + $0x7] sm:$0xc] %vm484_vm13, %v2084_v54  ;;  %v12154_v60 = vld [vmem:[%s13217_s14 + $0x108] sm:$0xff]  ;;  %v12137_v61 = vld [vmem:[%s13217_s14 + $0x80] sm:$0xff] }
 0x47a   :  { %2087 = vst.msk [vmem:[#allocation2 + $0x11] sm:$0x30] %vm346_vm4, %v2084_v54 }
 0x47b   :  { %2088 = vst.msk [vmem:[#allocation2 + $0x13] sm:$0xc0] %vm487_vm14, %v2084_v54  ;;  %v12138_v54 = vld [vmem:[%s13217_s14 + $0x88] sm:$0xff]  ;;  %2597 = vmatpush.bf16.msra.mxu0 %v12146_v58 }
 0x47c   :  { %2584 = vmatpush.bf16.msrb.mxu1 %v12138_v54  ;;  %2610 = vmatpush.bf16.msrb.mxu2 %v12154_v60 }
 0x47f   :  { %v13853_v4 = vld [vmem:[#allocation2 + $0x5] sm:$0x3]  ;;  %2598 = vmatpush.bf16.msra.mxu0 %v12145_v62 }
 0x480   :  { %v13855_v5 = vld [vmem:[#allocation2 + $0x8] sm:$0x3]  ;;  %v13040_v6 = vpack.i.bf16 %v2142_v23, %v13853_v4  ;;  %v2097_v2 = vld [vmem:[#allocation2 + $0xa] sm:$0x3]  ;;  %v13869_v30 = vld [vmem:[#allocation2 + $0x4] sm:$0x3]  ;;  %2585 = vmatpush.bf16.msrb.mxu1 %v12137_v61 }
 0x481   :  { %v13858_v43 = vld [vmem:[#allocation2 + $0x15] sm:$0x3]  ;;  %v2241_v7 = vsel %vm290_vm1, %v2097_v2, %v2202_v0  ;;  %v13878_v37 = vld [vmem:[#allocation2 + $0x6] sm:$0x3]  ;;  %v13889_v8 = vld [vmem:[#allocation2 + $0x9] sm:$0x3] }
 0x482   :  { %v13860_v10 = vld [vmem:[#allocation2 + $0x14] sm:$0x3]  ;;  %v13045_v3 = vpack.i.bf16 %v13858_v43, %v2090_v42  ;;  %13041 = vrot.lane.b32.xlu0 %v13040_v6, %s13162_s0  ;;  %v2149_v49 = vld [vmem:[#allocation2 + $0x1a] sm:$0x3]  ;;  %v13871_v12 = vld [vmem:[#allocation2 + $0x18] sm:$0x3]  ;;  %v13065_v57 = vpack.i.bf16 %v2119_v14, %v13878_v37  ;;  %v13075_v20 = vpack.i.bf16 %v2171_v17, %v13889_v8 }
 0x483   :  { %v13050_v59 = vpack.i.bf16 %v13860_v10, %v13855_v5  ;;  %v2216_v11 = vrot.slane %v2149_v49, 4  ;;  %v13876_v13 = vld [vmem:[#allocation2 + $0x16] sm:$0x3]  ;;  %v13055_v50 = vpack.i.bf16 %v13871_v12, %v13869_v30  ;;  %v13887_v16 = vld [vmem:[#allocation2 + $0x19] sm:$0x3]  ;;  %v12153_v23 = vld [vmem:[%s13217_s14 + $0x100] sm:$0xff] }
 0x484   :  { %13046 = vrot.lane.b32.xlu1 %v13045_v3, %s13162_s0  ;;  %v13060_v1 = vpack.i.bf16 %v13876_v13, %v2097_v2  ;;  %v13070_v18 = vpack.i.bf16 %v13887_v16, %v2149_v49  ;;  %2611 = vmatpush.bf16.msrb.mxu2 %v12153_v23  ;;  %v2141_v42 = vld [vmem:[#allocation2 + $0x10] sm:$0x3]  ;;  %v2089_v49 = vld [vmem:[#allocation2] sm:$0x3]  ;;  %v2143_v17 = vld [vmem:[#allocation2 + $0x12] sm:$0x3] }
 0x485   :  { %13051 = vrot.lane.b32.xlu2 %v13050_v59, %s13162_s0  ;;  %v13874_v44 = vsel %vm470_vm9, %v2241_v7, %v2216_v11  ;;  %v2170_v23 = vld [vmem:[#allocation2 + $0x1c] sm:$0x3]  ;;  %s15649_s14 = sld [smem:[#allocation12_spill]] }
 0x48a   :  { %13056 = vrot.lane.b32.xlu0 %v13055_v50, %s13162_s0 }
 0x48c   :  { %13061 = vrot.lane.b32.xlu1 %v13060_v1, %s13162_s0 }
 0x48d   :  { %13066 = vrot.lane.b32.xlu2 %v13065_v57, %s13162_s0 }
 0x492   :  { %13071 = vrot.lane.b32.xlu0 %v13070_v18, %s13162_s0 }
 0x494   :  { %13076 = vrot.lane.b32.xlu1 %v13075_v20, %s13162_s0 }
 0x4df   :  { %v13052_v0 = vpop.permute.xlu2 %13051 }
 0x4e0   :  { %v13054_v59 = vunpack.i.h.bf16 %v13052_v0  ;;  %v13053_v7 = vunpack.i.l.bf16 %v13052_v0 }
 0x4e2   :  { %v2167_v27 = vsel %vm478_vm7, %v2143_v17, %v13054_v59  ;;  %v2138_v29 = vsel %vm478_vm7, %v13878_v37, %v13053_v7 }
 0x4e3   :  { %v2213_v36 = vrot.slane %v2167_v27, 4  ;;  %v13084_v27 = vld [vmem:[%s13222_s19] ss:$0 sm:$0xff]  ;;  %s15650_s19 = sld [smem:[#allocation19_spill]] }
 0x4e7   :  { %v13067_v33 = vpop.permute.xlu2 %13066 }
 0x4e8   :  { %v13069_v46 = vunpack.i.h.bf16 %v13067_v33  ;;  %v13068_v53 = vunpack.i.l.bf16 %v13067_v33 }
 0x4ea   :  { %v2140_v45 = vsel %vm478_vm7, %v2118_v48, %v13069_v46  ;;  %v2116_v58 = vsel %vm478_vm7, %v13853_v4, %v13068_v53 }
 0x4eb   :  { %v2201_v59 = vrot.slane %v2140_v45, 6  ;;  %v12165_v45 = vld [vmem:[%s13227_s24 + $0x40] sm:$0xff] }
 0x4f4   :  { %v13042_v6 = vpop.permute.xlu0 %13041 }
 0x4f5   :  { %v13044_v2 = vunpack.i.h.bf16 %v13042_v6  ;;  %v13043_v3 = vunpack.i.l.bf16 %v13042_v6 }
 0x4f6   :  { %v13047_v11 = vpop.permute.xlu1 %13046 }
 0x4f7   :  { %v13049_v14 = vunpack.i.h.bf16 %v13047_v11  ;;  %v13048_v50 = vunpack.i.l.bf16 %v13047_v11  ;;  %v2166_v1 = vsel %vm478_vm7, %v2141_v42, %v13044_v2  ;;  %v2137_v57 = vsel %vm478_vm7, %v13869_v30, %v13043_v3 }
 0x4f8   :  { %v2212_v18 = vrot.slane %v2166_v1, 4  ;;  %v2198_v20 = vrot.slane %v2137_v57, 6 }
 0x4f9   :  { %v2114_v21 = vsel %vm478_vm7, %v2089_v49, %v13048_v50  ;;  %v2189_v26 = vsel %vm478_vm7, %v13860_v10, %v13049_v14  ;;  %v2199_v10 = vrot.slane %v2138_v29, 6  ;;  %v12161_v29 = vld [vmem:[%s13227_s24 + $0x20] sm:$0xff] }
 0x4fa   :  { %v2227_v9 = vrot.slane %v2189_v26, 2  ;;  %v2237_v25 = vsel %vm290_vm1, %v2114_v21, %v2198_v20  ;;  %v12164_v21 = vld [vmem:[%s13227_s24 + $0x38] sm:$0xff]  ;;  %v12163_v26 = vld [vmem:[%s13227_s24 + $0x30] sm:$0xff] }
 0x4fb   :  { %v2242_v22 = vsel %vm470_vm9, %v2237_v25, %v2212_v18  ;;  %2776 = vmatpush.bf16.msrb.mxu3 %v12164_v21  ;;  %v12162_v25 = vld [vmem:[%s13227_s24 + $0x28] sm:$0xff]  ;;  %v12191_v21 = vld [vmem:[%s15640_s5 + $0x30] sm:$0xff] }
 0x4fc   :  { %v13057_v30 = vpop.permute.xlu0 %13056  ;;  %v2247_v32 = vsel %vm474_vm11, %v2242_v22, %v2227_v9  ;;  %v12172_v9 = vld [vmem:[%s13227_s24 + $0x78] sm:$0xff] }
 0x4fd   :  { %v13059_v28 = vunpack.i.h.bf16 %v13057_v30  ;;  %v13058_v38 = vunpack.i.l.bf16 %v13057_v30  ;;  %v2252_v34 = vpack.c.bf16 %v2247_v32, %v2247_v32  ;;  %2789 = vmatpush.bf16.msra.mxu1 %v12172_v9  ;;  %v12190_v9 = vld [vmem:[%s15640_s5 + $0x28] sm:$0xff] }
 0x4fe   :  { %v13062_v39 = vpop.permute.xlu1 %13061 }
 0x4ff   :  { %v13064_v41 = vunpack.i.h.bf16 %v13062_v39  ;;  %v13063_v24 = vunpack.i.l.bf16 %v13062_v39  ;;  %v2190_v40 = vsel %vm478_vm7, %v13876_v13, %v13059_v28  ;;  %v2115_v37 = vsel %vm478_vm7, %v2091_v31, %v13058_v38  ;;  %2560 = vmatmul.bf16.vlgmr.msra.gmra.mxu2 %v2252_v34  ;;  %2777 = vmatpush.bf16.msrb.mxu3 %v12163_v26  ;;  %v12160_v28 = vld [vmem:[%s13227_s24 + $0x18] sm:$0xff]  ;;  %v13085_v26 = vld [vmem:[%s15641_s9] ss:$0 sm:$0xff] }
 0x500   :  { %v2228_v19 = vrot.slane %v2190_v40, 2  ;;  %v2238_v47 = vsel %vm290_vm1, %v2115_v37, %v2199_v10  ;;  %v12158_v40 = vld [vmem:[%s13227_s24 + $0x8] sm:$0xff] }
 0x501   :  { %v2139_v35 = vsel %vm478_vm7, %v13889_v8, %v13063_v24  ;;  %v2243_v63 = vsel %vm470_vm9, %v2238_v47, %v2213_v36  ;;  %v2168_v56 = vsel %vm478_vm7, %v13858_v43, %v13064_v41  ;;  %v2231_v43 = vrot.slane %v2172_v52, 2  ;;  %v12159_v36 = vld [vmem:[%s13227_s24 + $0x10] sm:$0xff]  ;;  %v12166_v52 = vld [vmem:[%s13227_s24 + $0x48] sm:$0xff] }
 0x502   :  { %v2200_v55 = vrot.slane %v2139_v35, 6  ;;  %v2248_v13 = vsel %vm474_vm11, %v2243_v63, %v2228_v19  ;;  %v2214_v60 = vrot.slane %v2168_v56, 4  ;;  %v12157_v63 = vld [vmem:[%s13227_s24] sm:$0xff]  ;;  %v12171_v56 = vld [vmem:[%s13227_s24 + $0x70] sm:$0xff] }
 0x503   :  { %v2253_v51 = vpack.c.bf16 %v2248_v13, %v2248_v13  ;;  %2778 = vmatpush.bf16.msrb.mxu3 %v12162_v25  ;;  %2790 = vmatpush.bf16.msra.mxu1 %v12171_v56  ;;  %v12168_v13 = vld [vmem:[%s13227_s24 + $0x58] sm:$0xff] }
 0x504   :  { %v13072_v54 = vpop.permute.xlu0 %13071  ;;  %v2239_v8 = vsel %vm290_vm1, %v2116_v58, %v2200_v55  ;;  %v12170_v55 = vld [vmem:[%s13227_s24 + $0x68] sm:$0xff] }
 0x505   :  { %v13074_v61 = vunpack.i.h.bf16 %v13072_v54  ;;  %v13073_v62 = vunpack.i.l.bf16 %v13072_v54  ;;  %2573 = vmatmul.bf16.vlgmr.msra.gmra.mxu3 %v2253_v51  ;;  %v2244_v14 = vsel %vm470_vm9, %v2239_v8, %v2214_v60  ;;  %v12167_v51 = vld [vmem:[%s13227_s24 + $0x50] sm:$0xff]  ;;  %v12176_v54 = vld [vmem:[%s13237_s6 + $0x18] sm:$0xff] }
 0x506   :  { %v13077_v0 = vpop.permute.xlu1 %13076 }
 0x507   :  { %v13079_v42 = vunpack.i.h.bf16 %v13077_v0  ;;  %v13078_v6 = vunpack.i.l.bf16 %v13077_v0  ;;  %v2169_v2 = vsel %vm478_vm7, %v13871_v12, %v13074_v61  ;;  %v2191_v3 = vsel %vm478_vm7, %v13887_v16, %v13073_v62  ;;  %2779 = vmatpush.bf16.msrb.mxu3 %v12161_v29  ;;  %2791 = vmatpush.bf16.msra.mxu1 %v12170_v55  ;;  %v12175_v61 = vld [vmem:[%s13237_s6 + $0x10] sm:$0xff]  ;;  %v12174_v0 = vld [vmem:[%s13237_s6 + $0x8] sm:$0xff]  ;;  %v12189_v29 = vld [vmem:[%s15640_s5 + $0x20] sm:$0xff] }
 0x508   :  { %v2215_v7 = vrot.slane %v2169_v2, 4  ;;  %v2229_v4 = vrot.slane %v2191_v3, 2  ;;  %v2251_v16 = vsel %vm474_vm11, %v13874_v44, %v2231_v43  ;;  %v12173_v43 = vld [vmem:[%s13237_s6] sm:$0xff]  ;;  %s15652_s6 = sld [smem:[#allocation21_spill]] }
 0x509   :  { %v2192_v49 = vsel %vm478_vm7, %v2170_v23, %v13079_v42  ;;  %v2117_v11 = vsel %vm478_vm7, %v13855_v5, %v13078_v6  ;;  %v2256_v20 = vpack.c.bf16 %v2251_v16, %v2251_v16  ;;  %v12184_v42 = vld [vmem:[%s13247_s20 + $0x38] sm:$0xff]  ;;  %v12183_v6 = vld [vmem:[%s13247_s20 + $0x30] sm:$0xff] }
 0x50a   :  { %v2230_v50 = vrot.slane %v2192_v49, 2  ;;  %v2240_v1 = vsel %vm290_vm1, %v2117_v11, %v2201_v59  ;;  %v2249_v12 = vsel %vm474_vm11, %v2244_v14, %v2229_v4  ;;  %2925 = vmatpush.bf16.msra.mxu2 %v12184_v42  ;;  %v12179_v16 = vld [vmem:[%s13247_s20 + $0x10] sm:$0xff] }
 0x50b   :  { %v2254_v57 = vpack.c.bf16 %v2249_v12, %v2249_v12  ;;  %v2245_v17 = vsel %vm470_vm9, %v2240_v1, %v2215_v7  ;;  %2780 = vmatpush.bf16.msrb.mxu3 %v12160_v28  ;;  %v12181_v1 = vld [vmem:[%s13247_s20 + $0x20] sm:$0xff]  ;;  %v12180_v12 = vld [vmem:[%s13247_s20 + $0x18] sm:$0xff] }
 0x50c   :  { %v2250_v18 = vsel %vm474_vm11, %v2245_v17, %v2230_v50  ;;  %v12182_v50 = vld [vmem:[%s13247_s20 + $0x28] sm:$0xff]  ;;  %v12177_v17 = vld [vmem:[%s13247_s20] sm:$0xff] }
 0x50d   :  { %2586 = vmatmul.bf16.vlgmr.msrb.gmra.mxu1 %v2254_v57  ;;  %v2255_v5 = vpack.c.bf16 %v2250_v18, %v2250_v18  ;;  %v12178_v57 = vld [vmem:[%s13247_s20 + $0x8] sm:$0xff]  ;;  %s15653_s20 = sld [smem:[#allocation18_spill]] }
 0x50e   :  { %2926 = vmatpush.bf16.msra.mxu2 %v12183_v6  ;;  %v12214_v6 = vld [vmem:[%s15645_s25 + $0x64] sm:$0xf0] }
 0x50f   :  { %2599 = vmatmul.bf16.vlgmr.msra.gmra.mxu0 %v2255_v5  ;;  %9134 = vmatmul.msk.bf16.vlgmr.msrb.gmra.mxu2 %vm478_vm7, %v2256_v20  ;;  %v12192_v20 = vld [vmem:[%s15640_s5 + $0x38] sm:$0xff] }
 0x510   :  { %2781 = vmatpush.bf16.msrb.mxu3 %v12159_v36  ;;  %3009 = vmatpush.bf16.msrb.mxu0 %v12192_v20  ;;  %v12185_v36 = vld [vmem:[%s15640_s5] sm:$0xff]  ;;  %v12228_v20 = vld [vmem:[%s15646_s29 + $0x54] sm:$0xf0] }
 0x512   :  { %2927 = vmatpush.bf16.msra.mxu2 %v12182_v50  ;;  %v9428_v50 = vld [vmem:[%s15646_s29 + $0x68] sm:$0xf0] }
 0x514   :  { %2782 = vmatpush.bf16.msrb.mxu3 %v12158_v40  ;;  %3010 = vmatpush.bf16.msrb.mxu0 %v12191_v21  ;;  %v12196_v40 = vld [vmem:[%s15642_s13 + $0x18] sm:$0xff]  ;;  %v12227_v21 = vld [vmem:[%s15646_s29 + $0x54] sm:$0xf] }
 0x516   :  { %2928 = vmatpush.bf16.msra.mxu2 %v12181_v1  ;;  %v9354_v1 = vld [vmem:[%s15645_s25 + $0x50] sm:$0xf] }
 0x518   :  { %2783 = vmatpush.bf16.msrb.mxu3 %v12157_v63  ;;  %3011 = vmatpush.bf16.msrb.mxu0 %v12190_v9 }
 0x51a   :  { %2929 = vmatpush.bf16.msra.mxu2 %v12180_v12  ;;  %v12212_v12 = vld [vmem:[%s15645_s25 + $0x54] sm:$0xf0] }
 0x51c   :  { %3012 = vmatpush.bf16.msrb.mxu0 %v12189_v29  ;;  %v12209_v29 = vld [vmem:[%s15645_s25 + $0x44] sm:$0xf] }
 0x51e   :  { %2930 = vmatpush.bf16.msra.mxu2 %v12179_v16 }
 0x522   :  { %2931 = vmatpush.bf16.msra.mxu2 %v12178_v57  ;;  %v12211_v57 = vld [vmem:[%s15645_s25 + $0x54] sm:$0xf] }
 0x526   :  { %2932 = vmatpush.bf16.msra.mxu2 %v12177_v17  ;;  %v9356_v17 = vld [vmem:[%s15645_s25 + $0x58] sm:$0xf0] }
 0x527   :  { %v9359_v9 = vor.u32 %v12211_v57, %v9356_v17  ;;  %v9314_v17 = vld [vmem:[%s15645_s25] sm:$0xf] }
 0x582   :  { %v2561_v44 = vpop.f32.mrf.mxu2 }
 0x583   :  { %v2562_v22 = vadd.f32 %v13084_v27, %v2561_v44 }
 0x588   :  { %v2574_v31 = vpop.f32.mrf.mxu3 }
 0x589   :  { %v2575_v30 = vadd.f32 %v2574_v31, %v2562_v22 }
 0x58a   :  { %v2563_v32 = vpop.f32.mrf.mxu2  ;;  %v2587_v33 = vpop.f32.mrf.mxu1 }
 0x58b   :  { %v2588_v34 = vadd.f32 %v2587_v33, %v2575_v30  ;;  %v12188_v30 = vld [vmem:[%s15640_s5 + $0x18] sm:$0xff]  ;;  %v12187_v33 = vld [vmem:[%s15640_s5 + $0x10] sm:$0xff] }
 0x58c   :  { %v2600_v38 = vpop.f32.mrf.mxu0  ;;  %3013 = vmatpush.bf16.msrb.mxu0 %v12188_v30  ;;  %v9410_v30 = vld [vmem:[%s15646_s29 + $0x40] sm:$0xf] }
 0x58d   :  { %v2601_v39 = vadd.f32 %v2600_v38, %v2588_v34  ;;  %v12186_v34 = vld [vmem:[%s15640_s5 + $0x8] sm:$0xff] }
 0x590   :  { %v2576_v10 = vpop.f32.mrf.mxu3  ;;  %3014 = vmatpush.bf16.msrb.mxu0 %v12187_v33  ;;  %v12225_v33 = vld [vmem:[%s15646_s29 + $0x44] sm:$0xf] }
 0x591   :  { %v12200_v10 = vld [vmem:[%s15642_s13 + $0x38] sm:$0xff] }
 0x592   :  { %v2589_v41 = vpop.f32.mrf.mxu1  ;;  %v2613_v24 = vpop.f32.mrf.mxu2  ;;  %3092 = vmatpush.bf16.msra.mxu3 %v12200_v10  ;;  %v9338_v10 = vld [vmem:[%s15645_s25 + $0x30] sm:$0xf] }
 0x593   :  { %v2614_v37 = vadd.f32 %v2613_v24, %v2601_v39  ;;  %v12199_v39 = vld [vmem:[%s15642_s13 + $0x30] sm:$0xff]  ;;  %v12198_v41 = vld [vmem:[%s15642_s13 + $0x28] sm:$0xff]  ;;  %v12197_v24 = vld [vmem:[%s15642_s13 + $0x20] sm:$0xff] }
 0x594   :  { %v2602_v46 = vpop.f32.mrf.mxu0  ;;  %3015 = vmatpush.bf16.msrb.mxu0 %v12186_v34 }
 0x595   :  { %v2617_v19 = vadd.f32 %v2614_v37, %v13714_v15  ;;  %v12169_v15 = vld [vmem:[%s13227_s24 + $0x60] sm:$0xff]  ;;  %v12195_v37 = vld [vmem:[%s15642_s13 + $0x10] sm:$0xff]  ;;  %s15651_s24 = sld [smem:[#allocation14_spill]] }
 0x596   :  { %2792 = vmatpush.bf16.msra.mxu1 %v12169_v15  ;;  %3093 = vmatpush.bf16.msra.mxu3 %v12199_v39  ;;  %v13086_v46 = vld [vmem:[%s15643_s17] ss:$0 sm:$0xff]  ;;  %v12194_v15 = vld [vmem:[%s15642_s13 + $0x8] sm:$0xff]  ;;  %v12208_v39 = vld [vmem:[%s15645_s25 + $0x34] sm:$0xf0] }
 0x597   :  { %v2618_v47 = vmax.f32 %v2617_v19, 0.0  ;;  %v13087_v19 = vld [vmem:[%s15644_s21] ss:$0 sm:$0xff] }
 0x598   :  { %3016 = vmatpush.bf16.msrb.mxu0 %v12185_v36 }
 0x599   :  { %v2626_v48 = vrot.slane %v2618_v47, 3  ;;  %v2620_v53 = vrot.slane %v2618_v47, 1  ;;  %v2624_v2 = vrot.slane %v2618_v47, 2 }
 0x59a   :  { %v2615_v35 = vpop.f32.mrf.mxu2  ;;  %2793 = vmatpush.bf16.msra.mxu1 %v12168_v13  ;;  %3094 = vmatpush.bf16.msra.mxu3 %v12198_v41  ;;  %v12193_v13 = vld [vmem:[%s15642_s13] sm:$0xff]  ;;  %v12207_v41 = vld [vmem:[%s15645_s25 + $0x34] sm:$0xf]  ;;  %s13107_s13 = scalar_lea.hbm %s13387_s30, 2 }
 0x59b   :  { %2627 = vrot.lane.b32.xlu0 %v2626_v48, %s13162_s0  ;;  %2621 = vrot.lane.b32.xlu2 %v2620_v53, %s13162_s0  ;;  %v2641_v11 = vsel %vm289_vm0, %v2618_v47, %v2626_v48  ;;  %s8449_s0 = sshll.u32 %s13387_s30, 4  ;;  %s8450_s0 = int_to_ptr.hbm [resolvable:$true] %s8449_s0 }
 0x59c   :  { %v2803_v14 = vpack.c.bf16 %v2641_v11, %v2641_v11  ;;  %v12229_v11 = vld [vmem:[%s15646_s29 + $0x64] sm:$0xf]  ;;  %s13103_s5 = sshra.s32 %s8450_s0, 4  ;;  %s13104_s5 = int_to_ptr.hbm [resolvable:$true] %s13103_s5 }
 0x59d   :  { %v9431_v16 = vor.u32 %v12229_v11, %v9428_v50  ;;  %v9386_v11 = vld [vmem:[%s15646_s29 + $0x10] sm:$0xf]  ;;  %s13105_s9 = scalar_lea.hbm %s13104_s5, 2  ;;  %p13108_p1 = scmp.lt.s32.totalorder %s13104_s5, %s13387_s30 }
 0x59e   :  { %2794 = vmatpush.bf16.msra.mxu1 %v12167_v51  ;;  %3095 = vmatpush.bf16.msra.mxu3 %v12197_v24  ;;  %v9370_v51 = vld [vmem:[%s15645_s25 + $0x70] sm:$0xf]  ;;  %p13106_p0 = scmp.ne.s32.totalorder %s13104_s5, %s13105_s9  ;;  %p13109_p2 = scmp.lt.s32.totalorder %s13107_s13, %s13105_s9 }
 0x5a0   :  { %p13110_p3 = por %p13109_p2, %p13108_p1 }
 0x5a2   :  { %2795 = vmatpush.bf16.msra.mxu1 %v12166_v52  ;;  %3096 = vmatpush.bf16.msra.mxu3 %v12196_v40  ;;  %v12216_v52 = vld [vmem:[%s15645_s25 + $0x74] sm:$0xf0]  ;;  %v9340_v40 = vld [vmem:[%s15645_s25 + $0x38] sm:$0xf0]  ;;  %p13111_p4 = pnand %p13110_p3, %p13106_p0 }
 0x5a6   :  { %2796 = vmatpush.bf16.msra.mxu1 %v12165_v45  ;;  %3097 = vmatpush.bf16.msra.mxu3 %v12195_v37  ;;  %v12215_v45 = vld [vmem:[%s15645_s25 + $0x74] sm:$0xf]  ;;  %v9402_v37 = vld [vmem:[%s15646_s29 + $0x30] sm:$0xf] }
 0x5aa   :  { %2847 = vmatpush.bf16.msrb.mxu1 %v12176_v54  ;;  %3098 = vmatpush.bf16.msra.mxu3 %v12194_v15  ;;  %v9371_v54 = vor.u32 %v12216_v52, %v9370_v51  ;;  %v12205_v15 = vld [vmem:[%s15645_s25 + $0x24] sm:$0xf]  ;;  %v9332_v51 = vld [vmem:[%s15645_s25 + $0x28] sm:$0xf0]  ;;  %v9394_v52 = vld [vmem:[%s15646_s29 + $0x20] sm:$0xf] }
 0x5ae   :  { %2848 = vmatpush.bf16.msrb.mxu1 %v12175_v61  ;;  %3099 = vmatpush.bf16.msra.mxu3 %v12193_v13  ;;  %v12232_v61 = vld [vmem:[%s15646_s29 + $0x74] sm:$0xf0] }
 0x5b2   :  { %2849 = vmatpush.bf16.msrb.mxu1 %v12174_v0  ;;  %v9436_v0 = vld [vmem:[%s15646_s29 + $0x78] sm:$0xf0] }
 0x5b6   :  { %2850 = vmatpush.bf16.msrb.mxu1 %v12173_v43  ;;  %v9362_v43 = vld [vmem:[%s15645_s25 + $0x60] sm:$0xf] }
 0x5f5   :  { %v2622_v58 = vpop.permute.xlu2 %2621 }
 0x5f6   :  { %v2630_v60 = vsel %vm478_vm7, %v2618_v47, %v2622_v58  ;;  %v9372_v58 = vld [vmem:[%s15645_s25 + $0x78] sm:$0xf0] }
 0x5f7   :  { %v2634_v62 = vrot.slane %v2630_v60, 3 }
 0x5f9   :  { %v2638_v8 = vsel %vm289_vm0, %v2630_v60, %v2634_v62  ;;  %v9434_v60 = vld [vmem:[%s15646_s29 + $0x70] sm:$0xf]  ;;  %v9375_v62 = vor.u32 %v12215_v45, %v9372_v58  ;;  %v12222_v45 = vld [vmem:[%s15646_s29 + $0x24] sm:$0xf0]  ;;  %v9396_v58 = vld [vmem:[%s15646_s29 + $0x28] sm:$0xf0] }
 0x5fa   :  { %v2642_v23 = vpack.c.bf16 %v2638_v8, %v2638_v8  ;;  %v9435_v8 = vor.u32 %v12232_v61, %v9434_v60  ;;  %v9335_v61 = vor.u32 %v12205_v15, %v9332_v51  ;;  %v9554_v15 = vld [vmem:[%s15648_s8 + $0xe0] sm:$0xf] }
 0x5fb   :  { %3223 = vmatpush.bf16.msrb.mxu2 %v9375_v62  ;;  %v9395_v62 = vor.u32 %v12222_v45, %v9394_v52  ;;  %v12261_v52 = vld [vmem:[%s15648_s8 + $0xe4] sm:$0xf]  ;;  %v9556_v45 = vld [vmem:[%s15648_s8 + $0xe8] sm:$0xf0] }
 0x5fc   :  { %2784 = vmatmul.bf16.vlgmr.msrb.gmra.mxu3 %v2642_v23  ;;  %v12231_v23 = vld [vmem:[%s15646_s29 + $0x74] sm:$0xf]  ;;  %3338 = vmatpush.bf16.msra.mxu0 %v9435_v8  ;;  %v13088_v8 = vld [vmem:[%s15647_s3] ss:$0 sm:$0xff] }
 0x5fd   :  { %v9439_v42 = vor.u32 %v12231_v23, %v9436_v0 }
 0x5ff   :  { %3351 = vmatpush.bf16.msrb.mxu3 %v9439_v42 }
 0x603   :  { %3352 = vmatpush.bf16.msrb.mxu3 %v9431_v16  ;;  %v9388_v16 = vld [vmem:[%s15646_s29 + $0x18] sm:$0xf0] }
 0x60d   :  { %v2628_v3 = vpop.permute.xlu0 %2627 }
 0x60e   :  { %v2631_v59 = vsel %vm478_vm7, %v2624_v2, %v2628_v3  ;;  %v12213_v2 = vld [vmem:[%s15645_s25 + $0x64] sm:$0xf]  ;;  %v9364_v3 = vld [vmem:[%s15645_s25 + $0x68] sm:$0xf0] }
 0x60f   :  { %v2635_v7 = vrot.slane %v2631_v59, 3 }
 0x611   :  { %v2639_v4 = vsel %vm289_vm0, %v2631_v59, %v2635_v7  ;;  %v9363_v59 = vor.u32 %v12214_v6, %v9362_v43  ;;  %v9367_v7 = vor.u32 %v12213_v2, %v9364_v3  ;;  %v9322_v3 = vld [vmem:[%s15645_s25 + $0x10] sm:$0xf] }
 0x612   :  { %v2643_v49 = vpack.c.bf16 %v2639_v4, %v2639_v4  ;;  %v9426_v4 = vld [vmem:[%s15646_s29 + $0x60] sm:$0xf] }
 0x613   :  { %3224 = vmatpush.bf16.msrb.mxu2 %v9367_v7  ;;  %v12203_v7 = vld [vmem:[%s15645_s25 + $0x14] sm:$0xf] }
 0x614   :  { %2797 = vmatmul.bf16.vlgmr.msra.gmra.mxu1 %v2643_v49  ;;  %v12230_v49 = vld [vmem:[%s15646_s29 + $0x64] sm:$0xf0] }
 0x615   :  { %3210 = vmatpush.bf16.msra.mxu1 %v9371_v54  ;;  %v12221_v54 = vld [vmem:[%s15646_s29 + $0x24] sm:$0xf] }
 0x616   :  { %v9399_v23 = vor.u32 %v12221_v54, %v9396_v58  ;;  %v9559_v58 = vor.u32 %v12261_v52, %v9556_v45  ;;  %v9444_v52 = vld [vmem:[%s15648_s8 + $0x8] sm:$0xf0] }
 0x617   :  { %3225 = vmatpush.bf16.msrb.mxu2 %v9359_v9  ;;  %v12218_v9 = vld [vmem:[%s15646_s29 + $0x4] sm:$0xf0] }
 0x619   :  { %3211 = vmatpush.bf16.msra.mxu1 %v9363_v59  ;;  %v12204_v59 = vld [vmem:[%s15645_s25 + $0x14] sm:$0xf0] }
 0x624   :  { %9215 = vmatmul.msk.bf16.vlgmr.msrb.gmra.mxu1 %vm478_vm7, %v2803_v14  ;;  %v9427_v14 = vor.u32 %v12230_v49, %v9426_v4  ;;  %v9323_v4 = vor.u32 %v12204_v59, %v9322_v3  ;;  %v9324_v49 = vld [vmem:[%s15645_s25 + $0x18] sm:$0xf0]  ;;  %v9538_v59 = vld [vmem:[%s15648_s8 + $0xc0] sm:$0xf] }
 0x625   :  { %v9327_v50 = vor.u32 %v12203_v7, %v9324_v49  ;;  %v12257_v49 = vld [vmem:[%s15648_s8 + $0xc4] sm:$0xf] }
 0x626   :  { %3339 = vmatpush.bf16.msra.mxu0 %v9427_v14  ;;  %v12220_v14 = vld [vmem:[%s15646_s29 + $0x14] sm:$0xf0] }
 0x67f   :  { %v2785_v18 = vpop.f32.mrf.mxu3 }
 0x680   :  { %v2786_v44 = vadd.f32 %v13085_v26, %v2785_v18  ;;  %v9418_v18 = vld [vmem:[%s15646_s29 + $0x50] sm:$0xf]  ;;  %v9420_v26 = vld [vmem:[%s15646_s29 + $0x58] sm:$0xf0] }
 0x687   :  { %v2787_v5 = vpop.f32.mrf.mxu3 }
 0x688   :  { %v9355_v5 = vor.u32 %v12212_v12, %v9354_v1  ;;  %v9387_v1 = vor.u32 %v12220_v14, %v9386_v11  ;;  %v12219_v12 = vld [vmem:[%s15646_s29 + $0x14] sm:$0xf]  ;;  %v9540_v11 = vld [vmem:[%s15648_s8 + $0xc8] sm:$0xf0] }
 0x689   :  { %v9391_v57 = vor.u32 %v12219_v12, %v9388_v16  ;;  %v12239_v12 = vld [vmem:[%s15648_s8 + $0x34] sm:$0xf]  ;;  %v9468_v16 = vld [vmem:[%s15648_s8 + $0x38] sm:$0xf0] }
 0x68a   :  { %3212 = vmatpush.bf16.msra.mxu1 %v9355_v5  ;;  %v12201_v5 = vld [vmem:[%s15645_s25 + $0x4] sm:$0xf] }
 0x691   :  { %v2798_v25 = vpop.f32.mrf.mxu1 }
 0x692   :  { %v2799_v27 = vadd.f32 %v2798_v25, %v2786_v44  ;;  %v9419_v44 = vor.u32 %v12228_v20, %v9418_v18  ;;  %v9346_v25 = vld [vmem:[%s15645_s25 + $0x40] sm:$0xf]  ;;  %v12202_v18 = vld [vmem:[%s15645_s25 + $0x4] sm:$0xf0] }
 0x693   :  { %v9315_v20 = vor.u32 %v12202_v18, %v9314_v17  ;;  %v9543_v17 = vor.u32 %v12257_v49, %v9540_v11  ;;  %v9530_v18 = vld [vmem:[%s15648_s8 + $0xb0] sm:$0xf]  ;;  %v12296_v49 = vld [vmem:[%s15650_s19 + $0xf4] sm:$0xf0]  ;;  %v12279_v11 = vld [vmem:[%s15650_s19 + $0x74] sm:$0xf] }
 0x694   :  { %v2802_v22 = vmax.f32 %v2799_v27, 0.0  ;;  %v12210_v27 = vld [vmem:[%s15645_s25 + $0x44] sm:$0xf0]  ;;  %3340 = vmatpush.bf16.msra.mxu0 %v9419_v44 }
 0x696   :  { %v2856_v31 = vpack.c.bf16 %v2802_v22, %v2802_v22  ;;  %v9423_v22 = vor.u32 %v12227_v21, %v9420_v26  ;;  %v9316_v21 = vld [vmem:[%s15645_s25 + $0x8] sm:$0xf0]  ;;  %v9378_v26 = vld [vmem:[%s15646_s29] sm:$0xf] }
 0x697   :  { %v9319_v44 = vor.u32 %v12201_v5, %v9316_v21  ;;  %v12255_v21 = vld [vmem:[%s15648_s8 + $0xb4] sm:$0xf] }
 0x698   :  { %2933 = vmatmul.bf16.vlgmr.msra.gmra.mxu2 %v2856_v31  ;;  %v9348_v31 = vld [vmem:[%s15645_s25 + $0x48] sm:$0xf0]  ;;  %3353 = vmatpush.bf16.msrb.mxu3 %v9423_v22 }
 0x699   :  { %v2800_v32 = vpop.f32.mrf.mxu1  ;;  %v9351_v34 = vor.u32 %v12209_v29, %v9348_v31  ;;  %v9380_v29 = vld [vmem:[%s15646_s29 + $0x8] sm:$0xf0]  ;;  %v9498_v31 = vld [vmem:[%s15648_s8 + $0x70] sm:$0xf] }
 0x69a   :  { %v12226_v32 = vld [vmem:[%s15646_s29 + $0x44] sm:$0xf0] }
 0x69b   :  { %v9411_v36 = vor.u32 %v12226_v32, %v9410_v30  ;;  %3226 = vmatpush.bf16.msrb.mxu2 %v9351_v34  ;;  %v12248_v30 = vld [vmem:[%s15648_s8 + $0x74] sm:$0xf0]  ;;  %v12247_v32 = vld [vmem:[%s15648_s8 + $0x74] sm:$0xf]  ;;  %v12246_v34 = vld [vmem:[%s15648_s8 + $0x64] sm:$0xf0] }
 0x69d   :  { %3341 = vmatpush.bf16.msra.mxu0 %v9411_v36 }
 0x6a1   :  { %v2852_v28 = vpop.f32.mrf.mxu1 }
 0x6a2   :  { %v2853_v48 = vadd.f32 %v13086_v46, %v2852_v28  ;;  %v9412_v28 = vld [vmem:[%s15646_s29 + $0x48] sm:$0xf0]  ;;  %v12224_v46 = vld [vmem:[%s15646_s29 + $0x34] sm:$0xf0] }
 0x6a3   :  { %v9415_v24 = vor.u32 %v12225_v33, %v9412_v28  ;;  %v9499_v33 = vor.u32 %v12248_v30, %v9498_v31  ;;  %v9500_v28 = vld [vmem:[%s15648_s8 + $0x78] sm:$0xf0]  ;;  %v13089_v30 = vld [vmem:[%s15649_s14] ss:$0 sm:$0xff] }
 0x6a4   :  { %v9503_v36 = vor.u32 %v12247_v32, %v9500_v28 }
 0x6a5   :  { %3354 = vmatpush.bf16.msrb.mxu3 %v9415_v24 }
 0x6a9   :  { %v2854_v38 = vpop.f32.mrf.mxu1 }
 0x6aa   :  { %v9347_v38 = vor.u32 %v12210_v27, %v9346_v25  ;;  %v9379_v25 = vor.u32 %v12218_v9, %v9378_v26  ;;  %v12217_v27 = vld [vmem:[%s15646_s29 + $0x4] sm:$0xf]  ;;  %v9532_v26 = vld [vmem:[%s15648_s8 + $0xb8] sm:$0xf0]  ;;  %v9471_v9 = vor.u32 %v12239_v12, %v9468_v16  ;;  %v12295_v12 = vld [vmem:[%s15650_s19 + $0xf4] sm:$0xf] }
 0x6ab   :  { %v9383_v22 = vor.u32 %v12217_v27, %v9380_v29  ;;  %v12237_v27 = vld [vmem:[%s15648_s8 + $0x24] sm:$0xf]  ;;  %v9460_v29 = vld [vmem:[%s15648_s8 + $0x28] sm:$0xf0]  ;;  %v9535_v31 = vor.u32 %v12255_v21, %v9532_v26  ;;  %v9692_v16 = vld [vmem:[%s15650_s19 + $0xf8] sm:$0xf0] }
 0x6ac   :  { %3213 = vmatpush.bf16.msra.mxu1 %v9347_v38  ;;  %v9490_v38 = vld [vmem:[%s15648_s8 + $0x60] sm:$0xf] }
 0x6ad   :  { %v9491_v24 = vor.u32 %v12246_v34, %v9490_v38 }
 0x71b   :  { %v2934_v47 = vpop.f32.mrf.mxu2 }
 0x71c   :  { %v2935_v53 = vadd.f32 %v13087_v19, %v2934_v47  ;;  %v12223_v19 = vld [vmem:[%s15646_s29 + $0x34] sm:$0xf]  ;;  %v9404_v47 = vld [vmem:[%s15646_s29 + $0x38] sm:$0xf0] }
 0x71d   :  { %v9407_v13 = vor.u32 %v12223_v19, %v9404_v47 }
 0x71e   :  { %v2938_v35 = vadd.f32 %v2935_v53, %v2853_v48  ;;  %v9339_v48 = vor.u32 %v12208_v39, %v9338_v10  ;;  %v9343_v53 = vor.u32 %v12207_v41, %v9340_v40  ;;  %v12245_v10 = vld [vmem:[%s15648_s8 + $0x64] sm:$0xf]  ;;  %v9492_v39 = vld [vmem:[%s15648_s8 + $0x68] sm:$0xf0]  ;;  %v9562_v41 = vld [vmem:[%s15648_s8 + $0xf0] sm:$0xf] }
 0x71f   :  { %3355 = vmatpush.bf16.msrb.mxu3 %v9407_v13  ;;  %v12264_v40 = vld [vmem:[%s15648_s8 + $0xf4] sm:$0xf0]  ;;  %v9495_v19 = vor.u32 %v12245_v10, %v9492_v39  ;;  %v12262_v13 = vld [vmem:[%s15648_s8 + $0xe4] sm:$0xf0] }
 0x720   :  { %v14027_v63 = vmax.f32 %v2938_v35, 0.0  ;;  %v9403_v35 = vor.u32 %v12224_v46, %v9402_v37  ;;  %3214 = vmatpush.bf16.msra.mxu1 %v9339_v48  ;;  %3227 = vmatpush.bf16.msrb.mxu2 %v9343_v53  ;;  %v12263_v37 = vld [vmem:[%s15648_s8 + $0xf4] sm:$0xf]  ;;  %v9564_v46 = vld [vmem:[%s15648_s8 + $0xf8] sm:$0xf0]  ;;  %v9563_v47 = vor.u32 %v12264_v40, %v9562_v41  ;;  %v9555_v51 = vor.u32 %v12262_v13, %v9554_v15 }
 0x721   :  { %v9567_v48 = vor.u32 %v12263_v37, %v9564_v46  ;;  %v9482_v53 = vld [vmem:[%s15648_s8 + $0x50] sm:$0xf]  ;;  %v12235_v40 = vld [vmem:[%s15648_s8 + $0x14] sm:$0xf]  ;;  %v9452_v46 = vld [vmem:[%s15648_s8 + $0x18] sm:$0xf0] }
 0x722   :  { %v2940_v56 = vpack.c.bf16 %v14027_v63, %v14027_v63  ;;  %3342 = vmatpush.bf16.msra.mxu0 %v9403_v35  ;;  %v12244_v35 = vld [vmem:[%s15648_s8 + $0x54] sm:$0xf0]  ;;  %v9450_v41 = vld [vmem:[%s15648_s8 + $0x10] sm:$0xf]  ;;  %v12234_v15 = vld [vmem:[%s15648_s8 + $0x4] sm:$0xf0] }
 0x723   :  { %v2936_v55 = vpop.f32.mrf.mxu2  ;;  %3356 = vmatpush.bf16.msrb.mxu3 %v9399_v23  ;;  %v9483_v54 = vor.u32 %v12244_v35, %v9482_v53  ;;  %v12260_v23 = vld [vmem:[%s15648_s8 + $0xd4] sm:$0xf0]  ;;  %v12253_v53 = vld [vmem:[%s15648_s8 + $0xa4] sm:$0xf]  ;;  %v9524_v35 = vld [vmem:[%s15648_s8 + $0xa8] sm:$0xf0] }
 0x724   :  { %3017 = vmatmul.bf16.vlgmr.msrb.gmra.mxu0 %v2940_v56  ;;  %v9330_v56 = vld [vmem:[%s15645_s25 + $0x20] sm:$0xf]  ;;  %v12206_v55 = vld [vmem:[%s15645_s25 + $0x24] sm:$0xf0]  ;;  %3228 = vmatpush.bf16.msrb.mxu2 %v9335_v61  ;;  %v12233_v13 = vld [vmem:[%s15648_s8 + $0x4] sm:$0xf] }
 0x725   :  { %v9331_v60 = vor.u32 %v12206_v55, %v9330_v56  ;;  %v12243_v56 = vld [vmem:[%s15648_s8 + $0x54] sm:$0xf]  ;;  %v9484_v55 = vld [vmem:[%s15648_s8 + $0x58] sm:$0xf0]  ;;  %v12242_v61 = vld [vmem:[%s15648_s8 + $0x44] sm:$0xf0]  ;;  %v9447_v45 = vor.u32 %v12233_v13, %v9444_v52 }
 0x726   :  { %3343 = vmatpush.bf16.msra.mxu0 %v9395_v62  ;;  %v9487_v62 = vor.u32 %v12243_v56, %v9484_v55  ;;  %v9527_v56 = vor.u32 %v12253_v53, %v9524_v35  ;;  %v9442_v55 = vld [vmem:[%s15648_s8] sm:$0xf] }
 0x727   :  { %3215 = vmatpush.bf16.msra.mxu1 %v9331_v60  ;;  %3357 = vmatpush.bf16.msrb.mxu3 %v9391_v57  ;;  %v9474_v60 = vld [vmem:[%s15648_s8 + $0x40] sm:$0xf] }
 0x728   :  { %3229 = vmatpush.bf16.msrb.mxu2 %v9327_v50  ;;  %v9475_v7 = vor.u32 %v12242_v61, %v9474_v60  ;;  %v9466_v50 = vld [vmem:[%s15648_s8 + $0x30] sm:$0xf]  ;;  %v12251_v61 = vld [vmem:[%s15648_s8 + $0x94] sm:$0xf] }
 0x72a   :  { %3344 = vmatpush.bf16.msra.mxu0 %v9387_v1  ;;  %v12240_v1 = vld [vmem:[%s15648_s8 + $0x34] sm:$0xf0] }
 0x72b   :  { %3216 = vmatpush.bf16.msra.mxu1 %v9323_v4  ;;  %3358 = vmatpush.bf16.msrb.mxu3 %v9383_v22  ;;  %v12258_v4 = vld [vmem:[%s15648_s8 + $0xc4] sm:$0xf0]  ;;  %v9467_v5 = vor.u32 %v12240_v1, %v9466_v50 }
 0x72c   :  { %3230 = vmatpush.bf16.msrb.mxu2 %v9319_v44  ;;  %v9539_v57 = vor.u32 %v12258_v4, %v9538_v59  ;;  %v9458_v44 = vld [vmem:[%s15648_s8 + $0x20] sm:$0xf]  ;;  %v12280_v59 = vld [vmem:[%s15650_s19 + $0x74] sm:$0xf0] }
 0x72e   :  { %3345 = vmatpush.bf16.msra.mxu0 %v9379_v25  ;;  %v12238_v25 = vld [vmem:[%s15648_s8 + $0x24] sm:$0xf0] }
 0x72f   :  { %3217 = vmatpush.bf16.msra.mxu1 %v9315_v20  ;;  %v12256_v20 = vld [vmem:[%s15648_s8 + $0xb4] sm:$0xf0]  ;;  %v9459_v32 = vor.u32 %v12238_v25, %v9458_v44  ;;  %v9620_v44 = vld [vmem:[%s15650_s19 + $0x68] sm:$0xf0]  ;;  %v12293_v25 = vld [vmem:[%s15650_s19 + $0xe4] sm:$0xf] }
 0x730   :  { %3579 = vmatpush.bf16.msra.mxu2 %v9563_v47  ;;  %v9531_v22 = vor.u32 %v12256_v20, %v9530_v18  ;;  %v12254_v47 = vld [vmem:[%s15648_s8 + $0xa4] sm:$0xf0] }
 0x731   :  { %v12278_v18 = vld [vmem:[%s15650_s19 + $0x64] sm:$0xf0] }
 0x732   :  { %3592 = vmatpush.bf16.msrb.mxu0 %v9503_v36  ;;  %v12294_v20 = vld [vmem:[%s15650_s19 + $0xe4] sm:$0xf0] }
 0x733   :  { %3566 = vmatpush.bf16.msrb.mxu1 %v9499_v33  ;;  %v9463_v33 = vor.u32 %v12237_v27, %v9460_v29  ;;  %v9684_v29 = vld [vmem:[%s15650_s19 + $0xe8] sm:$0xf0] }
 0x734   :  { %3580 = vmatpush.bf16.msra.mxu2 %v9555_v51  ;;  %v9443_v51 = vor.u32 %v12234_v15, %v9442_v55 }
 0x736   :  { %3593 = vmatpush.bf16.msrb.mxu0 %v9495_v19  ;;  %v9455_v19 = vor.u32 %v12235_v40, %v9452_v46  ;;  %v3252_v40 = vld [vmem:[%s15651_s24] sm:$0x3] }
 0x737   :  { %3567 = vmatpush.bf16.msrb.mxu1 %v9491_v24  ;;  %v12236_v24 = vld [vmem:[%s15648_s8 + $0x14] sm:$0xf0] }
 0x738   :  { %v9451_v37 = vor.u32 %v12236_v24, %v9450_v41 }
 0x73a   :  { %3594 = vmatpush.bf16.msrb.mxu0 %v9487_v62  ;;  %v9516_v62 = vld [vmem:[%s15648_s8 + $0x98] sm:$0xf0] }
 0x73b   :  { %3568 = vmatpush.bf16.msrb.mxu1 %v9483_v54  ;;  %v9514_v54 = vld [vmem:[%s15648_s8 + $0x90] sm:$0xf] }
 0x73f   :  { %3569 = vmatpush.bf16.msrb.mxu1 %v9475_v7  ;;  %v9690_v7 = vld [vmem:[%s15650_s19 + $0xf0] sm:$0xf] }
 0x740   :  { %v9691_v50 = vor.u32 %v12296_v49, %v9690_v7  ;;  %v12272_v7 = vld [vmem:[%s15650_s19 + $0x34] sm:$0xf0] }
 0x743   :  { %3570 = vmatpush.bf16.msrb.mxu1 %v9467_v5  ;;  %v9682_v5 = vld [vmem:[%s15650_s19 + $0xe0] sm:$0xf] }
 0x744   :  { %v9683_v26 = vor.u32 %v12294_v20, %v9682_v5  ;;  %v12270_v5 = vld [vmem:[%s15650_s19 + $0x24] sm:$0xf0]  ;;  %v9650_v20 = vld [vmem:[%s15650_s19 + $0xa0] sm:$0xf] }
 0x747   :  { %3571 = vmatpush.bf16.msrb.mxu1 %v9459_v32  ;;  %v9674_v32 = vld [vmem:[%s15650_s19 + $0xd0] sm:$0xf] }
 0x74b   :  { %3572 = vmatpush.bf16.msrb.mxu1 %v9451_v37  ;;  %v3254_v37 = vperm.slane %v3252_v40, 0 }
 0x74f   :  { %3573 = vmatpush.bf16.msrb.mxu1 %v9443_v51 }
 0x7a1   :  { %v3018_v0 = vpop.f32.mrf.mxu0 }
 0x7a2   :  { %v3019_v43 = vadd.f32 %v13088_v8, %v3018_v0  ;;  %v9546_v8 = vld [vmem:[%s15648_s8 + $0xd0] sm:$0xf]  ;;  %v12259_v0 = vld [vmem:[%s15648_s8 + $0xd4] sm:$0xf] }
 0x7a4   :  { %v3022_v42 = vmax.f32 %v3019_v43, 0.0  ;;  %v12241_v43 = vld [vmem:[%s15648_s8 + $0x44] sm:$0xf] }
 0x7a6   :  { %v3023_v6 = vpack.c.bf16 %v3022_v42, %v3022_v42  ;;  %v9476_v42 = vld [vmem:[%s15648_s8 + $0x48] sm:$0xf0] }
 0x7a7   :  { %v9479_v14 = vor.u32 %v12241_v43, %v9476_v42  ;;  %v12249_v43 = vld [vmem:[%s15648_s8 + $0x84] sm:$0xf] }
 0x7a8   :  { %3100 = vmatmul.bf16.vlgmr.msra.gmra.mxu3 %v3023_v6  ;;  %v9548_v6 = vld [vmem:[%s15648_s8 + $0xd8] sm:$0xf0] }
 0x7a9   :  { %v3020_v2 = vpop.f32.mrf.mxu0  ;;  %3605 = vmatpush.bf16.msra.mxu3 %v9567_v48  ;;  %v9551_v3 = vor.u32 %v12259_v0, %v9548_v6  ;;  %3595 = vmatpush.bf16.msrb.mxu0 %v9479_v14  ;;  %v12250_v0 = vld [vmem:[%s15648_s8 + $0x84] sm:$0xf0]  ;;  %v9508_v6 = vld [vmem:[%s15648_s8 + $0x88] sm:$0xf0]  ;;  %v9628_v14 = vld [vmem:[%s15650_s19 + $0x78] sm:$0xf0] }
 0x7aa   :  { %v9547_v2 = vor.u32 %v12260_v23, %v9546_v8  ;;  %v9519_v8 = vor.u32 %v12251_v61, %v9516_v62  ;;  %v9506_v23 = vld [vmem:[%s15648_s8 + $0x80] sm:$0xf]  ;;  %v9631_v1 = vor.u32 %v12279_v11, %v9628_v14  ;;  %v12288_v11 = vld [vmem:[%s15650_s19 + $0xb4] sm:$0xf0]  ;;  %v12271_v14 = vld [vmem:[%s15650_s19 + $0x34] sm:$0xf] }
 0x7ab   :  { %v9507_v42 = vor.u32 %v12250_v0, %v9506_v23  ;;  %v9666_v62 = vld [vmem:[%s15650_s19 + $0xc0] sm:$0xf]  ;;  %v12273_v23 = vld [vmem:[%s15650_s19 + $0x44] sm:$0xf] }
 0x7ac   :  { %3581 = vmatpush.bf16.msra.mxu2 %v9547_v2  ;;  %v9511_v2 = vor.u32 %v12249_v43, %v9508_v6  ;;  %v9604_v43 = vld [vmem:[%s15650_s19 + $0x48] sm:$0xf0] }
 0x7ad   :  { %3606 = vmatpush.bf16.msra.mxu3 %v9559_v58  ;;  %3596 = vmatpush.bf16.msrb.mxu0 %v9471_v9  ;;  %v12252_v58 = vld [vmem:[%s15648_s8 + $0x94] sm:$0xf0]  ;;  %v12277_v9 = vld [vmem:[%s15650_s19 + $0x64] sm:$0xf]  ;;  %v9668_v6 = vld [vmem:[%s15650_s19 + $0xc8] sm:$0xf0] }
 0x7ae   :  { %v9515_v60 = vor.u32 %v12252_v58, %v9514_v54  ;;  %v9623_v27 = vor.u32 %v12277_v9, %v9620_v44  ;;  %v9602_v58 = vld [vmem:[%s15650_s19 + $0x40] sm:$0xf]  ;;  %v12269_v9 = vld [vmem:[%s15650_s19 + $0x24] sm:$0xf]  ;;  %v9588_v44 = vld [vmem:[%s15650_s19 + $0x28] sm:$0xf0] }
 0x7b0   :  { %3582 = vmatpush.bf16.msra.mxu2 %v9539_v57  ;;  %v9618_v57 = vld [vmem:[%s15650_s19 + $0x60] sm:$0xf] }
 0x7b1   :  { %3607 = vmatpush.bf16.msra.mxu3 %v9551_v3  ;;  %3597 = vmatpush.bf16.msrb.mxu0 %v9463_v33  ;;  %v9626_v3 = vld [vmem:[%s15650_s19 + $0x70] sm:$0xf]  ;;  %v9619_v21 = vor.u32 %v12278_v18, %v9618_v57  ;;  %v12292_v33 = vld [vmem:[%s15650_s19 + $0xd4] sm:$0xf0]  ;;  %v9660_v57 = vld [vmem:[%s15650_s19 + $0xb8] sm:$0xf0] }
 0x7b2   :  { %v9627_v4 = vor.u32 %v12280_v59, %v9626_v3  ;;  %v9594_v59 = vld [vmem:[%s15650_s19 + $0x30] sm:$0xf]  ;;  %v9586_v18 = vld [vmem:[%s15650_s19 + $0x20] sm:$0xf] }
 0x7b3   :  { %v9595_v49 = vor.u32 %v12272_v7, %v9594_v59  ;;  %v9810_v59 = vld [vmem:[%s15652_s6 + $0xe0] sm:$0xf]  ;;  %v12326_v7 = vld [vmem:[%s15652_s6 + $0xe4] sm:$0xf0] }
 0x7b4   :  { %3583 = vmatpush.bf16.msra.mxu2 %v9531_v22  ;;  %v9610_v22 = vld [vmem:[%s15650_s19 + $0x50] sm:$0xf] }
 0x7b5   :  { %3608 = vmatpush.bf16.msra.mxu3 %v9543_v17  ;;  %3598 = vmatpush.bf16.msrb.mxu0 %v9455_v19  ;;  %v9695_v17 = vor.u32 %v12295_v12, %v9692_v16  ;;  %v12287_v16 = vld [vmem:[%s15650_s19 + $0xb4] sm:$0xf] }
 0x7b9   :  { %3609 = vmatpush.bf16.msra.mxu3 %v9535_v31  ;;  %3599 = vmatpush.bf16.msrb.mxu0 %v9447_v45  ;;  %v12276_v31 = vld [vmem:[%s15650_s19 + $0x54] sm:$0xf0] }
 0x7bd   :  { %3610 = vmatpush.bf16.msra.mxu3 %v9527_v56 }
 0x7c1   :  { %3611 = vmatpush.bf16.msra.mxu3 %v9519_v8  ;;  %v12290_v8 = vld [vmem:[%s15650_s19 + $0xc4] sm:$0xf0] }
 0x7c2   :  { %v9667_v0 = vor.u32 %v12290_v8, %v9666_v62  ;;  %v12311_v62 = vld [vmem:[%s15652_s6 + $0x74] sm:$0xf]  ;;  %v9756_v8 = vld [vmem:[%s15652_s6 + $0x78] sm:$0xf0] }
 0x7c5   :  { %3612 = vmatpush.bf16.msra.mxu3 %v9511_v2  ;;  %v9607_v2 = vor.u32 %v12273_v23, %v9604_v43  ;;  %v12327_v43 = vld [vmem:[%s15652_s6 + $0xf4] sm:$0xf] }
 0x82b   :  { %v3101_v28 = vpop.f32.mrf.mxu3 }
 0x82c   :  { %v3102_v38 = vadd.f32 %v13089_v30, %v3101_v28  ;;  %v9687_v30 = vor.u32 %v12293_v25, %v9684_v29  ;;  %v12275_v28 = vld [vmem:[%s15650_s19 + $0x54] sm:$0xf]  ;;  %v12285_v29 = vld [vmem:[%s15650_s19 + $0xa4] sm:$0xf] }
 0x82e   :  { %v3105_v34 = vadd.f32 %v3102_v38, %v14027_v63  ;;  %v9522_v63 = vld [vmem:[%s15648_s8 + $0xa0] sm:$0xf]  ;;  %v9611_v38 = vor.u32 %v12276_v31, %v9610_v22  ;;  %v9652_v22 = vld [vmem:[%s15650_s19 + $0xa8] sm:$0xf0] }
 0x82f   :  { %v9523_v48 = vor.u32 %v12254_v47, %v9522_v63  ;;  %v9655_v31 = vor.u32 %v12285_v29, %v9652_v22  ;;  %v9730_v29 = vld [vmem:[%s15652_s6 + $0x40] sm:$0xf]  ;;  %v12306_v22 = vld [vmem:[%s15652_s6 + $0x44] sm:$0xf0] }
 0x830   :  { %v3106_v36 = vmax.f32 %v3105_v34, 0.0  ;;  %v9612_v34 = vld [vmem:[%s15650_s19 + $0x58] sm:$0xf0] }
 0x831   :  { %3584 = vmatpush.bf16.msra.mxu2 %v9523_v48  ;;  %v9615_v41 = vor.u32 %v12275_v28, %v9612_v34  ;;  %v3255_v48 = vperm.slane %v3252_v40, 1  ;;  %v12267_v34 = vld [vmem:[%s15650_s19 + $0x14] sm:$0xf] }
 0x832   :  { %v3107_v10 = vpack.c.bf16 %v3106_v36, %v3106_v36  ;;  %v12291_v36 = vld [vmem:[%s15650_s19 + $0xd4] sm:$0xf] }
 0x833   :  { %v3103_v39 = vpop.f32.mrf.mxu3 }
 0x834   :  { %3218 = vmatmul.bf16.vlgmr.msra.gmra.mxu1 %v3107_v10  ;;  %3231 = vmatmul.bf16.vlgmr.msrb.gmra.mxu2 %v3107_v10  ;;  %v9675_v39 = vor.u32 %v12292_v33, %v9674_v32  ;;  %v12268_v32 = vld [vmem:[%s15650_s19 + $0x14] sm:$0xf0]  ;;  %v9642_v33 = vld [vmem:[%s15650_s19 + $0x90] sm:$0xf] }
 0x835   :  { %3346 = vmatmul.bf16.vlgmr.msra.gmra.mxu0 %v3107_v10  ;;  %3359 = vmatmul.bf16.vlgmr.msrb.gmra.mxu3 %v3107_v10  ;;  %v9676_v10 = vld [vmem:[%s15650_s19 + $0xd8] sm:$0xf0] }
 0x836   :  { %3585 = vmatpush.bf16.msra.mxu2 %v9515_v60  ;;  %3822 = vmatpush.bf16.msra.mxu1 %v9627_v4  ;;  %v9679_v24 = vor.u32 %v12291_v36, %v9676_v10  ;;  %v12274_v60 = vld [vmem:[%s15650_s19 + $0x44] sm:$0xf0]  ;;  %v9658_v4 = vld [vmem:[%s15650_s19 + $0xb0] sm:$0xf]  ;;  %v9580_v36 = vld [vmem:[%s15650_s19 + $0x18] sm:$0xf0] }
 0x837   :  { %3848 = vmatpush.bf16.msra.mxu0 %v9631_v1  ;;  %3861 = vmatpush.bf16.msrb.mxu3 %v9695_v17  ;;  %v9603_v61 = vor.u32 %v12274_v60, %v9602_v58  ;;  %v9659_v1 = vor.u32 %v12288_v11, %v9658_v4  ;;  %v9663_v17 = vor.u32 %v12287_v16, %v9660_v57  ;;  %v9818_v58 = vld [vmem:[%s15652_s6 + $0xf0] sm:$0xf]  ;;  %v12309_v11 = vld [vmem:[%s15652_s6 + $0x64] sm:$0xf]  ;;  %v12308_v57 = vld [vmem:[%s15652_s6 + $0x54] sm:$0xf0] }
 0x838   :  { %v9738_v16 = vld [vmem:[%s15652_s6 + $0x50] sm:$0xf] }
 0x83a   :  { %3586 = vmatpush.bf16.msra.mxu2 %v9507_v42  ;;  %3823 = vmatpush.bf16.msra.mxu1 %v9619_v21  ;;  %v12289_v42 = vld [vmem:[%s15650_s19 + $0xc4] sm:$0xf]  ;;  %v9587_v21 = vor.u32 %v12270_v5, %v9586_v18  ;;  %v9802_v18 = vld [vmem:[%s15652_s6 + $0xd0] sm:$0xf]  ;;  %v12324_v5 = vld [vmem:[%s15652_s6 + $0xd4] sm:$0xf0] }
 0x83b   :  { %3849 = vmatpush.bf16.msra.mxu0 %v9623_v27  ;;  %3862 = vmatpush.bf16.msrb.mxu3 %v9687_v30  ;;  %v9671_v3 = vor.u32 %v12289_v42, %v9668_v6  ;;  %v9591_v27 = vor.u32 %v12269_v9, %v9588_v44  ;;  %v9578_v30 = vld [vmem:[%s15650_s19 + $0x10] sm:$0xf]  ;;  %v9820_v42 = vld [vmem:[%s15652_s6 + $0xf8] sm:$0xf0]  ;;  %v9746_v6 = vld [vmem:[%s15652_s6 + $0x60] sm:$0xf] }
 0x83c   :  { %v9579_v28 = vor.u32 %v12268_v32, %v9578_v30  ;;  %v12323_v9 = vld [vmem:[%s15652_s6 + $0xd4] sm:$0xf]  ;;  %v9804_v44 = vld [vmem:[%s15652_s6 + $0xd8] sm:$0xf0]  ;;  %v12322_v32 = vld [vmem:[%s15652_s6 + $0xc4] sm:$0xf0] }
 0x83d   :  { %v9807_v30 = vor.u32 %v12323_v9, %v9804_v44  ;;  %v9780_v9 = vld [vmem:[%s15652_s6 + $0xa8] sm:$0xf0] }
 0x83e   :  { %3835 = vmatpush.bf16.msrb.mxu2 %v9691_v50  ;;  %3824 = vmatpush.bf16.msra.mxu1 %v9611_v38  ;;  %v9596_v50 = vld [vmem:[%s15650_s19 + $0x38] sm:$0xf0]  ;;  %v12284_v38 = vld [vmem:[%s15650_s19 + $0x94] sm:$0xf0] }
 0x83f   :  { %3850 = vmatpush.bf16.msra.mxu0 %v9615_v41  ;;  %3863 = vmatpush.bf16.msrb.mxu3 %v9679_v24  ;;  %v9599_v12 = vor.u32 %v12271_v14, %v9596_v50  ;;  %v9643_v10 = vor.u32 %v12284_v38, %v9642_v33  ;;  %v12283_v41 = vld [vmem:[%s15650_s19 + $0x94] sm:$0xf]  ;;  %v9644_v24 = vld [vmem:[%s15650_s19 + $0x98] sm:$0xf0]  ;;  %v9748_v14 = vld [vmem:[%s15652_s6 + $0x68] sm:$0xf0] }
 0x840   :  { %v9647_v40 = vor.u32 %v12283_v41, %v9644_v24  ;;  %v12325_v50 = vld [vmem:[%s15652_s6 + $0xe4] sm:$0xf] }
 0x841   :  { %v12305_v33 = vld [vmem:[%s15652_s6 + $0x44] sm:$0xf] }
 0x842   :  { %3836 = vmatpush.bf16.msrb.mxu2 %v9683_v26  ;;  %3825 = vmatpush.bf16.msra.mxu1 %v9603_v61  ;;  %v12286_v26 = vld [vmem:[%s15650_s19 + $0xa4] sm:$0xf0]  ;;  %v12328_v61 = vld [vmem:[%s15652_s6 + $0xf4] sm:$0xf0] }
 0x843   :  { %3851 = vmatpush.bf16.msra.mxu0 %v9607_v2  ;;  %3864 = vmatpush.bf16.msrb.mxu3 %v9671_v3  ;;  %v9651_v25 = vor.u32 %v12286_v26, %v9650_v20  ;;  %v9819_v23 = vor.u32 %v12328_v61, %v9818_v58  ;;  %v9823_v2 = vor.u32 %v12327_v43, %v9820_v42  ;;  %v12310_v3 = vld [vmem:[%s15652_s6 + $0x64] sm:$0xf0]  ;;  %v12307_v20 = vld [vmem:[%s15652_s6 + $0x54] sm:$0xf]  ;;  %v9740_v26 = vld [vmem:[%s15652_s6 + $0x58] sm:$0xf0] }
 0x844   :  { %v9747_v4 = vor.u32 %v12310_v3, %v9746_v6 }
 0x846   :  { %3837 = vmatpush.bf16.msrb.mxu2 %v9675_v39  ;;  %3826 = vmatpush.bf16.msra.mxu1 %v9595_v49  ;;  %v9583_v39 = vor.u32 %v12267_v34, %v9580_v36  ;;  %v9811_v49 = vor.u32 %v12326_v7, %v9810_v59  ;;  %v12321_v36 = vld [vmem:[%s15652_s6 + $0xc4] sm:$0xf] }
 0x847   :  { %3852 = vmatpush.bf16.msra.mxu0 %v9599_v12  ;;  %3865 = vmatpush.bf16.msrb.mxu3 %v9663_v17  ;;  %v9812_v12 = vld [vmem:[%s15652_s6 + $0xe8] sm:$0xf0] }
 0x848   :  { %v9815_v17 = vor.u32 %v12325_v50, %v9812_v12  ;;  %v9714_v12 = vld [vmem:[%s15652_s6 + $0x20] sm:$0xf] }
 0x84a   :  { %3838 = vmatpush.bf16.msrb.mxu2 %v9667_v0  ;;  %3827 = vmatpush.bf16.msra.mxu1 %v9587_v21  ;;  %v9759_v0 = vor.u32 %v12311_v62, %v9756_v8  ;;  %v9739_v21 = vor.u32 %v12308_v57, %v9738_v16  ;;  %v12302_v16 = vld [vmem:[%s15652_s6 + $0x24] sm:$0xf0] }
 0x84b   :  { %3853 = vmatpush.bf16.msra.mxu0 %v9591_v27  ;;  %3866 = vmatpush.bf16.msrb.mxu3 %v9655_v31  ;;  %v9743_v27 = vor.u32 %v12307_v20, %v9740_v26  ;;  %v9794_v31 = vld [vmem:[%s15652_s6 + $0xc0] sm:$0xf]  ;;  %v9715_v57 = vor.u32 %v12302_v16, %v9714_v12  ;;  %v12317_v26 = vld [vmem:[%s15652_s6 + $0xa4] sm:$0xf]  ;;  %v12383_v16 = vld [vmem:[%s15655_s23 + $0x1ac] sm:$0xf0] }
 0x84c   :  { %v9795_v41 = vor.u32 %v12322_v32, %v9794_v31  ;;  %v12299_v32 = vld [vmem:[%s15652_s6 + $0x14] sm:$0xf]  ;;  %v10034_v12 = vld [vmem:[%s15655_s23 + $0x1a0] sm:$0xf] }
 0x84e   :  { %3839 = vmatpush.bf16.msrb.mxu2 %v9659_v1  ;;  %3828 = vmatpush.bf16.msra.mxu1 %v9579_v28  ;;  %v9751_v1 = vor.u32 %v12309_v11, %v9748_v14  ;;  %v9732_v28 = vld [vmem:[%s15652_s6 + $0x48] sm:$0xf0] }
 0x84f   :  { %3854 = vmatpush.bf16.msra.mxu0 %v9583_v39  ;;  %3867 = vmatpush.bf16.msrb.mxu3 %v9647_v40  ;;  %v9731_v39 = vor.u32 %v12306_v22, %v9730_v29  ;;  %v9735_v24 = vor.u32 %v12305_v33, %v9732_v28  ;;  %v9722_v40 = vld [vmem:[%s15652_s6 + $0x30] sm:$0xf]  ;;  %v12300_v29 = vld [vmem:[%s15652_s6 + $0x14] sm:$0xf0]  ;;  %v9708_v33 = vld [vmem:[%s15652_s6 + $0x18] sm:$0xf0] }
 0x850   :  { %v9770_v22 = vld [vmem:[%s15652_s6 + $0x90] sm:$0xf] }
 0x852   :  { %3840 = vmatpush.bf16.msrb.mxu2 %v9651_v25  ;;  %v9803_v25 = vor.u32 %v12324_v5, %v9802_v18  ;;  %v12318_v18 = vld [vmem:[%s15652_s6 + $0xa4] sm:$0xf0]  ;;  %v12301_v5 = vld [vmem:[%s15652_s6 + $0x24] sm:$0xf] }
 0x856   :  { %3841 = vmatpush.bf16.msrb.mxu2 %v9643_v10  ;;  %v9796_v10 = vld [vmem:[%s15652_s6 + $0xc8] sm:$0xf0] }
 0x8b1   :  { %v14189_v46 = vpop.f32.mrf.mxu1 }
 0x8b2   :  { %v3347_v19 = vpop.f32.mrf.mxu0 }
 0x8b3   :  { %v3348_v63 = vadd.f32 %v3347_v19, %v3254_v37  ;;  %v9570_v37 = vld [vmem:[%s15650_s19] sm:$0xf]  ;;  %v12266_v19 = vld [vmem:[%s15650_s19 + $0x4] sm:$0xf0] }
 0x8b5   :  { %v3364_v47 = vmax.f32 %v3348_v63, 0.0  ;;  %v9634_v63 = vld [vmem:[%s15650_s19 + $0x80] sm:$0xf] }
 0x8b7   :  { %v3366_v53 = vpack.c.bf16 %v3364_v47, %v3364_v47  ;;  %v14191_v35 = vpop.f32.mrf.mxu2  ;;  %v9571_v47 = vor.u32 %v12266_v19, %v9570_v37  ;;  %v12304_v37 = vld [vmem:[%s15652_s6 + $0x34] sm:$0xf0]  ;;  %v9786_v19 = vld [vmem:[%s15652_s6 + $0xb0] sm:$0xf] }
 0x8b8   :  { %v3360_v56 = vpop.f32.mrf.mxu3 }
 0x8b9   :  { %v3361_v55 = vadd.f32 %v3360_v56, %v3255_v48  ;;  %3574 = vmatmul.bf16.vlgmr.msrb.gmra.mxu1 %v3366_v53  ;;  %3600 = vmatmul.bf16.vlgmr.msrb.gmra.mxu0 %v3366_v53  ;;  %v3221_v15 = vpop.f32.mrf.mxu1  ;;  %v12282_v48 = vld [vmem:[%s15650_s19 + $0x84] sm:$0xf0]  ;;  %v12265_v53 = vld [vmem:[%s15650_s19 + $0x4] sm:$0xf]  ;;  %v9572_v56 = vld [vmem:[%s15650_s19 + $0x8] sm:$0xf0] }
 0x8ba   :  { %v3349_v13 = vpop.f32.mrf.mxu0  ;;  %v9575_v15 = vor.u32 %v12265_v53, %v9572_v56  ;;  %3829 = vmatpush.bf16.msra.mxu1 %v9571_v47  ;;  %v12320_v47 = vld [vmem:[%s15652_s6 + $0xb4] sm:$0xf0]  ;;  %v9724_v53 = vld [vmem:[%s15652_s6 + $0x38] sm:$0xf0]  ;;  %v3400_v56 = vld [vmem:[%s15653_s20] sm:$0x3] }
 0x8bb   :  { %v3365_v51 = vmax.f32 %v3361_v55, 0.0  ;;  %v9635_v55 = vor.u32 %v12282_v48, %v9634_v63  ;;  %v12281_v13 = vld [vmem:[%s15650_s19 + $0x84] sm:$0xf]  ;;  %v9799_v63 = vor.u32 %v12321_v36, %v9796_v10  ;;  %v12303_v48 = vld [vmem:[%s15652_s6 + $0x34] sm:$0xf]  ;;  %v3403_v58 = vperm.slane %v3400_v56, 1 }
 0x8bc   :  { %3855 = vmatpush.bf16.msra.mxu0 %v9575_v15  ;;  %v9788_v15 = vld [vmem:[%s15652_s6 + $0xb8] sm:$0xf0] }
 0x8bd   :  { %v3367_v52 = vpack.c.bf16 %v3365_v51, %v3365_v51  ;;  %v9636_v51 = vld [vmem:[%s15650_s19 + $0x88] sm:$0xf0]  ;;  %3842 = vmatpush.bf16.msrb.mxu2 %v9635_v55  ;;  %v12319_v55 = vld [vmem:[%s15652_s6 + $0xb4] sm:$0xf]  ;;  %v9772_v36 = vld [vmem:[%s15652_s6 + $0x98] sm:$0xf0] }
 0x8bf   :  { %3587 = vmatmul.bf16.vlgmr.msra.gmra.mxu2 %v3367_v52  ;;  %3613 = vmatmul.bf16.vlgmr.msra.gmra.mxu3 %v3367_v52  ;;  %v3234_v45 = vpop.f32.mrf.mxu2  ;;  %v9639_v52 = vor.u32 %v12281_v13, %v9636_v51  ;;  %v9723_v13 = vor.u32 %v12304_v37, %v9722_v40  ;;  %v3124_v51 = vld [vmem:[%s15654_s22] sm:$0x3]  ;;  %v12314_v37 = vld [vmem:[%s15652_s6 + $0x84] sm:$0xf0] }
 0x8c0   :  { %v3362_v54 = vpop.f32.mrf.mxu3  ;;  %v9754_v45 = vld [vmem:[%s15652_s6 + $0x70] sm:$0xf]  ;;  %4102 = vmatpush.bf16.msrb.mxu0 %v9759_v0  ;;  %v3126_v8 = vperm.slane %v3124_v51, 0 }
 0x8c1   :  { %3868 = vmatpush.bf16.msrb.mxu3 %v9639_v52  ;;  %v12312_v54 = vld [vmem:[%s15652_s6 + $0x74] sm:$0xf0]  ;;  %4089 = vmatpush.bf16.msra.mxu2 %v9819_v23  ;;  %v9787_v52 = vor.u32 %v12320_v47, %v9786_v19  ;;  %v3127_v23 = vperm.slane %v3124_v51, 1  ;;  %v12297_v19 = vld [vmem:[%s15652_s6 + $0x4] sm:$0xf] }
 0x8c2   :  { %v9755_v60 = vor.u32 %v12312_v54, %v9754_v45  ;;  %v9727_v45 = vor.u32 %v12303_v48, %v9724_v53  ;;  %v3402_v54 = vperm.slane %v3400_v56, 0  ;;  %v12313_v53 = vld [vmem:[%s15652_s6 + $0x84] sm:$0xf]  ;;  %v9764_v56 = vld [vmem:[%s15652_s6 + $0x88] sm:$0xf0] }
 0x8c3   :  { %v3233_v3 = vadd.f32 %v14191_v35, %v3127_v23  ;;  %v10066_v51 = vld [vmem:[%s15655_s23 + $0x1e0] sm:$0xf] }
 0x8c4   :  { %4076 = vmatpush.bf16.msrb.mxu1 %v9755_v60  ;;  %4103 = vmatpush.bf16.msrb.mxu0 %v9751_v1  ;;  %v9791_v60 = vor.u32 %v12319_v55, %v9788_v15  ;;  %v9767_v55 = vor.u32 %v12313_v53, %v9764_v56  ;;  %v9938_v15 = vld [vmem:[%s15655_s23 + $0xe0] sm:$0xf] }
 0x8c5   :  { %4115 = vmatpush.bf16.msra.mxu3 %v9823_v2  ;;  %4090 = vmatpush.bf16.msra.mxu2 %v9811_v49  ;;  %v3220_v2 = vadd.f32 %v14189_v46, %v3126_v8  ;;  %v10068_v8 = vld [vmem:[%s15655_s23 + $0x1f0] sm:$0xf0]  ;;  %v9922_v23 = vld [vmem:[%s15655_s23 + $0xc0] sm:$0xf] }
 0x8c6   :  { %v9858_v56 = vld [vmem:[%s15655_s23 + $0x40] sm:$0xf] }
 0x8c8   :  { %4077 = vmatpush.bf16.msrb.mxu1 %v9747_v4  ;;  %4104 = vmatpush.bf16.msrb.mxu0 %v9743_v27  ;;  %v9706_v27 = vld [vmem:[%s15652_s6 + $0x10] sm:$0xf] }
 0x8c9   :  { %4116 = vmatpush.bf16.msra.mxu3 %v9815_v17  ;;  %4091 = vmatpush.bf16.msra.mxu2 %v9803_v25  ;;  %v9778_v17 = vld [vmem:[%s15652_s6 + $0xa0] sm:$0xf]  ;;  %v9783_v25 = vor.u32 %v12317_v26, %v9780_v9  ;;  %v9707_v31 = vor.u32 %v12300_v29, %v9706_v27  ;;  %v12379_v29 = vld [vmem:[%s15655_s23 + $0x18c] sm:$0xf0] }
 0x8ca   :  { %v9779_v20 = vor.u32 %v12318_v18, %v9778_v17  ;;  %v9908_v18 = vld [vmem:[%s15655_s23 + $0xb0] sm:$0xf0]  ;;  %v9890_v9 = vld [vmem:[%s15655_s23 + $0x80] sm:$0xf] }
 0x8cc   :  { %4078 = vmatpush.bf16.msrb.mxu1 %v9739_v21  ;;  %4105 = vmatpush.bf16.msrb.mxu0 %v9735_v24  ;;  %v9716_v21 = vld [vmem:[%s15652_s6 + $0x28] sm:$0xf0]  ;;  %v9762_v24 = vld [vmem:[%s15652_s6 + $0x80] sm:$0xf] }
 0x8cd   :  { %4117 = vmatpush.bf16.msra.mxu3 %v9807_v30  ;;  %4092 = vmatpush.bf16.msra.mxu2 %v9795_v41  ;;  %v9719_v44 = vor.u32 %v12301_v5, %v9716_v21  ;;  %v12316_v30 = vld [vmem:[%s15652_s6 + $0x94] sm:$0xf0]  ;;  %v12298_v41 = vld [vmem:[%s15652_s6 + $0x4] sm:$0xf0]  ;;  %v9763_v47 = vor.u32 %v12314_v37, %v9762_v24  ;;  %v12381_v5 = vld [vmem:[%s15655_s23 + $0x1a4] sm:$0xf]  ;;  %v10035_v21 = vor.u32 %v12383_v16, %v10034_v12 }
 0x8ce   :  { %v9771_v28 = vor.u32 %v12316_v30, %v9770_v22  ;;  %v12345_v22 = vld [vmem:[%s15655_s23 + $0x84] sm:$0xf]  ;;  %v9826_v16 = vld [vmem:[%s15655_s23] sm:$0xf] }
 0x8cf   :  { %v12377_v30 = vld [vmem:[%s15655_s23 + $0x184] sm:$0xf] }
 0x8d0   :  { %4079 = vmatpush.bf16.msrb.mxu1 %v9731_v39  ;;  %4106 = vmatpush.bf16.msrb.mxu0 %v9727_v45  ;;  %v9698_v39 = vld [vmem:[%s15652_s6] sm:$0xf]  ;;  %v12391_v45 = vld [vmem:[%s15655_s23 + $0x1ec] sm:$0xf0]  ;;  %v12341_v24 = vld [vmem:[%s15655_s23 + $0x64] sm:$0xf] }
 0x8d1   :  { %4118 = vmatpush.bf16.msra.mxu3 %v9799_v63  ;;  %4093 = vmatpush.bf16.msra.mxu2 %v9787_v52  ;;  %v9699_v40 = vor.u32 %v12298_v41, %v9698_v39  ;;  %v9700_v63 = vld [vmem:[%s15652_s6 + $0x8] sm:$0xf0]  ;;  %v12375_v41 = vld [vmem:[%s15655_s23 + $0x16c] sm:$0xf0]  ;;  %v12373_v37 = vld [vmem:[%s15655_s23 + $0x164] sm:$0xf] }
 0x8d2   :  { %v9703_v48 = vor.u32 %v12297_v19, %v9700_v63  ;;  %v10004_v19 = vld [vmem:[%s15655_s23 + $0x170] sm:$0xf0]  ;;  %v3656_v63 = vld [vmem:[%s15656_s26] sm:$0x3] }
 0x8d4   :  { %4080 = vmatpush.bf16.msrb.mxu1 %v9723_v13  ;;  %4107 = vmatpush.bf16.msrb.mxu0 %v9719_v44  ;;  %v12359_v13 = vld [vmem:[%s15655_s23 + $0xec] sm:$0xf0] }
 0x8d5   :  { %4119 = vmatpush.bf16.msra.mxu3 %v9791_v60  ;;  %4094 = vmatpush.bf16.msra.mxu2 %v9779_v20  ;;  %v9939_v52 = vor.u32 %v12359_v13, %v9938_v15  ;;  %v10067_v60 = vor.u32 %v12391_v45, %v10066_v51  ;;  %v10036_v20 = vld [vmem:[%s15655_s23 + $0x1b0] sm:$0xf0]  ;;  %v12347_v44 = vld [vmem:[%s15655_s23 + $0x8c] sm:$0xf0]  ;;  %v9986_v15 = vld [vmem:[%s15655_s23 + $0x140] sm:$0xf]  ;;  %v10007_v51 = vor.u32 %v12373_v37, %v10004_v19 }
 0x8d6   :  { %v10039_v27 = vor.u32 %v12381_v5, %v10036_v20  ;;  %v12337_v45 = vld [vmem:[%s15655_s23 + $0x44] sm:$0xf]  ;;  %v12390_v37 = vld [vmem:[%s15655_s23 + $0x1ec] sm:$0xf]  ;;  %v10076_v19 = vld [vmem:[%s15655_s23 + $0x1f8] sm:$0xf0] }
 0x8d8   :  { %4081 = vmatpush.bf16.msrb.mxu1 %v9715_v57  ;;  %v12349_v57 = vld [vmem:[%s15655_s23 + $0xa4] sm:$0xf] }
 0x8d9   :  { %4120 = vmatpush.bf16.msra.mxu3 %v9783_v25  ;;  %4095 = vmatpush.bf16.msra.mxu2 %v9771_v28  ;;  %v9911_v26 = vor.u32 %v12349_v57, %v9908_v18  ;;  %v10018_v25 = vld [vmem:[%s15655_s23 + $0x180] sm:$0xf]  ;;  %v12331_v57 = vld [vmem:[%s15655_s23 + $0xc] sm:$0xf0] }
 0x8da   :  { %v10019_v28 = vor.u32 %v12379_v29, %v10018_v25 }
 0x8dc   :  { %4082 = vmatpush.bf16.msrb.mxu1 %v9707_v31  ;;  %v9892_v31 = vld [vmem:[%s15655_s23 + $0x90] sm:$0xf0] }
 0x8dd   :  { %4096 = vmatpush.bf16.msra.mxu2 %v9763_v47 }
 0x8e0   :  { %4083 = vmatpush.bf16.msrb.mxu1 %v9699_v40  ;;  %v9876_v40 = vld [vmem:[%s15655_s23 + $0x70] sm:$0xf0] }
 0x8e1   :  { %v9879_v53 = vor.u32 %v12341_v24, %v9876_v40  ;;  %v9948_v40 = vld [vmem:[%s15655_s23 + $0xf8] sm:$0xf0] }
 0x936   :  { %v3575_v38 = vpop.f32.mrf.mxu1  ;;  %v3601_v34 = vpop.f32.mrf.mxu0 }
 0x937   :  { %v3576_v0 = vadd.f32 %v3575_v38, %v3402_v54  ;;  %v3602_v43 = vadd.f32 %v3601_v34, %v3403_v58  ;;  %v9711_v38 = vor.u32 %v12299_v32, %v9708_v33  ;;  %v12315_v34 = vld [vmem:[%s15652_s6 + $0x94] sm:$0xf]  ;;  %v12357_v54 = vld [vmem:[%s15655_s23 + $0xe4] sm:$0xf]  ;;  %v9891_v33 = vor.u32 %v12347_v44, %v9890_v9 }
 0x938   :  { %v9775_v10 = vor.u32 %v12315_v34, %v9772_v36  ;;  %v9940_v58 = vld [vmem:[%s15655_s23 + $0xf0] sm:$0xf0]  ;;  %v9874_v34 = vld [vmem:[%s15655_s23 + $0x60] sm:$0xf]  ;;  %v12343_v36 = vld [vmem:[%s15655_s23 + $0x6c] sm:$0xf0] }
 0x939   :  { %4108 = vmatpush.bf16.msrb.mxu0 %v9711_v38  ;;  %v10020_v32 = vld [vmem:[%s15655_s23 + $0x190] sm:$0xf0]  ;;  %v9895_v38 = vor.u32 %v12345_v22, %v9892_v31  ;;  %v9875_v47 = vor.u32 %v12343_v36, %v9874_v34  ;;  %v12329_v9 = vld [vmem:[%s15655_s23 + $0x4] sm:$0xf]  ;;  %v12392_v36 = vld [vmem:[%s15655_s23 + $0x1f4] sm:$0xf0] }
 0x93a   :  { %4121 = vmatpush.bf16.msra.mxu3 %v9775_v10  ;;  %v10002_v10 = vld [vmem:[%s15655_s23 + $0x160] sm:$0xf]  ;;  %v10023_v39 = vor.u32 %v12377_v30, %v10020_v32  ;;  %v9828_v44 = vld [vmem:[%s15655_s23 + $0x10] sm:$0xf0]  ;;  %v12361_v22 = vld [vmem:[%s15655_s23 + $0x104] sm:$0xf] }
 0x93b   :  { %v9956_v31 = vld [vmem:[%s15655_s23 + $0x110] sm:$0xf0]  ;;  %v9946_v30 = vld [vmem:[%s15655_s23 + $0xe8] sm:$0xf] }
 0x93d   :  { %4109 = vmatpush.bf16.msrb.mxu0 %v9703_v48  ;;  %v10003_v48 = vor.u32 %v12375_v41, %v10002_v10  ;;  %v12358_v10 = vld [vmem:[%s15655_s23 + $0xec] sm:$0xf]  ;;  %v9827_v41 = vor.u32 %v12331_v57, %v9826_v16 }
 0x93e   :  { %v3577_v61 = vpop.f32.mrf.mxu1  ;;  %v3603_v62 = vpop.f32.mrf.mxu0  ;;  %4122 = vmatpush.bf16.msra.mxu3 %v9767_v55  ;;  %v12339_v55 = vld [vmem:[%s15655_s23 + $0x4c] sm:$0xf0] }
 0x93f   :  { %v9943_v61 = vor.u32 %v12357_v54, %v9940_v58  ;;  %v12389_v62 = vld [vmem:[%s15655_s23 + $0x1e4] sm:$0xf]  ;;  %v9860_v54 = vld [vmem:[%s15655_s23 + $0x50] sm:$0xf0]  ;;  %v3658_v58 = vperm.slane %v3656_v63, 0 }
 0x942   :  { %v3588_v42 = vpop.f32.mrf.mxu2  ;;  %v3614_v6 = vpop.f32.mrf.mxu3 }
 0x943   :  { %v3589_v59 = vadd.f32 %v3588_v42, %v3576_v0  ;;  %v3615_v7 = vadd.f32 %v3614_v6, %v3602_v43  ;;  %v10071_v0 = vor.u32 %v12389_v62, %v10068_v8  ;;  %v12355_v43 = vld [vmem:[%s15655_s23 + $0xcc] sm:$0xf0]  ;;  %v10050_v42 = vld [vmem:[%s15655_s23 + $0x1c0] sm:$0xf]  ;;  %v9988_v62 = vld [vmem:[%s15655_s23 + $0x150] sm:$0xf0] }
 0x944   :  { %v12387_v6 = vld [vmem:[%s15655_s23 + $0x1cc] sm:$0xf0]  ;;  %v3659_v8 = vperm.slane %v3656_v63, 1 }
 0x945   :  { %v3618_v4 = vadd.f32 %v3589_v59, %v3220_v2  ;;  %v3619_v49 = vadd.f32 %v3615_v7, %v3233_v3  ;;  %v9923_v2 = vor.u32 %v12355_v43, %v9922_v23  ;;  %v10051_v3 = vor.u32 %v12387_v6, %v10050_v42  ;;  %v12353_v59 = vld [vmem:[%s15655_s23 + $0xc4] sm:$0xf]  ;;  %v9924_v7 = vld [vmem:[%s15655_s23 + $0xd0] sm:$0xf0]  ;;  %v9842_v42 = vld [vmem:[%s15655_s23 + $0x20] sm:$0xf] }
 0x946   :  { %v9859_v23 = vor.u32 %v12339_v55, %v9858_v56  ;;  %v9863_v43 = vor.u32 %v12337_v45, %v9860_v54  ;;  %v12335_v6 = vld [vmem:[%s15655_s23 + $0x2c] sm:$0xf0]  ;;  %v9930_v55 = vld [vmem:[%s15655_s23 + $0xc8] sm:$0xf]  ;;  %v12388_v54 = vld [vmem:[%s15655_s23 + $0x1d4] sm:$0xf0] }
 0x947   :  { %v14277_v11 = vmax.f32 %v3618_v4, 0.0  ;;  %v14279_v14 = vmax.f32 %v3619_v49, 0.0  ;;  %v12385_v4 = vld [vmem:[%s15655_s23 + $0x1c4] sm:$0xf]  ;;  %v9927_v49 = vor.u32 %v12353_v59, %v9924_v7  ;;  %v12367_v59 = vld [vmem:[%s15655_s23 + $0x12c] sm:$0xf0]  ;;  %v9843_v12 = vor.u32 %v12335_v6, %v9842_v42 }
 0x948   :  { %v12333_v7 = vld [vmem:[%s15655_s23 + $0x24] sm:$0xf]  ;;  %v10058_v45 = vld [vmem:[%s15655_s23 + $0x1c8] sm:$0xf]  ;;  %v12352_v42 = vld [vmem:[%s15655_s23 + $0xb4] sm:$0xf0] }
 0x949   :  { %v3622_v50 = vpack.c.bf16 %v14277_v11, %v14277_v11  ;;  %v3623_v46 = vpack.c.bf16 %v14279_v14, %v14279_v14 }
 0x94a   :  { %v3590_v35 = vpop.f32.mrf.mxu2  ;;  %v3616_v1 = vpop.f32.mrf.mxu3 }
 0x94b   :  { %3830 = vmatmul.bf16.vlgmr.msra.gmra.mxu1 %v3622_v50  ;;  %3843 = vmatmul.bf16.vlgmr.msrb.gmra.mxu2 %v3623_v46  ;;  %v12351_v35 = vld [vmem:[%s15655_s23 + $0xac] sm:$0xf0] }
 0x94c   :  { %3856 = vmatmul.bf16.vlgmr.msra.gmra.mxu0 %v3622_v50  ;;  %3869 = vmatmul.bf16.vlgmr.msrb.gmra.mxu3 %v3623_v46  ;;  %v10052_v50 = vld [vmem:[%s15655_s23 + $0x1d0] sm:$0xf0]  ;;  %v9906_v46 = vld [vmem:[%s15655_s23 + $0xa0] sm:$0xf] }
 0x94d   :  { %4528 = vmatpush.bf16.msra.mxu1 %v9939_v52  ;;  %4541 = vmatpush.bf16.msrb.mxu2 %v10067_v60  ;;  %v10055_v1 = vor.u32 %v12385_v4, %v10052_v50  ;;  %v9907_v17 = vor.u32 %v12351_v35, %v9906_v46  ;;  %v12371_v52 = vld [vmem:[%s15655_s23 + $0x14c] sm:$0xf0]  ;;  %v9844_v4 = vld [vmem:[%s15655_s23 + $0x30] sm:$0xf0]  ;;  %v12365_v50 = vld [vmem:[%s15655_s23 + $0x124] sm:$0xf] }
 0x94e   :  { %4554 = vmatpush.bf16.msra.mxu0 %v9943_v61  ;;  %4567 = vmatpush.bf16.msrb.mxu3 %v10071_v0  ;;  %v12369_v61 = vld [vmem:[%s15655_s23 + $0x144] sm:$0xf]  ;;  %v9987_v0 = vor.u32 %v12371_v52, %v9986_v15  ;;  %v9972_v46 = vld [vmem:[%s15655_s23 + $0x130] sm:$0xf0]  ;;  %v12356_v15 = vld [vmem:[%s15655_s23 + $0xd4] sm:$0xf0]  ;;  %v10079_v52 = vor.u32 %v12390_v37, %v10076_v19 }
 0x94f   :  { %v9975_v29 = vor.u32 %v12365_v50, %v9972_v46  ;;  %v10044_v50 = vld [vmem:[%s15655_s23 + $0x1b8] sm:$0xf0]  ;;  %v12372_v19 = vld [vmem:[%s15655_s23 + $0x154] sm:$0xf0] }
 0x951   :  { %4529 = vmatpush.bf16.msra.mxu1 %v9923_v2  ;;  %4542 = vmatpush.bf16.msrb.mxu2 %v10051_v3  ;;  %v9970_v2 = vld [vmem:[%s15655_s23 + $0x120] sm:$0xf]  ;;  %v9991_v3 = vor.u32 %v12369_v61, %v9988_v62  ;;  %v9932_v61 = vld [vmem:[%s15655_s23 + $0xd8] sm:$0xf0]  ;;  %v12386_v62 = vld [vmem:[%s15655_s23 + $0x1cc] sm:$0xf] }
 0x952   :  { %4555 = vmatpush.bf16.msra.mxu0 %v9927_v49  ;;  %4568 = vmatpush.bf16.msrb.mxu3 %v10055_v1  ;;  %v9971_v20 = vor.u32 %v12367_v59, %v9970_v2  ;;  %v12384_v59 = vld [vmem:[%s15655_s23 + $0x1b4] sm:$0xf0] }
 0x955   :  { %4530 = vmatpush.bf16.msra.mxu1 %v9907_v17  ;;  %4543 = vmatpush.bf16.msrb.mxu2 %v10035_v21  ;;  %v9954_v17 = vld [vmem:[%s15655_s23 + $0x100] sm:$0xf]  ;;  %v9847_v21 = vor.u32 %v12333_v7, %v9844_v4  ;;  %v12350_v7 = vld [vmem:[%s15655_s23 + $0xac] sm:$0xf]  ;;  %v9916_v4 = vld [vmem:[%s15655_s23 + $0xb8] sm:$0xf0] }
 0x956   :  { %4556 = vmatpush.bf16.msra.mxu0 %v9911_v26  ;;  %4569 = vmatpush.bf16.msrb.mxu3 %v10039_v27  ;;  %v12363_v26 = vld [vmem:[%s15655_s23 + $0x10c] sm:$0xf0]  ;;  %v9919_v16 = vor.u32 %v12350_v7, %v9916_v4  ;;  %v9836_v7 = vld [vmem:[%s15655_s23 + $0x18] sm:$0xf0] }
 0x957   :  { %v9955_v24 = vor.u32 %v12363_v26, %v9954_v17  ;;  %v10026_v17 = vld [vmem:[%s15655_s23 + $0x188] sm:$0xf]  ;;  %v10028_v26 = vld [vmem:[%s15655_s23 + $0x198] sm:$0xf0] }
 0x959   :  { %4531 = vmatpush.bf16.msra.mxu1 %v9891_v33  ;;  %4544 = vmatpush.bf16.msrb.mxu2 %v10019_v28  ;;  %v12360_v28 = vld [vmem:[%s15655_s23 + $0xf4] sm:$0xf0] }
 0x95a   :  { %4557 = vmatpush.bf16.msra.mxu0 %v9895_v38  ;;  %4570 = vmatpush.bf16.msrb.mxu3 %v10023_v39  ;;  %v10074_v38 = vld [vmem:[%s15655_s23 + $0x1e8] sm:$0xf] }
 0x95b   :  { %v10075_v56 = vor.u32 %v12392_v36, %v10074_v38  ;;  %v9884_v38 = vld [vmem:[%s15655_s23 + $0x78] sm:$0xf0] }
 0x95c   :  { %v10012_v36 = vld [vmem:[%s15655_s23 + $0x178] sm:$0xf0] }
 0x95d   :  { %4532 = vmatpush.bf16.msra.mxu1 %v9875_v47  ;;  %4545 = vmatpush.bf16.msrb.mxu2 %v10003_v48  ;;  %v9831_v47 = vor.u32 %v12329_v9, %v9828_v44  ;;  %v9959_v48 = vor.u32 %v12361_v22, %v9956_v31  ;;  %v12344_v22 = vld [vmem:[%s15655_s23 + $0x74] sm:$0xf0] }
 0x95e   :  { %4558 = vmatpush.bf16.msra.mxu0 %v9879_v53  ;;  %4571 = vmatpush.bf16.msrb.mxu3 %v10007_v51  ;;  %v9947_v53 = vor.u32 %v12360_v28, %v9946_v30  ;;  %v9951_v51 = vor.u32 %v12358_v10, %v9948_v40  ;;  %v10010_v30 = vld [vmem:[%s15655_s23 + $0x168] sm:$0xf] }
 0x95f   :  { %v9994_v40 = vld [vmem:[%s15655_s23 + $0x148] sm:$0xf] }
 0x961   :  { %4533 = vmatpush.bf16.msra.mxu1 %v9859_v23  ;;  %4546 = vmatpush.bf16.msrb.mxu2 %v9987_v0  ;;  %v9931_v23 = vor.u32 %v12356_v15, %v9930_v55  ;;  %v10059_v0 = vor.u32 %v12388_v54, %v10058_v45  ;;  %v9996_v55 = vld [vmem:[%s15655_s23 + $0x158] sm:$0xf0]  ;;  %v12368_v54 = vld [vmem:[%s15655_s23 + $0x134] sm:$0xf0] }
 0x962   :  { %4559 = vmatpush.bf16.msra.mxu0 %v9863_v43  ;;  %4572 = vmatpush.bf16.msrb.mxu3 %v9991_v3  ;;  %v9914_v43 = vld [vmem:[%s15655_s23 + $0xa8] sm:$0xf] }
 0x963   :  { %v10042_v3 = vld [vmem:[%s15655_s23 + $0x1a8] sm:$0xf]  ;;  %v9915_v46 = vor.u32 %v12352_v42, %v9914_v43  ;;  %v12332_v42 = vld [vmem:[%s15655_s23 + $0x14] sm:$0xf0] }
 0x964   :  { %v9834_v43 = vld [vmem:[%s15655_s23 + $0x8] sm:$0xf] }
 0x965   :  { %4534 = vmatpush.bf16.msra.mxu1 %v9843_v12  ;;  %4547 = vmatpush.bf16.msrb.mxu2 %v9971_v20  ;;  %v12348_v12 = vld [vmem:[%s15655_s23 + $0x94] sm:$0xf0]  ;;  %v9900_v20 = vld [vmem:[%s15655_s23 + $0x98] sm:$0xf0] }
 0x966   :  { %4560 = vmatpush.bf16.msra.mxu0 %v9847_v21  ;;  %4573 = vmatpush.bf16.msrb.mxu3 %v9975_v29  ;;  %v12378_v21 = vld [vmem:[%s15655_s23 + $0x18c] sm:$0xf]  ;;  %v9882_v29 = vld [vmem:[%s15655_s23 + $0x68] sm:$0xf] }
 0x967   :  { %v9883_v31 = vor.u32 %v12344_v22, %v9882_v29  ;;  %v10194_v22 = vld [vmem:[%s15658_s1 + $0xe0] sm:$0xf] }
 0x969   :  { %4535 = vmatpush.bf16.msra.mxu1 %v9827_v41  ;;  %4548 = vmatpush.bf16.msrb.mxu2 %v9955_v24  ;;  %v9866_v41 = vld [vmem:[%s15655_s23 + $0x48] sm:$0xf]  ;;  %v12340_v24 = vld [vmem:[%s15655_s23 + $0x54] sm:$0xf0] }
 0x96a   :  { %4561 = vmatpush.bf16.msra.mxu0 %v9831_v47  ;;  %4574 = vmatpush.bf16.msrb.mxu3 %v9959_v48  ;;  %v9867_v37 = vor.u32 %v12340_v24, %v9866_v41  ;;  %v9868_v47 = vld [vmem:[%s15655_s23 + $0x58] sm:$0xf0]  ;;  %v9995_v48 = vor.u32 %v12372_v19, %v9994_v40  ;;  %v10178_v24 = vld [vmem:[%s15658_s1 + $0xc0] sm:$0xf]  ;;  %v12419_v40 = vld [vmem:[%s15658_s1 + $0xcc] sm:$0xf0] }
 0x9c8   :  { %v3831_v13 = vpop.f32.mrf.mxu1 }
 0x9c9   :  { %v3857_v60 = vpop.f32.mrf.mxu0  ;;  %v3832_v49 = vadd.f32 %v3831_v13, %v3658_v58  ;;  %v12354_v58 = vld [vmem:[%s15655_s23 + $0xcc] sm:$0xf] }
 0x9ca   :  { %v3858_v35 = vadd.f32 %v3857_v60, %v3659_v8  ;;  %v10060_v8 = vld [vmem:[%s15655_s23 + $0x1d8] sm:$0xf0]  ;;  %v9935_v6 = vor.u32 %v12354_v58, %v9932_v61  ;;  %v12334_v58 = vld [vmem:[%s15655_s23 + $0x2c] sm:$0xf] }
 0x9cb   :  { %v10063_v2 = vor.u32 %v12386_v62, %v10060_v8  ;;  %v12366_v8 = vld [vmem:[%s15655_s23 + $0x12c] sm:$0xf] }
 0x9ce   :  { %v3844_v1 = vpop.f32.mrf.mxu2 }
 0x9cf   :  { %v3845_v18 = vadd.f32 %v3844_v1, %v3832_v49  ;;  %v3870_v5 = vpop.f32.mrf.mxu3  ;;  %v12382_v49 = vld [vmem:[%s15655_s23 + $0x1ac] sm:$0xf]  ;;  %v9898_v1 = vld [vmem:[%s15655_s23 + $0x88] sm:$0xf] }
 0x9d0   :  { %v3871_v25 = vadd.f32 %v3870_v5, %v3858_v35  ;;  %v3833_v27 = vpop.f32.mrf.mxu1  ;;  %v10043_v35 = vor.u32 %v12384_v59, %v10042_v3  ;;  %v10047_v57 = vor.u32 %v12382_v49, %v10044_v50  ;;  %v12346_v5 = vld [vmem:[%s15655_s23 + $0x8c] sm:$0xf]  ;;  %v9899_v9 = vor.u32 %v12348_v12, %v9898_v1  ;;  %v12364_v3 = vld [vmem:[%s15655_s23 + $0x114] sm:$0xf0]  ;;  %v3910_v1 = vld [vmem:[%s15657_s28] sm:$0x3] }
 0x9d1   :  { %v3874_v32 = vmax.f32 %v3845_v18, 0.0  ;;  %v3859_v33 = vpop.f32.mrf.mxu0  ;;  %v12380_v18 = vld [vmem:[%s15655_s23 + $0x194] sm:$0xf0]  ;;  %v10031_v27 = vor.u32 %v12378_v21, %v10028_v26  ;;  %v12330_v59 = vld [vmem:[%s15655_s23 + $0xc] sm:$0xf] }
 0x9d2   :  { %v3875_v34 = vmax.f32 %v3871_v25, 0.0  ;;  %v10027_v44 = vor.u32 %v12380_v18, %v10026_v17  ;;  %v9903_v25 = vor.u32 %v12346_v5, %v9900_v20  ;;  %v12342_v33 = vld [vmem:[%s15655_s23 + $0x6c] sm:$0xf]  ;;  %v9839_v49 = vor.u32 %v12330_v59, %v9836_v7 }
 0x9d3   :  { %v3876_v39 = vpack.c.bf16 %v3874_v32, %v3874_v32  ;;  %v12376_v32 = vld [vmem:[%s15655_s23 + $0x174] sm:$0xf0]  ;;  %v9887_v10 = vor.u32 %v12342_v33, %v9884_v38  ;;  %v12362_v50 = vld [vmem:[%s15655_s23 + $0x10c] sm:$0xf]  ;;  %v3913_v17 = vperm.slane %v3910_v1, 1 }
 0x9d4   :  { %v3877_v63 = vpack.c.bf16 %v3875_v34, %v3875_v34  ;;  %v10011_v28 = vor.u32 %v12376_v32, %v10010_v30  ;;  %v12374_v34 = vld [vmem:[%s15655_s23 + $0x16c] sm:$0xf]  ;;  %v10322_v30 = vld [vmem:[%s15658_s1 + $0x1e0] sm:$0xf]  ;;  %v12455_v32 = vld [vmem:[%s15658_s1 + $0x1ec] sm:$0xf0] }
 0x9d5   :  { %4084 = vmatmul.bf16.vlgmr.msrb.gmra.mxu1 %v3876_v39  ;;  %4110 = vmatmul.bf16.vlgmr.msrb.gmra.mxu0 %v3876_v39  ;;  %v10015_v39 = vor.u32 %v12374_v34, %v10012_v36  ;;  %v12421_v33 = vld [vmem:[%s15658_s1 + $0xe4] sm:$0xf]  ;;  %v10323_v41 = vor.u32 %v12455_v32, %v10322_v30 }
 0x9d6   :  { %4097 = vmatmul.bf16.vlgmr.msra.gmra.mxu2 %v3877_v63  ;;  %4123 = vmatmul.bf16.vlgmr.msra.gmra.mxu3 %v3877_v63  ;;  %v3846_v13 = vpop.f32.mrf.mxu2  ;;  %v12338_v63 = vld [vmem:[%s15655_s23 + $0x4c] sm:$0xf]  ;;  %v12453_v36 = vld [vmem:[%s15658_s1 + $0x1e4] sm:$0xf] }
 0x9d7   :  { %v3872_v60 = vpop.f32.mrf.mxu3  ;;  %4580 = vmatpush.bf16.msrb.mxu1 %v9947_v53  ;;  %4593 = vmatpush.bf16.msra.mxu2 %v10075_v56  ;;  %v9871_v53 = vor.u32 %v12338_v63, %v9868_v47  ;;  %v12370_v56 = vld [vmem:[%s15655_s23 + $0x14c] sm:$0xf]  ;;  %v9850_v13 = vld [vmem:[%s15655_s23 + $0x28] sm:$0xf] }
 0x9d8   :  { %4606 = vmatpush.bf16.msrb.mxu0 %v9951_v51  ;;  %4619 = vmatpush.bf16.msra.mxu3 %v10079_v52  ;;  %v9999_v15 = vor.u32 %v12370_v56, %v9996_v55  ;;  %v12336_v51 = vld [vmem:[%s15655_s23 + $0x34] sm:$0xf0]  ;;  %v9978_v52 = vld [vmem:[%s15655_s23 + $0x128] sm:$0xf]  ;;  %v9852_v60 = vld [vmem:[%s15655_s23 + $0x38] sm:$0xf0] }
 0x9d9   :  { %v9851_v45 = vor.u32 %v12336_v51, %v9850_v13  ;;  %v9979_v61 = vor.u32 %v12368_v54, %v9978_v52  ;;  %v9855_v62 = vor.u32 %v12334_v58, %v9852_v60  ;;  %v12417_v56 = vld [vmem:[%s15658_s1 + $0xc4] sm:$0xf]  ;;  %v10180_v55 = vld [vmem:[%s15658_s1 + $0xd0] sm:$0xf0]  ;;  %v10179_v51 = vor.u32 %v12419_v40, %v10178_v24  ;;  %v12415_v54 = vld [vmem:[%s15658_s1 + $0xac] sm:$0xf0] }
 0x9da   :  { %v10308_v13 = vld [vmem:[%s15658_s1 + $0x1d0] sm:$0xf0]  ;;  %v10183_v58 = vor.u32 %v12417_v56, %v10180_v55  ;;  %v10098_v24 = vld [vmem:[%s15658_s1 + $0x20] sm:$0xf]  ;;  %v12399_v40 = vld [vmem:[%s15658_s1 + $0x2c] sm:$0xf0] }
 0x9db   :  { %4581 = vmatpush.bf16.msrb.mxu1 %v9931_v23  ;;  %4594 = vmatpush.bf16.msra.mxu2 %v10059_v0  ;;  %v9980_v23 = vld [vmem:[%s15655_s23 + $0x138] sm:$0xf0]  ;;  %v12429_v56 = vld [vmem:[%s15658_s1 + $0x124] sm:$0xf]  ;;  %v10228_v55 = vld [vmem:[%s15658_s1 + $0x130] sm:$0xf0] }
 0x9dc   :  { %4607 = vmatpush.bf16.msrb.mxu0 %v9935_v6  ;;  %4620 = vmatpush.bf16.msra.mxu3 %v10063_v2  ;;  %v9983_v0 = vor.u32 %v12366_v8, %v9980_v23  ;;  %v9962_v6 = vld [vmem:[%s15655_s23 + $0x108] sm:$0xf]  ;;  %v9835_v2 = vor.u32 %v12332_v42, %v9834_v43  ;;  %v12413_v8 = vld [vmem:[%s15658_s1 + $0xa4] sm:$0xf]  ;;  %v10164_v23 = vld [vmem:[%s15658_s1 + $0xb0] sm:$0xf0] }
 0x9dd   :  { %v9963_v4 = vor.u32 %v12364_v3, %v9962_v6  ;;  %v10292_v43 = vld [vmem:[%s15658_s1 + $0x1b0] sm:$0xf0]  ;;  %v12411_v3 = vld [vmem:[%s15658_s1 + $0x8c] sm:$0xf0]  ;;  %v10167_v59 = vor.u32 %v12413_v8, %v10164_v23  ;;  %v12425_v8 = vld [vmem:[%s15658_s1 + $0x104] sm:$0xf] }
 0x9de   :  { %v10212_v23 = vld [vmem:[%s15658_s1 + $0x110] sm:$0xf0] }
 0x9df   :  { %4582 = vmatpush.bf16.msrb.mxu1 %v9915_v46  ;;  %4595 = vmatpush.bf16.msra.mxu2 %v10043_v35  ;;  %v9964_v46 = vld [vmem:[%s15655_s23 + $0x118] sm:$0xf0] }
 0x9e0   :  { %4608 = vmatpush.bf16.msrb.mxu0 %v9919_v16  ;;  %4621 = vmatpush.bf16.msra.mxu3 %v10047_v57  ;;  %v9967_v35 = vor.u32 %v12362_v50, %v9964_v46  ;;  %v3912_v57 = vperm.slane %v3910_v1, 0  ;;  %v12409_v50 = vld [vmem:[%s15658_s1 + $0x84] sm:$0xf]  ;;  %v10148_v46 = vld [vmem:[%s15658_s1 + $0x90] sm:$0xf0] }
 0x9e1   :  { %v10276_v1 = vld [vmem:[%s15658_s1 + $0x190] sm:$0xf0] }
 0x9e3   :  { %4583 = vmatpush.bf16.msrb.mxu1 %v9899_v9  ;;  %4596 = vmatpush.bf16.msra.mxu2 %v10027_v44 }
 0x9e4   :  { %4609 = vmatpush.bf16.msrb.mxu0 %v9903_v25  ;;  %4622 = vmatpush.bf16.msra.mxu3 %v10031_v27 }
 0x9e7   :  { %4584 = vmatpush.bf16.msrb.mxu1 %v9883_v31  ;;  %4597 = vmatpush.bf16.msra.mxu2 %v10011_v28  ;;  %v12423_v31 = vld [vmem:[%s15658_s1 + $0xec] sm:$0xf0]  ;;  %v10196_v28 = vld [vmem:[%s15658_s1 + $0xf0] sm:$0xf0] }
 0x9e8   :  { %4610 = vmatpush.bf16.msrb.mxu0 %v9887_v10  ;;  %4623 = vmatpush.bf16.msra.mxu3 %v10015_v39  ;;  %v10324_v10 = vld [vmem:[%s15658_s1 + $0x1f0] sm:$0xf0]  ;;  %v10199_v63 = vor.u32 %v12421_v33, %v10196_v28  ;;  %v10242_v33 = vld [vmem:[%s15658_s1 + $0x140] sm:$0xf]  ;;  %v12435_v28 = vld [vmem:[%s15658_s1 + $0x14c] sm:$0xf0] }
 0x9e9   :  { %v10327_v47 = vor.u32 %v12453_v36, %v10324_v10  ;;  %v12433_v36 = vld [vmem:[%s15658_s1 + $0x144] sm:$0xf]  ;;  %v10244_v10 = vld [vmem:[%s15658_s1 + $0x150] sm:$0xf0] }
 0x9eb   :  { %4585 = vmatpush.bf16.msrb.mxu1 %v9867_v37  ;;  %4598 = vmatpush.bf16.msra.mxu2 %v9995_v48  ;;  %v10306_v48 = vld [vmem:[%s15658_s1 + $0x1c0] sm:$0xf] }
 0x9ec   :  { %4611 = vmatpush.bf16.msrb.mxu0 %v9871_v53  ;;  %4624 = vmatpush.bf16.msra.mxu3 %v9999_v15  ;;  %v12451_v53 = vld [vmem:[%s15658_s1 + $0x1cc] sm:$0xf0]  ;;  %v12449_v15 = vld [vmem:[%s15658_s1 + $0x1c4] sm:$0xf] }
 0x9ed   :  { %v10307_v52 = vor.u32 %v12451_v53, %v10306_v48  ;;  %v10311_v60 = vor.u32 %v12449_v15, %v10308_v13  ;;  %v12397_v48 = vld [vmem:[%s15658_s1 + $0x24] sm:$0xf]  ;;  %v10100_v53 = vld [vmem:[%s15658_s1 + $0x30] sm:$0xf0]  ;;  %v10082_v15 = vld [vmem:[%s15658_s1] sm:$0xf]  ;;  %v10099_v13 = vor.u32 %v12399_v40, %v10098_v24 }
 0x9ef   :  { %4586 = vmatpush.bf16.msrb.mxu1 %v9851_v45  ;;  %4599 = vmatpush.bf16.msra.mxu2 %v9979_v61  ;;  %v10162_v45 = vld [vmem:[%s15658_s1 + $0xa0] sm:$0xf] }
 0x9f0   :  { %4612 = vmatpush.bf16.msrb.mxu0 %v9855_v62  ;;  %4625 = vmatpush.bf16.msra.mxu3 %v9983_v0  ;;  %v10290_v61 = vld [vmem:[%s15658_s1 + $0x1a0] sm:$0xf]  ;;  %v12447_v62 = vld [vmem:[%s15658_s1 + $0x1ac] sm:$0xf0]  ;;  %v12445_v0 = vld [vmem:[%s15658_s1 + $0x1a4] sm:$0xf]  ;;  %v10163_v42 = vor.u32 %v12415_v54, %v10162_v45 }
 0x9f1   :  { %v10291_v6 = vor.u32 %v12447_v62, %v10290_v61  ;;  %v10295_v7 = vor.u32 %v12445_v0, %v10292_v43  ;;  %v10210_v45 = vld [vmem:[%s15658_s1 + $0x100] sm:$0xf]  ;;  %v12427_v54 = vld [vmem:[%s15658_s1 + $0x10c] sm:$0xf0]  ;;  %v12393_v61 = vld [vmem:[%s15658_s1 + $0x4] sm:$0xf] }
 0x9f2   :  { %v10084_v62 = vld [vmem:[%s15658_s1 + $0x10] sm:$0xf0]  ;;  %v10202_v0 = vld [vmem:[%s15658_s1 + $0xe8] sm:$0xf]  ;;  %v12424_v43 = vld [vmem:[%s15658_s1 + $0xf4] sm:$0xf0] }
 0x9f3   :  { %4587 = vmatpush.bf16.msrb.mxu1 %v9835_v2  ;;  %4600 = vmatpush.bf16.msra.mxu2 %v9963_v4  ;;  %v10146_v2 = vld [vmem:[%s15658_s1 + $0x80] sm:$0xf] }
 0x9f4   :  { %4613 = vmatpush.bf16.msrb.mxu0 %v9839_v49  ;;  %4626 = vmatpush.bf16.msra.mxu3 %v9967_v35  ;;  %v10274_v4 = vld [vmem:[%s15658_s1 + $0x180] sm:$0xf]  ;;  %v12443_v49 = vld [vmem:[%s15658_s1 + $0x18c] sm:$0xf0]  ;;  %v12441_v35 = vld [vmem:[%s15658_s1 + $0x184] sm:$0xf] }
 0xa52   :  { %v4085_v12 = vpop.f32.mrf.mxu1  ;;  %v4111_v16 = vpop.f32.mrf.mxu0 }
 0xa53   :  { %v4086_v18 = vadd.f32 %v4085_v12, %v3912_v57  ;;  %v4112_v5 = vadd.f32 %v4111_v16, %v3913_v17  ;;  %v10147_v12 = vor.u32 %v12411_v3, %v10146_v2  ;;  %v10275_v16 = vor.u32 %v12443_v49, %v10274_v4  ;;  %v10130_v57 = vld [vmem:[%s15658_s1 + $0x60] sm:$0xf]  ;;  %v12407_v17 = vld [vmem:[%s15658_s1 + $0x6c] sm:$0xf0]  ;;  %v12422_v2 = vld [vmem:[%s15658_s1 + $0xec] sm:$0xf] }
 0xa54   :  { %v12454_v4 = vld [vmem:[%s15658_s1 + $0x1ec] sm:$0xf]  ;;  %v10332_v49 = vld [vmem:[%s15658_s1 + $0x1f8] sm:$0xf0] }
 0xa59   :  { %v4098_v20 = vpop.f32.mrf.mxu2  ;;  %v4124_v21 = vpop.f32.mrf.mxu3 }
 0xa5a   :  { %v4099_v26 = vadd.f32 %v4098_v20, %v4086_v18  ;;  %v4125_v9 = vadd.f32 %v4124_v21, %v4112_v5  ;;  %v4087_v44 = vpop.f32.mrf.mxu1  ;;  %v4113_v25 = vpop.f32.mrf.mxu0  ;;  %v10151_v18 = vor.u32 %v12409_v50, %v10148_v46  ;;  %v10279_v5 = vor.u32 %v12441_v35, %v10276_v1  ;;  %v10258_v20 = vld [vmem:[%s15658_s1 + $0x160] sm:$0xf]  ;;  %v12439_v21 = vld [vmem:[%s15658_s1 + $0x16c] sm:$0xf0] }
 0xa5b   :  { %v12437_v44 = vld [vmem:[%s15658_s1 + $0x164] sm:$0xf]  ;;  %v10260_v25 = vld [vmem:[%s15658_s1 + $0x170] sm:$0xf0]  ;;  %v10087_v50 = vor.u32 %v12393_v61, %v10084_v62  ;;  %v10215_v46 = vor.u32 %v12425_v8, %v10212_v23  ;;  %v10203_v35 = vor.u32 %v12424_v43, %v10202_v0  ;;  %v12438_v61 = vld [vmem:[%s15658_s1 + $0x16c] sm:$0xf] }
 0xa5c   :  { %v4128_v27 = vadd.f32 %v4099_v26, %v14277_v11  ;;  %v4129_v29 = vadd.f32 %v4125_v9, %v14279_v14  ;;  %v10195_v14 = vor.u32 %v12423_v31, %v10194_v22  ;;  %v12405_v26 = vld [vmem:[%s15658_s1 + $0x64] sm:$0xf]  ;;  %v10132_v9 = vld [vmem:[%s15658_s1 + $0x70] sm:$0xf0]  ;;  %v10114_v22 = vld [vmem:[%s15658_s1 + $0x40] sm:$0xf]  ;;  %v10263_v32 = vor.u32 %v12437_v44, %v10260_v25 }
 0xa5d   :  { %v12403_v31 = vld [vmem:[%s15658_s1 + $0x4c] sm:$0xf0]  ;;  %v10135_v30 = vor.u32 %v12405_v26, %v10132_v9  ;;  %v12450_v26 = vld [vmem:[%s15658_s1 + $0x1cc] sm:$0xf]  ;;  %v10316_v9 = vld [vmem:[%s15658_s1 + $0x1d8] sm:$0xf0] }
 0xa5e   :  { %v4130_v38 = vmax.f32 %v4128_v27, 0.0  ;;  %v4131_v34 = vmax.f32 %v4129_v29, 0.0  ;;  %v10131_v27 = vor.u32 %v12407_v17, %v10130_v57  ;;  %v10259_v29 = vor.u32 %v12439_v21, %v10258_v20  ;;  %v12418_v20 = vld [vmem:[%s15658_s1 + $0xcc] sm:$0xf]  ;;  %v10188_v21 = vld [vmem:[%s15658_s1 + $0xd8] sm:$0xf0] }
 0xa5f   :  { %v10335_v17 = vor.u32 %v12454_v4, %v10332_v49  ;;  %v10268_v62 = vld [vmem:[%s15658_s1 + $0x178] sm:$0xf0]  ;;  %v10122_v0 = vld [vmem:[%s15658_s1 + $0x48] sm:$0xf]  ;;  %v12404_v43 = vld [vmem:[%s15658_s1 + $0x54] sm:$0xf0] }
 0xa60   :  { %v14449_v39 = vpack.c.bf16 %v4130_v38, %v4130_v38  ;;  %v14451_v11 = vpack.c.bf16 %v4131_v34, %v4131_v34  ;;  %v12401_v38 = vld [vmem:[%s15658_s1 + $0x44] sm:$0xf]  ;;  %v10116_v34 = vld [vmem:[%s15658_s1 + $0x50] sm:$0xf0]  ;;  %v12434_v4 = vld [vmem:[%s15658_s1 + $0x14c] sm:$0xf] }
 0xa61   :  { %v4100_v37 = vpop.f32.mrf.mxu2  ;;  %v4126_v19 = vpop.f32.mrf.mxu3  ;;  %v10252_v49 = vld [vmem:[%s15658_s1 + $0x158] sm:$0xf0] }
 0xa62   :  { %4536 = vmatmul.bf16.vlgmr.msra.gmra.mxu1 %v14449_v39  ;;  %4549 = vmatmul.bf16.vlgmr.msrb.gmra.mxu2 %v14451_v11  ;;  %v10119_v37 = vor.u32 %v12401_v38, %v10116_v34  ;;  %v10247_v19 = vor.u32 %v12433_v36, %v10244_v10  ;;  %v12446_v38 = vld [vmem:[%s15658_s1 + $0x1ac] sm:$0xf]  ;;  %v10300_v34 = vld [vmem:[%s15658_s1 + $0x1b8] sm:$0xf0] }
 0xa63   :  { %4562 = vmatmul.bf16.vlgmr.msra.gmra.mxu0 %v14449_v39  ;;  %4575 = vmatmul.bf16.vlgmr.msrb.gmra.mxu3 %v14451_v11  ;;  %v10303_v40 = vor.u32 %v12446_v38, %v10300_v34  ;;  %v10450_v38 = vld [vmem:[%s15659_s2 + $0xe0] sm:$0xf]  ;;  %v12487_v34 = vld [vmem:[%s15659_s2 + $0xec] sm:$0xf0] }
 0xa64   :  { %5026 = vmatpush.bf16.msra.mxu1 %v10195_v14  ;;  %5039 = vmatpush.bf16.msrb.mxu2 %v10323_v41  ;;  %v10115_v14 = vor.u32 %v12403_v31, %v10114_v22  ;;  %v10243_v41 = vor.u32 %v12435_v28, %v10242_v33  ;;  %v10191_v22 = vor.u32 %v12418_v20, %v10188_v21  ;;  %v12414_v33 = vld [vmem:[%s15658_s1 + $0xac] sm:$0xf]  ;;  %v10172_v28 = vld [vmem:[%s15658_s1 + $0xb8] sm:$0xf0] }
 0xa65   :  { %5052 = vmatpush.bf16.msra.mxu0 %v10199_v63  ;;  %5065 = vmatpush.bf16.msrb.mxu3 %v10327_v47  ;;  %v10226_v63 = vld [vmem:[%s15658_s1 + $0x120] sm:$0xf]  ;;  %v12431_v47 = vld [vmem:[%s15658_s1 + $0x12c] sm:$0xf0]  ;;  %v10319_v31 = vor.u32 %v12450_v26, %v10316_v9  ;;  %v10175_v24 = vor.u32 %v12414_v33, %v10172_v28  ;;  %v12430_v20 = vld [vmem:[%s15658_s1 + $0x12c] sm:$0xf] }
 0xa66   :  { %v10236_v21 = vld [vmem:[%s15658_s1 + $0x138] sm:$0xf0]  ;;  %v12426_v33 = vld [vmem:[%s15658_s1 + $0x10c] sm:$0xf] }
 0xa67   :  { %v10220_v28 = vld [vmem:[%s15658_s1 + $0x118] sm:$0xf0] }
 0xa68   :  { %5027 = vmatpush.bf16.msra.mxu1 %v10179_v51  ;;  %5040 = vmatpush.bf16.msrb.mxu2 %v10307_v52  ;;  %v10227_v51 = vor.u32 %v12431_v47, %v10226_v63  ;;  %v12395_v52 = vld [vmem:[%s15658_s1 + $0xc] sm:$0xf0]  ;;  %v12410_v63 = vld [vmem:[%s15658_s1 + $0x8c] sm:$0xf]  ;;  %v10156_v47 = vld [vmem:[%s15658_s1 + $0x98] sm:$0xf0] }
 0xa69   :  { %5053 = vmatpush.bf16.msra.mxu0 %v10183_v58  ;;  %5066 = vmatpush.bf16.msrb.mxu3 %v10311_v60  ;;  %v10103_v58 = vor.u32 %v12397_v48, %v10100_v53  ;;  %v10231_v60 = vor.u32 %v12429_v56, %v10228_v55  ;;  %v10083_v3 = vor.u32 %v12395_v52, %v10082_v15  ;;  %v12442_v48 = vld [vmem:[%s15658_s1 + $0x18c] sm:$0xf]  ;;  %v10284_v53 = vld [vmem:[%s15658_s1 + $0x198] sm:$0xf0]  ;;  %v10138_v15 = vld [vmem:[%s15658_s1 + $0x68] sm:$0xf] }
 0xa6a   :  { %v10287_v52 = vor.u32 %v12442_v48, %v10284_v53  ;;  %v10562_v48 = vld [vmem:[%s15659_s2 + $0x1c0] sm:$0xf]  ;;  %v12515_v53 = vld [vmem:[%s15659_s2 + $0x1cc] sm:$0xf0] }
 0xa6c   :  { %5028 = vmatpush.bf16.msra.mxu1 %v10163_v42  ;;  %5041 = vmatpush.bf16.msrb.mxu2 %v10291_v6  ;;  %v10330_v42 = vld [vmem:[%s15658_s1 + $0x1e8] sm:$0xf]  ;;  %v12456_v6 = vld [vmem:[%s15658_s1 + $0x1f4] sm:$0xf0] }
 0xa6d   :  { %5054 = vmatpush.bf16.msra.mxu0 %v10167_v59  ;;  %5067 = vmatpush.bf16.msrb.mxu3 %v10295_v7  ;;  %v10211_v59 = vor.u32 %v12427_v54, %v10210_v45  ;;  %v10204_v7 = vld [vmem:[%s15658_s1 + $0xf8] sm:$0xf0]  ;;  %v10331_v1 = vor.u32 %v12456_v6, %v10330_v42  ;;  %v10266_v45 = vld [vmem:[%s15658_s1 + $0x168] sm:$0xf]  ;;  %v12440_v54 = vld [vmem:[%s15658_s1 + $0x174] sm:$0xf0]  ;;  %v10271_v6 = vor.u32 %v12438_v61, %v10268_v62 }
 0xa6e   :  { %v10207_v57 = vor.u32 %v12422_v2, %v10204_v7  ;;  %v10267_v23 = vor.u32 %v12440_v54, %v10266_v45  ;;  %v10250_v2 = vld [vmem:[%s15658_s1 + $0x148] sm:$0xf]  ;;  %v10124_v7 = vld [vmem:[%s15658_s1 + $0x58] sm:$0xf0]  ;;  %v10530_v61 = vld [vmem:[%s15659_s2 + $0x180] sm:$0xf] }
 0xa6f   :  { %v12507_v62 = vld [vmem:[%s15659_s2 + $0x18c] sm:$0xf0] }
 0xa70   :  { %5029 = vmatpush.bf16.msra.mxu1 %v10147_v12  ;;  %5042 = vmatpush.bf16.msrb.mxu2 %v10275_v16  ;;  %v10186_v12 = vld [vmem:[%s15658_s1 + $0xc8] sm:$0xf]  ;;  %v12420_v16 = vld [vmem:[%s15658_s1 + $0xd4] sm:$0xf0] }
 0xa71   :  { %5055 = vmatpush.bf16.msra.mxu0 %v10151_v18  ;;  %5068 = vmatpush.bf16.msrb.mxu3 %v10279_v5  ;;  %v10314_v18 = vld [vmem:[%s15658_s1 + $0x1c8] sm:$0xf]  ;;  %v12452_v5 = vld [vmem:[%s15658_s1 + $0x1d4] sm:$0xf0]  ;;  %v10187_v44 = vor.u32 %v12420_v16, %v10186_v12  ;;  %v10255_v16 = vor.u32 %v12434_v4, %v10252_v49  ;;  %v12499_v4 = vld [vmem:[%s15659_s2 + $0x14c] sm:$0xf0] }
 0xa72   :  { %4588 = vmatmul.bf16.vlgmr.msrb.gmra.mxu1 %v14449_v39  ;;  %4601 = vmatmul.bf16.vlgmr.msra.gmra.mxu2 %v14451_v11  ;;  %v10315_v25 = vor.u32 %v12452_v5, %v10314_v18  ;;  %v12398_v18 = vld [vmem:[%s15658_s1 + $0x2c] sm:$0xf]  ;;  %v10108_v5 = vld [vmem:[%s15658_s1 + $0x38] sm:$0xf0]  ;;  %v10354_v49 = vld [vmem:[%s15659_s2 + $0x20] sm:$0xf] }
 0xa73   :  { %4614 = vmatmul.bf16.vlgmr.msrb.gmra.mxu0 %v14449_v39  ;;  %4627 = vmatmul.bf16.vlgmr.msra.gmra.mxu3 %v14451_v11 }
 0xa74   :  { %5030 = vmatpush.bf16.msra.mxu1 %v10131_v27  ;;  %5043 = vmatpush.bf16.msrb.mxu2 %v10259_v29  ;;  %v10170_v27 = vld [vmem:[%s15658_s1 + $0xa8] sm:$0xf]  ;;  %v12416_v29 = vld [vmem:[%s15658_s1 + $0xb4] sm:$0xf0] }
 0xa75   :  { %5056 = vmatpush.bf16.msra.mxu0 %v10135_v30  ;;  %5069 = vmatpush.bf16.msrb.mxu3 %v10263_v32  ;;  %v10298_v30 = vld [vmem:[%s15658_s1 + $0x1a8] sm:$0xf]  ;;  %v12448_v32 = vld [vmem:[%s15658_s1 + $0x1b4] sm:$0xf0]  ;;  %v10171_v36 = vor.u32 %v12416_v29, %v10170_v27  ;;  %v10111_v29 = vor.u32 %v12398_v18, %v10108_v5  ;;  %v10466_v18 = vld [vmem:[%s15659_s2 + $0x100] sm:$0xf] }
 0xa76   :  { %v10299_v10 = vor.u32 %v12448_v32, %v10298_v30  ;;  %v10218_v27 = vld [vmem:[%s15658_s1 + $0x108] sm:$0xf]  ;;  %v12394_v30 = vld [vmem:[%s15658_s1 + $0xc] sm:$0xf]  ;;  %v10092_v32 = vld [vmem:[%s15658_s1 + $0x18] sm:$0xf0] }
 0xa78   :  { %5031 = vmatpush.bf16.msra.mxu1 %v10115_v14  ;;  %5044 = vmatpush.bf16.msrb.mxu2 %v10243_v41  ;;  %v10154_v14 = vld [vmem:[%s15658_s1 + $0x88] sm:$0xf]  ;;  %v12412_v41 = vld [vmem:[%s15658_s1 + $0x94] sm:$0xf0] }
 0xa79   :  { %5057 = vmatpush.bf16.msra.mxu0 %v10119_v37  ;;  %5070 = vmatpush.bf16.msrb.mxu3 %v10247_v19  ;;  %v10282_v37 = vld [vmem:[%s15658_s1 + $0x188] sm:$0xf]  ;;  %v12444_v19 = vld [vmem:[%s15658_s1 + $0x194] sm:$0xf0]  ;;  %v10155_v56 = vor.u32 %v12412_v41, %v10154_v14 }
 0xa7a   :  { %v10283_v55 = vor.u32 %v12444_v19, %v10282_v37  ;;  %v10451_v37 = vor.u32 %v12487_v34, %v10450_v38  ;;  %v12547_v38 = vld [vmem:[%s15659_s2 + $0x2cc] sm:$0xf0] }
 0xa7c   :  { %5032 = vmatpush.bf16.msra.mxu1 %v10099_v13  ;;  %5045 = vmatpush.bf16.msrb.mxu2 %v10227_v51  ;;  %v12408_v13 = vld [vmem:[%s15658_s1 + $0x74] sm:$0xf0]  ;;  %v10159_v51 = vor.u32 %v12410_v63, %v10156_v47  ;;  %v10434_v63 = vld [vmem:[%s15659_s2 + $0xc0] sm:$0xf]  ;;  %v12483_v47 = vld [vmem:[%s15659_s2 + $0xcc] sm:$0xf0] }
 0xa7d   :  { %5058 = vmatpush.bf16.msra.mxu0 %v10103_v58  ;;  %5071 = vmatpush.bf16.msrb.mxu3 %v10231_v60  ;;  %v12406_v58 = vld [vmem:[%s15658_s1 + $0x6c] sm:$0xf]  ;;  %v10140_v60 = vld [vmem:[%s15658_s1 + $0x78] sm:$0xf0]  ;;  %v10139_v8 = vor.u32 %v12408_v13, %v10138_v15  ;;  %v10418_v15 = vld [vmem:[%s15659_s2 + $0xa0] sm:$0xf] }
 0xa7e   :  { %v10143_v42 = vor.u32 %v12406_v58, %v10140_v60  ;;  %v12479_v13 = vld [vmem:[%s15659_s2 + $0xac] sm:$0xf0]  ;;  %v10402_v58 = vld [vmem:[%s15659_s2 + $0x80] sm:$0xf] }
 0xa7f   :  { %v10419_v45 = vor.u32 %v12479_v13, %v10418_v15  ;;  %v12475_v60 = vld [vmem:[%s15659_s2 + $0x8c] sm:$0xf0]  ;;  %v12477_v13 = vld [vmem:[%s15659_s2 + $0xa4] sm:$0xf] }
 0xa80   :  { %5033 = vmatpush.bf16.msra.mxu1 %v10083_v3  ;;  %5046 = vmatpush.bf16.msrb.mxu2 %v10211_v59  ;;  %v12436_v3 = vld [vmem:[%s15658_s1 + $0x154] sm:$0xf0]  ;;  %v12402_v59 = vld [vmem:[%s15658_s1 + $0x4c] sm:$0xf]  ;;  %v12575_v15 = vld [vmem:[%s15659_s2 + $0x3ac] sm:$0xf0] }
 0xa81   :  { %5059 = vmatpush.bf16.msra.mxu0 %v10087_v50  ;;  %5072 = vmatpush.bf16.msrb.mxu3 %v10215_v46  ;;  %v10123_v50 = vor.u32 %v12404_v43, %v10122_v0  ;;  %v10251_v46 = vor.u32 %v12436_v3, %v10250_v2  ;;  %v10127_v12 = vor.u32 %v12402_v59, %v10124_v7  ;;  %v10514_v0 = vld [vmem:[%s15659_s2 + $0x160] sm:$0xf]  ;;  %v12467_v3 = vld [vmem:[%s15659_s2 + $0x4c] sm:$0xf0] }
 0xa82   :  { %v10370_v2 = vld [vmem:[%s15659_s2 + $0x40] sm:$0xf] }
 0xa83   :  { %5034 = vmatmul.bf16.vlgmr.msra.gmra.mxu1 %v14449_v39  ;;  %5047 = vmatmul.bf16.vlgmr.msrb.gmra.mxu2 %v14451_v11  ;;  %v10498_v59 = vld [vmem:[%s15659_s2 + $0x140] sm:$0xf]  ;;  %v10371_v7 = vor.u32 %v12467_v3, %v10370_v2  ;;  %v10532_v2 = vld [vmem:[%s15659_s2 + $0x190] sm:$0xf0] }
 0xa84   :  { %5078 = vmatpush.bf16.msrb.mxu1 %v10203_v35  ;;  %5091 = vmatpush.bf16.msra.mxu2 %v10331_v1  ;;  %v10106_v35 = vld [vmem:[%s15658_s1 + $0x28] sm:$0xf]  ;;  %v12400_v1 = vld [vmem:[%s15658_s1 + $0x34] sm:$0xf0]  ;;  %v14654_v3 = vld [vmem:[%s15660_s7] sm:$0xf] }
 0xa85   :  { %5104 = vmatpush.bf16.msrb.mxu0 %v10207_v57  ;;  %5117 = vmatpush.bf16.msra.mxu3 %v10335_v17  ;;  %v10234_v57 = vld [vmem:[%s15658_s1 + $0x128] sm:$0xf]  ;;  %v12432_v17 = vld [vmem:[%s15658_s1 + $0x134] sm:$0xf0]  ;;  %v10107_v26 = vor.u32 %v12400_v1, %v10106_v35  ;;  %v10482_v35 = vld [vmem:[%s15659_s2 + $0x120] sm:$0xf] }
 0xa86   :  { %5060 = vmatmul.bf16.vlgmr.msra.gmra.mxu0 %v14449_v39  ;;  %5073 = vmatmul.bf16.vlgmr.msrb.gmra.mxu3 %v14451_v11  ;;  %v10235_v9 = vor.u32 %v12432_v17, %v10234_v57  ;;  %v12495_v1 = vld [vmem:[%s15659_s2 + $0x12c] sm:$0xf0]  ;;  %v10338_v57 = vld [vmem:[%s15659_s2] sm:$0xf] }
 0xa87   :  { %v12459_v17 = vld [vmem:[%s15659_s2 + $0xc] sm:$0xf0] }
 0xa88   :  { %5079 = vmatpush.bf16.msrb.mxu1 %v10187_v44  ;;  %5092 = vmatpush.bf16.msra.mxu2 %v10315_v25  ;;  %v10090_v44 = vld [vmem:[%s15658_s1 + $0x8] sm:$0xf]  ;;  %v12396_v25 = vld [vmem:[%s15658_s1 + $0x14] sm:$0xf0]  ;;  %v10339_v5 = vor.u32 %v12459_v17, %v10338_v57  ;;  %v12469_v57 = vld [vmem:[%s15659_s2 + $0x64] sm:$0xf] }
 0xa89   :  { %5105 = vmatpush.bf16.msrb.mxu0 %v10191_v22  ;;  %5118 = vmatpush.bf16.msra.mxu3 %v10319_v31  ;;  %v10239_v22 = vor.u32 %v12430_v20, %v10236_v21  ;;  %v12428_v31 = vld [vmem:[%s15658_s1 + $0x114] sm:$0xf0]  ;;  %v10091_v14 = vor.u32 %v12396_v25, %v10090_v44  ;;  %v12491_v20 = vld [vmem:[%s15659_s2 + $0x10c] sm:$0xf0]  ;;  %v10706_v21 = vld [vmem:[%s15659_s2 + $0x2e0] sm:$0xf] }
 0xa8a   :  { %v10219_v41 = vor.u32 %v12428_v31, %v10218_v27  ;;  %v10834_v25 = vld [vmem:[%s15659_s2 + $0x3e0] sm:$0xf]  ;;  %v12583_v27 = vld [vmem:[%s15659_s2 + $0x3ec] sm:$0xf0]  ;;  %v10452_v31 = vld [vmem:[%s15659_s2 + $0xf0] sm:$0xf0] }
 0xa8b   :  { %v10388_v17 = vld [vmem:[%s15659_s2 + $0x70] sm:$0xf0] }
 0xa8c   :  { %5080 = vmatpush.bf16.msrb.mxu1 %v10171_v36  ;;  %5093 = vmatpush.bf16.msra.mxu2 %v10299_v10  ;;  %v10578_v36 = vld [vmem:[%s15659_s2 + $0x1e0] sm:$0xf]  ;;  %v12519_v10 = vld [vmem:[%s15659_s2 + $0x1ec] sm:$0xf0] }
 0xa8d   :  { %5106 = vmatpush.bf16.msrb.mxu0 %v10175_v24  ;;  %5119 = vmatpush.bf16.msra.mxu3 %v10303_v40  ;;  %v10095_v24 = vor.u32 %v12394_v30, %v10092_v32  ;;  %v10223_v40 = vor.u32 %v12426_v33, %v10220_v28  ;;  %v10579_v19 = vor.u32 %v12519_v10, %v10578_v36  ;;  %v12517_v30 = vld [vmem:[%s15659_s2 + $0x1e4] sm:$0xf]  ;;  %v10580_v33 = vld [vmem:[%s15659_s2 + $0x1f0] sm:$0xf0]  ;;  %v10690_v28 = vld [vmem:[%s15659_s2 + $0x2c0] sm:$0xf] }
 0xa8e   :  { %v10583_v34 = vor.u32 %v12517_v30, %v10580_v33  ;;  %v10691_v36 = vor.u32 %v12547_v38, %v10690_v28  ;;  %v10818_v10 = vld [vmem:[%s15659_s2 + $0x3c0] sm:$0xf]  ;;  %v10372_v30 = vld [vmem:[%s15659_s2 + $0x50] sm:$0xf0] }
 0xa90   :  { %5081 = vmatpush.bf16.msrb.mxu1 %v10155_v56  ;;  %5094 = vmatpush.bf16.msra.mxu2 %v10283_v55  ;;  %v10435_v56 = vor.u32 %v12483_v47, %v10434_v63  ;;  %v10563_v55 = vor.u32 %v12515_v53, %v10562_v48  ;;  %v10674_v48 = vld [vmem:[%s15659_s2 + $0x2a0] sm:$0xf]  ;;  %v12543_v53 = vld [vmem:[%s15659_s2 + $0x2ac] sm:$0xf0] }
 0xa91   :  { %5107 = vmatpush.bf16.msrb.mxu0 %v10159_v51  ;;  %5120 = vmatpush.bf16.msra.mxu3 %v10287_v52  ;;  %v10546_v51 = vld [vmem:[%s15659_s2 + $0x1a0] sm:$0xf]  ;;  %v12511_v52 = vld [vmem:[%s15659_s2 + $0x1ac] sm:$0xf0] }
 0xa92   :  { %v10547_v54 = vor.u32 %v12511_v52, %v10546_v51  ;;  %v10420_v51 = vld [vmem:[%s15659_s2 + $0xb0] sm:$0xf0] }
 0xa94   :  { %5082 = vmatpush.bf16.msrb.mxu1 %v10139_v8  ;;  %5095 = vmatpush.bf16.msra.mxu2 %v10267_v23  ;;  %v10531_v8 = vor.u32 %v12507_v62, %v10530_v61  ;;  %v12471_v23 = vld [vmem:[%s15659_s2 + $0x6c] sm:$0xf0] }
 0xa95   :  { %5108 = vmatpush.bf16.msrb.mxu0 %v10143_v42  ;;  %5121 = vmatpush.bf16.msra.mxu3 %v10271_v6  ;;  %v12503_v42 = vld [vmem:[%s15659_s2 + $0x16c] sm:$0xf0] }
 0xa96   :  { %v10515_v6 = vor.u32 %v12503_v42, %v10514_v0  ;;  %v12539_v62 = vld [vmem:[%s15659_s2 + $0x28c] sm:$0xf0]  ;;  %v12473_v0 = vld [vmem:[%s15659_s2 + $0x84] sm:$0xf] }
 0xa97   :  { %v12505_v42 = vld [vmem:[%s15659_s2 + $0x184] sm:$0xf] }
 0xa98   :  { %5083 = vmatpush.bf16.msrb.mxu1 %v10123_v50  ;;  %5096 = vmatpush.bf16.msra.mxu2 %v10251_v46  ;;  %v12463_v50 = vld [vmem:[%s15659_s2 + $0x2c] sm:$0xf0]  ;;  %v10499_v46 = vor.u32 %v12499_v4, %v10498_v59  ;;  %v10535_v59 = vor.u32 %v12505_v42, %v10532_v2  ;;  %v10468_v42 = vld [vmem:[%s15659_s2 + $0x110] sm:$0xf0] }
 0xa99   :  { %5109 = vmatpush.bf16.msrb.mxu0 %v10127_v12  ;;  %5122 = vmatpush.bf16.msra.mxu3 %v10255_v16  ;;  %v10355_v12 = vor.u32 %v12463_v50, %v10354_v49  ;;  %v10483_v16 = vor.u32 %v12495_v1, %v10482_v35  ;;  %v12535_v4 = vld [vmem:[%s15659_s2 + $0x26c] sm:$0xf0]  ;;  %v10770_v49 = vld [vmem:[%s15659_s2 + $0x360] sm:$0xf]  ;;  %v4200_v1 = vperm.slane %v14654_v3, 0 }
 0xa9a   :  { %v12567_v35 = vld [vmem:[%s15659_s2 + $0x36c] sm:$0xf0] }
 0xa9c   :  { %5084 = vmatpush.bf16.msrb.mxu1 %v10107_v26  ;;  %5097 = vmatpush.bf16.msra.mxu2 %v10235_v9  ;;  %v12551_v26 = vld [vmem:[%s15659_s2 + $0x2ec] sm:$0xf0]  ;;  %v10467_v9 = vor.u32 %v12491_v20, %v10466_v18  ;;  %v4201_v18 = vperm.slane %v14654_v3, 1  ;;  %v12501_v20 = vld [vmem:[%s15659_s2 + $0x164] sm:$0xf] }
 0xa9d   :  { %5110 = vmatpush.bf16.msrb.mxu0 %v10111_v29  ;;  %5123 = vmatpush.bf16.msra.mxu3 %v10239_v22  ;;  %v10707_v44 = vor.u32 %v12551_v26, %v10706_v21  ;;  %v10835_v29 = vor.u32 %v12583_v27, %v10834_v25  ;;  %v12485_v22 = vld [vmem:[%s15659_s2 + $0xe4] sm:$0xf]  ;;  %v10516_v21 = vld [vmem:[%s15659_s2 + $0x170] sm:$0xf0]  ;;  %v10754_v25 = vld [vmem:[%s15659_s2 + $0x340] sm:$0xf] }
 0xa9e   :  { %v10455_v32 = vor.u32 %v12485_v22, %v10452_v31  ;;  %v10519_v26 = vor.u32 %v12501_v20, %v10516_v21  ;;  %v12563_v22 = vld [vmem:[%s15659_s2 + $0x34c] sm:$0xf0]  ;;  %v12465_v31 = vld [vmem:[%s15659_s2 + $0x44] sm:$0xf]  ;;  %v10820_v20 = vld [vmem:[%s15659_s2 + $0x3d0] sm:$0xf0] }
 0xa9f   :  { %v10755_v28 = vor.u32 %v12563_v22, %v10754_v25  ;;  %v10375_v38 = vor.u32 %v12465_v31, %v10372_v30  ;;  %v12573_v25 = vld [vmem:[%s15659_s2 + $0x3a4] sm:$0xf]  ;;  %v10804_v22 = vld [vmem:[%s15659_s2 + $0x3b0] sm:$0xf0] }
 0xaa0   :  { %5085 = vmatpush.bf16.msrb.mxu1 %v10091_v14  ;;  %5098 = vmatpush.bf16.msra.mxu2 %v10219_v41  ;;  %v12579_v14 = vld [vmem:[%s15659_s2 + $0x3cc] sm:$0xf0]  ;;  %v12481_v41 = vld [vmem:[%s15659_s2 + $0xc4] sm:$0xf] }
 0xaa1   :  { %5111 = vmatpush.bf16.msrb.mxu0 %v10095_v24  ;;  %5124 = vmatpush.bf16.msra.mxu3 %v10223_v40  ;;  %v10819_v24 = vor.u32 %v12579_v14, %v10818_v10  ;;  %v10436_v40 = vld [vmem:[%s15659_s2 + $0xd0] sm:$0xf0] }
 0xaa2   :  { %v10439_v63 = vor.u32 %v12481_v41, %v10436_v40 }
 0xaa3   :  { %5086 = vmatmul.bf16.vlgmr.msrb.gmra.mxu1 %v14449_v39  ;;  %5099 = vmatmul.bf16.vlgmr.msra.gmra.mxu2 %v14451_v11 }
 0xaa4   :  { %5916 = vmatpush.bf16.msra.mxu1 %v10451_v37  ;;  %5929 = vmatpush.bf16.msrb.mxu2 %v10579_v19  ;;  %v12513_v37 = vld [vmem:[%s15659_s2 + $0x1c4] sm:$0xf]  ;;  %v10564_v19 = vld [vmem:[%s15659_s2 + $0x1d0] sm:$0xf0] }
 0xaa5   :  { %5112 = vmatmul.bf16.vlgmr.msrb.gmra.mxu0 %v14449_v39  ;;  %5125 = vmatmul.bf16.vlgmr.msra.gmra.mxu3 %v14451_v11  ;;  %v10403_v39 = vor.u32 %v12475_v60, %v10402_v58  ;;  %v10386_v11 = vld [vmem:[%s15659_s2 + $0x60] sm:$0xf]  ;;  %v10567_v47 = vor.u32 %v12513_v37, %v10564_v19  ;;  %v10548_v58 = vld [vmem:[%s15659_s2 + $0x1b0] sm:$0xf0]  ;;  %v12527_v19 = vld [vmem:[%s15659_s2 + $0x22c] sm:$0xf0] }
 0xaa6   :  { %v10387_v43 = vor.u32 %v12471_v23, %v10386_v11  ;;  %5942 = vmatpush.bf16.msra.mxu0 %v10707_v44  ;;  %5955 = vmatpush.bf16.msrb.mxu3 %v10835_v29  ;;  %v10658_v60 = vld [vmem:[%s15659_s2 + $0x280] sm:$0xf]  ;;  %v12531_v44 = vld [vmem:[%s15659_s2 + $0x24c] sm:$0xf0] }
 0xaa7   :  { %v10659_v11 = vor.u32 %v12539_v62, %v10658_v60  ;;  %v10610_v37 = vld [vmem:[%s15659_s2 + $0x220] sm:$0xf]  ;;  %v12555_v62 = vld [vmem:[%s15659_s2 + $0x30c] sm:$0xf0] }
 0xaa8   :  { %5917 = vmatpush.bf16.msra.mxu1 %v10435_v56  ;;  %5930 = vmatpush.bf16.msrb.mxu2 %v10563_v55  ;;  %v10802_v56 = vld [vmem:[%s15659_s2 + $0x3a0] sm:$0xf]  ;;  %v10675_v55 = vor.u32 %v12543_v53, %v10674_v48  ;;  %v10611_v48 = vor.u32 %v12527_v19, %v10610_v37  ;;  %v12559_v53 = vld [vmem:[%s15659_s2 + $0x32c] sm:$0xf0]  ;;  %v12533_v19 = vld [vmem:[%s15659_s2 + $0x264] sm:$0xf] }
 0xaa9   :  { %v10803_v52 = vor.u32 %v12575_v15, %v10802_v56  ;;  %v12461_v56 = vld [vmem:[%s15659_s2 + $0x24] sm:$0xf]  ;;  %v10722_v60 = vld [vmem:[%s15659_s2 + $0x300] sm:$0xf] }
 0xaaa   :  { %5943 = vmatpush.bf16.msra.mxu0 %v10691_v36  ;;  %5956 = vmatpush.bf16.msrb.mxu3 %v10819_v24  ;;  %v10500_v36 = vld [vmem:[%s15659_s2 + $0x150] sm:$0xf0] }
 0xaac   :  { %5918 = vmatpush.bf16.msra.mxu1 %v10419_v45  ;;  %5931 = vmatpush.bf16.msrb.mxu2 %v10547_v54  ;;  %v10423_v45 = vor.u32 %v12477_v13, %v10420_v51  ;;  %v12509_v54 = vld [vmem:[%s15659_s2 + $0x1a4] sm:$0xf] }
 0xaad   :  { %v10551_v61 = vor.u32 %v12509_v54, %v10548_v58  ;;  %v12493_v51 = vld [vmem:[%s15659_s2 + $0x124] sm:$0xf]  ;;  %v10594_v54 = vld [vmem:[%s15659_s2 + $0x200] sm:$0xf]  ;;  %v12523_v58 = vld [vmem:[%s15659_s2 + $0x20c] sm:$0xf0] }
 0xaae   :  { %5944 = vmatpush.bf16.msra.mxu0 %v10675_v55  ;;  %5957 = vmatpush.bf16.msrb.mxu3 %v10803_v52  ;;  %v10356_v55 = vld [vmem:[%s15659_s2 + $0x30] sm:$0xf0] }
 0xaaf   :  { %v10359_v13 = vor.u32 %v12461_v56, %v10356_v55  ;;  %v10484_v52 = vld [vmem:[%s15659_s2 + $0x130] sm:$0xf0] }
 0xab0   :  { %5919 = vmatpush.bf16.msra.mxu1 %v10403_v39  ;;  %5932 = vmatpush.bf16.msrb.mxu2 %v10531_v8  ;;  %v10786_v39 = vld [vmem:[%s15659_s2 + $0x380] sm:$0xf]  ;;  %v12571_v8 = vld [vmem:[%s15659_s2 + $0x38c] sm:$0xf0]  ;;  %v10772_v56 = vld [vmem:[%s15659_s2 + $0x370] sm:$0xf0] }
 0xab1   :  { %v10787_v23 = vor.u32 %v12571_v8, %v10786_v39  ;;  %v12457_v39 = vld [vmem:[%s15659_s2 + $0x4] sm:$0xf]  ;;  %v10340_v8 = vld [vmem:[%s15659_s2 + $0x10] sm:$0xf0] }
 0xab2   :  { %5945 = vmatpush.bf16.msra.mxu0 %v10659_v11 }
 0xab3   :  { %5958 = vmatpush.bf16.msrb.mxu3 %v10787_v23  ;;  %v10723_v23 = vor.u32 %v12555_v62, %v10722_v60  ;;  %v10756_v60 = vld [vmem:[%s15659_s2 + $0x350] sm:$0xf0] }
 0xab4   :  { %5920 = vmatpush.bf16.msra.mxu1 %v10387_v43  ;;  %5933 = vmatpush.bf16.msrb.mxu2 %v10515_v6  ;;  %v10404_v43 = vld [vmem:[%s15659_s2 + $0x90] sm:$0xf0] }
 0xab5   :  { %v10407_v6 = vor.u32 %v12473_v0, %v10404_v43  ;;  %v10343_v0 = vor.u32 %v12457_v39, %v10340_v8  ;;  %v12489_v43 = vld [vmem:[%s15659_s2 + $0x104] sm:$0xf] }
 0xab8   :  { %5921 = vmatpush.bf16.msra.mxu1 %v10371_v7  ;;  %5934 = vmatpush.bf16.msrb.mxu2 %v10499_v46  ;;  %v10642_v7 = vld [vmem:[%s15659_s2 + $0x260] sm:$0xf] }
 0xab9   :  { %v10643_v46 = vor.u32 %v12535_v4, %v10642_v7  ;;  %v10708_v7 = vld [vmem:[%s15659_s2 + $0x2f0] sm:$0xf0]  ;;  %v12581_v4 = vld [vmem:[%s15659_s2 + $0x3e4] sm:$0xf] }
 0xabb   :  { %5946 = vmatpush.bf16.msra.mxu0 %v10643_v46 }
 0xabc   :  { %5922 = vmatpush.bf16.msra.mxu1 %v10355_v12  ;;  %5935 = vmatpush.bf16.msrb.mxu2 %v10483_v16  ;;  %v10771_v16 = vor.u32 %v12567_v35, %v10770_v49  ;;  %v10836_v49 = vld [vmem:[%s15659_s2 + $0x3f0] sm:$0xf0] }
 0xabd   :  { %v10839_v35 = vor.u32 %v12581_v4, %v10836_v49  ;;  %v10458_v4 = vld [vmem:[%s15659_s2 + $0xe8] sm:$0xf]  ;;  %v12488_v49 = vld [vmem:[%s15659_s2 + $0xf4] sm:$0xf0] }
 0xabe   :  { %5959 = vmatpush.bf16.msrb.mxu3 %v10771_v16  ;;  %v12545_v16 = vld [vmem:[%s15659_s2 + $0x2c4] sm:$0xf] }
 0xac0   :  { %5923 = vmatpush.bf16.msra.mxu1 %v10339_v5  ;;  %5936 = vmatpush.bf16.msrb.mxu2 %v10467_v9  ;;  %v10391_v5 = vor.u32 %v12469_v57, %v10388_v17  ;;  %v10626_v9 = vld [vmem:[%s15659_s2 + $0x240] sm:$0xf]  ;;  %v10692_v57 = vld [vmem:[%s15659_s2 + $0x2d0] sm:$0xf0]  ;;  %v4203_v17 = vperm.slane %v14654_v3, 3 }
 0xac1   :  { %v10627_v29 = vor.u32 %v12531_v44, %v10626_v9  ;;  %v12541_v9 = vld [vmem:[%s15659_s2 + $0x2a4] sm:$0xf]  ;;  %v10676_v44 = vld [vmem:[%s15659_s2 + $0x2b0] sm:$0xf0] }
 0xac2   :  { %5960 = vmatpush.bf16.msrb.mxu3 %v10755_v28 }
 0xac3   :  { %5947 = vmatpush.bf16.msra.mxu0 %v10627_v29 }
 0xac4   :  { %5968 = vmatpush.bf16.msrb.mxu1 %v10455_v32  ;;  %5981 = vmatpush.bf16.msra.mxu2 %v10583_v34  ;;  %v12497_v34 = vld [vmem:[%s15659_s2 + $0x144] sm:$0xf] }
 0xac5   :  { %v10503_v41 = vor.u32 %v12497_v34, %v10500_v36  ;;  %v12537_v34 = vld [vmem:[%s15659_s2 + $0x284] sm:$0xf]  ;;  %v10660_v36 = vld [vmem:[%s15659_s2 + $0x290] sm:$0xf0] }
 0xac7   :  { %5948 = vmatpush.bf16.msra.mxu0 %v10611_v48 }
 0xac8   :  { %5969 = vmatpush.bf16.msrb.mxu1 %v10439_v63  ;;  %5982 = vmatpush.bf16.msra.mxu2 %v10567_v47  ;;  %v10738_v63 = vld [vmem:[%s15659_s2 + $0x320] sm:$0xf] }
 0xac9   :  { %v10739_v15 = vor.u32 %v12559_v53, %v10738_v63  ;;  %v10644_v63 = vld [vmem:[%s15659_s2 + $0x270] sm:$0xf0]  ;;  %v12565_v53 = vld [vmem:[%s15659_s2 + $0x364] sm:$0xf] }
 0xaca   :  { %v10647_v48 = vor.u32 %v12533_v19, %v10644_v63  ;;  %v12512_v19 = vld [vmem:[%s15659_s2 + $0x1b4] sm:$0xf0] }
 0xacb   :  { %5961 = vmatpush.bf16.msrb.mxu3 %v10739_v15  ;;  %v10775_v15 = vor.u32 %v12565_v53, %v10772_v56  ;;  %v12476_v53 = vld [vmem:[%s15659_s2 + $0x94] sm:$0xf0]  ;;  %v10538_v56 = vld [vmem:[%s15659_s2 + $0x188] sm:$0xf] }
 0xacc   :  { %5970 = vmatpush.bf16.msrb.mxu1 %v10423_v45  ;;  %5983 = vmatpush.bf16.msra.mxu2 %v10551_v61  ;;  %v10487_v45 = vor.u32 %v12493_v51, %v10484_v52  ;;  %v10595_v61 = vor.u32 %v12523_v58, %v10594_v54  ;;  %v12529_v51 = vld [vmem:[%s15659_s2 + $0x244] sm:$0xf]  ;;  %v10628_v52 = vld [vmem:[%s15659_s2 + $0x250] sm:$0xf0] }
 0xacd   :  { %v10631_v58 = vor.u32 %v12529_v51, %v10628_v52  ;;  %v10394_v52 = vld [vmem:[%s15659_s2 + $0x68] sm:$0xf] }
 0xace   :  { %5949 = vmatpush.bf16.msra.mxu0 %v10595_v61 }
 0xacf   :  { %5962 = vmatpush.bf16.msrb.mxu3 %v10723_v23  ;;  %v10612_v23 = vld [vmem:[%s15659_s2 + $0x230] sm:$0xf0] }
 0xad0   :  { %5971 = vmatpush.bf16.msrb.mxu1 %v10407_v6  ;;  %5984 = vmatpush.bf16.msra.mxu2 %v10535_v59  ;;  %v12549_v6 = vld [vmem:[%s15659_s2 + $0x2e4] sm:$0xf]  ;;  %v10471_v59 = vor.u32 %v12489_v43, %v10468_v42  ;;  %v10740_v42 = vld [vmem:[%s15659_s2 + $0x330] sm:$0xf0] }
 0xad1   :  { %v10711_v46 = vor.u32 %v12549_v6, %v10708_v7 }
 0xad3   :  { %5994 = vmatpush.bf16.msrb.mxu0 %v10711_v46  ;;  %6007 = vmatpush.bf16.msra.mxu3 %v10839_v35  ;;  %v12521_v35 = vld [vmem:[%s15659_s2 + $0x204] sm:$0xf] }
 0xad4   :  { %5972 = vmatpush.bf16.msrb.mxu1 %v10391_v5  ;;  %5985 = vmatpush.bf16.msra.mxu2 %v10519_v26  ;;  %v12577_v5 = vld [vmem:[%s15659_s2 + $0x3c4] sm:$0xf] }
 0xad5   :  { %v10823_v21 = vor.u32 %v12577_v5, %v10820_v20  ;;  %v10724_v20 = vld [vmem:[%s15659_s2 + $0x310] sm:$0xf0] }
 0xad7   :  { %6008 = vmatpush.bf16.msra.mxu3 %v10823_v21 }
 0xad8   :  { %5973 = vmatpush.bf16.msrb.mxu1 %v10375_v38  ;;  %5986 = vmatpush.bf16.msra.mxu2 %v10503_v41  ;;  %v10663_v41 = vor.u32 %v12537_v34, %v10660_v36 }
 0xadc   :  { %5974 = vmatpush.bf16.msrb.mxu1 %v10359_v13  ;;  %5987 = vmatpush.bf16.msra.mxu2 %v10487_v45  ;;  %v14721_v13 = vld [vmem:[%s15661_s10] sm:$0xf]  ;;  %v12561_v45 = vld [vmem:[%s15659_s2 + $0x344] sm:$0xf] }
 0xadd   :  { %v4698_v61 = vperm.slane %v14721_v13, 0  ;;  %v10759_v39 = vor.u32 %v12561_v45, %v10756_v60  ;;  %v4699_v8 = vperm.slane %v14721_v13, 1  ;;  %v12472_v45 = vld [vmem:[%s15659_s2 + $0x74] sm:$0xf0] }
 0xade   :  { %v10395_v60 = vor.u32 %v12472_v45, %v10394_v52  ;;  %v12514_v52 = vld [vmem:[%s15659_s2 + $0x1cc] sm:$0xf]  ;;  %v10572_v45 = vld [vmem:[%s15659_s2 + $0x1d8] sm:$0xf0] }
 0xadf   :  { %v4537_v50 = vpop.f32.mrf.mxu1 }
 0xae0   :  { %v4563_v12 = vpop.f32.mrf.mxu0  ;;  %v4538_v27 = vadd.f32 %v4537_v50, %v4200_v1  ;;  %v4202_v1 = vperm.slane %v14654_v3, 2  ;;  %5975 = vmatpush.bf16.msrb.mxu1 %v10343_v0  ;;  %5988 = vmatpush.bf16.msra.mxu2 %v10471_v59  ;;  %v10679_v3 = vor.u32 %v12541_v9, %v10676_v44  ;;  %v12557_v0 = vld [vmem:[%s15659_s2 + $0x324] sm:$0xf] }
 0xae1   :  { %v4564_v32 = vadd.f32 %v4563_v12, %v4201_v18  ;;  %v10695_v18 = vor.u32 %v12545_v16, %v10692_v57 }
 0xae3   :  { %5995 = vmatpush.bf16.msrb.mxu0 %v10695_v18  ;;  %v12520_v18 = vld [vmem:[%s15659_s2 + $0x1f4] sm:$0xf0] }
 0xae5   :  { %v4550_v33 = vpop.f32.mrf.mxu2 }
 0xae6   :  { %v14674_v10 = vadd.f32 %v4550_v33, %v4538_v27  ;;  %v4576_v14 = vpop.f32.mrf.mxu3 }
 0xae7   :  { %v14676_v24 = vadd.f32 %v4576_v14, %v4564_v32  ;;  %v4539_v40 = vpop.f32.mrf.mxu1  ;;  %v10807_v32 = vor.u32 %v12573_v25, %v10804_v22  ;;  %v12569_v14 = vld [vmem:[%s15659_s2 + $0x384] sm:$0xf]  ;;  %5996 = vmatpush.bf16.msrb.mxu0 %v10679_v3  ;;  %v10459_v25 = vor.u32 %v12488_v49, %v10458_v4  ;;  %v10442_v3 = vld [vmem:[%s15659_s2 + $0xc8] sm:$0xf]  ;;  %v12484_v22 = vld [vmem:[%s15659_s2 + $0xd4] sm:$0xf0] }
 0xae8   :  { %v4565_v47 = vpop.f32.mrf.mxu0  ;;  %v10788_v40 = vld [vmem:[%s15659_s2 + $0x390] sm:$0xf0]  ;;  %v10443_v34 = vor.u32 %v12484_v22, %v10442_v3  ;;  %v10490_v4 = vld [vmem:[%s15659_s2 + $0x128] sm:$0xf]  ;;  %v12496_v49 = vld [vmem:[%s15659_s2 + $0x134] sm:$0xf0] }
 0xae9   :  { %6009 = vmatpush.bf16.msra.mxu3 %v10807_v32  ;;  %v10791_v37 = vor.u32 %v12569_v14, %v10788_v40  ;;  %v10570_v32 = vld [vmem:[%s15659_s2 + $0x1c8] sm:$0xf]  ;;  %v12480_v40 = vld [vmem:[%s15659_s2 + $0xb4] sm:$0xf0]  ;;  %v10460_v3 = vld [vmem:[%s15659_s2 + $0xf8] sm:$0xf0] }
 0xaeb   :  { %5997 = vmatpush.bf16.msrb.mxu0 %v10663_v41  ;;  %v10426_v41 = vld [vmem:[%s15659_s2 + $0xa8] sm:$0xf] }
 0xaec   :  { %v10427_v63 = vor.u32 %v12480_v40, %v10426_v41 }
 0xaed   :  { %v4552_v11 = vpop.f32.mrf.mxu2  ;;  %6010 = vmatpush.bf16.msra.mxu3 %v10791_v37  ;;  %v10554_v37 = vld [vmem:[%s15659_s2 + $0x1a8] sm:$0xf] }
 0xaee   :  { %v4578_v2 = vpop.f32.mrf.mxu3  ;;  %v12525_v11 = vld [vmem:[%s15659_s2 + $0x224] sm:$0xf] }
 0xaef   :  { %v4589_v50 = vpop.f32.mrf.mxu1  ;;  %5998 = vmatpush.bf16.msrb.mxu0 %v10647_v48  ;;  %v10615_v43 = vor.u32 %v12525_v11, %v10612_v23  ;;  %v10743_v2 = vor.u32 %v12557_v0, %v10740_v42  ;;  %v10410_v48 = vld [vmem:[%s15659_s2 + $0x88] sm:$0xf]  ;;  %v12500_v11 = vld [vmem:[%s15659_s2 + $0x154] sm:$0xf0]  ;;  %v4700_v0 = vperm.slane %v14721_v13, 2 }
 0xaf0   :  { %v4615_v12 = vpop.f32.mrf.mxu0  ;;  %v4590_v26 = vadd.f32 %v4589_v50, %v4202_v1  ;;  %v10596_v1 = vld [vmem:[%s15659_s2 + $0x210] sm:$0xf0] }
 0xaf1   :  { %v4616_v27 = vadd.f32 %v4615_v12, %v4203_v17  ;;  %6011 = vmatpush.bf16.msra.mxu3 %v10775_v15  ;;  %v12553_v12 = vld [vmem:[%s15659_s2 + $0x304] sm:$0xf]  ;;  %v10586_v17 = vld [vmem:[%s15659_s2 + $0x1e8] sm:$0xf]  ;;  %v10599_v5 = vor.u32 %v12521_v35, %v10596_v1  ;;  %v10411_v15 = vor.u32 %v12476_v53, %v10410_v48 }
 0xaf2   :  { %v10727_v9 = vor.u32 %v12553_v12, %v10724_v20  ;;  %v10346_v35 = vld [vmem:[%s15659_s2 + $0x8] sm:$0xf]  ;;  %v10491_v12 = vor.u32 %v12496_v49, %v10490_v4  ;;  %v12540_v49 = vld [vmem:[%s15659_s2 + $0x294] sm:$0xf0] }
 0xaf3   :  { %5999 = vmatpush.bf16.msrb.mxu0 %v10631_v58  ;;  %v12504_v58 = vld [vmem:[%s15659_s2 + $0x174] sm:$0xf0]  ;;  %v10714_v20 = vld [vmem:[%s15659_s2 + $0x2e8] sm:$0xf] }
 0xaf4   :  { %v10666_v4 = vld [vmem:[%s15659_s2 + $0x288] sm:$0xf] }
 0xaf5   :  { %v4602_v29 = vpop.f32.mrf.mxu2  ;;  %6012 = vmatpush.bf16.msra.mxu3 %v10759_v39  ;;  %v12468_v39 = vld [vmem:[%s15659_s2 + $0x54] sm:$0xf0] }
 0xaf6   :  { %v14708_v31 = vadd.f32 %v4602_v29, %v4590_v26  ;;  %v4628_v30 = vpop.f32.mrf.mxu3  ;;  %v10587_v29 = vor.u32 %v12520_v18, %v10586_v17  ;;  %v12492_v17 = vld [vmem:[%s15659_s2 + $0x114] sm:$0xf0] }
 0xaf7   :  { %v14710_v33 = vadd.f32 %v4628_v30, %v4616_v27  ;;  %v4591_v28 = vpop.f32.mrf.mxu1  ;;  %6000 = vmatpush.bf16.msrb.mxu0 %v10615_v43 }
 0xaf8   :  { %v4617_v38 = vpop.f32.mrf.mxu0  ;;  %v12516_v28 = vld [vmem:[%s15659_s2 + $0x1d4] sm:$0xf0] }
 0xaf9   :  { %6013 = vmatpush.bf16.msra.mxu3 %v10743_v2  ;;  %v10571_v14 = vor.u32 %v12516_v28, %v10570_v32 }
 0xafb   :  { %6001 = vmatpush.bf16.msrb.mxu0 %v10599_v5 }
 0xafd   :  { %v4604_v47 = vpop.f32.mrf.mxu2  ;;  %6014 = vmatpush.bf16.msra.mxu3 %v10727_v9 }
 0xafe   :  { %v4630_v55 = vpop.f32.mrf.mxu3  ;;  %v10555_v47 = vor.u32 %v12512_v19, %v10554_v37  ;;  %v10698_v19 = vld [vmem:[%s15659_s2 + $0x2c8] sm:$0xf] }
 0xaff   :  { %v12508_v55 = vld [vmem:[%s15659_s2 + $0x194] sm:$0xf0] }
 0xb00   :  { %v5035_v54 = vpop.f32.mrf.mxu1  ;;  %v10539_v51 = vor.u32 %v12508_v55, %v10538_v56  ;;  %v10826_v56 = vld [vmem:[%s15659_s2 + $0x3c8] sm:$0xf]  ;;  %v12580_v55 = vld [vmem:[%s15659_s2 + $0x3d4] sm:$0xf0] }
 0xb01   :  { %v5036_v6 = vadd.f32 %v5035_v54, %v4698_v61  ;;  %v10522_v54 = vld [vmem:[%s15659_s2 + $0x168] sm:$0xf] }
 0xb02   :  { %v10523_v61 = vor.u32 %v12504_v58, %v10522_v54 }
 0xb03   :  { %v5061_v62 = vpop.f32.mrf.mxu0 }
 0xb04   :  { %v5062_v59 = vadd.f32 %v5061_v62, %v4699_v8  ;;  %v10378_v62 = vld [vmem:[%s15659_s2 + $0x48] sm:$0xf] }
 0xb05   :  { %v10506_v8 = vld [vmem:[%s15659_s2 + $0x148] sm:$0xf]  ;;  %v10379_v42 = vor.u32 %v12468_v39, %v10378_v62  ;;  %v12544_v39 = vld [vmem:[%s15659_s2 + $0x2b4] sm:$0xf0] }
 0xb06   :  { %v5048_v7 = vpop.f32.mrf.mxu2  ;;  %v10507_v2 = vor.u32 %v12500_v11, %v10506_v8  ;;  %v10682_v62 = vld [vmem:[%s15659_s2 + $0x2a8] sm:$0xf]  ;;  %v10575_v11 = vor.u32 %v12514_v52, %v10572_v45 }
 0xb07   :  { %v5049_v50 = vadd.f32 %v5048_v7, %v5036_v6  ;;  %v4701_v6 = vperm.slane %v14721_v13, 3  ;;  %v12464_v7 = vld [vmem:[%s15659_s2 + $0x34] sm:$0xf0] }
 0xb08   :  { %v5037_v57 = vpop.f32.mrf.mxu1 }
 0xb09   :  { %v5074_v46 = vpop.f32.mrf.mxu3  ;;  %v5130_v21 = vmax.f32 %v5049_v50, 0.0  ;;  %v10474_v57 = vld [vmem:[%s15659_s2 + $0x108] sm:$0xf] }
 0xb0a   :  { %v5075_v16 = vadd.f32 %v5074_v46, %v5062_v59  ;;  %v10362_v59 = vld [vmem:[%s15659_s2 + $0x28] sm:$0xf] }
 0xb0b   :  { %v5063_v26 = vpop.f32.mrf.mxu0  ;;  %v14741_v27 = vpack.c.bf16 %v5130_v21, %v5130_v21  ;;  %v10363_v46 = vor.u32 %v12464_v7, %v10362_v59  ;;  %v12552_v21 = vld [vmem:[%s15659_s2 + $0x2f4] sm:$0xf0]  ;;  %v10683_v59 = vor.u32 %v12544_v39, %v10682_v62  ;;  %v12494_v62 = vld [vmem:[%s15659_s2 + $0x12c] sm:$0xf]  ;;  %v10492_v39 = vld [vmem:[%s15659_s2 + $0x138] sm:$0xf0] }
 0xb0c   :  { %v5131_v44 = vmax.f32 %v5075_v16, 0.0  ;;  %v12460_v16 = vld [vmem:[%s15659_s2 + $0x14] sm:$0xf0]  ;;  %v10842_v26 = vld [vmem:[%s15659_s2 + $0x3e8] sm:$0xf]  ;;  %v10715_v40 = vor.u32 %v12552_v21, %v10714_v20 }
 0xb0d   :  { %5924 = vmatmul.bf16.vlgmr.msra.gmra.mxu1 %v14741_v27  ;;  %v10347_v28 = vor.u32 %v12460_v16, %v10346_v35  ;;  %v10794_v35 = vld [vmem:[%s15659_s2 + $0x388] sm:$0xf]  ;;  %v12506_v16 = vld [vmem:[%s15659_s2 + $0x18c] sm:$0xf]  ;;  %v12536_v20 = vld [vmem:[%s15659_s2 + $0x274] sm:$0xf0] }
 0xb0e   :  { %v14745_v30 = vpack.c.bf16 %v5131_v44, %v5131_v44  ;;  %6020 = vmatpush.bf16.msra.mxu1 %v10459_v25  ;;  %v5050_v38 = vpop.f32.mrf.mxu2  ;;  %v12584_v25 = vld [vmem:[%s15659_s2 + $0x3f4] sm:$0xf0] }
 0xb0f   :  { %v12518_v38 = vld [vmem:[%s15659_s2 + $0x1ec] sm:$0xf]  ;;  %v10843_v37 = vor.u32 %v12584_v25, %v10842_v26 }
 0xb10   :  { %5937 = vmatmul.bf16.vlgmr.msrb.gmra.mxu2 %v14745_v30  ;;  %v12470_v25 = vld [vmem:[%s15659_s2 + $0x6c] sm:$0xf] }
 0xb11   :  { %6033 = vmatpush.bf16.msrb.mxu2 %v10587_v29  ;;  %v5076_v36 = vpop.f32.mrf.mxu3  ;;  %v12486_v29 = vld [vmem:[%s15659_s2 + $0xec] sm:$0xf] }
 0xb12   :  { %6021 = vmatpush.bf16.msra.mxu1 %v10443_v34  ;;  %v10588_v34 = vld [vmem:[%s15659_s2 + $0x1f8] sm:$0xf0]  ;;  %v10463_v48 = vor.u32 %v12486_v29, %v10460_v3  ;;  %v12502_v3 = vld [vmem:[%s15659_s2 + $0x16c] sm:$0xf] }
 0xb13   :  { %v10591_v53 = vor.u32 %v12518_v38, %v10588_v34  ;;  %v10396_v29 = vld [vmem:[%s15659_s2 + $0x78] sm:$0xf0]  ;;  %v10634_v38 = vld [vmem:[%s15659_s2 + $0x248] sm:$0xf]  ;;  %v12532_v34 = vld [vmem:[%s15659_s2 + $0x254] sm:$0xf0] }
 0xb15   :  { %6034 = vmatpush.bf16.msrb.mxu2 %v10571_v14  ;;  %v10475_v14 = vor.u32 %v12492_v17, %v10474_v57  ;;  %v10540_v57 = vld [vmem:[%s15659_s2 + $0x198] sm:$0xf0]  ;;  %v10667_v17 = vor.u32 %v12540_v49, %v10666_v4  ;;  %v12490_v4 = vld [vmem:[%s15659_s2 + $0x10c] sm:$0xf] }
 0xb16   :  { %6022 = vmatpush.bf16.msra.mxu1 %v10427_v63  ;;  %v12548_v63 = vld [vmem:[%s15659_s2 + $0x2d4] sm:$0xf0]  ;;  %v10543_v26 = vor.u32 %v12506_v16, %v10540_v57  ;;  %v10476_v49 = vld [vmem:[%s15659_s2 + $0x118] sm:$0xf0] }
 0xb17   :  { %v10479_v57 = vor.u32 %v12490_v4, %v10476_v49 }
 0xb19   :  { %6035 = vmatpush.bf16.msrb.mxu2 %v10555_v47 }
 0xb1a   :  { %6023 = vmatpush.bf16.msra.mxu1 %v10411_v15  ;;  %v12482_v15 = vld [vmem:[%s15659_s2 + $0xcc] sm:$0xf] }
 0xb1d   :  { %6036 = vmatpush.bf16.msrb.mxu2 %v10539_v51  ;;  %5976 = vmatmul.bf16.vlgmr.msrb.gmra.mxu1 %v14741_v27  ;;  %v10444_v51 = vld [vmem:[%s15659_s2 + $0xd8] sm:$0xf0] }
 0xb1e   :  { %6024 = vmatpush.bf16.msra.mxu1 %v10395_v60  ;;  %v10699_v60 = vor.u32 %v12548_v63, %v10698_v19  ;;  %v10447_v8 = vor.u32 %v12482_v15, %v10444_v51  ;;  %v12466_v19 = vld [vmem:[%s15659_s2 + $0x4c] sm:$0xf]  ;;  %v10380_v63 = vld [vmem:[%s15659_s2 + $0x58] sm:$0xf0]  ;;  %v10618_v15 = vld [vmem:[%s15659_s2 + $0x228] sm:$0xf] }
 0xb1f   :  { %v12528_v51 = vld [vmem:[%s15659_s2 + $0x234] sm:$0xf0]  ;;  %v10383_v52 = vor.u32 %v12466_v19, %v10380_v63  ;;  %v12538_v19 = vld [vmem:[%s15659_s2 + $0x28c] sm:$0xf]  ;;  %v10930_v63 = vld [vmem:[%s15662_s11 + $0xa0] sm:$0xf] }
 0xb20   :  { %v5087_v23 = vpop.f32.mrf.mxu1  ;;  %5989 = vmatmul.bf16.vlgmr.msra.gmra.mxu2 %v14745_v30 }
 0xb21   :  { %6037 = vmatpush.bf16.msrb.mxu2 %v10523_v61  ;;  %v5088_v50 = vadd.f32 %v5087_v23, %v4700_v0  ;;  %v10827_v61 = vor.u32 %v12580_v55, %v10826_v56  ;;  %v10810_v23 = vld [vmem:[%s15659_s2 + $0x3a8] sm:$0xf]  ;;  %v12576_v0 = vld [vmem:[%s15659_s2 + $0x3b4] sm:$0xf0]  ;;  %v10635_v56 = vor.u32 %v12532_v34, %v10634_v38  ;;  %v10684_v38 = vld [vmem:[%s15659_s2 + $0x2b8] sm:$0xf0] }
 0xb22   :  { %v5113_v43 = vpop.f32.mrf.mxu0  ;;  %6025 = vmatpush.bf16.msra.mxu1 %v10379_v42  ;;  %v10428_v42 = vld [vmem:[%s15659_s2 + $0xb8] sm:$0xf0]  ;;  %v10811_v7 = vor.u32 %v12576_v0, %v10810_v23  ;;  %v10602_v23 = vld [vmem:[%s15659_s2 + $0x208] sm:$0xf]  ;;  %v12524_v0 = vld [vmem:[%s15659_s2 + $0x214] sm:$0xf0] }
 0xb23   :  { %v5114_v1 = vadd.f32 %v5113_v43, %v4701_v6  ;;  %v12478_v43 = vld [vmem:[%s15659_s2 + $0xac] sm:$0xf] }
 0xb24   :  { %v12510_v6 = vld [vmem:[%s15659_s2 + $0x1ac] sm:$0xf] }
 0xb25   :  { %6038 = vmatpush.bf16.msrb.mxu2 %v10507_v2  ;;  %v10556_v2 = vld [vmem:[%s15659_s2 + $0x1b8] sm:$0xf0]  ;;  %v12574_v34 = vld [vmem:[%s15659_s2 + $0x3ac] sm:$0xf] }
 0xb26   :  { %v5100_v13 = vpop.f32.mrf.mxu2  ;;  %6026 = vmatpush.bf16.msra.mxu1 %v10363_v46  ;;  %v10559_v46 = vor.u32 %v12510_v6, %v10556_v2  ;;  %v10495_v6 = vor.u32 %v12494_v62, %v10492_v39  ;;  %v12556_v2 = vld [vmem:[%s15659_s2 + $0x314] sm:$0xf0] }
 0xb27   :  { %v5101_v18 = vadd.f32 %v5100_v13, %v5088_v50  ;;  %v10431_v50 = vor.u32 %v12478_v43, %v10428_v42  ;;  %v12474_v13 = vld [vmem:[%s15659_s2 + $0x8c] sm:$0xf]  ;;  %v10730_v43 = vld [vmem:[%s15659_s2 + $0x308] sm:$0xf] }
 0xb28   :  { %v5126_v5 = vpop.f32.mrf.mxu3  ;;  %v5089_v44 = vpop.f32.mrf.mxu1 }
 0xb29   :  { %v5127_v9 = vadd.f32 %v5126_v5, %v5114_v1  ;;  %v5132_v22 = vmax.f32 %v5101_v18, 0.0  ;;  %6039 = vmatpush.bf16.msrb.mxu2 %v10491_v12  ;;  %v12572_v1 = vld [vmem:[%s15659_s2 + $0x394] sm:$0xf0]  ;;  %v10412_v12 = vld [vmem:[%s15659_s2 + $0x98] sm:$0xf0] }
 0xb2a   :  { %v5115_v32 = vpop.f32.mrf.mxu0  ;;  %6027 = vmatpush.bf16.msra.mxu1 %v10347_v28  ;;  %v10795_v18 = vor.u32 %v12572_v1, %v10794_v35  ;;  %v10650_v5 = vld [vmem:[%s15659_s2 + $0x268] sm:$0xf]  ;;  %v10415_v21 = vor.u32 %v12474_v13, %v10412_v12  ;;  %v12568_v44 = vld [vmem:[%s15659_s2 + $0x374] sm:$0xf0]  ;;  %v12582_v35 = vld [vmem:[%s15659_s2 + $0x3ec] sm:$0xf]  ;;  %v10603_v13 = vor.u32 %v12524_v0, %v10602_v23  ;;  %v10731_v12 = vor.u32 %v12556_v2, %v10730_v43 }
 0xb2b   :  { %v5133_v36 = vmax.f32 %v5127_v9, 0.0  ;;  %v14787_v41 = vpack.c.bf16 %v5132_v22, %v5132_v22  ;;  %v10778_v9 = vld [vmem:[%s15659_s2 + $0x368] sm:$0xf]  ;;  %v10524_v22 = vld [vmem:[%s15659_s2 + $0x178] sm:$0xf0]  ;;  %v10651_v32 = vor.u32 %v12536_v20, %v10650_v5 }
 0xb2c   :  { %v10779_v28 = vor.u32 %v12568_v44, %v10778_v9  ;;  %v10844_v1 = vld [vmem:[%s15659_s2 + $0x3f8] sm:$0xf0]  ;;  %v12546_v5 = vld [vmem:[%s15659_s2 + $0x2cc] sm:$0xf]  ;;  %v10962_v9 = vld [vmem:[%s15662_s11 + $0xe0] sm:$0xf] }
 0xb2d   :  { %v14791_v47 = vpack.c.bf16 %v5133_v36, %v5133_v36  ;;  %5950 = vmatmul.bf16.vlgmr.msra.gmra.mxu0 %v14787_v41  ;;  %6040 = vmatpush.bf16.msrb.mxu2 %v10475_v14  ;;  %v10399_v36 = vor.u32 %v12470_v25, %v10396_v29  ;;  %v10527_v14 = vor.u32 %v12502_v3, %v10524_v22  ;;  %v10700_v20 = vld [vmem:[%s15659_s2 + $0x2d8] sm:$0xf0]  ;;  %v12615_v44 = vld [vmem:[%s15662_s11 + $0xec] sm:$0xf0]  ;;  %v12542_v3 = vld [vmem:[%s15659_s2 + $0x2ac] sm:$0xf] }
 0xb2e   :  { %v5102_v54 = vpop.f32.mrf.mxu2  ;;  %6046 = vmatpush.bf16.msra.mxu0 %v10715_v40  ;;  %6072 = vmatpush.bf16.msrb.mxu1 %v10463_v48  ;;  %v10762_v40 = vld [vmem:[%s15659_s2 + $0x348] sm:$0xf]  ;;  %v12498_v48 = vld [vmem:[%s15659_s2 + $0x14c] sm:$0xf]  ;;  %v10703_v25 = vor.u32 %v12546_v5, %v10700_v20  ;;  %v10963_v22 = vor.u32 %v12615_v44, %v10962_v9  ;;  %v10764_v0 = vld [vmem:[%s15659_s2 + $0x358] sm:$0xf0] }
 0xb2f   :  { %5963 = vmatmul.bf16.vlgmr.msrb.gmra.mxu3 %v14791_v47  ;;  %6028 = vmatmul.bf16.vlgmr.msra.gmra.mxu1 %v14741_v27  ;;  %v10746_v54 = vld [vmem:[%s15659_s2 + $0x328] sm:$0xf]  ;;  %v12562_v23 = vld [vmem:[%s15659_s2 + $0x34c] sm:$0xf]  ;;  %v10620_v2 = vld [vmem:[%s15659_s2 + $0x238] sm:$0xf0] }
 0xb30   :  { %6059 = vmatpush.bf16.msrb.mxu3 %v10843_v37  ;;  %v5128_v58 = vpop.f32.mrf.mxu3  ;;  %6041 = vmatmul.bf16.vlgmr.msrb.gmra.mxu2 %v14745_v30  ;;  %v12564_v37 = vld [vmem:[%s15659_s2 + $0x354] sm:$0xf0]  ;;  %v12647_v5 = vld [vmem:[%s15662_s11 + $0x1ec] sm:$0xf0]  ;;  %v10882_v20 = vld [vmem:[%s15662_s11 + $0x40] sm:$0xf] }
 0xb31   :  { %6085 = vmatpush.bf16.msra.mxu2 %v10591_v53  ;;  %v10508_v53 = vld [vmem:[%s15659_s2 + $0x158] sm:$0xf0]  ;;  %v10763_v55 = vor.u32 %v12564_v37, %v10762_v40  ;;  %v12560_v58 = vld [vmem:[%s15659_s2 + $0x334] sm:$0xf0]  ;;  %v10687_v40 = vor.u32 %v12542_v3, %v10684_v38  ;;  %v11074_v9 = vld [vmem:[%s15662_s11 + $0x1c0] sm:$0xf] }
 0xb32   :  { %6047 = vmatpush.bf16.msra.mxu0 %v10699_v60  ;;  %6073 = vmatpush.bf16.msrb.mxu1 %v10447_v8  ;;  %v10511_v45 = vor.u32 %v12498_v48, %v10508_v53  ;;  %v12462_v60 = vld [vmem:[%s15659_s2 + $0x2c] sm:$0xf]  ;;  %v10619_v8 = vor.u32 %v12528_v51, %v10618_v15  ;;  %v12607_v48 = vld [vmem:[%s15662_s11 + $0xac] sm:$0xf0]  ;;  %v10668_v53 = vld [vmem:[%s15659_s2 + $0x298] sm:$0xf0] }
 0xb33   :  { %v12534_v51 = vld [vmem:[%s15659_s2 + $0x26c] sm:$0xf]  ;;  %v12643_v44 = vld [vmem:[%s15662_s11 + $0x1cc] sm:$0xf0]  ;;  %v11058_v3 = vld [vmem:[%s15662_s11 + $0x1a0] sm:$0xf] }
 0xb34   :  { %6060 = vmatpush.bf16.msrb.mxu3 %v10827_v61  ;;  %v10364_v61 = vld [vmem:[%s15659_s2 + $0x38] sm:$0xf0]  ;;  %v12587_v38 = vld [vmem:[%s15662_s11 + $0xc] sm:$0xf0] }
 0xb35   :  { %6086 = vmatpush.bf16.msra.mxu2 %v10575_v11  ;;  %v10747_v11 = vor.u32 %v12560_v58, %v10746_v54  ;;  %v10367_v42 = vor.u32 %v12462_v60, %v10364_v61  ;;  %v10652_v54 = vld [vmem:[%s15659_s2 + $0x278] sm:$0xf0]  ;;  %v12566_v58 = vld [vmem:[%s15659_s2 + $0x36c] sm:$0xf] }
 0xb36   :  { %6048 = vmatpush.bf16.msra.mxu0 %v10683_v59  ;;  %6074 = vmatpush.bf16.msrb.mxu1 %v10431_v50  ;;  %v12458_v59 = vld [vmem:[%s15659_s2 + $0xc] sm:$0xf]  ;;  %v10780_v60 = vld [vmem:[%s15659_s2 + $0x378] sm:$0xf0]  ;;  %v10655_v62 = vor.u32 %v12534_v51, %v10652_v54  ;;  %v10948_v51 = vld [vmem:[%s15662_s11 + $0xd0] sm:$0xf0] }
 0xb37   :  { %v12550_v50 = vld [vmem:[%s15659_s2 + $0x2ec] sm:$0xf]  ;;  %v10783_v39 = vor.u32 %v12566_v58, %v10780_v60  ;;  %v11010_v54 = vld [vmem:[%s15662_s11 + $0x140] sm:$0xf]  ;;  %v12627_v58 = vld [vmem:[%s15662_s11 + $0x14c] sm:$0xf0] }
 0xb38   :  { %6061 = vmatpush.bf16.msrb.mxu3 %v10811_v7  ;;  %v10348_v7 = vld [vmem:[%s15659_s2 + $0x18] sm:$0xf0]  ;;  %v11202_v60 = vld [vmem:[%s15662_s11 + $0x2c0] sm:$0xf] }
 0xb39   :  { %6087 = vmatpush.bf16.msra.mxu2 %v10559_v46  ;;  %v10716_v46 = vld [vmem:[%s15659_s2 + $0x2f8] sm:$0xf0]  ;;  %v10351_v16 = vor.u32 %v12458_v59, %v10348_v7  ;;  %v12558_v59 = vld [vmem:[%s15659_s2 + $0x32c] sm:$0xf] }
 0xb3a   :  { %6049 = vmatpush.bf16.msra.mxu0 %v10667_v17  ;;  %6075 = vmatpush.bf16.msrb.mxu1 %v10415_v21  ;;  %v10719_v17 = vor.u32 %v12550_v50, %v10716_v46  ;;  %v12578_v21 = vld [vmem:[%s15659_s2 + $0x3cc] sm:$0xf]  ;;  %v10748_v7 = vld [vmem:[%s15659_s2 + $0x338] sm:$0xf0] }
 0xb3b   :  { %v10751_v49 = vor.u32 %v12558_v59, %v10748_v7  ;;  %v12522_v50 = vld [vmem:[%s15659_s2 + $0x20c] sm:$0xf]  ;;  %v10604_v46 = vld [vmem:[%s15659_s2 + $0x218] sm:$0xf0]  ;;  %v12601_v59 = vld [vmem:[%s15662_s11 + $0x84] sm:$0xf] }
 0xb3c   :  { %6062 = vmatpush.bf16.msrb.mxu3 %v10795_v18  ;;  %v10847_v18 = vor.u32 %v12582_v35, %v10844_v1  ;;  %v12554_v35 = vld [vmem:[%s15659_s2 + $0x30c] sm:$0xf]  ;;  %v10732_v1 = vld [vmem:[%s15659_s2 + $0x318] sm:$0xf0]  ;;  %v10916_v7 = vld [vmem:[%s15662_s11 + $0x90] sm:$0xf0] }
 0xb3d   :  { %6088 = vmatpush.bf16.msra.mxu2 %v10543_v26  ;;  %6002 = vmatmul.bf16.vlgmr.msrb.gmra.mxu0 %v14787_v41  ;;  %v10828_v26 = vld [vmem:[%s15659_s2 + $0x3d8] sm:$0xf0] }
 0xb3e   :  { %6050 = vmatpush.bf16.msra.mxu0 %v10651_v32  ;;  %6076 = vmatpush.bf16.msrb.mxu1 %v10399_v36  ;;  %v10831_v29 = vor.u32 %v12578_v21, %v10828_v26  ;;  %v10946_v32 = vld [vmem:[%s15662_s11 + $0xc0] sm:$0xf]  ;;  %v10812_v36 = vld [vmem:[%s15659_s2 + $0x3b8] sm:$0xf0]  ;;  %v12595_v21 = vld [vmem:[%s15662_s11 + $0x4c] sm:$0xf0] }
 0xb3f   :  { %6015 = vmatmul.bf16.vlgmr.msra.gmra.mxu3 %v14791_v47  ;;  %v10815_v37 = vor.u32 %v12574_v34, %v10812_v36  ;;  %v11042_v36 = vld [vmem:[%s15662_s11 + $0x180] sm:$0xf] }
 0xb40   :  { %6063 = vmatpush.bf16.msrb.mxu3 %v10779_v28  ;;  %v12611_v28 = vld [vmem:[%s15662_s11 + $0xcc] sm:$0xf0] }
 0xb41   :  { %6089 = vmatpush.bf16.msra.mxu2 %v10527_v14  ;;  %v10947_v14 = vor.u32 %v12611_v28, %v10946_v32  ;;  %v12639_v32 = vld [vmem:[%s15662_s11 + $0x1ac] sm:$0xf0]  ;;  %v10850_v28 = vld [vmem:[%s15662_s11] sm:$0xf] }
 0xb42   :  { %6051 = vmatpush.bf16.msra.mxu0 %v10635_v56  ;;  %6077 = vmatpush.bf16.msrb.mxu1 %v10383_v52  ;;  %v12570_v56 = vld [vmem:[%s15659_s2 + $0x38c] sm:$0xf]  ;;  %v10914_v52 = vld [vmem:[%s15662_s11 + $0x80] sm:$0xf]  ;;  %v11059_v34 = vor.u32 %v12639_v32, %v11058_v3  ;;  %v11076_v3 = vld [vmem:[%s15662_s11 + $0x1d0] sm:$0xf0] }
 0xb43   :  { %v11138_v32 = vld [vmem:[%s15662_s11 + $0x240] sm:$0xf] }
 0xb44   :  { %6064 = vmatpush.bf16.msrb.mxu3 %v10763_v55  ;;  %v10671_v55 = vor.u32 %v12538_v19, %v10668_v53  ;;  %v12613_v19 = vld [vmem:[%s15662_s11 + $0xe4] sm:$0xf]  ;;  %v11026_v53 = vld [vmem:[%s15662_s11 + $0x160] sm:$0xf] }
 0xb45   :  { %6090 = vmatpush.bf16.msra.mxu2 %v10511_v45  ;;  %v12603_v45 = vld [vmem:[%s15662_s11 + $0x8c] sm:$0xf0] }
 0xb46   :  { %6052 = vmatpush.bf16.msra.mxu0 %v10619_v8  ;;  %6078 = vmatpush.bf16.msrb.mxu1 %v10367_v42  ;;  %v10915_v61 = vor.u32 %v12603_v45, %v10914_v52  ;;  %v12530_v8 = vld [vmem:[%s15659_s2 + $0x24c] sm:$0xf]  ;;  %v10767_v42 = vor.u32 %v12562_v23, %v10764_v0  ;;  %v10994_v0 = vld [vmem:[%s15662_s11 + $0x120] sm:$0xf] }
 0xb48   :  { %6065 = vmatpush.bf16.msrb.mxu3 %v10747_v11  ;;  %v10636_v11 = vld [vmem:[%s15659_s2 + $0x258] sm:$0xf0] }
 0xb49   :  { %6091 = vmatpush.bf16.msra.mxu2 %v10495_v6  ;;  %v10639_v43 = vor.u32 %v12530_v8, %v10636_v11  ;;  %v12526_v6 = vld [vmem:[%s15659_s2 + $0x22c] sm:$0xf]  ;;  %v12605_v8 = vld [vmem:[%s15662_s11 + $0xa4] sm:$0xf]  ;;  %v10932_v11 = vld [vmem:[%s15662_s11 + $0xb0] sm:$0xf0] }
 0xb4a   :  { %6053 = vmatpush.bf16.msra.mxu0 %v10603_v13  ;;  %6079 = vmatpush.bf16.msrb.mxu1 %v10351_v16  ;;  %v10623_v4 = vor.u32 %v12526_v6, %v10620_v2  ;;  %v10607_v13 = vor.u32 %v12522_v50, %v10604_v46  ;;  %v10898_v16 = vld [vmem:[%s15662_s11 + $0x60] sm:$0xf]  ;;  %v10935_v23 = vor.u32 %v12605_v8, %v10932_v11  ;;  %v12671_v2 = vld [vmem:[%s15662_s11 + $0x2ac] sm:$0xf0]  ;;  %v12629_v8 = vld [vmem:[%s15662_s11 + $0x164] sm:$0xf] }
 0xb4b   :  { %v10978_v50 = vld [vmem:[%s15662_s11 + $0x100] sm:$0xf]  ;;  %v12619_v46 = vld [vmem:[%s15662_s11 + $0x10c] sm:$0xf0]  ;;  %v11028_v11 = vld [vmem:[%s15662_s11 + $0x170] sm:$0xf0] }
 0xb4c   :  { %6066 = vmatpush.bf16.msrb.mxu3 %v10731_v12  ;;  %v10735_v12 = vor.u32 %v12554_v35, %v10732_v1  ;;  %v11170_v35 = vld [vmem:[%s15662_s11 + $0x280] sm:$0xf]  ;;  %v10979_v1 = vor.u32 %v12619_v46, %v10978_v50  ;;  %v11012_v50 = vld [vmem:[%s15662_s11 + $0x150] sm:$0xf0]  ;;  %v12673_v46 = vld [vmem:[%s15662_s11 + $0x2c4] sm:$0xf] }
 0xb4d   :  { %6092 = vmatpush.bf16.msra.mxu2 %v10479_v57  ;;  %6054 = vmatmul.bf16.vlgmr.msra.gmra.mxu0 %v14787_v41  ;;  %v12599_v57 = vld [vmem:[%s15662_s11 + $0x6c] sm:$0xf0] }
 0xb4e   :  { %6098 = vmatpush.bf16.msrb.mxu0 %v10719_v17  ;;  %6080 = vmatmul.bf16.vlgmr.msrb.gmra.mxu1 %v14741_v27  ;;  %v10796_v27 = vld [vmem:[%s15659_s2 + $0x398] sm:$0xf0]  ;;  %v11090_v17 = vld [vmem:[%s15662_s11 + $0x1e0] sm:$0xf] }
 0xb4f   :  { %6067 = vmatmul.bf16.vlgmr.msrb.gmra.mxu3 %v14791_v47  ;;  %6914 = vmatpush.bf16.msra.mxu1 %v10963_v22  ;;  %v10799_v15 = vor.u32 %v12570_v56, %v10796_v27  ;;  %v11091_v26 = vor.u32 %v12647_v5, %v11090_v17  ;;  %v12631_v56 = vld [vmem:[%s15662_s11 + $0x16c] sm:$0xf0]  ;;  %v11218_v27 = vld [vmem:[%s15662_s11 + $0x2e0] sm:$0xf]  ;;  %v12645_v5 = vld [vmem:[%s15662_s11 + $0x1e4] sm:$0xf] }
 0xb50   :  { %6111 = vmatpush.bf16.msra.mxu3 %v10847_v18  ;;  %6093 = vmatmul.bf16.vlgmr.msra.gmra.mxu2 %v14745_v30  ;;  %v10931_v30 = vor.u32 %v12607_v48, %v10930_v63  ;;  %v10899_v18 = vor.u32 %v12599_v57, %v10898_v16  ;;  %v10964_v63 = vld [vmem:[%s15662_s11 + $0xf0] sm:$0xf0] }
 0xb51   :  { %6927 = vmatpush.bf16.msrb.mxu2 %v11091_v26  ;;  %v10967_v48 = vor.u32 %v12613_v19, %v10964_v63  ;;  %v10900_v16 = vld [vmem:[%s15662_s11 + $0x70] sm:$0xf0]  ;;  %v11154_v26 = vld [vmem:[%s15662_s11 + $0x260] sm:$0xf] }
 0xb52   :  { %6099 = vmatpush.bf16.msrb.mxu0 %v10703_v25  ;;  %v10866_v25 = vld [vmem:[%s15662_s11 + $0x20] sm:$0xf]  ;;  %v11060_v63 = vld [vmem:[%s15662_s11 + $0x1b0] sm:$0xf0] }
 0xb53   :  { %6915 = vmatpush.bf16.msra.mxu1 %v10947_v14  ;;  %v12635_v14 = vld [vmem:[%s15662_s11 + $0x18c] sm:$0xf0] }
 0xb54   :  { %6112 = vmatpush.bf16.msra.mxu3 %v10831_v29  ;;  %v12591_v29 = vld [vmem:[%s15662_s11 + $0x2c] sm:$0xf0] }
 0xb55   :  { %v10867_v22 = vor.u32 %v12591_v29, %v10866_v25  ;;  %v12641_v25 = vld [vmem:[%s15662_s11 + $0x1c4] sm:$0xf] }
 0xb56   :  { %6100 = vmatpush.bf16.msrb.mxu0 %v10687_v40  ;;  %v10851_v40 = vor.u32 %v12587_v38, %v10850_v28  ;;  %v12659_v28 = vld [vmem:[%s15662_s11 + $0x24c] sm:$0xf0] }
 0xb57   :  { %6916 = vmatpush.bf16.msra.mxu1 %v10931_v30  ;;  %v11027_v30 = vor.u32 %v12631_v56, %v11026_v53  ;;  %v11122_v53 = vld [vmem:[%s15662_s11 + $0x220] sm:$0xf]  ;;  %v12655_v56 = vld [vmem:[%s15662_s11 + $0x22c] sm:$0xf0] }
 0xb58   :  { %6113 = vmatpush.bf16.msra.mxu3 %v10815_v37  ;;  %v11043_v37 = vor.u32 %v12635_v14, %v11042_v36  ;;  %v12589_v36 = vld [vmem:[%s15662_s11 + $0x24] sm:$0xf]  ;;  %v10868_v14 = vld [vmem:[%s15662_s11 + $0x30] sm:$0xf0] }
 0xb59   :  { %v10871_v19 = vor.u32 %v12589_v36, %v10868_v14  ;;  %v11172_v14 = vld [vmem:[%s15662_s11 + $0x290] sm:$0xf0] }
 0xb5a   :  { %6101 = vmatpush.bf16.msrb.mxu0 %v10671_v55  ;;  %v12679_v55 = vld [vmem:[%s15662_s11 + $0x2ec] sm:$0xf0] }
 0xb5b   :  { %6917 = vmatpush.bf16.msra.mxu1 %v10915_v61  ;;  %v11219_v52 = vor.u32 %v12679_v55, %v11218_v27  ;;  %v12675_v61 = vld [vmem:[%s15662_s11 + $0x2cc] sm:$0xf0]  ;;  %v11123_v27 = vor.u32 %v12655_v56, %v11122_v53  ;;  %v10852_v55 = vld [vmem:[%s15662_s11 + $0x10] sm:$0xf0] }
 0xb5c   :  { %6114 = vmatpush.bf16.msra.mxu3 %v10799_v15  ;;  %v12609_v15 = vld [vmem:[%s15662_s11 + $0xc4] sm:$0xf] }
 0xb5d   :  { %v10951_v45 = vor.u32 %v12609_v15, %v10948_v51  ;;  %v12633_v15 = vld [vmem:[%s15662_s11 + $0x184] sm:$0xf] }
 0xb5e   :  { %6102 = vmatpush.bf16.msrb.mxu0 %v10655_v62  ;;  %v11011_v62 = vor.u32 %v12627_v58, %v11010_v54  ;;  %v11106_v54 = vld [vmem:[%s15662_s11 + $0x200] sm:$0xf]  ;;  %v12651_v58 = vld [vmem:[%s15662_s11 + $0x20c] sm:$0xf0] }
 0xb5f   :  { %6918 = vmatpush.bf16.msra.mxu1 %v10899_v18 }
 0xb60   :  { %6115 = vmatpush.bf16.msra.mxu3 %v10783_v39  ;;  %v11203_v39 = vor.u32 %v12675_v61, %v11202_v60  ;;  %v11346_v60 = vld [vmem:[%s15662_s11 + $0x3e0] sm:$0xf] }
 0xb62   :  { %6103 = vmatpush.bf16.msrb.mxu0 %v10639_v43  ;;  %v12623_v43 = vld [vmem:[%s15662_s11 + $0x12c] sm:$0xf0] }
 0xb63   :  { %v10995_v6 = vor.u32 %v12623_v43, %v10994_v0  ;;  %v11031_v43 = vor.u32 %v12629_v8, %v11028_v11  ;;  %v11250_v11 = vld [vmem:[%s15662_s11 + $0x320] sm:$0xf] }
 0xb64   :  { %6116 = vmatpush.bf16.msra.mxu3 %v10767_v42  ;;  %v11186_v42 = vld [vmem:[%s15662_s11 + $0x2a0] sm:$0xf] }
 0xb66   :  { %6104 = vmatpush.bf16.msrb.mxu0 %v10623_v4  ;;  %v11187_v4 = vor.u32 %v12671_v2, %v11186_v42  ;;  %v12677_v42 = vld [vmem:[%s15662_s11 + $0x2e4] sm:$0xf] }
 0xb68   :  { %6117 = vmatpush.bf16.msra.mxu3 %v10751_v49  ;;  %v10919_v49 = vor.u32 %v12601_v59, %v10916_v7  ;;  %v11330_v59 = vld [vmem:[%s15662_s11 + $0x3c0] sm:$0xf]  ;;  %v12707_v7 = vld [vmem:[%s15662_s11 + $0x3cc] sm:$0xf0] }
 0xb6a   :  { %6105 = vmatpush.bf16.msrb.mxu0 %v10607_v13  ;;  %v12667_v13 = vld [vmem:[%s15662_s11 + $0x28c] sm:$0xf0] }
 0xb6b   :  { %v11171_v17 = vor.u32 %v12667_v13, %v11170_v35 }
 0xb6c   :  { %6118 = vmatpush.bf16.msra.mxu3 %v10735_v12  ;;  %v12597_v12 = vld [vmem:[%s15662_s11 + $0x64] sm:$0xf] }
 0xb6d   :  { %6106 = vmatmul.bf16.vlgmr.msrb.gmra.mxu0 %v14787_v41  ;;  %v10883_v41 = vor.u32 %v12595_v21, %v10882_v20  ;;  %v10903_v18 = vor.u32 %v12597_v12, %v10900_v16  ;;  %v11092_v20 = vld [vmem:[%s15662_s11 + $0x1f0] sm:$0xf0]  ;;  %v14982_v12 = vld [vmem:[%s15663_s15] sm:$0xf] }
 0xb6e   :  { %6940 = vmatpush.bf16.msra.mxu0 %v11219_v52  ;;  %v11095_v21 = vor.u32 %v12645_v5, %v11092_v20  ;;  %v11044_v52 = vld [vmem:[%s15662_s11 + $0x190] sm:$0xf0]  ;;  %v11314_v16 = vld [vmem:[%s15662_s11 + $0x3a0] sm:$0xf]  ;;  %v12621_v20 = vld [vmem:[%s15662_s11 + $0x124] sm:$0xf] }
 0xb6f   :  { %6119 = vmatmul.bf16.vlgmr.msra.gmra.mxu3 %v14791_v47  ;;  %v11075_v47 = vor.u32 %v12643_v44, %v11074_v9  ;;  %6919 = vmatpush.bf16.msra.mxu1 %v10883_v41  ;;  %v12663_v9 = vld [vmem:[%s15662_s11 + $0x26c] sm:$0xf0]  ;;  %v12593_v41 = vld [vmem:[%s15662_s11 + $0x44] sm:$0xf] }
 0xb70   :  { %v11155_v44 = vor.u32 %v12663_v9, %v11154_v26  ;;  %v12669_v26 = vld [vmem:[%s15662_s11 + $0x2a4] sm:$0xf] }
 0xb71   :  { %6928 = vmatpush.bf16.msrb.mxu2 %v11075_v47  ;;  %v10884_v47 = vld [vmem:[%s15662_s11 + $0x50] sm:$0xf0] }
 0xb72   :  { %6941 = vmatpush.bf16.msra.mxu0 %v11203_v39  ;;  %v10887_v29 = vor.u32 %v12593_v41, %v10884_v47  ;;  %v12711_v39 = vld [vmem:[%s15662_s11 + $0x3ec] sm:$0xf0]  ;;  %v11188_v41 = vld [vmem:[%s15662_s11 + $0x2b0] sm:$0xf0] }
 0xb73   :  { %6920 = vmatpush.bf16.msra.mxu1 %v10867_v22  ;;  %v11079_v22 = vor.u32 %v12641_v25, %v11076_v3  ;;  %v11347_v0 = vor.u32 %v12711_v39, %v11346_v60  ;;  %v11191_v47 = vor.u32 %v12669_v26, %v11188_v41  ;;  %v5268_v25 = vperm.slane %v14982_v12, 0  ;;  %v12699_v3 = vld [vmem:[%s15662_s11 + $0x38c] sm:$0xf0]  ;;  %v11140_v60 = vld [vmem:[%s15662_s11 + $0x250] sm:$0xf0] }
 0xb74   :  { %v12709_v26 = vld [vmem:[%s15662_s11 + $0x3e4] sm:$0xf]  ;;  %v11348_v41 = vld [vmem:[%s15662_s11 + $0x3f0] sm:$0xf0] }
 0xb75   :  { %6929 = vmatpush.bf16.msrb.mxu2 %v11059_v34  ;;  %v11139_v34 = vor.u32 %v12659_v28, %v11138_v32  ;;  %6953 = vmatpush.bf16.msrb.mxu3 %v11347_v0  ;;  %v12617_v32 = vld [vmem:[%s15662_s11 + $0x104] sm:$0xf]  ;;  %v10980_v28 = vld [vmem:[%s15662_s11 + $0x110] sm:$0xf0]  ;;  %v12687_v0 = vld [vmem:[%s15662_s11 + $0x32c] sm:$0xf0] }
 0xb76   :  { %6942 = vmatpush.bf16.msra.mxu0 %v11187_v4  ;;  %v11331_v4 = vor.u32 %v12707_v7, %v11330_v59  ;;  %v10983_v36 = vor.u32 %v12617_v32, %v10980_v28  ;;  %v12653_v59 = vld [vmem:[%s15662_s11 + $0x224] sm:$0xf]  ;;  %v11124_v7 = vld [vmem:[%s15662_s11 + $0x230] sm:$0xf0]  ;;  %v12608_v28 = vld [vmem:[%s15662_s11 + $0xb4] sm:$0xf0] }
 0xb77   :  { %6921 = vmatpush.bf16.msra.mxu1 %v10851_v40  ;;  %v12637_v40 = vld [vmem:[%s15662_s11 + $0x1a4] sm:$0xf] }
 0xb79   :  { %6930 = vmatpush.bf16.msrb.mxu2 %v11043_v37  ;;  %6954 = vmatpush.bf16.msrb.mxu3 %v11331_v4  ;;  %v11127_v4 = vor.u32 %v12653_v59, %v11124_v7  ;;  %v11284_v59 = vld [vmem:[%s15662_s11 + $0x370] sm:$0xf0] }
 0xb7a   :  { %6943 = vmatpush.bf16.msra.mxu0 %v11171_v17  ;;  %v12703_v17 = vld [vmem:[%s15662_s11 + $0x3ac] sm:$0xf0] }
 0xb7b   :  { %6966 = vmatpush.bf16.msrb.mxu1 %v10967_v48  ;;  %v11063_v48 = vor.u32 %v12637_v40, %v11060_v63  ;;  %v11315_v5 = vor.u32 %v12703_v17, %v11314_v16  ;;  %v12695_v63 = vld [vmem:[%s15662_s11 + $0x36c] sm:$0xf0] }
 0xb7c   :  { %v12683_v16 = vld [vmem:[%s15662_s11 + $0x30c] sm:$0xf0] }
 0xb7d   :  { %6931 = vmatpush.bf16.msrb.mxu2 %v11027_v30  ;;  %v12585_v30 = vld [vmem:[%s15662_s11 + $0x4] sm:$0xf]  ;;  %6955 = vmatpush.bf16.msrb.mxu3 %v11315_v5 }
 0xb7e   :  { %6944 = vmatpush.bf16.msra.mxu0 %v11155_v44  ;;  %v10855_v51 = vor.u32 %v12585_v30, %v10852_v55  ;;  %v11156_v30 = vld [vmem:[%s15662_s11 + $0x270] sm:$0xf0] }
 0xb7f   :  { %6967 = vmatpush.bf16.msrb.mxu1 %v10951_v45  ;;  %v11047_v45 = vor.u32 %v12633_v15, %v11044_v52  ;;  %v11266_v52 = vld [vmem:[%s15662_s11 + $0x340] sm:$0xf] }
 0xb81   :  { %6932 = vmatpush.bf16.msrb.mxu2 %v11011_v62  ;;  %v11107_v62 = vor.u32 %v12651_v58, %v11106_v54  ;;  %v12657_v58 = vld [vmem:[%s15662_s11 + $0x244] sm:$0xf] }
 0xb82   :  { %6945 = vmatpush.bf16.msra.mxu0 %v11139_v34  ;;  %v12665_v34 = vld [vmem:[%s15662_s11 + $0x284] sm:$0xf] }
 0xb83   :  { %6968 = vmatpush.bf16.msrb.mxu1 %v10935_v23 }
 0xb85   :  { %6933 = vmatpush.bf16.msrb.mxu2 %v10995_v6  ;;  %v11220_v6 = vld [vmem:[%s15662_s11 + $0x2f0] sm:$0xf0] }
 0xb86   :  { %6946 = vmatpush.bf16.msra.mxu0 %v11123_v27  ;;  %v11223_v2 = vor.u32 %v12677_v42, %v11220_v6  ;;  %v12661_v27 = vld [vmem:[%s15662_s11 + $0x264] sm:$0xf]  ;;  %v12616_v6 = vld [vmem:[%s15662_s11 + $0xf4] sm:$0xf0] }
 0xb87   :  { %6969 = vmatpush.bf16.msrb.mxu1 %v10919_v49  ;;  %v12625_v49 = vld [vmem:[%s15662_s11 + $0x144] sm:$0xf]  ;;  %v11159_v55 = vor.u32 %v12661_v27, %v11156_v30 }
 0xb88   :  { %v11015_v35 = vor.u32 %v12625_v49, %v11012_v50  ;;  %v5269_v49 = vperm.slane %v14982_v12, 1 }
 0xb89   :  { %6934 = vmatpush.bf16.msrb.mxu2 %v10979_v1  ;;  %v11204_v1 = vld [vmem:[%s15662_s11 + $0x2d0] sm:$0xf0] }
 0xb8a   :  { %v14941_v57 = vpop.f32.mrf.mxu1  ;;  %6947 = vmatpush.bf16.msra.mxu0 %v11107_v62  ;;  %v11207_v13 = vor.u32 %v12673_v46, %v11204_v1  ;;  %v11143_v62 = vor.u32 %v12657_v58, %v11140_v60  ;;  %v12612_v1 = vld [vmem:[%s15662_s11 + $0xd4] sm:$0xf0]  ;;  %v12697_v58 = vld [vmem:[%s15662_s11 + $0x384] sm:$0xf]  ;;  %v11300_v60 = vld [vmem:[%s15662_s11 + $0x390] sm:$0xf0] }
 0xb8b   :  { %6970 = vmatpush.bf16.msrb.mxu1 %v10903_v18 }
 0xb8d   :  { %6979 = vmatpush.bf16.msra.mxu2 %v11095_v21  ;;  %v10996_v21 = vld [vmem:[%s15662_s11 + $0x130] sm:$0xf0] }
 0xb8e   :  { %6992 = vmatpush.bf16.msrb.mxu0 %v11223_v2  ;;  %v10999_v44 = vor.u32 %v12621_v20, %v10996_v21  ;;  %v11251_v2 = vor.u32 %v12687_v0, %v11250_v11  ;;  %v12649_v20 = vld [vmem:[%s15662_s11 + $0x204] sm:$0xf]  ;;  %v11108_v21 = vld [vmem:[%s15662_s11 + $0x210] sm:$0xf0]  ;;  %v10890_v11 = vld [vmem:[%s15662_s11 + $0x48] sm:$0xf] }
 0xb8f   :  { %6971 = vmatpush.bf16.msrb.mxu1 %v10887_v29  ;;  %v11298_v29 = vld [vmem:[%s15662_s11 + $0x380] sm:$0xf]  ;;  %v12596_v0 = vld [vmem:[%s15662_s11 + $0x54] sm:$0xf0] }
 0xb91   :  { %6980 = vmatpush.bf16.msra.mxu2 %v11079_v22  ;;  %v11299_v22 = vor.u32 %v12699_v3, %v11298_v29  ;;  %v10938_v3 = vld [vmem:[%s15662_s11 + $0xa8] sm:$0xf] }
 0xb92   :  { %v5927_v37 = vpop.f32.mrf.mxu1  ;;  %6993 = vmatpush.bf16.msrb.mxu0 %v11207_v13  ;;  %v11234_v13 = vld [vmem:[%s15662_s11 + $0x300] sm:$0xf] }
 0xb93   :  { %v14953_v38 = vpop.f32.mrf.mxu2  ;;  %6972 = vmatpush.bf16.msrb.mxu1 %v10871_v19  ;;  %v11175_v37 = vor.u32 %v12665_v34, %v11172_v14  ;;  %6956 = vmatpush.bf16.msrb.mxu3 %v11299_v22  ;;  %v11282_v19 = vld [vmem:[%s15662_s11 + $0x360] sm:$0xf]  ;;  %v11235_v5 = vor.u32 %v12683_v16, %v11234_v13  ;;  %v12705_v34 = vld [vmem:[%s15662_s11 + $0x3c4] sm:$0xf]  ;;  %v11066_v13 = vld [vmem:[%s15662_s11 + $0x1a8] sm:$0xf] }
 0xb94   :  { %v11283_v56 = vor.u32 %v12695_v63, %v11282_v19  ;;  %v10922_v19 = vld [vmem:[%s15662_s11 + $0x88] sm:$0xf] }
 0xb95   :  { %6981 = vmatpush.bf16.msra.mxu2 %v11063_v48  ;;  %v5926_v48 = vadd.f32 %v14941_v57, %v5268_v25  ;;  %v11351_v25 = vor.u32 %v12709_v26, %v11348_v41  ;;  %v11268_v26 = vld [vmem:[%s15662_s11 + $0x350] sm:$0xf0] }
 0xb96   :  { %6994 = vmatpush.bf16.msrb.mxu0 %v11191_v47 }
 0xb97   :  { %6973 = vmatpush.bf16.msrb.mxu1 %v10855_v51  ;;  %v5939_v15 = vadd.f32 %v14953_v38, %v5926_v48  ;;  %6957 = vmatpush.bf16.msrb.mxu3 %v11283_v56  ;;  %v10970_v38 = vld [vmem:[%s15662_s11 + $0xe8] sm:$0xf]  ;;  %v12604_v48 = vld [vmem:[%s15662_s11 + $0x94] sm:$0xf0] }
 0xb99   :  { %6982 = vmatpush.bf16.msra.mxu2 %v11047_v45  ;;  %v12691_v45 = vld [vmem:[%s15662_s11 + $0x34c] sm:$0xf0] }
 0xb9a   :  { %v14971_v23 = vpop.f32.mrf.mxu1  ;;  %6995 = vmatpush.bf16.msrb.mxu0 %v11175_v37  ;;  %v11267_v54 = vor.u32 %v12691_v45, %v11266_v52  ;;  %v10939_v37 = vor.u32 %v12608_v28, %v10938_v3  ;;  %v12600_v52 = vld [vmem:[%s15662_s11 + $0x74] sm:$0xf0]  ;;  %v11098_v45 = vld [vmem:[%s15662_s11 + $0x1e8] sm:$0xf]  ;;  %v11252_v28 = vld [vmem:[%s15662_s11 + $0x330] sm:$0xf0] }
 0xb9b   :  { %v5940_v61 = vpop.f32.mrf.mxu2  ;;  %v5978_v22 = vadd.f32 %v14971_v23, %v5269_v49  ;;  %v12701_v23 = vld [vmem:[%s15662_s11 + $0x3a4] sm:$0xf] }
 0xb9c   :  { %6958 = vmatpush.bf16.msrb.mxu3 %v11267_v54  ;;  %v12648_v54 = vld [vmem:[%s15662_s11 + $0x1f4] sm:$0xf0] }
 0xb9d   :  { %6983 = vmatpush.bf16.msra.mxu2 %v11031_v43 }
 0xb9e   :  { %6996 = vmatpush.bf16.msrb.mxu0 %v11159_v55 }
 0xba0   :  { %6959 = vmatpush.bf16.msrb.mxu3 %v11251_v2  ;;  %v12693_v2 = vld [vmem:[%s15662_s11 + $0x364] sm:$0xf] }
 0xba1   :  { %6984 = vmatpush.bf16.msra.mxu2 %v11015_v35  ;;  %v10954_v35 = vld [vmem:[%s15662_s11 + $0xc8] sm:$0xf] }
 0xba2   :  { %v5979_v9 = vpop.f32.mrf.mxu1  ;;  %6997 = vmatpush.bf16.msrb.mxu0 %v11143_v62  ;;  %v10955_v29 = vor.u32 %v12612_v1, %v10954_v35  ;;  %v5270_v62 = vperm.slane %v14982_v12, 2  ;;  %v12592_v1 = vld [vmem:[%s15662_s11 + $0x34] sm:$0xf0] }
 0xba3   :  { %v14986_v18 = vpop.f32.mrf.mxu2 }
 0xba4   :  { %6960 = vmatpush.bf16.msrb.mxu3 %v11235_v5 }
 0xba5   :  { %6985 = vmatpush.bf16.msra.mxu2 %v10999_v44  ;;  %v11111_v44 = vor.u32 %v12649_v20, %v11108_v21  ;;  %v12640_v20 = vld [vmem:[%s15662_s11 + $0x1b4] sm:$0xf0]  ;;  %v12689_v21 = vld [vmem:[%s15662_s11 + $0x344] sm:$0xf] }
 0xba6   :  { %6998 = vmatpush.bf16.msrb.mxu0 %v11127_v4  ;;  %v11287_v4 = vor.u32 %v12693_v2, %v11284_v59  ;;  %v10940_v2 = vld [vmem:[%s15662_s11 + $0xb8] sm:$0xf0] }
 0xba8   :  { %7005 = vmatpush.bf16.msra.mxu3 %v11351_v25  ;;  %v10858_v25 = vld [vmem:[%s15662_s11 + $0x8] sm:$0xf] }
 0xba9   :  { %6986 = vmatpush.bf16.msra.mxu2 %v10983_v36  ;;  %v11332_v36 = vld [vmem:[%s15662_s11 + $0x3d0] sm:$0xf0] }
 0xbaa   :  { %v5951_v40 = vpop.f32.mrf.mxu0  ;;  %6999 = vmatpush.bf16.msrb.mxu0 %v11111_v44  ;;  %v11335_v14 = vor.u32 %v12705_v34, %v11332_v36  ;;  %v12614_v36 = vld [vmem:[%s15662_s11 + $0xec] sm:$0xf] }
 0xbab   :  { %v5992_v53 = vpop.f32.mrf.mxu2  ;;  %v5952_v57 = vadd.f32 %v5951_v40, %v5939_v15  ;;  %v5991_v40 = vadd.f32 %v14986_v18, %v5978_v22  ;;  %v10923_v18 = vor.u32 %v12604_v48, %v10922_v19  ;;  %v10906_v15 = vld [vmem:[%s15662_s11 + $0x68] sm:$0xf]  ;;  %v12636_v22 = vld [vmem:[%s15662_s11 + $0x194] sm:$0xf0] }
 0xbac   :  { %v15005_v51 = vpop.f32.mrf.mxu1  ;;  %7006 = vmatpush.bf16.msra.mxu3 %v11335_v14  ;;  %v11316_v53 = vld [vmem:[%s15662_s11 + $0x3b0] sm:$0xf0]  ;;  %v10972_v14 = vld [vmem:[%s15662_s11 + $0xf8] sm:$0xf0] }
 0xbad   :  { %v11319_v27 = vor.u32 %v12701_v23, %v11316_v53  ;;  %v6030_v16 = vadd.f32 %v15005_v51, %v5270_v62  ;;  %v12588_v51 = vld [vmem:[%s15662_s11 + $0x14] sm:$0xf0]  ;;  %v11034_v23 = vld [vmem:[%s15662_s11 + $0x168] sm:$0xf] }
 0xbae   :  { %v12632_v53 = vld [vmem:[%s15662_s11 + $0x174] sm:$0xf0] }
 0xbb0   :  { %7007 = vmatpush.bf16.msra.mxu3 %v11319_v27 }
 0xbb2   :  { %v5964_v61 = vpop.f32.mrf.mxu3  ;;  %v5953_v8 = vpop.f32.mrf.mxu0 }
 0xbb3   :  { %v5965_v39 = vadd.f32 %v5964_v61, %v5952_v57  ;;  %v15015_v42 = vpop.f32.mrf.mxu2  ;;  %v11303_v61 = vor.u32 %v12697_v58, %v11300_v60  ;;  %v10907_v8 = vor.u32 %v12600_v52, %v10906_v15  ;;  %v11236_v15 = vld [vmem:[%s15662_s11 + $0x310] sm:$0xf0]  ;;  %v12680_v52 = vld [vmem:[%s15662_s11 + $0x2f4] sm:$0xf0] }
 0xbb4   :  { %v6031_v46 = vpop.f32.mrf.mxu1  ;;  %v6043_v44 = vadd.f32 %v15015_v42, %v6030_v16  ;;  %v10924_v16 = vld [vmem:[%s15662_s11 + $0x98] sm:$0xf0] }
 0xbb5   :  { %v6124_v43 = vadd.f32 %v5965_v39, %v14674_v10  ;;  %v10971_v10 = vor.u32 %v12616_v6, %v10970_v38  ;;  %v11099_v38 = vor.u32 %v12648_v54, %v11098_v45  ;;  %v12644_v6 = vld [vmem:[%s15662_s11 + $0x1d4] sm:$0xf0]  ;;  %7008 = vmatpush.bf16.msra.mxu3 %v11303_v61  ;;  %v10891_v46 = vor.u32 %v12596_v0, %v10890_v11  ;;  %v12610_v45 = vld [vmem:[%s15662_s11 + $0xcc] sm:$0xf]  ;;  %v11210_v11 = vld [vmem:[%s15662_s11 + $0x2c8] sm:$0xf] }
 0xbb7   :  { %v15021_v50 = vmax.f32 %v6124_v43, 0.0  ;;  %v11082_v43 = vld [vmem:[%s15662_s11 + $0x1c8] sm:$0xf] }
 0xbb8   :  { %v11083_v35 = vor.u32 %v12644_v6, %v11082_v43  ;;  %v12676_v43 = vld [vmem:[%s15662_s11 + $0x2d4] sm:$0xf0]  ;;  %v12606_v6 = vld [vmem:[%s15662_s11 + $0xac] sm:$0xf] }
 0xbb9   :  { %v15029_v17 = vpack.c.bf16 %v15021_v50, %v15021_v50  ;;  %7009 = vmatpush.bf16.msra.mxu3 %v11287_v4  ;;  %v11211_v4 = vor.u32 %v12676_v43, %v11210_v11  ;;  %v11052_v43 = vld [vmem:[%s15662_s11 + $0x198] sm:$0xf0] }
 0xbba   :  { %v5966_v9 = vpop.f32.mrf.mxu3  ;;  %v6003_v47 = vpop.f32.mrf.mxu0 }
 0xbbb   :  { %6922 = vmatmul.bf16.vlgmr.msra.gmra.mxu1 %v15029_v17  ;;  %v6044_v32 = vpop.f32.mrf.mxu2  ;;  %v6004_v63 = vadd.f32 %v6003_v47, %v5991_v40  ;;  %v11271_v9 = vor.u32 %v12689_v21, %v11268_v26  ;;  %v11067_v47 = vor.u32 %v12640_v20, %v11066_v13  ;;  %v12602_v13 = vld [vmem:[%s15662_s11 + $0x8c] sm:$0xf] }
 0xbbc   :  { %7018 = vmatpush.bf16.msra.mxu1 %v10971_v10  ;;  %v10874_v10 = vld [vmem:[%s15662_s11 + $0x28] sm:$0xf]  ;;  %v12685_v32 = vld [vmem:[%s15662_s11 + $0x324] sm:$0xf]  ;;  %v10927_v26 = vor.u32 %v12602_v13, %v10924_v16  ;;  %v12630_v13 = vld [vmem:[%s15662_s11 + $0x16c] sm:$0xf] }
 0xbbd   :  { %v10875_v41 = vor.u32 %v12592_v1, %v10874_v10  ;;  %7010 = vmatpush.bf16.msra.mxu3 %v11271_v9  ;;  %v11255_v42 = vor.u32 %v12685_v32, %v11252_v28  ;;  %v11194_v10 = vld [vmem:[%s15662_s11 + $0x2a8] sm:$0xf]  ;;  %v12672_v1 = vld [vmem:[%s15662_s11 + $0x2b4] sm:$0xf0]  ;;  %v11036_v16 = vld [vmem:[%s15662_s11 + $0x178] sm:$0xf0] }
 0xbbe   :  { %v11195_v21 = vor.u32 %v12672_v1, %v11194_v10  ;;  %v10986_v9 = vld [vmem:[%s15662_s11 + $0x108] sm:$0xf]  ;;  %v12712_v1 = vld [vmem:[%s15662_s11 + $0x3f4] sm:$0xf0] }
 0xbc0   :  { %7019 = vmatpush.bf16.msra.mxu1 %v10955_v29  ;;  %v11050_v29 = vld [vmem:[%s15662_s11 + $0x188] sm:$0xf] }
 0xbc1   :  { %v11051_v48 = vor.u32 %v12636_v22, %v11050_v29  ;;  %7011 = vmatpush.bf16.msra.mxu3 %v11255_v42  ;;  %v12646_v29 = vld [vmem:[%s15662_s11 + $0x1ec] sm:$0xf] }
 0xbc2   :  { %v6016_v56 = vpop.f32.mrf.mxu3  ;;  %v6005_v55 = vpop.f32.mrf.mxu0  ;;  %v12594_v42 = vld [vmem:[%s15662_s11 + $0x4c] sm:$0xf] }
 0xbc3   :  { %v6017_v30 = vadd.f32 %v6016_v56, %v6004_v63  ;;  %v10859_v63 = vor.u32 %v12588_v51, %v10858_v25  ;;  %v11226_v55 = vld [vmem:[%s15662_s11 + $0x2e8] sm:$0xf]  ;;  %v12598_v25 = vld [vmem:[%s15662_s11 + $0x6c] sm:$0xf]  ;;  %v10908_v51 = vld [vmem:[%s15662_s11 + $0x78] sm:$0xf0] }
 0xbc4   :  { %7020 = vmatpush.bf16.msra.mxu1 %v10939_v37  ;;  %v11227_v61 = vor.u32 %v12680_v52, %v11226_v55  ;;  %v10911_v28 = vor.u32 %v12598_v25, %v10908_v51  ;;  %v12660_v55 = vld [vmem:[%s15662_s11 + $0x254] sm:$0xf0]  ;;  %v12638_v52 = vld [vmem:[%s15662_s11 + $0x1ac] sm:$0xf] }
 0xbc5   :  { %v6125_v57 = vadd.f32 %v6017_v30, %v14676_v24  ;;  %v10975_v30 = vor.u32 %v12614_v36, %v10972_v14  ;;  %v12664_v14 = vld [vmem:[%s15662_s11 + $0x274] sm:$0xf0] }
 0xbc6   :  { %v12708_v51 = vld [vmem:[%s15662_s11 + $0x3d4] sm:$0xf0] }
 0xbc7   :  { %v15054_v39 = vmax.f32 %v6125_v57, 0.0  ;;  %v10956_v57 = vld [vmem:[%s15662_s11 + $0xd8] sm:$0xf0] }
 0xbc8   :  { %7021 = vmatpush.bf16.msra.mxu1 %v10923_v18  ;;  %v12681_v18 = vld [vmem:[%s15662_s11 + $0x304] sm:$0xf]  ;;  %v10959_v62 = vor.u32 %v12610_v45, %v10956_v57  ;;  %v11068_v45 = vld [vmem:[%s15662_s11 + $0x1b8] sm:$0xf0] }
 0xbc9   :  { %v15061_v24 = vpack.c.bf16 %v15054_v39, %v15054_v39  ;;  %v11239_v54 = vor.u32 %v12681_v18, %v11236_v15  ;;  %v12590_v18 = vld [vmem:[%s15662_s11 + $0x2c] sm:$0xf]  ;;  %v10876_v15 = vld [vmem:[%s15662_s11 + $0x38] sm:$0xf0] }
 0xbca   :  { %v6018_v7 = vpop.f32.mrf.mxu3  ;;  %v6055_v49 = vpop.f32.mrf.mxu0 }
 0xbcb   :  { %6935 = vmatmul.bf16.vlgmr.msrb.gmra.mxu2 %v15061_v24  ;;  %6974 = vmatmul.bf16.vlgmr.msrb.gmra.mxu1 %v15029_v17  ;;  %v15072_v5 = vpop.f32.mrf.mxu1  ;;  %v6056_v3 = vadd.f32 %v6055_v49, %v6043_v44  ;;  %v10943_v49 = vor.u32 %v12606_v6, %v10940_v2  ;;  %v12620_v44 = vld [vmem:[%s15662_s11 + $0x114] sm:$0xf0] }
 0xbcc   :  { %7022 = vmatpush.bf16.msra.mxu1 %v10907_v8  ;;  %7031 = vmatpush.bf16.msrb.mxu2 %v11099_v38  ;;  %v11018_v8 = vld [vmem:[%s15662_s11 + $0x148] sm:$0xf]  ;;  %v12628_v38 = vld [vmem:[%s15662_s11 + $0x154] sm:$0xf0]  ;;  %v10987_v22 = vor.u32 %v12620_v44, %v10986_v9 }
 0xbcd   :  { %7012 = vmatpush.bf16.msra.mxu3 %v11239_v54  ;;  %v11019_v7 = vor.u32 %v12628_v38, %v11018_v8  ;;  %v12656_v8 = vld [vmem:[%s15662_s11 + $0x234] sm:$0xf0]  ;;  %v10860_v38 = vld [vmem:[%s15662_s11 + $0x18] sm:$0xf0] }
 0xbd0   :  { %7023 = vmatpush.bf16.msra.mxu1 %v10891_v46  ;;  %7032 = vmatpush.bf16.msrb.mxu2 %v11083_v35  ;;  %v11002_v46 = vld [vmem:[%s15662_s11 + $0x128] sm:$0xf]  ;;  %v12624_v35 = vld [vmem:[%s15662_s11 + $0x134] sm:$0xf0] }
 0xbd1   :  { %v11003_v20 = vor.u32 %v12624_v35, %v11002_v46  ;;  %v12652_v46 = vld [vmem:[%s15662_s11 + $0x214] sm:$0xf0]  ;;  %v11354_v35 = vld [vmem:[%s15662_s11 + $0x3e8] sm:$0xf] }
 0xbd2   :  { %v6068_v34 = vpop.f32.mrf.mxu3  ;;  %v6057_v19 = vpop.f32.mrf.mxu0  ;;  %v11355_v44 = vor.u32 %v12712_v1, %v11354_v35  ;;  %v11242_v35 = vld [vmem:[%s15662_s11 + $0x308] sm:$0xf]  ;;  %v11116_v1 = vld [vmem:[%s15662_s11 + $0x218] sm:$0xf0] }
 0xbd3   :  { %v6069_v40 = vadd.f32 %v6068_v34, %v6056_v3  ;;  %v15086_v37 = vpop.f32.mrf.mxu2  ;;  %v6083_v27 = vpop.f32.mrf.mxu1  ;;  %v11100_v3 = vld [vmem:[%s15662_s11 + $0x1f8] sm:$0xf0]  ;;  %v11162_v34 = vld [vmem:[%s15662_s11 + $0x268] sm:$0xf]  ;;  %v5271_v19 = vperm.slane %v14982_v12, 3 }
 0xbd4   :  { %7024 = vmatpush.bf16.msra.mxu1 %v10875_v41  ;;  %7033 = vmatpush.bf16.msrb.mxu2 %v11067_v47  ;;  %v11178_v41 = vld [vmem:[%s15662_s11 + $0x288] sm:$0xf]  ;;  %v12668_v47 = vld [vmem:[%s15662_s11 + $0x294] sm:$0xf0]  ;;  %v11103_v36 = vor.u32 %v12646_v29, %v11100_v3  ;;  %v12626_v29 = vld [vmem:[%s15662_s11 + $0x14c] sm:$0xf] }
 0xbd5   :  { %v6126_v56 = vadd.f32 %v6069_v40, %v14708_v31  ;;  %v11035_v31 = vor.u32 %v12632_v53, %v11034_v23  ;;  %v11179_v32 = vor.u32 %v12668_v47, %v11178_v41  ;;  %v10892_v40 = vld [vmem:[%s15662_s11 + $0x58] sm:$0xf0]  ;;  %v11163_v23 = vor.u32 %v12664_v14, %v11162_v34  ;;  %v11338_v47 = vld [vmem:[%s15662_s11 + $0x3c8] sm:$0xf] }
 0xbd6   :  { %v10895_v53 = vor.u32 %v12594_v42, %v10892_v40  ;;  %v6082_v12 = vadd.f32 %v15072_v5, %v5271_v19  ;;  %v12586_v5 = vld [vmem:[%s15662_s11 + $0xc] sm:$0xf]  ;;  %v11039_v41 = vor.u32 %v12630_v13, %v11036_v16  ;;  %v11020_v3 = vld [vmem:[%s15662_s11 + $0x158] sm:$0xf0]  ;;  %v11339_v34 = vor.u32 %v12708_v51, %v11338_v47  ;;  %v11322_v14 = vld [vmem:[%s15662_s11 + $0x3a8] sm:$0xf] }
 0xbd7   :  { %v15097_v58 = vmax.f32 %v6126_v56, 0.0  ;;  %v11146_v56 = vld [vmem:[%s15662_s11 + $0x248] sm:$0xf]  ;;  %v12704_v40 = vld [vmem:[%s15662_s11 + $0x3b4] sm:$0xf0] }
 0xbd8   :  { %7025 = vmatpush.bf16.msra.mxu1 %v10859_v63  ;;  %7034 = vmatpush.bf16.msrb.mxu2 %v11051_v48  ;;  %v12642_v63 = vld [vmem:[%s15662_s11 + $0x1cc] sm:$0xf]  ;;  %v11084_v48 = vld [vmem:[%s15662_s11 + $0x1d8] sm:$0xf0]  ;;  %v6095_v57 = vadd.f32 %v15086_v37, %v6082_v12  ;;  %v11147_v54 = vor.u32 %v12660_v55, %v11146_v56  ;;  %v11306_v56 = vld [vmem:[%s15662_s11 + $0x388] sm:$0xf] }
 0xbd9   :  { %v15101_v60 = vpack.c.bf16 %v15097_v58, %v15097_v58  ;;  %v11004_v19 = vld [vmem:[%s15662_s11 + $0x138] sm:$0xf0]  ;;  %v12618_v55 = vld [vmem:[%s15662_s11 + $0x10c] sm:$0xf] }
 0xbda   :  { %v6070_v0 = vpop.f32.mrf.mxu3  ;;  %v11180_v12 = vld [vmem:[%s15662_s11 + $0x298] sm:$0xf0]  ;;  %v12710_v13 = vld [vmem:[%s15662_s11 + $0x3ec] sm:$0xf] }
 0xbdb   :  { %v6096_v59 = vpop.f32.mrf.mxu2  ;;  %6948 = vmatmul.bf16.vlgmr.msra.gmra.mxu0 %v15101_v60  ;;  %6987 = vmatmul.bf16.vlgmr.msra.gmra.mxu2 %v15061_v24  ;;  %v12634_v0 = vld [vmem:[%s15662_s11 + $0x18c] sm:$0xf]  ;;  %v11356_v16 = vld [vmem:[%s15662_s11 + $0x3f8] sm:$0xf0] }
 0xbdc   :  { %7070 = vmatpush.bf16.msrb.mxu1 %v10975_v30  ;;  %7035 = vmatpush.bf16.msrb.mxu2 %v11035_v31  ;;  %v11087_v30 = vor.u32 %v12642_v63, %v11084_v48  ;;  %v10879_v31 = vor.u32 %v12590_v18, %v10876_v15  ;;  %v10863_v59 = vor.u32 %v12586_v5, %v10860_v38  ;;  %v12670_v63 = vld [vmem:[%s15662_s11 + $0x2ac] sm:$0xf]  ;;  %v11196_v48 = vld [vmem:[%s15662_s11 + $0x2b8] sm:$0xf0]  ;;  %v11274_v38 = vld [vmem:[%s15662_s11 + $0x348] sm:$0xf] }
 0xbdd   :  { %7026 = vmatmul.bf16.vlgmr.msra.gmra.mxu1 %v15029_v17  ;;  %7044 = vmatpush.bf16.msra.mxu0 %v11227_v61  ;;  %v11130_v61 = vld [vmem:[%s15662_s11 + $0x228] sm:$0xf]  ;;  %v10988_v18 = vld [vmem:[%s15662_s11 + $0x118] sm:$0xf0]  ;;  %v12666_v15 = vld [vmem:[%s15662_s11 + $0x28c] sm:$0xf] }
 0xbde   :  { %v11131_v2 = vor.u32 %v12656_v8, %v11130_v61  ;;  %v12662_v61 = vld [vmem:[%s15662_s11 + $0x26c] sm:$0xf]  ;;  %v11324_v51 = vld [vmem:[%s15662_s11 + $0x3b8] sm:$0xf0] }
 0xbe0   :  { %7071 = vmatpush.bf16.msrb.mxu1 %v10959_v62  ;;  %7036 = vmatpush.bf16.msrb.mxu2 %v11019_v7  ;;  %v11071_v62 = vor.u32 %v12638_v52, %v11068_v45  ;;  %v10991_v45 = vor.u32 %v12618_v55, %v10988_v18  ;;  %v11244_v55 = vld [vmem:[%s15662_s11 + $0x318] sm:$0xf0] }
 0xbe1   :  { %7045 = vmatpush.bf16.msra.mxu0 %v11211_v4  ;;  %v11055_v4 = vor.u32 %v12634_v0, %v11052_v43  ;;  %v12658_v0 = vld [vmem:[%s15662_s11 + $0x24c] sm:$0xf]  ;;  %v11148_v43 = vld [vmem:[%s15662_s11 + $0x258] sm:$0xf0] }
 0xbe4   :  { %7072 = vmatpush.bf16.msrb.mxu1 %v10943_v49  ;;  %7037 = vmatpush.bf16.msrb.mxu2 %v11003_v20  ;;  %v11114_v49 = vld [vmem:[%s15662_s11 + $0x208] sm:$0xf]  ;;  %v12678_v20 = vld [vmem:[%s15662_s11 + $0x2ec] sm:$0xf] }
 0xbe5   :  { %7046 = vmatpush.bf16.msra.mxu0 %v11195_v21  ;;  %v11228_v21 = vld [vmem:[%s15662_s11 + $0x2f8] sm:$0xf0]  ;;  %v11115_v9 = vor.u32 %v12652_v46, %v11114_v49 }
 0xbe6   :  { %v11231_v25 = vor.u32 %v12678_v20, %v11228_v21 }
 0xbe8   :  { %7073 = vmatpush.bf16.msrb.mxu1 %v10927_v26  ;;  %7038 = vmatpush.bf16.msrb.mxu2 %v10987_v22 }
 0xbe9   :  { %7047 = vmatpush.bf16.msra.mxu0 %v11179_v32  ;;  %v12674_v32 = vld [vmem:[%s15662_s11 + $0x2cc] sm:$0xf] }
 0xbea   :  { %v6107_v27 = vpop.f32.mrf.mxu0 }
 0xbeb   :  { %7000 = vmatmul.bf16.vlgmr.msrb.gmra.mxu0 %v15101_v60  ;;  %7039 = vmatmul.bf16.vlgmr.msrb.gmra.mxu2 %v15061_v24  ;;  %v6108_v11 = vadd.f32 %v6107_v27, %v6095_v57  ;;  %v11199_v27 = vor.u32 %v12670_v63, %v11196_v48  ;;  %v11183_v57 = vor.u32 %v12666_v15, %v11180_v12  ;;  %v12686_v63 = vld [vmem:[%s15662_s11 + $0x32c] sm:$0xf]  ;;  %v11260_v48 = vld [vmem:[%s15662_s11 + $0x338] sm:$0xf0]  ;;  %v11442_v15 = vld [vmem:[%s15664_s16 + $0xa0] sm:$0xf] }
 0xbec   :  { %7074 = vmatpush.bf16.msrb.mxu1 %v10911_v28  ;;  %7083 = vmatpush.bf16.msra.mxu2 %v11103_v36  ;;  %v11212_v28 = vld [vmem:[%s15662_s11 + $0x2d8] sm:$0xf0]  ;;  %v11023_v36 = vor.u32 %v12626_v29, %v11020_v3  ;;  %v12698_v3 = vld [vmem:[%s15662_s11 + $0x38c] sm:$0xf]  ;;  %v12735_v12 = vld [vmem:[%s15664_s16 + $0xac] sm:$0xf0] }
 0xbed   :  { %7048 = vmatpush.bf16.msra.mxu0 %v11163_v23  ;;  %v11215_v42 = vor.u32 %v12674_v32, %v11212_v28  ;;  %v11323_v23 = vor.u32 %v12704_v40, %v11322_v14  ;;  %v12694_v28 = vld [vmem:[%s15662_s11 + $0x36c] sm:$0xf]  ;;  %v12743_v14 = vld [vmem:[%s15664_s16 + $0xec] sm:$0xf0] }
 0xbee   :  { %v12690_v40 = vld [vmem:[%s15662_s11 + $0x34c] sm:$0xf] }
 0xbf0   :  { %7075 = vmatpush.bf16.msrb.mxu1 %v10895_v53  ;;  %7084 = vmatpush.bf16.msra.mxu2 %v11087_v30  ;;  %v12700_v30 = vld [vmem:[%s15662_s11 + $0x394] sm:$0xf0] }
 0xbf1   :  { %7049 = vmatpush.bf16.msra.mxu0 %v11147_v54  ;;  %v11307_v52 = vor.u32 %v12700_v30, %v11306_v56  ;;  %v11290_v54 = vld [vmem:[%s15662_s11 + $0x368] sm:$0xf]  ;;  %v12682_v30 = vld [vmem:[%s15662_s11 + $0x30c] sm:$0xf] }
 0xbf2   :  { %v6120_v37 = vpop.f32.mrf.mxu3  ;;  %v6109_v7 = vpop.f32.mrf.mxu0  ;;  %v11247_v18 = vor.u32 %v12682_v30, %v11244_v55  ;;  %v11698_v30 = vld [vmem:[%s15664_s16 + $0x2a0] sm:$0xf] }
 0xbf3   :  { %v6121_v6 = vadd.f32 %v6120_v37, %v6108_v11  ;;  %v12692_v11 = vld [vmem:[%s15662_s11 + $0x354] sm:$0xf0]  ;;  %v12654_v7 = vld [vmem:[%s15662_s11 + $0x22c] sm:$0xf] }
 0xbf4   :  { %7076 = vmatpush.bf16.msrb.mxu1 %v10879_v31  ;;  %7085 = vmatpush.bf16.msra.mxu2 %v11071_v62  ;;  %v12696_v31 = vld [vmem:[%s15662_s11 + $0x374] sm:$0xf0]  ;;  %v11164_v62 = vld [vmem:[%s15662_s11 + $0x278] sm:$0xf0]  ;;  %v11275_v37 = vor.u32 %v12692_v11, %v11274_v38 }
 0xbf5   :  { %v6127_v10 = vadd.f32 %v6121_v6, %v14710_v33  ;;  %7050 = vmatpush.bf16.msra.mxu0 %v11131_v2  ;;  %v11291_v8 = vor.u32 %v12696_v31, %v11290_v54  ;;  %v11167_v5 = vor.u32 %v12662_v61, %v11164_v62  ;;  %v11151_v6 = vor.u32 %v12658_v0, %v11148_v43  ;;  %v11258_v2 = vld [vmem:[%s15662_s11 + $0x328] sm:$0xf]  ;;  %v11410_v31 = vld [vmem:[%s15664_s16 + $0x60] sm:$0xf]  ;;  %v12727_v61 = vld [vmem:[%s15664_s16 + $0x6c] sm:$0xf0] }
 0xbf6   :  { %v11602_v62 = vld [vmem:[%s15664_s16 + $0x1e0] sm:$0xf]  ;;  %v12723_v43 = vld [vmem:[%s15664_s16 + $0x4c] sm:$0xf0] }
 0xbf7   :  { %v15158_v26 = vmax.f32 %v6127_v10, 0.0  ;;  %v12684_v10 = vld [vmem:[%s15662_s11 + $0x314] sm:$0xf0]  ;;  %v11394_v0 = vld [vmem:[%s15664_s16 + $0x40] sm:$0xf] }
 0xbf8   :  { %7077 = vmatpush.bf16.msrb.mxu1 %v10863_v59  ;;  %7086 = vmatpush.bf16.msra.mxu2 %v11055_v4  ;;  %v12688_v59 = vld [vmem:[%s15662_s11 + $0x334] sm:$0xf0]  ;;  %v11132_v4 = vld [vmem:[%s15662_s11 + $0x238] sm:$0xf0]  ;;  %v11243_v20 = vor.u32 %v12684_v10, %v11242_v35  ;;  %v12767_v35 = vld [vmem:[%s15664_s16 + $0x1ac] sm:$0xf0] }
 0xbf9   :  { %v15163_v33 = vpack.c.bf16 %v15158_v26, %v15158_v26  ;;  %7051 = vmatpush.bf16.msra.mxu0 %v11115_v9  ;;  %v11259_v49 = vor.u32 %v12688_v59, %v11258_v2  ;;  %v11135_v46 = vor.u32 %v12654_v7, %v11132_v4  ;;  %v11359_v9 = vor.u32 %v12710_v13, %v11356_v16  ;;  %v11378_v59 = vld [vmem:[%s15664_s16 + $0x20] sm:$0xf]  ;;  %v12719_v7 = vld [vmem:[%s15664_s16 + $0x2c] sm:$0xf0] }
 0xbfa   :  { %v6122_v22 = vpop.f32.mrf.mxu3  ;;  %v11570_v4 = vld [vmem:[%s15664_s16 + $0x1a0] sm:$0xf] }
 0xbfb   :  { %7078 = vmatmul.bf16.vlgmr.msrb.gmra.mxu1 %v15029_v17  ;;  %6961 = vmatmul.bf16.vlgmr.msrb.gmra.mxu3 %v15163_v33  ;;  %v12622_v17 = vld [vmem:[%s15662_s11 + $0x12c] sm:$0xf]  ;;  %v11308_v22 = vld [vmem:[%s15662_s11 + $0x398] sm:$0xf0]  ;;  %v11571_v10 = vor.u32 %v12767_v35, %v11570_v4  ;;  %v11554_v13 = vld [vmem:[%s15664_s16 + $0x180] sm:$0xf] }
 0xbfc   :  { %7057 = vmatpush.bf16.msrb.mxu3 %v11355_v44  ;;  %7087 = vmatpush.bf16.msra.mxu2 %v11039_v41  ;;  %v11007_v53 = vor.u32 %v12622_v17, %v11004_v19  ;;  %v12706_v44 = vld [vmem:[%s15662_s11 + $0x3cc] sm:$0xf]  ;;  %v11340_v41 = vld [vmem:[%s15662_s11 + $0x3d8] sm:$0xf0]  ;;  %v11311_v32 = vor.u32 %v12698_v3, %v11308_v22  ;;  %v12807_v3 = vld [vmem:[%s15664_s16 + $0x2ec] sm:$0xf0] }
 0xbfd   :  { %7096 = vmatpush.bf16.msrb.mxu0 %v11231_v25  ;;  %v11343_v47 = vor.u32 %v12706_v44, %v11340_v41  ;;  %v12702_v25 = vld [vmem:[%s15662_s11 + $0x3ac] sm:$0xf]  ;;  %v11276_v17 = vld [vmem:[%s15662_s11 + $0x358] sm:$0xf0]  ;;  %v11396_v35 = vld [vmem:[%s15664_s16 + $0x50] sm:$0xf0] }
 0xbfe   :  { %7052 = vmatmul.bf16.vlgmr.msra.gmra.mxu0 %v15101_v60  ;;  %v11327_v29 = vor.u32 %v12702_v25, %v11324_v51  ;;  %v11279_v19 = vor.u32 %v12690_v40, %v11276_v17  ;;  %v12759_v25 = vld [vmem:[%s15664_s16 + $0x16c] sm:$0xf0]  ;;  %v11730_v51 = vld [vmem:[%s15664_s16 + $0x2e0] sm:$0xf]  ;;  %v12733_v17 = vld [vmem:[%s15664_s16 + $0xa4] sm:$0xf] }
 0xbff   :  { %v12803_v40 = vld [vmem:[%s15664_s16 + $0x2cc] sm:$0xf0] }
 0xc00   :  { %7058 = vmatpush.bf16.msrb.mxu3 %v11339_v34  ;;  %7088 = vmatpush.bf16.msra.mxu2 %v11023_v36  ;;  %v11292_v34 = vld [vmem:[%s15662_s11 + $0x378] sm:$0xf0]  ;;  %v11474_v36 = vld [vmem:[%s15664_s16 + $0xe0] sm:$0xf] }
 0xc01   :  { %7097 = vmatpush.bf16.msrb.mxu0 %v11215_v42  ;;  %v11475_v42 = vor.u32 %v12743_v14, %v11474_v36  ;;  %v11522_v14 = vld [vmem:[%s15664_s16 + $0x140] sm:$0xf] }
 0xc03   :  { %7908 = vmatpush.bf16.msra.mxu1 %v11475_v42  ;;  %v12755_v42 = vld [vmem:[%s15664_s16 + $0x14c] sm:$0xf0] }
 0xc04   :  { %7059 = vmatpush.bf16.msrb.mxu3 %v11323_v23  ;;  %7089 = vmatpush.bf16.msra.mxu2 %v11007_v53  ;;  %v11458_v23 = vld [vmem:[%s15664_s16 + $0xc0] sm:$0xf]  ;;  %v12739_v53 = vld [vmem:[%s15664_s16 + $0xcc] sm:$0xf0] }
 0xc05   :  { %7098 = vmatpush.bf16.msrb.mxu0 %v11199_v27  ;;  %v11459_v56 = vor.u32 %v12739_v53, %v11458_v23  ;;  %v11263_v27 = vor.u32 %v12686_v63, %v11260_v48  ;;  %v11523_v63 = vor.u32 %v12755_v42, %v11522_v14  ;;  %v12713_v14 = vld [vmem:[%s15664_s16 + $0x4] sm:$0xf]  ;;  %v11364_v42 = vld [vmem:[%s15664_s16 + $0x10] sm:$0xf0] }
 0xc07   :  { %7909 = vmatpush.bf16.msra.mxu1 %v11459_v56  ;;  %v11506_v56 = vld [vmem:[%s15664_s16 + $0x120] sm:$0xf] }
 0xc08   :  { %7060 = vmatpush.bf16.msrb.mxu3 %v11307_v52  ;;  %7090 = vmatpush.bf16.msra.mxu2 %v10991_v45  ;;  %v11443_v52 = vor.u32 %v12735_v12, %v11442_v15  ;;  %v11426_v45 = vld [vmem:[%s15664_s16 + $0x80] sm:$0xf]  ;;  %v12799_v15 = vld [vmem:[%s15664_s16 + $0x2ac] sm:$0xf0]  ;;  %v12729_v12 = vld [vmem:[%s15664_s16 + $0x84] sm:$0xf] }
 0xc09   :  { %7099 = vmatpush.bf16.msrb.mxu0 %v11183_v57  ;;  %v12731_v57 = vld [vmem:[%s15664_s16 + $0x8c] sm:$0xf0] }
 0xc0a   :  { %v11427_v54 = vor.u32 %v12731_v57, %v11426_v45  ;;  %v11699_v45 = vor.u32 %v12799_v15, %v11698_v30  ;;  %v12839_v30 = vld [vmem:[%s15664_s16 + $0x3ec] sm:$0xf0] }
 0xc0b   :  { %7013 = vmatmul.bf16.vlgmr.msra.gmra.mxu3 %v15163_v33  ;;  %7091 = vmatmul.bf16.vlgmr.msra.gmra.mxu2 %v15061_v24  ;;  %v12650_v24 = vld [vmem:[%s15662_s11 + $0x20c] sm:$0xf] }
 0xc0c   :  { %7061 = vmatpush.bf16.msrb.mxu3 %v11291_v8  ;;  %v11119_v21 = vor.u32 %v12650_v24, %v11116_v1  ;;  %7910 = vmatpush.bf16.msra.mxu1 %v11443_v52  ;;  %v11411_v8 = vor.u32 %v12727_v61, %v11410_v31  ;;  %v11362_v24 = vld [vmem:[%s15664_s16] sm:$0xf]  ;;  %v12715_v1 = vld [vmem:[%s15664_s16 + $0xc] sm:$0xf0]  ;;  %v11428_v52 = vld [vmem:[%s15664_s16 + $0x90] sm:$0xf0] }
 0xc0d   :  { %7100 = vmatpush.bf16.msrb.mxu0 %v11167_v5  ;;  %v12775_v5 = vld [vmem:[%s15664_s16 + $0x1ec] sm:$0xf0]  ;;  %v11363_v16 = vor.u32 %v12715_v1, %v11362_v24  ;;  %v11431_v57 = vor.u32 %v12729_v12, %v11428_v52  ;;  %v11682_v61 = vld [vmem:[%s15664_s16 + $0x280] sm:$0xf]  ;;  %v12805_v52 = vld [vmem:[%s15664_s16 + $0x2e4] sm:$0xf] }
 0xc0e   :  { %v11603_v11 = vor.u32 %v12775_v5, %v11602_v62  ;;  %v12747_v31 = vld [vmem:[%s15664_s16 + $0x10c] sm:$0xf0] }
 0xc0f   :  { %v12795_v62 = vld [vmem:[%s15664_s16 + $0x28c] sm:$0xf0] }
 0xc10   :  { %7062 = vmatpush.bf16.msrb.mxu3 %v11275_v37  ;;  %7911 = vmatpush.bf16.msra.mxu1 %v11427_v54  ;;  %v11395_v37 = vor.u32 %v12723_v43, %v11394_v0  ;;  %v11490_v54 = vld [vmem:[%s15664_s16 + $0x100] sm:$0xf]  ;;  %v11683_v5 = vor.u32 %v12795_v62, %v11682_v61  ;;  %v11412_v0 = vld [vmem:[%s15664_s16 + $0x70] sm:$0xf0]  ;;  %v12773_v43 = vld [vmem:[%s15664_s16 + $0x1e4] sm:$0xf] }
 0xc11   :  { %7101 = vmatpush.bf16.msrb.mxu0 %v11151_v6  ;;  %7921 = vmatpush.bf16.msrb.mxu2 %v11603_v11  ;;  %v12771_v6 = vld [vmem:[%s15664_s16 + $0x1cc] sm:$0xf0]  ;;  %v12725_v11 = vld [vmem:[%s15664_s16 + $0x64] sm:$0xf] }
 0xc12   :  { %v12835_v61 = vld [vmem:[%s15664_s16 + $0x3cc] sm:$0xf0] }
 0xc14   :  { %7063 = vmatpush.bf16.msrb.mxu3 %v11259_v49  ;;  %7912 = vmatpush.bf16.msra.mxu1 %v11411_v8  ;;  %v11491_v8 = vor.u32 %v12747_v31, %v11490_v54  ;;  %v11842_v31 = vld [vmem:[%s15664_s16 + $0x3c0] sm:$0xf] }
 0xc15   :  { %7102 = vmatpush.bf16.msrb.mxu0 %v11135_v46  ;;  %v11379_v46 = vor.u32 %v12719_v7, %v11378_v59  ;;  %v11666_v59 = vld [vmem:[%s15664_s16 + $0x260] sm:$0xf]  ;;  %v12791_v7 = vld [vmem:[%s15664_s16 + $0x26c] sm:$0xf0] }
 0xc16   :  { %v11667_v4 = vor.u32 %v12791_v7, %v11666_v59  ;;  %v12749_v7 = vld [vmem:[%s15664_s16 + $0x124] sm:$0xf] }
 0xc18   :  { %7064 = vmatpush.bf16.msrb.mxu3 %v11243_v20  ;;  %7913 = vmatpush.bf16.msra.mxu1 %v11395_v37  ;;  %v12763_v20 = vld [vmem:[%s15664_s16 + $0x18c] sm:$0xf0]  ;;  %v11604_v37 = vld [vmem:[%s15664_s16 + $0x1f0] sm:$0xf0] }
 0xc19   :  { %7103 = vmatpush.bf16.msrb.mxu0 %v11119_v21  ;;  %v12741_v21 = vld [vmem:[%s15664_s16 + $0xe4] sm:$0xf]  ;;  %v11555_v44 = vor.u32 %v12763_v20, %v11554_v13  ;;  %v11588_v13 = vld [vmem:[%s15664_s16 + $0x1d0] sm:$0xf0]  ;;  %v11650_v20 = vld [vmem:[%s15664_s16 + $0x240] sm:$0xf] }
 0xc1b   :  { %7065 = vmatmul.bf16.vlgmr.msrb.gmra.mxu3 %v15163_v33 }
 0xc1c   :  { %7109 = vmatpush.bf16.msra.mxu3 %v11359_v9  ;;  %7104 = vmatmul.bf16.vlgmr.msrb.gmra.mxu0 %v15101_v60  ;;  %v11295_v60 = vor.u32 %v12694_v28, %v11292_v34  ;;  %v11476_v9 = vld [vmem:[%s15664_s16 + $0xf0] sm:$0xf0]  ;;  %v12737_v28 = vld [vmem:[%s15664_s16 + $0xc4] sm:$0xf] }
 0xc1d   :  { %7914 = vmatpush.bf16.msra.mxu1 %v11379_v46  ;;  %v11479_v41 = vor.u32 %v12741_v21, %v11476_v9  ;;  %v11460_v34 = vld [vmem:[%s15664_s16 + $0xd0] sm:$0xf0]  ;;  %v12721_v46 = vld [vmem:[%s15664_s16 + $0x44] sm:$0xf]  ;;  %v12787_v21 = vld [vmem:[%s15664_s16 + $0x24c] sm:$0xf0] }
 0xc1e   :  { %v11463_v36 = vor.u32 %v12737_v28, %v11460_v34  ;;  %v11399_v1 = vor.u32 %v12721_v46, %v11396_v35  ;;  %v11651_v9 = vor.u32 %v12787_v21, %v11650_v20  ;;  %v12783_v28 = vld [vmem:[%s15664_s16 + $0x22c] sm:$0xf0]  ;;  %v12797_v46 = vld [vmem:[%s15664_s16 + $0x2a4] sm:$0xf]  ;;  %v11810_v20 = vld [vmem:[%s15664_s16 + $0x380] sm:$0xf] }
 0xc1f   :  { %v12827_v21 = vld [vmem:[%s15664_s16 + $0x38c] sm:$0xf0] }
 0xc20   :  { %7110 = vmatpush.bf16.msra.mxu3 %v11343_v47  ;;  %v11538_v47 = vld [vmem:[%s15664_s16 + $0x160] sm:$0xf] }
 0xc21   :  { %7915 = vmatpush.bf16.msra.mxu1 %v11363_v16 }
 0xc24   :  { %7111 = vmatpush.bf16.msra.mxu3 %v11327_v29  ;;  %v11539_v29 = vor.u32 %v12759_v25, %v11538_v47  ;;  %v12765_v47 = vld [vmem:[%s15664_s16 + $0x1a4] sm:$0xf] }
 0xc25   :  { %7960 = vmatpush.bf16.msrb.mxu1 %v11479_v41  ;;  %v11380_v41 = vld [vmem:[%s15664_s16 + $0x30] sm:$0xf0] }
 0xc28   :  { %7112 = vmatpush.bf16.msra.mxu3 %v11311_v32  ;;  %v11731_v32 = vor.u32 %v12807_v3, %v11730_v51  ;;  %v11572_v51 = vld [vmem:[%s15664_s16 + $0x1b0] sm:$0xf0] }
 0xc29   :  { %7961 = vmatpush.bf16.msrb.mxu1 %v11463_v36  ;;  %v11575_v3 = vor.u32 %v12765_v47, %v11572_v51  ;;  %v11492_v47 = vld [vmem:[%s15664_s16 + $0x110] sm:$0xf0] }
 0xc2a   :  { %7934 = vmatpush.bf16.msra.mxu0 %v11731_v32  ;;  %v11634_v32 = vld [vmem:[%s15664_s16 + $0x220] sm:$0xf] }
 0xc2b   :  { %v11635_v36 = vor.u32 %v12783_v28, %v11634_v32 }
 0xc2c   :  { %7113 = vmatpush.bf16.msra.mxu3 %v11295_v60  ;;  %v11714_v60 = vld [vmem:[%s15664_s16 + $0x2c0] sm:$0xf] }
 0xc2d   :  { %v11715_v48 = vor.u32 %v12803_v40, %v11714_v60  ;;  %v12761_v60 = vld [vmem:[%s15664_s16 + $0x184] sm:$0xf] }
 0xc2f   :  { %7935 = vmatpush.bf16.msra.mxu0 %v11715_v48  ;;  %v11618_v48 = vld [vmem:[%s15664_s16 + $0x200] sm:$0xf] }
 0xc30   :  { %7114 = vmatpush.bf16.msra.mxu3 %v11279_v19  ;;  %v11444_v19 = vld [vmem:[%s15664_s16 + $0xb0] sm:$0xf0] }
 0xc31   :  { %v11447_v23 = vor.u32 %v12733_v17, %v11444_v19  ;;  %v11367_v17 = vor.u32 %v12713_v14, %v11364_v42  ;;  %v11556_v19 = vld [vmem:[%s15664_s16 + $0x190] sm:$0xf0]  ;;  %v12789_v42 = vld [vmem:[%s15664_s16 + $0x264] sm:$0xf] }
 0xc33   :  { %7962 = vmatpush.bf16.msrb.mxu1 %v11447_v23  ;;  %7936 = vmatpush.bf16.msra.mxu0 %v11699_v45  ;;  %v12779_v23 = vld [vmem:[%s15664_s16 + $0x20c] sm:$0xf0]  ;;  %v11732_v45 = vld [vmem:[%s15664_s16 + $0x2f0] sm:$0xf0] }
 0xc34   :  { %7115 = vmatpush.bf16.msra.mxu3 %v11263_v27  ;;  %v12751_v27 = vld [vmem:[%s15664_s16 + $0x12c] sm:$0xf0]  ;;  %v11735_v54 = vor.u32 %v12805_v52, %v11732_v45 }
 0xc35   :  { %v12815_v52 = vld [vmem:[%s15664_s16 + $0x32c] sm:$0xf0] }
 0xc37   :  { %7963 = vmatpush.bf16.msrb.mxu1 %v11431_v57  ;;  %7937 = vmatpush.bf16.msra.mxu0 %v11683_v5  ;;  %v12753_v5 = vld [vmem:[%s15664_s16 + $0x144] sm:$0xf] }
 0xc38   :  { %7116 = vmatpush.bf16.msra.mxu3 %v11247_v18  ;;  %v15234_v38 = vpop.f32.mrf.mxu1  ;;  %v11507_v18 = vor.u32 %v12751_v27, %v11506_v56  ;;  %v11858_v56 = vld [vmem:[%s15664_s16 + $0x3e0] sm:$0xf]  ;;  %v11619_v27 = vor.u32 %v12779_v23, %v11618_v48  ;;  %v12819_v23 = vld [vmem:[%s15664_s16 + $0x34c] sm:$0xf0] }
 0xc39   :  { %v11859_v15 = vor.u32 %v12839_v30, %v11858_v56  ;;  %v11778_v48 = vld [vmem:[%s15664_s16 + $0x340] sm:$0xf]  ;;  %v11652_v30 = vld [vmem:[%s15664_s16 + $0x250] sm:$0xf0] }
 0xc3a   :  { %v11779_v56 = vor.u32 %v12819_v23, %v11778_v48  ;;  %v11418_v23 = vld [vmem:[%s15664_s16 + $0x68] sm:$0xf] }
 0xc3b   :  { %7117 = vmatmul.bf16.vlgmr.msra.gmra.mxu3 %v15163_v33  ;;  %v11586_v33 = vld [vmem:[%s15664_s16 + $0x1c0] sm:$0xf]  ;;  %7938 = vmatpush.bf16.msra.mxu0 %v11667_v4  ;;  %v11508_v4 = vld [vmem:[%s15664_s16 + $0x130] sm:$0xf0] }
 0xc3c   :  { %v11587_v2 = vor.u32 %v12771_v6, %v11586_v33  ;;  %v11415_v33 = vor.u32 %v12725_v11, %v11412_v0  ;;  %7947 = vmatpush.bf16.msrb.mxu3 %v11859_v15  ;;  %v11524_v11 = vld [vmem:[%s15664_s16 + $0x150] sm:$0xf0]  ;;  %v12801_v0 = vld [vmem:[%s15664_s16 + $0x2c4] sm:$0xf]  ;;  %v11511_v35 = vor.u32 %v12749_v7, %v11508_v4 }
 0xc3e   :  { %7922 = vmatpush.bf16.msrb.mxu2 %v11587_v2  ;;  %v11607_v2 = vor.u32 %v12773_v43, %v11604_v37  ;;  %7964 = vmatpush.bf16.msrb.mxu1 %v11415_v33  ;;  %v11527_v43 = vor.u32 %v12753_v5, %v11524_v11  ;;  %v11716_v33 = vld [vmem:[%s15664_s16 + $0x2d0] sm:$0xf0]  ;;  %v12744_v5 = vld [vmem:[%s15664_s16 + $0xf4] sm:$0xf0] }
 0xc3f   :  { %7939 = vmatpush.bf16.msra.mxu0 %v11651_v9  ;;  %v11719_v37 = vor.u32 %v12801_v0, %v11716_v33  ;;  %v11746_v0 = vld [vmem:[%s15664_s16 + $0x300] sm:$0xf] }
 0xc40   :  { %v6925_v49 = vpop.f32.mrf.mxu1 }
 0xc42   :  { %7923 = vmatpush.bf16.msrb.mxu2 %v11571_v10  ;;  %v12769_v10 = vld [vmem:[%s15664_s16 + $0x1c4] sm:$0xf]  ;;  %7965 = vmatpush.bf16.msrb.mxu1 %v11399_v1 }
 0xc43   :  { %v11591_v16 = vor.u32 %v12769_v10, %v11588_v13  ;;  %7940 = vmatpush.bf16.msra.mxu0 %v11635_v36  ;;  %v11700_v10 = vld [vmem:[%s15664_s16 + $0x2b0] sm:$0xf0]  ;;  %v12823_v36 = vld [vmem:[%s15664_s16 + $0x36c] sm:$0xf0] }
 0xc44   :  { %v11703_v13 = vor.u32 %v12797_v46, %v11700_v10  ;;  %v11466_v46 = vld [vmem:[%s15664_s16 + $0xc8] sm:$0xf] }
 0xc46   :  { %7924 = vmatpush.bf16.msrb.mxu2 %v11555_v44  ;;  %v12717_v44 = vld [vmem:[%s15664_s16 + $0x24] sm:$0xf] }
 0xc47   :  { %v11383_v25 = vor.u32 %v12717_v44, %v11380_v41  ;;  %7941 = vmatpush.bf16.msra.mxu0 %v11619_v27  ;;  %v11811_v44 = vor.u32 %v12827_v21, %v11810_v20  ;;  %v12745_v41 = vld [vmem:[%s15664_s16 + $0x104] sm:$0xf] }
 0xc48   :  { %v15254_v22 = vpop.f32.mrf.mxu1  ;;  %v11495_v51 = vor.u32 %v12745_v41, %v11492_v47  ;;  %v12785_v27 = vld [vmem:[%s15664_s16 + $0x244] sm:$0xf]  ;;  %v11450_v41 = vld [vmem:[%s15664_s16 + $0xa8] sm:$0xf]  ;;  %v12736_v47 = vld [vmem:[%s15664_s16 + $0xb4] sm:$0xf0] }
 0xc49   :  { %7966 = vmatpush.bf16.msrb.mxu1 %v11383_v25  ;;  %v12793_v25 = vld [vmem:[%s15664_s16 + $0x284] sm:$0xf]  ;;  %v11655_v15 = vor.u32 %v12785_v27, %v11652_v30  ;;  %v12776_v30 = vld [vmem:[%s15664_s16 + $0x1f4] sm:$0xf0] }
 0xc4a   :  { %7925 = vmatpush.bf16.msrb.mxu2 %v11539_v29 }
 0xc4b   :  { %7986 = vmatpush.bf16.msrb.mxu0 %v11735_v54  ;;  %v12781_v54 = vld [vmem:[%s15664_s16 + $0x224] sm:$0xf] }
 0xc4d   :  { %7967 = vmatpush.bf16.msrb.mxu1 %v11367_v17 }
 0xc4e   :  { %v15264_v53 = vpop.f32.mrf.mxu2  ;;  %7926 = vmatpush.bf16.msrb.mxu2 %v11523_v63  ;;  %v11559_v63 = vor.u32 %v12761_v60, %v11556_v19  ;;  %v11668_v60 = vld [vmem:[%s15664_s16 + $0x270] sm:$0xf0] }
 0xc4f   :  { %7987 = vmatpush.bf16.msrb.mxu0 %v11719_v37  ;;  %v11671_v17 = vor.u32 %v12789_v42, %v11668_v60  ;;  %v12829_v42 = vld [vmem:[%s15664_s16 + $0x3a4] sm:$0xf]  ;;  %v11828_v60 = vld [vmem:[%s15664_s16 + $0x3b0] sm:$0xf0] }
 0xc50   :  { %v6977_v55 = vpop.f32.mrf.mxu1 }
 0xc51   :  { %v12757_v55 = vld [vmem:[%s15664_s16 + $0x164] sm:$0xf] }
 0xc52   :  { %7927 = vmatpush.bf16.msrb.mxu2 %v11507_v18  ;;  %v11540_v18 = vld [vmem:[%s15664_s16 + $0x170] sm:$0xf0] }
 0xc53   :  { %v11543_v12 = vor.u32 %v12757_v55, %v11540_v18  ;;  %7988 = vmatpush.bf16.msrb.mxu0 %v11703_v13  ;;  %v11860_v13 = vld [vmem:[%s15664_s16 + $0x3f0] sm:$0xf0] }
 0xc56   :  { %v6938_v6 = vpop.f32.mrf.mxu2  ;;  %7928 = vmatpush.bf16.msrb.mxu2 %v11491_v8  ;;  %v11843_v8 = vor.u32 %v12835_v61, %v11842_v31  ;;  %v11636_v31 = vld [vmem:[%s15664_s16 + $0x230] sm:$0xf0] }
 0xc57   :  { %v11826_v6 = vld [vmem:[%s15664_s16 + $0x3a0] sm:$0xf] }
 0xc58   :  { %v15282_v49 = vpop.f32.mrf.mxu0  ;;  %7948 = vmatpush.bf16.msrb.mxu3 %v11843_v8  ;;  %v11482_v8 = vld [vmem:[%s15664_s16 + $0xe8] sm:$0xf] }
 0xc59   :  { %v11483_v33 = vor.u32 %v12744_v5, %v11482_v8  ;;  %v11796_v8 = vld [vmem:[%s15664_s16 + $0x370] sm:$0xf0] }
 0xc5a   :  { %7973 = vmatpush.bf16.msra.mxu2 %v11607_v2  ;;  %v15287_v24 = vpop.f32.mrf.mxu1  ;;  %v12831_v2 = vld [vmem:[%s15664_s16 + $0x3ac] sm:$0xf0] }
 0xc5b   :  { %v11827_v59 = vor.u32 %v12831_v2, %v11826_v6  ;;  %v12777_v6 = vld [vmem:[%s15664_s16 + $0x204] sm:$0xf]  ;;  %v11620_v2 = vld [vmem:[%s15664_s16 + $0x210] sm:$0xf0] }
 0xc5c   :  { %v11623_v10 = vor.u32 %v12777_v6, %v11620_v2  ;;  %v12720_v6 = vld [vmem:[%s15664_s16 + $0x34] sm:$0xf0]  ;;  %v11578_v2 = vld [vmem:[%s15664_s16 + $0x1a8] sm:$0xf] }
 0xc5d   :  { %7949 = vmatpush.bf16.msrb.mxu3 %v11827_v59  ;;  %v12837_v59 = vld [vmem:[%s15664_s16 + $0x3e4] sm:$0xf] }
 0xc5e   :  { %7974 = vmatpush.bf16.msra.mxu2 %v11591_v16  ;;  %v15296_v29 = vpop.f32.mrf.mxu2  ;;  %v15329_v16 = vld [vmem:[%s15665_s18] sm:$0xf]  ;;  %v11863_v20 = vor.u32 %v12837_v59, %v11860_v13  ;;  %v12768_v59 = vld [vmem:[%s15664_s16 + $0x1b4] sm:$0xf0] }
 0xc5f   :  { %v6266_v28 = vperm.slane %v15329_v16, 0  ;;  %v6267_v21 = vperm.slane %v15329_v16, 1 }
 0xc60   :  { %v6951_v34 = vpop.f32.mrf.mxu0 }
 0xc61   :  { %7950 = vmatpush.bf16.msrb.mxu3 %v11811_v44  ;;  %v11794_v34 = vld [vmem:[%s15664_s16 + $0x360] sm:$0xf] }
 0xc62   :  { %7975 = vmatpush.bf16.msra.mxu2 %v11575_v3  ;;  %v7029_v40 = vpop.f32.mrf.mxu1  ;;  %v11684_v3 = vld [vmem:[%s15664_s16 + $0x290] sm:$0xf0]  ;;  %v11795_v14 = vor.u32 %v12823_v36, %v11794_v34  ;;  %v11434_v34 = vld [vmem:[%s15664_s16 + $0x88] sm:$0xf] }
 0xc63   :  { %v11687_v32 = vor.u32 %v12793_v25, %v11684_v3  ;;  %v12833_v25 = vld [vmem:[%s15664_s16 + $0x3c4] sm:$0xf] }
 0xc65   :  { %7989 = vmatpush.bf16.msrb.mxu0 %v11687_v32  ;;  %7951 = vmatpush.bf16.msrb.mxu3 %v11795_v14  ;;  %v6976_v32 = vadd.f32 %v15254_v22, %v6267_v21  ;;  %v12732_v14 = vld [vmem:[%s15664_s16 + $0x94] sm:$0xf0]  ;;  %v11579_v21 = vor.u32 %v12768_v59, %v11578_v2  ;;  %v11436_v2 = vld [vmem:[%s15664_s16 + $0x98] sm:$0xf0] }
 0xc66   :  { %7976 = vmatpush.bf16.msra.mxu2 %v11559_v63  ;;  %v6990_v57 = vpop.f32.mrf.mxu2  ;;  %v6924_v63 = vadd.f32 %v15234_v38, %v6266_v28  ;;  %v11762_v38 = vld [vmem:[%s15664_s16 + $0x320] sm:$0xf]  ;;  %v11451_v28 = vor.u32 %v12736_v47, %v11450_v41  ;;  %v11435_v48 = vor.u32 %v12732_v14, %v11434_v34  ;;  %v11562_v41 = vld [vmem:[%s15664_s16 + $0x188] sm:$0xf] }
 0xc67   :  { %v11763_v57 = vor.u32 %v12815_v52, %v11762_v38  ;;  %v6989_v36 = vadd.f32 %v15296_v29, %v6976_v32  ;;  %v11610_v29 = vld [vmem:[%s15664_s16 + $0x1e8] sm:$0xf]  ;;  %v11484_v32 = vld [vmem:[%s15664_s16 + $0xf8] sm:$0xf0] }
 0xc68   :  { %v15314_v62 = vpop.f32.mrf.mxu0  ;;  %v6937_v55 = vadd.f32 %v15264_v53, %v6924_v63  ;;  %v11611_v52 = vor.u32 %v12776_v30, %v11610_v29  ;;  %v12738_v29 = vld [vmem:[%s15664_s16 + $0xcc] sm:$0xf] }
 0xc69   :  { %7990 = vmatpush.bf16.msrb.mxu0 %v11671_v17  ;;  %7952 = vmatpush.bf16.msrb.mxu3 %v11779_v56  ;;  %v11831_v17 = vor.u32 %v12829_v42, %v11828_v60  ;;  %v12728_v56 = vld [vmem:[%s15664_s16 + $0x74] sm:$0xf0]  ;;  %v11546_v42 = vld [vmem:[%s15664_s16 + $0x168] sm:$0xf] }
 0xc6a   :  { %7977 = vmatpush.bf16.msra.mxu2 %v11543_v12  ;;  %v6950_v12 = vadd.f32 %v15282_v49, %v6937_v55  ;;  %v11639_v49 = vor.u32 %v12781_v54, %v11636_v31  ;;  %v12825_v55 = vld [vmem:[%s15664_s16 + $0x384] sm:$0xf]  ;;  %v11419_v38 = vor.u32 %v12728_v56, %v11418_v23  ;;  %v11594_v54 = vld [vmem:[%s15664_s16 + $0x1c8] sm:$0xf]  ;;  %v12760_v60 = vld [vmem:[%s15664_s16 + $0x174] sm:$0xf0] }
 0xc6b   :  { %v11748_v23 = vld [vmem:[%s15664_s16 + $0x310] sm:$0xf0]  ;;  %v12808_v56 = vld [vmem:[%s15664_s16 + $0x2f4] sm:$0xf0] }
 0xc6d   :  { %7991 = vmatpush.bf16.msrb.mxu0 %v11655_v15  ;;  %7953 = vmatpush.bf16.msrb.mxu3 %v11763_v57  ;;  %v11812_v15 = vld [vmem:[%s15664_s16 + $0x390] sm:$0xf0]  ;;  %v12724_v57 = vld [vmem:[%s15664_s16 + $0x54] sm:$0xf0] }
 0xc6e   :  { %7978 = vmatpush.bf16.msra.mxu2 %v11527_v43  ;;  %v15326_v1 = vpop.f32.mrf.mxu2  ;;  %v12811_v43 = vld [vmem:[%s15664_s16 + $0x30c] sm:$0xf0] }
 0xc6f   :  { %v11747_v37 = vor.u32 %v12811_v43, %v11746_v0 }
 0xc70   :  { %v7003_v9 = vpop.f32.mrf.mxu0 }
 0xc71   :  { %7992 = vmatpush.bf16.msrb.mxu0 %v11639_v49  ;;  %7954 = vmatpush.bf16.msrb.mxu3 %v11747_v37  ;;  %v6268_v49 = vperm.slane %v15329_v16, 2  ;;  %v11386_v37 = vld [vmem:[%s15664_s16 + $0x28] sm:$0xf] }
 0xc72   :  { %7979 = vmatpush.bf16.msra.mxu2 %v11511_v35  ;;  %v12740_v35 = vld [vmem:[%s15664_s16 + $0xd4] sm:$0xf0] }
 0xc73   :  { %v11467_v44 = vor.u32 %v12740_v35, %v11466_v46  ;;  %v11780_v46 = vld [vmem:[%s15664_s16 + $0x350] sm:$0xf0] }
 0xc75   :  { %7993 = vmatpush.bf16.msrb.mxu0 %v11623_v10  ;;  %7999 = vmatpush.bf16.msra.mxu3 %v11863_v20  ;;  %v7028_v10 = vadd.f32 %v15287_v24, %v6268_v49  ;;  %v11387_v20 = vor.u32 %v12720_v6, %v11386_v37  ;;  %v12742_v24 = vld [vmem:[%s15664_s16 + $0xec] sm:$0xf]  ;;  %v12800_v37 = vld [vmem:[%s15664_s16 + $0x2b4] sm:$0xf0] }
 0xc76   :  { %7980 = vmatpush.bf16.msra.mxu2 %v11495_v51  ;;  %v7042_v19 = vpop.f32.mrf.mxu2  ;;  %v11844_v51 = vld [vmem:[%s15664_s16 + $0x3d0] sm:$0xf0]  ;;  %v12730_v6 = vld [vmem:[%s15664_s16 + $0x8c] sm:$0xf] }
 0xc77   :  { %v11847_v3 = vor.u32 %v12833_v25, %v11844_v51  ;;  %v7002_v19 = vadd.f32 %v15314_v62, %v6989_v36  ;;  %v11815_v62 = vor.u32 %v12825_v55, %v11812_v15  ;;  %v7041_v47 = vadd.f32 %v15326_v1, %v7028_v10  ;;  %v12764_v25 = vld [vmem:[%s15664_s16 + $0x194] sm:$0xf0]  ;;  %v12813_v51 = vld [vmem:[%s15664_s16 + $0x324] sm:$0xf] }
 0xc78   :  { %v15342_v40 = vpop.f32.mrf.mxu1  ;;  %v11563_v1 = vor.u32 %v12764_v25, %v11562_v41  ;;  %v11547_v15 = vor.u32 %v12760_v60, %v11546_v42  ;;  %v12748_v10 = vld [vmem:[%s15664_s16 + $0x114] sm:$0xf0]  ;;  %v12774_v41 = vld [vmem:[%s15664_s16 + $0x1ec] sm:$0xf]  ;;  %v6269_v42 = vperm.slane %v15329_v16, 3 }
 0xc79   :  { %8000 = vmatpush.bf16.msra.mxu3 %v11847_v3  ;;  %v11764_v3 = vld [vmem:[%s15664_s16 + $0x330] sm:$0xf0]  ;;  %v12766_v16 = vld [vmem:[%s15664_s16 + $0x1ac] sm:$0xf] }
 0xc7b   :  { %v15350_v18 = vpop.f32.mrf.mxu0 }
 0xc7c   :  { %v7054_v34 = vadd.f32 %v15350_v18, %v7041_v47  ;;  %v11468_v18 = vld [vmem:[%s15664_s16 + $0xd8] sm:$0xf0] }
 0xc7d   :  { %8001 = vmatpush.bf16.msra.mxu3 %v11831_v17  ;;  %v11612_v47 = vld [vmem:[%s15664_s16 + $0x1f8] sm:$0xf0] }
 0xc7e   :  { %v6962_v45 = vpop.f32.mrf.mxu3 }
 0xc7f   :  { %v6963_v61 = vadd.f32 %v6962_v45, %v6950_v12  ;;  %v11402_v45 = vld [vmem:[%s15664_s16 + $0x48] sm:$0xf] }
 0xc80   :  { %v7081_v53 = vpop.f32.mrf.mxu1  ;;  %v11403_v43 = vor.u32 %v12724_v57, %v11402_v45  ;;  %v12756_v45 = vld [vmem:[%s15664_s16 + $0x154] sm:$0xf0]  ;;  %v11722_v57 = vld [vmem:[%s15664_s16 + $0x2c8] sm:$0xf] }
 0xc81   :  { %v7122_v11 = vmax.f32 %v6963_v61, 0.0  ;;  %v12772_v61 = vld [vmem:[%s15664_s16 + $0x1d4] sm:$0xf0]  ;;  %8002 = vmatpush.bf16.msra.mxu3 %v11815_v62  ;;  %v12821_v53 = vld [vmem:[%s15664_s16 + $0x364] sm:$0xf] }
 0xc82   :  { %v11799_v5 = vor.u32 %v12821_v53, %v11796_v8  ;;  %v11452_v53 = vld [vmem:[%s15664_s16 + $0xb8] sm:$0xf0] }
 0xc83   :  { %v15364_v7 = vpack.c.bf16 %v7122_v11, %v7122_v11  ;;  %v7055_v4 = vpop.f32.mrf.mxu0 }
 0xc84   :  { %v12817_v4 = vld [vmem:[%s15664_s16 + $0x344] sm:$0xf] }
 0xc85   :  { %7916 = vmatmul.bf16.vlgmr.msra.gmra.mxu1 %v15364_v7  ;;  %8003 = vmatpush.bf16.msra.mxu3 %v11799_v5  ;;  %v11783_v35 = vor.u32 %v12817_v4, %v11780_v46  ;;  %v11439_v46 = vor.u32 %v12730_v6, %v11436_v2  ;;  %v11740_v6 = vld [vmem:[%s15664_s16 + $0x2f8] sm:$0xf0] }
 0xc86   :  { %8012 = vmatpush.bf16.msra.mxu1 %v11483_v33  ;;  %v6964_v9 = vpop.f32.mrf.mxu3  ;;  %v11595_v33 = vor.u32 %v12772_v61, %v11594_v54  ;;  %v12804_v54 = vld [vmem:[%s15664_s16 + $0x2d4] sm:$0xf0]  ;;  %v12734_v61 = vld [vmem:[%s15664_s16 + $0xac] sm:$0xf] }
 0xc87   :  { %v11370_v9 = vld [vmem:[%s15664_s16 + $0x8] sm:$0xf]  ;;  %v11723_v49 = vor.u32 %v12804_v54, %v11722_v57  ;;  %v12762_v57 = vld [vmem:[%s15664_s16 + $0x18c] sm:$0xf] }
 0xc89   :  { %8004 = vmatpush.bf16.msra.mxu3 %v11783_v35  ;;  %v11498_v35 = vld [vmem:[%s15664_s16 + $0x108] sm:$0xf] }
 0xc8a   :  { %8013 = vmatpush.bf16.msra.mxu1 %v11467_v44  ;;  %v12716_v44 = vld [vmem:[%s15664_s16 + $0x14] sm:$0xf0]  ;;  %v11499_v25 = vor.u32 %v12748_v10, %v11498_v35 }
 0xc8b   :  { %v11371_v14 = vor.u32 %v12716_v44, %v11370_v9  ;;  %v12726_v9 = vld [vmem:[%s15664_s16 + $0x6c] sm:$0xf]  ;;  %v11420_v44 = vld [vmem:[%s15664_s16 + $0x78] sm:$0xf0] }
 0xc8e   :  { %8014 = vmatpush.bf16.msra.mxu1 %v11451_v28  ;;  %v7014_v63 = vpop.f32.mrf.mxu3  ;;  %v15382_v22 = vpop.f32.mrf.mxu2  ;;  %v11767_v28 = vor.u32 %v12813_v51, %v11764_v3  ;;  %v11423_v3 = vor.u32 %v12726_v9, %v11420_v44  ;;  %v12754_v9 = vld [vmem:[%s15664_s16 + $0x14c] sm:$0xf]  ;;  %v11532_v44 = vld [vmem:[%s15664_s16 + $0x158] sm:$0xf0] }
 0xc8f   :  { %v7015_v27 = vadd.f32 %v7014_v63, %v7002_v19  ;;  %v11487_v19 = vor.u32 %v12742_v24, %v11484_v32  ;;  %v11738_v63 = vld [vmem:[%s15664_s16 + $0x2e8] sm:$0xf]  ;;  %v11615_v32 = vor.u32 %v12774_v41, %v11612_v47  ;;  %v12802_v41 = vld [vmem:[%s15664_s16 + $0x2cc] sm:$0xf]  ;;  %v11724_v47 = vld [vmem:[%s15664_s16 + $0x2d8] sm:$0xf0] }
 0xc90   :  { %8005 = vmatpush.bf16.msra.mxu3 %v11767_v28  ;;  %v11674_v24 = vld [vmem:[%s15664_s16 + $0x268] sm:$0xf]  ;;  %v12792_v28 = vld [vmem:[%s15664_s16 + $0x274] sm:$0xf0] }
 0xc91   :  { %v7123_v12 = vmax.f32 %v7015_v27, 0.0  ;;  %v11675_v60 = vor.u32 %v12792_v28, %v11674_v24  ;;  %v11727_v24 = vor.u32 %v12802_v41, %v11724_v47  ;;  %v12832_v28 = vld [vmem:[%s15664_s16 + $0x3b4] sm:$0xf0]  ;;  %v11820_v41 = vld [vmem:[%s15664_s16 + $0x398] sm:$0xf0] }
 0xc92   :  { %8015 = vmatpush.bf16.msra.mxu1 %v11435_v48  ;;  %v12809_v48 = vld [vmem:[%s15664_s16 + $0x304] sm:$0xf] }
 0xc93   :  { %v15393_v31 = vpack.c.bf16 %v7123_v12, %v7123_v12  ;;  %v11751_v27 = vor.u32 %v12809_v48, %v11748_v23  ;;  %v11739_v12 = vor.u32 %v12808_v56, %v11738_v63  ;;  %v12788_v48 = vld [vmem:[%s15664_s16 + $0x254] sm:$0xf0]  ;;  %v12718_v23 = vld [vmem:[%s15664_s16 + $0x2c] sm:$0xf]  ;;  %v11388_v56 = vld [vmem:[%s15664_s16 + $0x38] sm:$0xf0] }
 0xc95   :  { %7929 = vmatmul.bf16.vlgmr.msrb.gmra.mxu2 %v15393_v31  ;;  %7968 = vmatmul.bf16.vlgmr.msrb.gmra.mxu1 %v15364_v7 }
 0xc96   :  { %8016 = vmatpush.bf16.msra.mxu1 %v11419_v38  ;;  %8025 = vmatpush.bf16.msrb.mxu2 %v11611_v52  ;;  %v7016_v11 = vpop.f32.mrf.mxu3  ;;  %v7094_v0 = vpop.f32.mrf.mxu2  ;;  %v11471_v38 = vor.u32 %v12738_v29, %v11468_v18  ;;  %v11530_v52 = vld [vmem:[%s15664_s16 + $0x148] sm:$0xf]  ;;  %v11580_v29 = vld [vmem:[%s15664_s16 + $0x1b8] sm:$0xf0]  ;;  %v7080_v18 = vadd.f32 %v15342_v40, %v6269_v42 }
 0xc97   :  { %8006 = vmatpush.bf16.msra.mxu3 %v11751_v27  ;;  %v11531_v5 = vor.u32 %v12756_v45, %v11530_v52  ;;  %v11455_v11 = vor.u32 %v12734_v61, %v11452_v53  ;;  %v11514_v0 = vld [vmem:[%s15664_s16 + $0x128] sm:$0xf]  ;;  %v12714_v52 = vld [vmem:[%s15664_s16 + $0xc] sm:$0xf]  ;;  %v11372_v45 = vld [vmem:[%s15664_s16 + $0x18] sm:$0xf0] }
 0xc98   :  { %v11564_v40 = vld [vmem:[%s15664_s16 + $0x198] sm:$0xf0] }
 0xc99   :  { %v15408_v13 = vpop.f32.mrf.mxu0 }
 0xc9a   :  { %8017 = vmatpush.bf16.msra.mxu1 %v11403_v43  ;;  %8026 = vmatpush.bf16.msrb.mxu2 %v11595_v33  ;;  %v12752_v43 = vld [vmem:[%s15664_s16 + $0x134] sm:$0xf0]  ;;  %v11706_v33 = vld [vmem:[%s15664_s16 + $0x2a8] sm:$0xf] }
 0xc9b   :  { %v11515_v59 = vor.u32 %v12752_v43, %v11514_v0  ;;  %v11707_v4 = vor.u32 %v12800_v37, %v11706_v33  ;;  %v11866_v0 = vld [vmem:[%s15664_s16 + $0x3e8] sm:$0xf]  ;;  %v12840_v43 = vld [vmem:[%s15664_s16 + $0x3f4] sm:$0xf0]  ;;  %v12758_v33 = vld [vmem:[%s15664_s16 + $0x16c] sm:$0xf] }
 0xc9c   :  { %v11548_v37 = vld [vmem:[%s15664_s16 + $0x178] sm:$0xf0] }
 0xc9d   :  { %v11551_v35 = vor.u32 %v12758_v33, %v11548_v37  ;;  %v12778_v33 = vld [vmem:[%s15664_s16 + $0x20c] sm:$0xf] }
 0xc9e   :  { %8018 = vmatpush.bf16.msra.mxu1 %v11387_v20  ;;  %8027 = vmatpush.bf16.msrb.mxu2 %v11579_v21  ;;  %v7066_v36 = vpop.f32.mrf.mxu3  ;;  %v11690_v20 = vld [vmem:[%s15664_s16 + $0x288] sm:$0xf]  ;;  %v12796_v21 = vld [vmem:[%s15664_s16 + $0x294] sm:$0xf0]  ;;  %v12838_v37 = vld [vmem:[%s15664_s16 + $0x3ec] sm:$0xf] }
 0xc9f   :  { %v7067_v17 = vadd.f32 %v7066_v36, %v7054_v34  ;;  %v11691_v51 = vor.u32 %v12796_v21, %v11690_v20  ;;  %v12722_v34 = vld [vmem:[%s15664_s16 + $0x4c] sm:$0xf]  ;;  %v11404_v36 = vld [vmem:[%s15664_s16 + $0x58] sm:$0xf0]  ;;  %v11850_v20 = vld [vmem:[%s15664_s16 + $0x3c8] sm:$0xf] }
 0xca0   :  { %v12836_v21 = vld [vmem:[%s15664_s16 + $0x3d4] sm:$0xf0] }
 0xca1   :  { %v7124_v30 = vmax.f32 %v7067_v17, 0.0  ;;  %v7107_v55 = vpop.f32.mrf.mxu0  ;;  %v11407_v17 = vor.u32 %v12722_v34, %v11404_v36  ;;  %v12750_v34 = vld [vmem:[%s15664_s16 + $0x12c] sm:$0xf]  ;;  %v11516_v36 = vld [vmem:[%s15664_s16 + $0x138] sm:$0xf0] }
 0xca2   :  { %8019 = vmatpush.bf16.msra.mxu1 %v11371_v14  ;;  %8028 = vmatpush.bf16.msrb.mxu2 %v11563_v1  ;;  %v12770_v14 = vld [vmem:[%s15664_s16 + $0x1cc] sm:$0xf]  ;;  %v11596_v1 = vld [vmem:[%s15664_s16 + $0x1d8] sm:$0xf0]  ;;  %v11642_v55 = vld [vmem:[%s15664_s16 + $0x228] sm:$0xf]  ;;  %v11519_v42 = vor.u32 %v12750_v34, %v11516_v36 }
 0xca3   :  { %v15428_v62 = vpack.c.bf16 %v7124_v30, %v7124_v30  ;;  %v11599_v63 = vor.u32 %v12770_v14, %v11596_v1  ;;  %v11391_v30 = vor.u32 %v12718_v23, %v11388_v56  ;;  %v12798_v14 = vld [vmem:[%s15664_s16 + $0x2ac] sm:$0xf]  ;;  %v11692_v56 = vld [vmem:[%s15664_s16 + $0x298] sm:$0xf0] }
 0xca4   :  { %v12794_v23 = vld [vmem:[%s15664_s16 + $0x28c] sm:$0xf]  ;;  %v11772_v34 = vld [vmem:[%s15664_s16 + $0x338] sm:$0xf0] }
 0xca5   :  { %7942 = vmatmul.bf16.vlgmr.msra.gmra.mxu0 %v15428_v62  ;;  %7981 = vmatmul.bf16.vlgmr.msra.gmra.mxu2 %v15393_v31 }
 0xca6   :  { %8064 = vmatpush.bf16.msrb.mxu1 %v11487_v19  ;;  %8029 = vmatpush.bf16.msrb.mxu2 %v11547_v15  ;;  %v7068_v8 = vpop.f32.mrf.mxu3  ;;  %v11658_v19 = vld [vmem:[%s15664_s16 + $0x248] sm:$0xf]  ;;  %v7093_v15 = vadd.f32 %v15382_v22, %v7080_v18  ;;  %v11375_v22 = vor.u32 %v12714_v52, %v11372_v45  ;;  %v11695_v18 = vor.u32 %v12794_v23, %v11692_v56  ;;  %v12820_v45 = vld [vmem:[%s15664_s16 + $0x354] sm:$0xf0] }
 0xca7   :  { %8020 = vmatmul.bf16.vlgmr.msra.gmra.mxu1 %v15364_v7  ;;  %8038 = vmatpush.bf16.msra.mxu0 %v11739_v12  ;;  %v11659_v27 = vor.u32 %v12788_v48, %v11658_v19  ;;  %v11583_v12 = vor.u32 %v12766_v16, %v11580_v29  ;;  %v11626_v8 = vld [vmem:[%s15664_s16 + $0x208] sm:$0xf]  ;;  %v12828_v19 = vld [vmem:[%s15664_s16 + $0x394] sm:$0xf0]  ;;  %v11500_v48 = vld [vmem:[%s15664_s16 + $0x118] sm:$0xf0] }
 0xca8   :  { %v7106_v54 = vadd.f32 %v15408_v13, %v7093_v15  ;;  %v12806_v13 = vld [vmem:[%s15664_s16 + $0x2ec] sm:$0xf]  ;;  %v11676_v15 = vld [vmem:[%s15664_s16 + $0x278] sm:$0xf0]  ;;  %v11786_v52 = vld [vmem:[%s15664_s16 + $0x348] sm:$0xf] }
 0xca9   :  { %v11743_v10 = vor.u32 %v12806_v13, %v11740_v6  ;;  %v11868_v13 = vld [vmem:[%s15664_s16 + $0x3f8] sm:$0xf0] }
 0xcaa   :  { %8065 = vmatpush.bf16.msrb.mxu1 %v11471_v38  ;;  %8030 = vmatpush.bf16.msrb.mxu2 %v11531_v5  ;;  %v12784_v38 = vld [vmem:[%s15664_s16 + $0x234] sm:$0xf0] }
 0xcab   :  { %8039 = vmatpush.bf16.msra.mxu0 %v11723_v49  ;;  %v11643_v53 = vor.u32 %v12784_v38, %v11642_v55  ;;  %v12780_v5 = vld [vmem:[%s15664_s16 + $0x214] sm:$0xf0]  ;;  %v12790_v55 = vld [vmem:[%s15664_s16 + $0x26c] sm:$0xf] }
 0xcac   :  { %v11679_v38 = vor.u32 %v12790_v55, %v11676_v15  ;;  %v12855_v55 = vld [vmem:[%s13377_s4 + $0x70] sm:$0xff] }
 0xcae   :  { %8066 = vmatpush.bf16.msrb.mxu1 %v11455_v11  ;;  %8031 = vmatpush.bf16.msrb.mxu2 %v11515_v59  ;;  %v11567_v11 = vor.u32 %v12762_v57, %v11564_v40  ;;  %v11627_v59 = vor.u32 %v12780_v5, %v11626_v8  ;;  %v12786_v57 = vld [vmem:[%s15664_s16 + $0x24c] sm:$0xf]  ;;  %v11660_v40 = vld [vmem:[%s15664_s16 + $0x258] sm:$0xf0] }
 0xcaf   :  { %8040 = vmatpush.bf16.msra.mxu0 %v11707_v4  ;;  %v11867_v4 = vor.u32 %v12840_v43, %v11866_v0  ;;  %v12782_v8 = vld [vmem:[%s15664_s16 + $0x22c] sm:$0xf]  ;;  %v11644_v5 = vld [vmem:[%s15664_s16 + $0x238] sm:$0xf0]  ;;  %v11754_v0 = vld [vmem:[%s15664_s16 + $0x308] sm:$0xf] }
 0xcb0   :  { %v12812_v43 = vld [vmem:[%s15664_s16 + $0x314] sm:$0xf0] }
 0xcb1   :  { %v11755_v6 = vor.u32 %v12812_v43, %v11754_v0  ;;  %v12862_v0 = vld [vmem:[%s13377_s4 + $0xa8] sm:$0xff] }
 0xcb2   :  { %8067 = vmatpush.bf16.msrb.mxu1 %v11439_v46  ;;  %8032 = vmatpush.bf16.msrb.mxu2 %v11499_v25 }
 0xcb3   :  { %8041 = vmatpush.bf16.msra.mxu0 %v11691_v51  ;;  %v11851_v51 = vor.u32 %v12836_v21, %v11850_v20  ;;  %v12830_v20 = vld [vmem:[%s15664_s16 + $0x3ac] sm:$0xf]  ;;  %v11836_v21 = vld [vmem:[%s15664_s16 + $0x3b8] sm:$0xf0] }
 0xcb5   :  { %7994 = vmatmul.bf16.vlgmr.msrb.gmra.mxu0 %v15428_v62  ;;  %8033 = vmatmul.bf16.vlgmr.msrb.gmra.mxu2 %v15393_v31 }
 0xcb6   :  { %8068 = vmatpush.bf16.msrb.mxu1 %v11423_v3  ;;  %8077 = vmatpush.bf16.msra.mxu2 %v11615_v32  ;;  %v11535_v3 = vor.u32 %v12754_v9, %v11532_v44  ;;  %v11834_v32 = vld [vmem:[%s15664_s16 + $0x3a8] sm:$0xf]  ;;  %v11839_v9 = vor.u32 %v12830_v20, %v11836_v21  ;;  %v12826_v44 = vld [vmem:[%s15664_s16 + $0x38c] sm:$0xf] }
 0xcb7   :  { %8042 = vmatpush.bf16.msra.mxu0 %v11675_v60  ;;  %v11835_v1 = vor.u32 %v12832_v28, %v11834_v32  ;;  %v11823_v47 = vor.u32 %v12826_v44, %v11820_v41  ;;  %v11788_v32 = vld [vmem:[%s15664_s16 + $0x358] sm:$0xf0] }
 0xcba   :  { %8069 = vmatpush.bf16.msrb.mxu1 %v11407_v17  ;;  %8078 = vmatpush.bf16.msra.mxu2 %v11599_v63  ;;  %v11818_v17 = vld [vmem:[%s15664_s16 + $0x388] sm:$0xf]  ;;  %v12746_v63 = vld [vmem:[%s15664_s16 + $0x10c] sm:$0xf] }
 0xcbb   :  { %8043 = vmatpush.bf16.msra.mxu0 %v11659_v27  ;;  %v11819_v16 = vor.u32 %v12828_v19, %v11818_v17  ;;  %v11503_v29 = vor.u32 %v12746_v63, %v11500_v48  ;;  %v11802_v27 = vld [vmem:[%s15664_s16 + $0x368] sm:$0xf]  ;;  %v12848_v17 = vld [vmem:[%s13377_s4 + $0x38] sm:$0xff]  ;;  %v12847_v63 = vld [vmem:[%s13377_s4 + $0x30] sm:$0xff] }
 0xcbc   :  { %v12846_v48 = vld [vmem:[%s13377_s4 + $0x28] sm:$0xff] }
 0xcbe   :  { %v7118_v61 = vpop.f32.mrf.mxu3  ;;  %8070 = vmatpush.bf16.msrb.mxu1 %v11391_v30  ;;  %8079 = vmatpush.bf16.msra.mxu2 %v11583_v12  ;;  %v12824_v30 = vld [vmem:[%s15664_s16 + $0x374] sm:$0xf0] }
 0xcbf   :  { %v7119_v49 = vadd.f32 %v7118_v61, %v7106_v54  ;;  %8044 = vmatpush.bf16.msra.mxu0 %v11643_v53  ;;  %v11803_v12 = vor.u32 %v12824_v30, %v11802_v27  ;;  %v11787_v54 = vor.u32 %v12820_v45, %v11786_v52  ;;  %v11663_v61 = vor.u32 %v12786_v57, %v11660_v40  ;;  %v11770_v53 = vld [vmem:[%s15664_s16 + $0x328] sm:$0xf]  ;;  %v12843_v30 = vld [vmem:[%s13377_s4 + $0x10] sm:$0xff]  ;;  %v12841_v57 = vld [vmem:[%s13377_s4] sm:$0xff] }
 0xcc0   :  { %v12853_v40 = vld [vmem:[%s13377_s4 + $0x60] sm:$0xff] }
 0xcc1   :  { %v7125_v2 = vmax.f32 %v7119_v49, 0.0 }
 0xcc2   :  { %8071 = vmatpush.bf16.msrb.mxu1 %v11375_v22  ;;  %8080 = vmatpush.bf16.msra.mxu2 %v11567_v11  ;;  %v12816_v22 = vld [vmem:[%s15664_s16 + $0x334] sm:$0xf0]  ;;  %v11647_v11 = vor.u32 %v12782_v8, %v11644_v5  ;;  %v12851_v8 = vld [vmem:[%s13377_s4 + $0x50] sm:$0xff] }
 0xcc3   :  { %v15485_v46 = vpack.c.bf16 %v7125_v2, %v7125_v2  ;;  %8045 = vmatpush.bf16.msra.mxu0 %v11627_v59  ;;  %v11771_v49 = vor.u32 %v12816_v22, %v11770_v53  ;;  %v11871_v59 = vor.u32 %v12838_v37, %v11868_v13  ;;  %v12864_v53 = vld [vmem:[%s13377_s4 + $0xb8] sm:$0xff]  ;;  %v12863_v5 = vld [vmem:[%s13377_s4 + $0xb0] sm:$0xff]  ;;  %v12849_v37 = vld [vmem:[%s13377_s4 + $0x40] sm:$0xff] }
 0xcc4   :  { %v12861_v13 = vld [vmem:[%s13377_s4 + $0xa0] sm:$0xff] }
 0xcc5   :  { %7955 = vmatmul.bf16.vlgmr.msrb.gmra.mxu3 %v15485_v46  ;;  %8072 = vmatmul.bf16.vlgmr.msrb.gmra.mxu1 %v15364_v7  ;;  %v11708_v7 = vld [vmem:[%s15664_s16 + $0x2b8] sm:$0xf0] }
 0xcc6   :  { %8051 = vmatpush.bf16.msrb.mxu3 %v11867_v4  ;;  %v7120_v25 = vpop.f32.mrf.mxu3  ;;  %8081 = vmatpush.bf16.msra.mxu2 %v11551_v35  ;;  %v11711_v60 = vor.u32 %v12798_v14, %v11708_v7  ;;  %v12834_v4 = vld [vmem:[%s15664_s16 + $0x3cc] sm:$0xf]  ;;  %v11852_v35 = vld [vmem:[%s15664_s16 + $0x3d8] sm:$0xf0] }
 0xcc7   :  { %8090 = vmatpush.bf16.msrb.mxu0 %v11743_v10  ;;  %v11855_v10 = vor.u32 %v12834_v4, %v11852_v35  ;;  %v12822_v25 = vld [vmem:[%s15664_s16 + $0x36c] sm:$0xf]  ;;  %v11756_v7 = vld [vmem:[%s15664_s16 + $0x318] sm:$0xf0]  ;;  %8388 = vmatpush.bf16.msra.mxu1 %v12848_v17 }
 0xcc8   :  { %8046 = vmatmul.bf16.vlgmr.msra.gmra.mxu0 %v15428_v62  ;;  %v12810_v14 = vld [vmem:[%s15664_s16 + $0x30c] sm:$0xf] }
 0xcca   :  { %8052 = vmatpush.bf16.msrb.mxu3 %v11851_v51  ;;  %8082 = vmatpush.bf16.msra.mxu2 %v11535_v3  ;;  %v11804_v51 = vld [vmem:[%s15664_s16 + $0x378] sm:$0xf0] }
 0xccb   :  { %8091 = vmatpush.bf16.msrb.mxu0 %v11727_v24  ;;  %v11807_v3 = vor.u32 %v12822_v25, %v11804_v51  ;;  %v12818_v24 = vld [vmem:[%s15664_s16 + $0x34c] sm:$0xf]  ;;  %8389 = vmatpush.bf16.msra.mxu1 %v12847_v63 }
 0xccc   :  { %v11791_v28 = vor.u32 %v12818_v24, %v11788_v32  ;;  %v12857_v24 = vld [vmem:[%s13377_s4 + $0x80] sm:$0xff]  ;;  %v12872_v32 = vld [vmem:[%s13377_s4 + $0xf8] sm:$0xff] }
 0xcce   :  { %8053 = vmatpush.bf16.msrb.mxu3 %v11835_v1  ;;  %8083 = vmatpush.bf16.msra.mxu2 %v11519_v42  ;;  %v11759_v1 = vor.u32 %v12810_v14, %v11756_v7  ;;  %v12871_v14 = vld [vmem:[%s13377_s4 + $0xf0] sm:$0xff] }
 0xccf   :  { %8092 = vmatpush.bf16.msrb.mxu0 %v11711_v60  ;;  %8390 = vmatpush.bf16.msra.mxu1 %v12846_v48 }
 0xcd2   :  { %8054 = vmatpush.bf16.msrb.mxu3 %v11819_v16  ;;  %8084 = vmatpush.bf16.msra.mxu2 %v11503_v29  ;;  %v12845_v16 = vld [vmem:[%s13377_s4 + $0x20] sm:$0xff]  ;;  %v12844_v29 = vld [vmem:[%s13377_s4 + $0x18] sm:$0xff] }
 0xcd3   :  { %8093 = vmatpush.bf16.msrb.mxu0 %v11695_v18  ;;  %8391 = vmatpush.bf16.msra.mxu1 %v12845_v16 }
 0xcd5   :  { %8007 = vmatmul.bf16.vlgmr.msra.gmra.mxu3 %v15485_v46  ;;  %8085 = vmatmul.bf16.vlgmr.msra.gmra.mxu2 %v15393_v31  ;;  %v11628_v31 = vld [vmem:[%s15664_s16 + $0x218] sm:$0xf0] }
 0xcd6   :  { %8055 = vmatpush.bf16.msrb.mxu3 %v11803_v12  ;;  %v11631_v2 = vor.u32 %v12778_v33, %v11628_v31  ;;  %v12842_v12 = vld [vmem:[%s13377_s4 + $0x8] sm:$0xff]  ;;  %v15568_v33 = vld [vmem:[%s13372_s27] sm:$0xf]  ;;  %s13163_s27 = smov [#allocation3]  }
 0xcd7   :  { %8094 = vmatpush.bf16.msrb.mxu0 %v11679_v38  ;;  %8392 = vmatpush.bf16.msra.mxu1 %v12844_v29  ;;  %v12854_v38 = vld [vmem:[%s13377_s4 + $0x68] sm:$0xff]  ;;  %v7262_v29 = vperm.slane %v15568_v33, 2 }
 0xcda   :  { %8056 = vmatpush.bf16.msrb.mxu3 %v11787_v54 }
 0xcdb   :  { %8095 = vmatpush.bf16.msrb.mxu0 %v11663_v61  ;;  %8393 = vmatpush.bf16.msra.mxu1 %v12843_v30  ;;  %v12852_v61 = vld [vmem:[%s13377_s4 + $0x58] sm:$0xff] }
 0xcde   :  { %8057 = vmatpush.bf16.msrb.mxu3 %v11771_v49 }
 0xcdf   :  { %8096 = vmatpush.bf16.msrb.mxu0 %v11647_v11  ;;  %8394 = vmatpush.bf16.msra.mxu1 %v12842_v12  ;;  %v12850_v11 = vld [vmem:[%s13377_s4 + $0x48] sm:$0xff] }
 0xce2   :  { %8058 = vmatpush.bf16.msrb.mxu3 %v11755_v6  ;;  %v7260_v6 = vperm.slane %v15568_v33, 0 }
 0xce3   :  { %8097 = vmatpush.bf16.msrb.mxu0 %v11631_v2  ;;  %8395 = vmatpush.bf16.msra.mxu1 %v12841_v57  ;;  %v12860_v2 = vld [vmem:[%s13377_s4 + $0x98] sm:$0xff]  ;;  %v12865_v57 = vld [vmem:[%s13377_s4 + $0xc0] sm:$0xff] }
 0xce5   :  { %8059 = vmatmul.bf16.vlgmr.msrb.gmra.mxu3 %v15485_v46 }
 0xce6   :  { %8103 = vmatpush.bf16.msra.mxu3 %v11871_v59  ;;  %8098 = vmatmul.bf16.vlgmr.msrb.gmra.mxu0 %v15428_v62  ;;  %v12814_v62 = vld [vmem:[%s15664_s16 + $0x32c] sm:$0xf] }
 0xce7   :  { %v11775_v36 = vor.u32 %v12814_v62, %v11772_v34  ;;  %8414 = vmatpush.bf16.msra.mxu0 %v12864_v53  ;;  %v7261_v62 = vperm.slane %v15568_v33, 1 }
 0xcea   :  { %8104 = vmatpush.bf16.msra.mxu3 %v11855_v10  ;;  %v12859_v10 = vld [vmem:[%s13377_s4 + $0x90] sm:$0xff] }
 0xceb   :  { %8415 = vmatpush.bf16.msra.mxu0 %v12863_v5 }
 0xcee   :  { %8105 = vmatpush.bf16.msra.mxu3 %v11839_v9 }
 0xcef   :  { %8416 = vmatpush.bf16.msra.mxu0 %v12862_v0 }
 0xcf2   :  { %8106 = vmatpush.bf16.msra.mxu3 %v11823_v47  ;;  %v12858_v47 = vld [vmem:[%s13377_s4 + $0x88] sm:$0xff] }
 0xcf3   :  { %8417 = vmatpush.bf16.msra.mxu0 %v12861_v13 }
 0xcf6   :  { %8107 = vmatpush.bf16.msra.mxu3 %v11807_v3 }
 0xcf7   :  { %8418 = vmatpush.bf16.msra.mxu0 %v12860_v2 }
 0xcfa   :  { %8108 = vmatpush.bf16.msra.mxu3 %v11791_v28 }
 0xcfb   :  { %8419 = vmatpush.bf16.msra.mxu0 %v12859_v10  ;;  %v13090_v10 = vld [vmem:[%s13382_s12] ss:$0 sm:$0xff] }
 0xcfe   :  { %8109 = vmatpush.bf16.msra.mxu3 %v11775_v36 }
 0xcff   :  { %8420 = vmatpush.bf16.msra.mxu0 %v12858_v47 }
 0xd02   :  { %8110 = vmatpush.bf16.msra.mxu3 %v11759_v1  ;;  %v7917_v42 = vpop.f32.mrf.mxu1 }
 0xd03   :  { %v7918_v4 = vadd.f32 %v7917_v42, %v7260_v6  ;;  %8421 = vmatpush.bf16.msra.mxu0 %v12857_v24 }
 0xd05   :  { %8111 = vmatmul.bf16.vlgmr.msra.gmra.mxu3 %v15485_v46  ;;  %v12856_v46 = vld [vmem:[%s13377_s4 + $0x78] sm:$0xff] }
 0xd06   :  { %8401 = vmatpush.bf16.msrb.mxu2 %v12856_v46  ;;  %8427 = vmatpush.bf16.msrb.mxu3 %v12872_v32  ;;  %v12867_v46 = vld [vmem:[%s13377_s4 + $0xd0] sm:$0xff] }
 0xd0a   :  { %v7919_v60 = vpop.f32.mrf.mxu1  ;;  %8402 = vmatpush.bf16.msrb.mxu2 %v12855_v55  ;;  %8428 = vmatpush.bf16.msrb.mxu3 %v12871_v14 }
 0xd0b   :  { %v12869_v60 = vld [vmem:[%s13377_s4 + $0xe0] sm:$0xff] }
 0xd0e   :  { %8403 = vmatpush.bf16.msrb.mxu2 %v12854_v38  ;;  %v12866_v38 = vld [vmem:[%s13377_s4 + $0xc8] sm:$0xff] }
 0xd12   :  { %v15546_v19 = vpop.f32.mrf.mxu1  ;;  %8404 = vmatpush.bf16.msrb.mxu2 %v12853_v40 }
 0xd13   :  { %v7970_v7 = vadd.f32 %v15546_v19, %v7261_v62 }
 0xd16   :  { %8405 = vmatpush.bf16.msrb.mxu2 %v12852_v61 }
 0xd18   :  { %v7930_v23 = vpop.f32.mrf.mxu2 }
 0xd19   :  { %v7931_v20 = vadd.f32 %v7930_v23, %v7918_v4 }
 0xd1a   :  { %v7971_v56 = vpop.f32.mrf.mxu1  ;;  %8406 = vmatpush.bf16.msrb.mxu2 %v12851_v8  ;;  %v7263_v8 = vperm.slane %v15568_v33, 3 }
 0xd1b   :  { %v12868_v56 = vld [vmem:[%s13377_s4 + $0xd8] sm:$0xff] }
 0xd1e   :  { %8407 = vmatpush.bf16.msrb.mxu2 %v12850_v11 }
 0xd20   :  { %v7932_v18 = vpop.f32.mrf.mxu2 }
 0xd22   :  { %v7943_v27 = vpop.f32.mrf.mxu0  ;;  %8408 = vmatpush.bf16.msrb.mxu2 %v12849_v37 }
 0xd23   :  { %v7944_v9 = vadd.f32 %v7943_v27, %v7931_v20 }
 0xd24   :  { %v15555_v15 = vpop.f32.mrf.mxu1 }
 0xd25   :  { %v8022_v30 = vadd.f32 %v15555_v15, %v7262_v29 }
 0xd28   :  { %v7982_v52 = vpop.f32.mrf.mxu2 }
 0xd29   :  { %v7983_v1 = vadd.f32 %v7982_v52, %v7970_v7 }
 0xd2a   :  { %v7945_v45 = vpop.f32.mrf.mxu0 }
 0xd2c   :  { %v8023_v54 = vpop.f32.mrf.mxu1 }
 0xd30   :  { %v7984_v22 = vpop.f32.mrf.mxu2 }
 0xd32   :  { %v7995_v49 = vpop.f32.mrf.mxu0 }
 0xd33   :  { %v7996_v42 = vadd.f32 %v7995_v49, %v7983_v1 }
 0xd38   :  { %v8034_v43 = vpop.f32.mrf.mxu2 }
 0xd39   :  { %v8035_v12 = vadd.f32 %v8034_v43, %v8022_v30 }
 0xd3a   :  { %v7997_v31 = vpop.f32.mrf.mxu0 }
 0xd40   :  { %v8036_v35 = vpop.f32.mrf.mxu2 }
 0xd42   :  { %v15574_v59 = vpop.f32.mrf.mxu1 }
 0xd43   :  { %v8074_v15 = vadd.f32 %v15574_v59, %v7263_v8 }
 0xd45   :  { %v8047_v21 = vpop.f32.mrf.mxu0 }
 0xd46   :  { %v8048_v52 = vadd.f32 %v8047_v21, %v8035_v12 }
 0xd48   :  { %v7956_v44 = vpop.f32.mrf.mxu3 }
 0xd49   :  { %v7957_v41 = vadd.f32 %v7956_v44, %v7944_v9 }
 0xd4a   :  { %v8075_v25 = vpop.f32.mrf.mxu1 }
 0xd4b   :  { %v8116_v51 = vadd.f32 %v7957_v41, %v15021_v50  ;;  %v12870_v50 = vld [vmem:[%s13377_s4 + $0xe8] sm:$0xff]  ;;  %s8447_s4 = sshll.u32 %s13163_s27, 4  ;;  %s8448_s4 = int_to_ptr.vmem [resolvable:$true] %s8447_s4 }
 0xd4c   :  { %8429 = vmatpush.bf16.msrb.mxu3 %v12870_v50 }
 0xd4d   :  { %v8120_v3 = vmax.f32 %v8116_v51, 0.0  ;;  %v8049_v28 = vpop.f32.mrf.mxu0 }
 0xd4f   :  { %v8124_v34 = vpack.c.bf16 %v8120_v3, %v8120_v3 }
 0xd50   :  { %v7958_v36 = vpop.f32.mrf.mxu3  ;;  %8430 = vmatpush.bf16.msrb.mxu3 %v12869_v60 }
 0xd51   :  { %8396 = vmatmul.bf16.vlgmr.msra.gmra.mxu1 %v8124_v34 }
 0xd54   :  { %8431 = vmatpush.bf16.msrb.mxu3 %v12868_v56 }
 0xd58   :  { %v8008_v17 = vpop.f32.mrf.mxu3  ;;  %v8086_v48 = vpop.f32.mrf.mxu2  ;;  %8432 = vmatpush.bf16.msrb.mxu3 %v12867_v46 }
 0xd59   :  { %v8009_v63 = vadd.f32 %v8008_v17, %v7996_v42  ;;  %v8087_v5 = vadd.f32 %v8086_v48, %v8074_v15 }
 0xd5b   :  { %v8117_v23 = vadd.f32 %v8009_v63, %v15054_v39 }
 0xd5c   :  { %8433 = vmatpush.bf16.msrb.mxu3 %v12866_v38 }
 0xd5d   :  { %v8121_v16 = vmax.f32 %v8117_v23, 0.0 }
 0xd5f   :  { %v8125_v19 = vpack.c.bf16 %v8121_v16, %v8121_v16 }
 0xd60   :  { %v8010_v18 = vpop.f32.mrf.mxu3  ;;  %v8088_v27 = vpop.f32.mrf.mxu2  ;;  %8434 = vmatpush.bf16.msrb.mxu3 %v12865_v57 }
 0xd61   :  { %8409 = vmatmul.bf16.vlgmr.msrb.gmra.mxu2 %v8125_v19 }
 0xd63   :  { %v8099_v55 = vpop.f32.mrf.mxu0 }
 0xd64   :  { %v8100_v49 = vadd.f32 %v8099_v55, %v8087_v5 }
 0xd68   :  { %v8060_v39 = vpop.f32.mrf.mxu3 }
 0xd69   :  { %v8061_v45 = vadd.f32 %v8060_v39, %v8048_v52 }
 0xd6b   :  { %v8118_v40 = vadd.f32 %v8061_v45, %v15097_v58  ;;  %v8101_v54 = vpop.f32.mrf.mxu0 }
 0xd6d   :  { %v8122_v61 = vmax.f32 %v8118_v40, 0.0 }
 0xd6f   :  { %v8126_v53 = vpack.c.bf16 %v8122_v61, %v8122_v61 }
 0xd70   :  { %v8062_v22 = vpop.f32.mrf.mxu3 }
 0xd71   :  { %8422 = vmatmul.bf16.vlgmr.msra.gmra.mxu0 %v8126_v53 }
 0xd88   :  { %v8112_v11 = vpop.f32.mrf.mxu3 }
 0xd89   :  { %v8113_v0 = vadd.f32 %v8112_v11, %v8100_v49 }
 0xd8b   :  { %v8119_v43 = vadd.f32 %v8113_v0, %v15158_v26 }
 0xd8d   :  { %v8123_v31 = vmax.f32 %v8119_v43, 0.0 }
 0xd8f   :  { %v8127_v58 = vpack.c.bf16 %v8123_v31, %v8123_v31 }
 0xd90   :  { %v8114_v37 = vpop.f32.mrf.mxu3 }
 0xd91   :  { %8435 = vmatmul.bf16.vlgmr.msrb.gmra.mxu3 %v8127_v58 }
 0xdce   :  { %v8397_v13 = vpop.f32.mrf.mxu1 }
 0xdcf   :  { %v8398_v59 = vadd.f32 %v13090_v10, %v8397_v13 }
 0xdd6   :  { %v8399_v6 = vpop.f32.mrf.mxu1 }
 0xde4   :  { %v8410_v2 = vpop.f32.mrf.mxu2 }
 0xde5   :  { %v8411_v20 = vadd.f32 %v8410_v2, %v8398_v59 }
 0xdec   :  { %v8412_v4 = vpop.f32.mrf.mxu2 }
 0xdee   :  { %v8423_v35 = vpop.f32.mrf.mxu0 }
 0xdef   :  { %v8424_v26 = vadd.f32 %v8423_v35, %v8411_v20 }
 0xdf6   :  { %v8425_v33 = vpop.f32.mrf.mxu0 }
 0xe14   :  { %v8436_v21 = vpop.f32.mrf.mxu3 }
 0xe15   :  { %v8437_v9 = vadd.f32 %v8436_v21, %v8424_v26 }
 0xe17   :  { %8441 = vst.msk [vmem:[#allocation3] sm:$0x3] %vm8440_vm15, %v8437_v9 }
 0xe18   :  { %13114 = shalt.err (!%p13111_p4)
}
 0xe19   :  { %8452 = dma.vmem_to_hbm [thread:$0]  %s8448_s4, 32, %s8450_s0, [#allocation4]  }
 0xe1c   :  { %v8438_v44 = vpop.f32.mrf.mxu3 }
 0xe1d   :  { %13115 = dma.done.wait [#allocation4], 32  }
 0xe1e   :  { %13116 = vsyncadd [#allocation4], 4294967264 }
 0xe1f   :  { %8457 = vsyncpa [#allocation4], 1 }

</bundles_post_ra>
